<compile_context>
chip_gen: v5e
topology: v5e:2x2
jax: 0.10.0
libtpu: 0.0.40
codegen_flags: <defaults>
</compile_context>

<pallas_src>
import functools
import math

import jax
import jax.numpy as jnp
import numpy as np
from jax.experimental import pallas as pl
from jax.experimental.pallas import tpu as pltpu


# ----------------------------------------------------------------------------
# Pallas kernel
# ----------------------------------------------------------------------------
def attention_kernel(x_ref, wqkv_ref, bqkv_ref, wo_ref, bo_ref, o_ref, *,
                     batch, seq, num_heads, head_dim):
    """Fused MHA forward for all batch elements in one invocation.

    x_ref:    (B*N, H)   flattened tokens
    wqkv_ref: (H, 3*H)   [Wq.T | Wk.T | Wv.T]
    bqkv_ref: (1, 3*H)   [bq | bk | bv]
    wo_ref:   (H, H)     Wo.T
    bo_ref:   (1, H)
    o_ref:    (B*N, H)
    """
    hidden = num_heads * head_dim
    x = x_ref[...]

    # One fused QKV projection over all B*N tokens (fills the MXU row dim).
    qkv = (jnp.dot(x, wqkv_ref[...], preferred_element_type=jnp.float32)
           + bqkv_ref[...])                                    # (B*N, 3H)

    wo = wo_ref[...]
    bo = bo_ref[...]
    scale = 1.0 / math.sqrt(head_dim)

    # Attention only couples tokens within a batch element -> static loop over B.
    for b in range(batch):
        r0 = b * seq
        out_b = jnp.zeros((seq, hidden), jnp.float32)
        for h in range(num_heads):
            c = h * head_dim
            qh = qkv[r0:r0 + seq, c:c + head_dim]                           # (N, hd)
            kh = qkv[r0:r0 + seq, hidden + c:hidden + c + head_dim]         # (N, hd)
            vh = qkv[r0:r0 + seq, 2 * hidden + c:2 * hidden + c + head_dim] # (N, hd)

            scores = jax.lax.dot_general(
                qh, kh, (((1,), (1,)), ((), ())),
                preferred_element_type=jnp.float32) * scale                 # (N, N)
            scores = scores - jnp.max(scores, axis=-1, keepdims=True)
            p = jnp.exp(scores)
            p = p * pl.reciprocal(jnp.sum(p, axis=-1, keepdims=True),
                                  approx=True)                              # softmax
            # TODO(synk): attn_dropout would act on `p` here (identity in eval).
            ctx = jnp.dot(p, vh, preferred_element_type=jnp.float32)        # (N, hd)
            # Fold this head straight into the output projection: no lane concat.
            out_b = out_b + jnp.dot(ctx, wo[c:c + head_dim, :],
                                    preferred_element_type=jnp.float32)
        o_ref[r0:r0 + seq, :] = (out_b + bo).astype(o_ref.dtype)


# ----------------------------------------------------------------------------
# Wrapper (glue)
# ----------------------------------------------------------------------------
def attention_forward(hidden_states, params, num_heads):
    """hidden_states: (B, N, H) -> (B, N, H), matching Attention.forward."""
    B, N, H = hidden_states.shape
    head_dim = H // num_heads

    # PyTorch nn.Linear: y = x @ W.T + b, with W of shape (out, in).
    # Fuse the three projections into one (H, 3H) weight / (1, 3H) bias.
    w_qkv = jnp.concatenate(
        [params["wq"].T, params["wk"].T, params["wv"].T], axis=1)   # (H, 3H)
    b_qkv = jnp.concatenate(
        [params["bq"], params["bk"], params["bv"]], axis=0)[None, :]  # (1, 3H)
    w_o = params["wo"].T                                             # (H, H)
    b_o = params["bo"][None, :]                                      # (1, H)

    x_flat = hidden_states.reshape(B * N, H)

    kernel = functools.partial(
        attention_kernel, batch=B, seq=N, num_heads=num_heads, head_dim=head_dim)

    out_flat = pl.pallas_call(
        kernel,
        out_shape=jax.ShapeDtypeStruct((B * N, H), hidden_states.dtype),
        in_specs=[pl.BlockSpec(memory_space=pltpu.MemorySpace.VMEM)] * 5,
        out_specs=pl.BlockSpec(memory_space=pltpu.MemorySpace.VMEM),
        compiler_params=pltpu.CompilerParams(vmem_limit_bytes=32 * 1024 * 1024),
    )(x_flat, w_qkv, b_qkv, w_o, b_o)

    return out_flat.reshape(B, N, H)


# ----------------------------------------------------------------------------
# Pure-JAX reference (mirrors the PyTorch forward, eval mode)
# ----------------------------------------------------------------------------
def reference_attention(hidden_states, params, num_heads):
    B, N, H = hidden_states.shape
    hd = H // num_heads

    q = hidden_states @ params["wq"].T + params["bq"]
    k = hidden_states @ params["wk"].T + params["bk"]
    v = hidden_states @ params["wv"].T + params["bv"]

    def split_heads(t):
        return t.reshape(B, N, num_heads, hd).transpose(0, 2, 1, 3)

    q, k, v = split_heads(q), split_heads(k), split_heads(v)
    scores = jnp.einsum("bhnd,bhmd->bhnm", q, k) / math.sqrt(hd)
    probs = jax.nn.softmax(scores, axis=-1)
    ctx = jnp.einsum("bhnm,bhmd->bhnd", probs, v)
    ctx = ctx.transpose(0, 2, 1, 3).reshape(B, N, H)
    return ctx @ params["wo"].T + params["bo"]


# ----------------------------------------------------------------------------
# Deterministic parameter init (shapes follow the PyTorch module __init__)
# ----------------------------------------------------------------------------
def init_params(key, hidden):
    ks = jax.random.split(key, 8)

    def nrm(k, shape, scale=0.05):
        return (scale * jax.random.normal(k, shape)).astype(jnp.float32)

    return {
        # nn.Linear weights are (out_features, in_features)
        "wq": nrm(ks[0], (hidden, hidden)), "bq": nrm(ks[1], (hidden,)),
        "wk": nrm(ks[2], (hidden, hidden)), "bk": nrm(ks[3], (hidden,)),
        "wv": nrm(ks[4], (hidden, hidden)), "bv": nrm(ks[5], (hidden,)),
        "wo": nrm(ks[6], (hidden, hidden)), "bo": nrm(ks[7], (hidden,)),
    }


# ----------------------------------------------------------------------------
if __name__ == "__main__":
    B, N, hidden, num_heads = 2, 64, 32, 8   # head_dim = 4, as in the config

    root = jax.random.PRNGKey(0)
    k_params, k_x = jax.random.split(root)
    params = init_params(k_params, hidden)
    x = jax.random.normal(k_x, (B, N, hidden), jnp.float32)

    out = attention_forward(x, params, num_heads)
    out = jax.block_until_ready(out)

    ref = reference_attention(x, params, num_heads)
    # rtol slightly widened to accommodate the approx (EUP) reciprocal in softmax.
    np.testing.assert_allclose(np.asarray(out), np.asarray(ref),
                               rtol=2e-3, atol=5e-4)
    assert out.shape == (B, N, hidden)
    print("KERNEL_OK")
</pallas_src>

<mosaic_0001>
module attributes {stable_mosaic.version = 11 : i64} {
  func.func @attention_kernel(%arg0: memref<128x32xf32, #tpu.memory_space<vmem>>, %arg1: memref<32x96xf32, #tpu.memory_space<vmem>>, %arg2: memref<1x96xf32, #tpu.memory_space<vmem>>, %arg3: memref<32x32xf32, #tpu.memory_space<vmem>>, %arg4: memref<1x32xf32, #tpu.memory_space<vmem>>, %arg5: memref<128x32xf32, #tpu.memory_space<vmem>>) attributes {dimension_semantics = [], scalar_prefetch = 0 : i64, scratch_operands = 0 : i64, tpu.core_type = #tpu.core_type<tc>} {
    %c0 = arith.constant 0 : index
    %c0_0 = arith.constant 0 : index
    %0 = vector.load %arg0[%c0, %c0_0] : memref<128x32xf32, #tpu.memory_space<vmem>>, vector<128x32xf32>
    %c0_1 = arith.constant 0 : index
    %c0_2 = arith.constant 0 : index
    %1 = vector.load %arg1[%c0_1, %c0_2] : memref<32x96xf32, #tpu.memory_space<vmem>>, vector<32x96xf32>
    %cst = arith.constant dense<0.000000e+00> : vector<128x96xf32>
    %2 = tpu.matmul %0, %1, %cst {dimension_numbers = #tpu.dot_dimension_numbers<[1], [0], [0], [1], [0, 0, 1, 1], [], []>} : vector<128x32xf32>, vector<32x96xf32>, vector<128x96xf32> -> vector<128x96xf32>
    %c0_3 = arith.constant 0 : index
    %c0_4 = arith.constant 0 : index
    %3 = vector.load %arg2[%c0_3, %c0_4] : memref<1x96xf32, #tpu.memory_space<vmem>>, vector<1x96xf32>
    %4 = vector.broadcast %3 : vector<1x96xf32> to vector<128x96xf32>
    %5 = arith.addf %2, %4 : vector<128x96xf32>
    %c0_5 = arith.constant 0 : index
    %c0_6 = arith.constant 0 : index
    %6 = vector.load %arg3[%c0_5, %c0_6] : memref<32x32xf32, #tpu.memory_space<vmem>>, vector<32x32xf32>
    %c0_7 = arith.constant 0 : index
    %c0_8 = arith.constant 0 : index
    %7 = vector.load %arg4[%c0_7, %c0_8] : memref<1x32xf32, #tpu.memory_space<vmem>>, vector<1x32xf32>
    %cst_9 = arith.constant 0.000000e+00 : f32
    %8 = vector.broadcast %cst_9 : f32 to vector<64x32xf32>
    %9 = vector.extract_strided_slice %5 {offsets = [0, 0], sizes = [64, 4], strides = [1, 1]} : vector<128x96xf32> to vector<64x4xf32>
    %10 = vector.extract_strided_slice %5 {offsets = [0, 32], sizes = [64, 4], strides = [1, 1]} : vector<128x96xf32> to vector<64x4xf32>
    %11 = vector.extract_strided_slice %5 {offsets = [0, 64], sizes = [64, 4], strides = [1, 1]} : vector<128x96xf32> to vector<64x4xf32>
    %cst_10 = arith.constant dense<0.000000e+00> : vector<64x64xf32>
    %12 = tpu.matmul %9, %10, %cst_10 {dimension_numbers = #tpu.dot_dimension_numbers<[1], [1], [0], [0], [0, 0, 1, 0], [], []>} : vector<64x4xf32>, vector<64x4xf32>, vector<64x64xf32> -> vector<64x64xf32>
    %cst_11 = arith.constant 5.000000e-01 : f32
    %13 = vector.broadcast %cst_11 : f32 to vector<64x64xf32>
    %14 = arith.mulf %12, %13 : vector<64x64xf32>
    %cst_12 = arith.constant dense<0xFF800000> : vector<64xf32>
    %15 = vector.multi_reduction <maximumf>, %14, %cst_12 [1] : vector<64x64xf32> to vector<64xf32>
    %16 = vector.shape_cast %15 : vector<64xf32> to vector<64x1xf32>
    %17 = vector.broadcast %16 : vector<64x1xf32> to vector<64x64xf32>
    %18 = arith.subf %14, %17 : vector<64x64xf32>
    %19 = math.exp %18 : vector<64x64xf32>
    %cst_13 = arith.constant dense<0.000000e+00> : vector<64xf32>
    %20 = vector.multi_reduction <add>, %19, %cst_13 [1] : vector<64x64xf32> to vector<64xf32>
    %21 = vector.shape_cast %20 : vector<64xf32> to vector<64x1xf32>
    %22 = tpu.reciprocal %21 {approx = true} : vector<64x1xf32> -> vector<64x1xf32>
    %23 = vector.broadcast %22 : vector<64x1xf32> to vector<64x64xf32>
    %24 = arith.mulf %19, %23 : vector<64x64xf32>
    %cst_14 = arith.constant dense<0.000000e+00> : vector<64x4xf32>
    %25 = tpu.matmul %24, %11, %cst_14 {dimension_numbers = #tpu.dot_dimension_numbers<[1], [0], [0], [1], [0, 0, 1, 1], [], []>} : vector<64x64xf32>, vector<64x4xf32>, vector<64x4xf32> -> vector<64x4xf32>
    %26 = vector.extract_strided_slice %6 {offsets = [0, 0], sizes = [4, 32], strides = [1, 1]} : vector<32x32xf32> to vector<4x32xf32>
    %cst_15 = arith.constant dense<0.000000e+00> : vector<64x32xf32>
    %27 = tpu.matmul %25, %26, %cst_15 {dimension_numbers = #tpu.dot_dimension_numbers<[1], [0], [0], [1], [0, 0, 1, 1], [], []>} : vector<64x4xf32>, vector<4x32xf32>, vector<64x32xf32> -> vector<64x32xf32>
    %28 = arith.addf %8, %27 : vector<64x32xf32>
    %29 = vector.extract_strided_slice %5 {offsets = [0, 4], sizes = [64, 4], strides = [1, 1]} : vector<128x96xf32> to vector<64x4xf32>
    %30 = vector.extract_strided_slice %5 {offsets = [0, 36], sizes = [64, 4], strides = [1, 1]} : vector<128x96xf32> to vector<64x4xf32>
    %31 = vector.extract_strided_slice %5 {offsets = [0, 68], sizes = [64, 4], strides = [1, 1]} : vector<128x96xf32> to vector<64x4xf32>
    %cst_16 = arith.constant dense<0.000000e+00> : vector<64x64xf32>
    %32 = tpu.matmul %29, %30, %cst_16 {dimension_numbers = #tpu.dot_dimension_numbers<[1], [1], [0], [0], [0, 0, 1, 0], [], []>} : vector<64x4xf32>, vector<64x4xf32>, vector<64x64xf32> -> vector<64x64xf32>
    %cst_17 = arith.constant 5.000000e-01 : f32
    %33 = vector.broadcast %cst_17 : f32 to vector<64x64xf32>
    %34 = arith.mulf %32, %33 : vector<64x64xf32>
    %cst_18 = arith.constant dense<0xFF800000> : vector<64xf32>
    %35 = vector.multi_reduction <maximumf>, %34, %cst_18 [1] : vector<64x64xf32> to vector<64xf32>
    %36 = vector.shape_cast %35 : vector<64xf32> to vector<64x1xf32>
    %37 = vector.broadcast %36 : vector<64x1xf32> to vector<64x64xf32>
    %38 = arith.subf %34, %37 : vector<64x64xf32>
    %39 = math.exp %38 : vector<64x64xf32>
    %cst_19 = arith.constant dense<0.000000e+00> : vector<64xf32>
    %40 = vector.multi_reduction <add>, %39, %cst_19 [1] : vector<64x64xf32> to vector<64xf32>
    %41 = vector.shape_cast %40 : vector<64xf32> to vector<64x1xf32>
    %42 = tpu.reciprocal %41 {approx = true} : vector<64x1xf32> -> vector<64x1xf32>
    %43 = vector.broadcast %42 : vector<64x1xf32> to vector<64x64xf32>
    %44 = arith.mulf %39, %43 : vector<64x64xf32>
    %cst_20 = arith.constant dense<0.000000e+00> : vector<64x4xf32>
    %45 = tpu.matmul %44, %31, %cst_20 {dimension_numbers = #tpu.dot_dimension_numbers<[1], [0], [0], [1], [0, 0, 1, 1], [], []>} : vector<64x64xf32>, vector<64x4xf32>, vector<64x4xf32> -> vector<64x4xf32>
    %46 = vector.extract_strided_slice %6 {offsets = [4, 0], sizes = [4, 32], strides = [1, 1]} : vector<32x32xf32> to vector<4x32xf32>
    %cst_21 = arith.constant dense<0.000000e+00> : vector<64x32xf32>
    %47 = tpu.matmul %45, %46, %cst_21 {dimension_numbers = #tpu.dot_dimension_numbers<[1], [0], [0], [1], [0, 0, 1, 1], [], []>} : vector<64x4xf32>, vector<4x32xf32>, vector<64x32xf32> -> vector<64x32xf32>
    %48 = arith.addf %28, %47 : vector<64x32xf32>
    %49 = vector.extract_strided_slice %5 {offsets = [0, 8], sizes = [64, 4], strides = [1, 1]} : vector<128x96xf32> to vector<64x4xf32>
    %50 = vector.extract_strided_slice %5 {offsets = [0, 40], sizes = [64, 4], strides = [1, 1]} : vector<128x96xf32> to vector<64x4xf32>
    %51 = vector.extract_strided_slice %5 {offsets = [0, 72], sizes = [64, 4], strides = [1, 1]} : vector<128x96xf32> to vector<64x4xf32>
    %cst_22 = arith.constant dense<0.000000e+00> : vector<64x64xf32>
    %52 = tpu.matmul %49, %50, %cst_22 {dimension_numbers = #tpu.dot_dimension_numbers<[1], [1], [0], [0], [0, 0, 1, 0], [], []>} : vector<64x4xf32>, vector<64x4xf32>, vector<64x64xf32> -> vector<64x64xf32>
    %cst_23 = arith.constant 5.000000e-01 : f32
    %53 = vector.broadcast %cst_23 : f32 to vector<64x64xf32>
    %54 = arith.mulf %52, %53 : vector<64x64xf32>
    %cst_24 = arith.constant dense<0xFF800000> : vector<64xf32>
    %55 = vector.multi_reduction <maximumf>, %54, %cst_24 [1] : vector<64x64xf32> to vector<64xf32>
    %56 = vector.shape_cast %55 : vector<64xf32> to vector<64x1xf32>
    %57 = vector.broadcast %56 : vector<64x1xf32> to vector<64x64xf32>
    %58 = arith.subf %54, %57 : vector<64x64xf32>
    %59 = math.exp %58 : vector<64x64xf32>
    %cst_25 = arith.constant dense<0.000000e+00> : vector<64xf32>
    %60 = vector.multi_reduction <add>, %59, %cst_25 [1] : vector<64x64xf32> to vector<64xf32>
    %61 = vector.shape_cast %60 : vector<64xf32> to vector<64x1xf32>
    %62 = tpu.reciprocal %61 {approx = true} : vector<64x1xf32> -> vector<64x1xf32>
    %63 = vector.broadcast %62 : vector<64x1xf32> to vector<64x64xf32>
    %64 = arith.mulf %59, %63 : vector<64x64xf32>
    %cst_26 = arith.constant dense<0.000000e+00> : vector<64x4xf32>
    %65 = tpu.matmul %64, %51, %cst_26 {dimension_numbers = #tpu.dot_dimension_numbers<[1], [0], [0], [1], [0, 0, 1, 1], [], []>} : vector<64x64xf32>, vector<64x4xf32>, vector<64x4xf32> -> vector<64x4xf32>
    %66 = vector.extract_strided_slice %6 {offsets = [8, 0], sizes = [4, 32], strides = [1, 1]} : vector<32x32xf32> to vector<4x32xf32>
    %cst_27 = arith.constant dense<0.000000e+00> : vector<64x32xf32>
    %67 = tpu.matmul %65, %66, %cst_27 {dimension_numbers = #tpu.dot_dimension_numbers<[1], [0], [0], [1], [0, 0, 1, 1], [], []>} : vector<64x4xf32>, vector<4x32xf32>, vector<64x32xf32> -> vector<64x32xf32>
    %68 = arith.addf %48, %67 : vector<64x32xf32>
    %69 = vector.extract_strided_slice %5 {offsets = [0, 12], sizes = [64, 4], strides = [1, 1]} : vector<128x96xf32> to vector<64x4xf32>
    %70 = vector.extract_strided_slice %5 {offsets = [0, 44], sizes = [64, 4], strides = [1, 1]} : vector<128x96xf32> to vector<64x4xf32>
    %71 = vector.extract_strided_slice %5 {offsets = [0, 76], sizes = [64, 4], strides = [1, 1]} : vector<128x96xf32> to vector<64x4xf32>
    %cst_28 = arith.constant dense<0.000000e+00> : vector<64x64xf32>
    %72 = tpu.matmul %69, %70, %cst_28 {dimension_numbers = #tpu.dot_dimension_numbers<[1], [1], [0], [0], [0, 0, 1, 0], [], []>} : vector<64x4xf32>, vector<64x4xf32>, vector<64x64xf32> -> vector<64x64xf32>
    %cst_29 = arith.constant 5.000000e-01 : f32
    %73 = vector.broadcast %cst_29 : f32 to vector<64x64xf32>
    %74 = arith.mulf %72, %73 : vector<64x64xf32>
    %cst_30 = arith.constant dense<0xFF800000> : vector<64xf32>
    %75 = vector.multi_reduction <maximumf>, %74, %cst_30 [1] : vector<64x64xf32> to vector<64xf32>
    %76 = vector.shape_cast %75 : vector<64xf32> to vector<64x1xf32>
    %77 = vector.broadcast %76 : vector<64x1xf32> to vector<64x64xf32>
    %78 = arith.subf %74, %77 : vector<64x64xf32>
    %79 = math.exp %78 : vector<64x64xf32>
    %cst_31 = arith.constant dense<0.000000e+00> : vector<64xf32>
    %80 = vector.multi_reduction <add>, %79, %cst_31 [1] : vector<64x64xf32> to vector<64xf32>
    %81 = vector.shape_cast %80 : vector<64xf32> to vector<64x1xf32>
    %82 = tpu.reciprocal %81 {approx = true} : vector<64x1xf32> -> vector<64x1xf32>
    %83 = vector.broadcast %82 : vector<64x1xf32> to vector<64x64xf32>
    %84 = arith.mulf %79, %83 : vector<64x64xf32>
    %cst_32 = arith.constant dense<0.000000e+00> : vector<64x4xf32>
    %85 = tpu.matmul %84, %71, %cst_32 {dimension_numbers = #tpu.dot_dimension_numbers<[1], [0], [0], [1], [0, 0, 1, 1], [], []>} : vector<64x64xf32>, vector<64x4xf32>, vector<64x4xf32> -> vector<64x4xf32>
    %86 = vector.extract_strided_slice %6 {offsets = [12, 0], sizes = [4, 32], strides = [1, 1]} : vector<32x32xf32> to vector<4x32xf32>
    %cst_33 = arith.constant dense<0.000000e+00> : vector<64x32xf32>
    %87 = tpu.matmul %85, %86, %cst_33 {dimension_numbers = #tpu.dot_dimension_numbers<[1], [0], [0], [1], [0, 0, 1, 1], [], []>} : vector<64x4xf32>, vector<4x32xf32>, vector<64x32xf32> -> vector<64x32xf32>
    %88 = arith.addf %68, %87 : vector<64x32xf32>
    %89 = vector.extract_strided_slice %5 {offsets = [0, 16], sizes = [64, 4], strides = [1, 1]} : vector<128x96xf32> to vector<64x4xf32>
    %90 = vector.extract_strided_slice %5 {offsets = [0, 48], sizes = [64, 4], strides = [1, 1]} : vector<128x96xf32> to vector<64x4xf32>
    %91 = vector.extract_strided_slice %5 {offsets = [0, 80], sizes = [64, 4], strides = [1, 1]} : vector<128x96xf32> to vector<64x4xf32>
    %cst_34 = arith.constant dense<0.000000e+00> : vector<64x64xf32>
    %92 = tpu.matmul %89, %90, %cst_34 {dimension_numbers = #tpu.dot_dimension_numbers<[1], [1], [0], [0], [0, 0, 1, 0], [], []>} : vector<64x4xf32>, vector<64x4xf32>, vector<64x64xf32> -> vector<64x64xf32>
    %cst_35 = arith.constant 5.000000e-01 : f32
    %93 = vector.broadcast %cst_35 : f32 to vector<64x64xf32>
    %94 = arith.mulf %92, %93 : vector<64x64xf32>
    %cst_36 = arith.constant dense<0xFF800000> : vector<64xf32>
    %95 = vector.multi_reduction <maximumf>, %94, %cst_36 [1] : vector<64x64xf32> to vector<64xf32>
    %96 = vector.shape_cast %95 : vector<64xf32> to vector<64x1xf32>
    %97 = vector.broadcast %96 : vector<64x1xf32> to vector<64x64xf32>
    %98 = arith.subf %94, %97 : vector<64x64xf32>
    %99 = math.exp %98 : vector<64x64xf32>
    %cst_37 = arith.constant dense<0.000000e+00> : vector<64xf32>
    %100 = vector.multi_reduction <add>, %99, %cst_37 [1] : vector<64x64xf32> to vector<64xf32>
    %101 = vector.shape_cast %100 : vector<64xf32> to vector<64x1xf32>
    %102 = tpu.reciprocal %101 {approx = true} : vector<64x1xf32> -> vector<64x1xf32>
    %103 = vector.broadcast %102 : vector<64x1xf32> to vector<64x64xf32>
    %104 = arith.mulf %99, %103 : vector<64x64xf32>
    %cst_38 = arith.constant dense<0.000000e+00> : vector<64x4xf32>
    %105 = tpu.matmul %104, %91, %cst_38 {dimension_numbers = #tpu.dot_dimension_numbers<[1], [0], [0], [1], [0, 0, 1, 1], [], []>} : vector<64x64xf32>, vector<64x4xf32>, vector<64x4xf32> -> vector<64x4xf32>
    %106 = vector.extract_strided_slice %6 {offsets = [16, 0], sizes = [4, 32], strides = [1, 1]} : vector<32x32xf32> to vector<4x32xf32>
    %cst_39 = arith.constant dense<0.000000e+00> : vector<64x32xf32>
    %107 = tpu.matmul %105, %106, %cst_39 {dimension_numbers = #tpu.dot_dimension_numbers<[1], [0], [0], [1], [0, 0, 1, 1], [], []>} : vector<64x4xf32>, vector<4x32xf32>, vector<64x32xf32> -> vector<64x32xf32>
    %108 = arith.addf %88, %107 : vector<64x32xf32>
    %109 = vector.extract_strided_slice %5 {offsets = [0, 20], sizes = [64, 4], strides = [1, 1]} : vector<128x96xf32> to vector<64x4xf32>
    %110 = vector.extract_strided_slice %5 {offsets = [0, 52], sizes = [64, 4], strides = [1, 1]} : vector<128x96xf32> to vector<64x4xf32>
    %111 = vector.extract_strided_slice %5 {offsets = [0, 84], sizes = [64, 4], strides = [1, 1]} : vector<128x96xf32> to vector<64x4xf32>
    %cst_40 = arith.constant dense<0.000000e+00> : vector<64x64xf32>
    %112 = tpu.matmul %109, %110, %cst_40 {dimension_numbers = #tpu.dot_dimension_numbers<[1], [1], [0], [0], [0, 0, 1, 0], [], []>} : vector<64x4xf32>, vector<64x4xf32>, vector<64x64xf32> -> vector<64x64xf32>
    %cst_41 = arith.constant 5.000000e-01 : f32
    %113 = vector.broadcast %cst_41 : f32 to vector<64x64xf32>
    %114 = arith.mulf %112, %113 : vector<64x64xf32>
    %cst_42 = arith.constant dense<0xFF800000> : vector<64xf32>
    %115 = vector.multi_reduction <maximumf>, %114, %cst_42 [1] : vector<64x64xf32> to vector<64xf32>
    %116 = vector.shape_cast %115 : vector<64xf32> to vector<64x1xf32>
    %117 = vector.broadcast %116 : vector<64x1xf32> to vector<64x64xf32>
    %118 = arith.subf %114, %117 : vector<64x64xf32>
    %119 = math.exp %118 : vector<64x64xf32>
    %cst_43 = arith.constant dense<0.000000e+00> : vector<64xf32>
    %120 = vector.multi_reduction <add>, %119, %cst_43 [1] : vector<64x64xf32> to vector<64xf32>
    %121 = vector.shape_cast %120 : vector<64xf32> to vector<64x1xf32>
    %122 = tpu.reciprocal %121 {approx = true} : vector<64x1xf32> -> vector<64x1xf32>
    %123 = vector.broadcast %122 : vector<64x1xf32> to vector<64x64xf32>
    %124 = arith.mulf %119, %123 : vector<64x64xf32>
    %cst_44 = arith.constant dense<0.000000e+00> : vector<64x4xf32>
    %125 = tpu.matmul %124, %111, %cst_44 {dimension_numbers = #tpu.dot_dimension_numbers<[1], [0], [0], [1], [0, 0, 1, 1], [], []>} : vector<64x64xf32>, vector<64x4xf32>, vector<64x4xf32> -> vector<64x4xf32>
    %126 = vector.extract_strided_slice %6 {offsets = [20, 0], sizes = [4, 32], strides = [1, 1]} : vector<32x32xf32> to vector<4x32xf32>
    %cst_45 = arith.constant dense<0.000000e+00> : vector<64x32xf32>
    %127 = tpu.matmul %125, %126, %cst_45 {dimension_numbers = #tpu.dot_dimension_numbers<[1], [0], [0], [1], [0, 0, 1, 1], [], []>} : vector<64x4xf32>, vector<4x32xf32>, vector<64x32xf32> -> vector<64x32xf32>
    %128 = arith.addf %108, %127 : vector<64x32xf32>
    %129 = vector.extract_strided_slice %5 {offsets = [0, 24], sizes = [64, 4], strides = [1, 1]} : vector<128x96xf32> to vector<64x4xf32>
    %130 = vector.extract_strided_slice %5 {offsets = [0, 56], sizes = [64, 4], strides = [1, 1]} : vector<128x96xf32> to vector<64x4xf32>
    %131 = vector.extract_strided_slice %5 {offsets = [0, 88], sizes = [64, 4], strides = [1, 1]} : vector<128x96xf32> to vector<64x4xf32>
    %cst_46 = arith.constant dense<0.000000e+00> : vector<64x64xf32>
    %132 = tpu.matmul %129, %130, %cst_46 {dimension_numbers = #tpu.dot_dimension_numbers<[1], [1], [0], [0], [0, 0, 1, 0], [], []>} : vector<64x4xf32>, vector<64x4xf32>, vector<64x64xf32> -> vector<64x64xf32>
    %cst_47 = arith.constant 5.000000e-01 : f32
    %133 = vector.broadcast %cst_47 : f32 to vector<64x64xf32>
    %134 = arith.mulf %132, %133 : vector<64x64xf32>
    %cst_48 = arith.constant dense<0xFF800000> : vector<64xf32>
    %135 = vector.multi_reduction <maximumf>, %134, %cst_48 [1] : vector<64x64xf32> to vector<64xf32>
    %136 = vector.shape_cast %135 : vector<64xf32> to vector<64x1xf32>
    %137 = vector.broadcast %136 : vector<64x1xf32> to vector<64x64xf32>
    %138 = arith.subf %134, %137 : vector<64x64xf32>
    %139 = math.exp %138 : vector<64x64xf32>
    %cst_49 = arith.constant dense<0.000000e+00> : vector<64xf32>
    %140 = vector.multi_reduction <add>, %139, %cst_49 [1] : vector<64x64xf32> to vector<64xf32>
    %141 = vector.shape_cast %140 : vector<64xf32> to vector<64x1xf32>
    %142 = tpu.reciprocal %141 {approx = true} : vector<64x1xf32> -> vector<64x1xf32>
    %143 = vector.broadcast %142 : vector<64x1xf32> to vector<64x64xf32>
    %144 = arith.mulf %139, %143 : vector<64x64xf32>
    %cst_50 = arith.constant dense<0.000000e+00> : vector<64x4xf32>
    %145 = tpu.matmul %144, %131, %cst_50 {dimension_numbers = #tpu.dot_dimension_numbers<[1], [0], [0], [1], [0, 0, 1, 1], [], []>} : vector<64x64xf32>, vector<64x4xf32>, vector<64x4xf32> -> vector<64x4xf32>
    %146 = vector.extract_strided_slice %6 {offsets = [24, 0], sizes = [4, 32], strides = [1, 1]} : vector<32x32xf32> to vector<4x32xf32>
    %cst_51 = arith.constant dense<0.000000e+00> : vector<64x32xf32>
    %147 = tpu.matmul %145, %146, %cst_51 {dimension_numbers = #tpu.dot_dimension_numbers<[1], [0], [0], [1], [0, 0, 1, 1], [], []>} : vector<64x4xf32>, vector<4x32xf32>, vector<64x32xf32> -> vector<64x32xf32>
    %148 = arith.addf %128, %147 : vector<64x32xf32>
    %149 = vector.extract_strided_slice %5 {offsets = [0, 28], sizes = [64, 4], strides = [1, 1]} : vector<128x96xf32> to vector<64x4xf32>
    %150 = vector.extract_strided_slice %5 {offsets = [0, 60], sizes = [64, 4], strides = [1, 1]} : vector<128x96xf32> to vector<64x4xf32>
    %151 = vector.extract_strided_slice %5 {offsets = [0, 92], sizes = [64, 4], strides = [1, 1]} : vector<128x96xf32> to vector<64x4xf32>
    %cst_52 = arith.constant dense<0.000000e+00> : vector<64x64xf32>
    %152 = tpu.matmul %149, %150, %cst_52 {dimension_numbers = #tpu.dot_dimension_numbers<[1], [1], [0], [0], [0, 0, 1, 0], [], []>} : vector<64x4xf32>, vector<64x4xf32>, vector<64x64xf32> -> vector<64x64xf32>
    %cst_53 = arith.constant 5.000000e-01 : f32
    %153 = vector.broadcast %cst_53 : f32 to vector<64x64xf32>
    %154 = arith.mulf %152, %153 : vector<64x64xf32>
    %cst_54 = arith.constant dense<0xFF800000> : vector<64xf32>
    %155 = vector.multi_reduction <maximumf>, %154, %cst_54 [1] : vector<64x64xf32> to vector<64xf32>
    %156 = vector.shape_cast %155 : vector<64xf32> to vector<64x1xf32>
    %157 = vector.broadcast %156 : vector<64x1xf32> to vector<64x64xf32>
    %158 = arith.subf %154, %157 : vector<64x64xf32>
    %159 = math.exp %158 : vector<64x64xf32>
    %cst_55 = arith.constant dense<0.000000e+00> : vector<64xf32>
    %160 = vector.multi_reduction <add>, %159, %cst_55 [1] : vector<64x64xf32> to vector<64xf32>
    %161 = vector.shape_cast %160 : vector<64xf32> to vector<64x1xf32>
    %162 = tpu.reciprocal %161 {approx = true} : vector<64x1xf32> -> vector<64x1xf32>
    %163 = vector.broadcast %162 : vector<64x1xf32> to vector<64x64xf32>
    %164 = arith.mulf %159, %163 : vector<64x64xf32>
    %cst_56 = arith.constant dense<0.000000e+00> : vector<64x4xf32>
    %165 = tpu.matmul %164, %151, %cst_56 {dimension_numbers = #tpu.dot_dimension_numbers<[1], [0], [0], [1], [0, 0, 1, 1], [], []>} : vector<64x64xf32>, vector<64x4xf32>, vector<64x4xf32> -> vector<64x4xf32>
    %166 = vector.extract_strided_slice %6 {offsets = [28, 0], sizes = [4, 32], strides = [1, 1]} : vector<32x32xf32> to vector<4x32xf32>
    %cst_57 = arith.constant dense<0.000000e+00> : vector<64x32xf32>
    %167 = tpu.matmul %165, %166, %cst_57 {dimension_numbers = #tpu.dot_dimension_numbers<[1], [0], [0], [1], [0, 0, 1, 1], [], []>} : vector<64x4xf32>, vector<4x32xf32>, vector<64x32xf32> -> vector<64x32xf32>
    %168 = arith.addf %148, %167 : vector<64x32xf32>
    %169 = vector.broadcast %7 : vector<1x32xf32> to vector<64x32xf32>
    %170 = arith.addf %168, %169 : vector<64x32xf32>
    %c0_58 = arith.constant 0 : index
    %c0_59 = arith.constant 0 : index
    %171 = vector.load %arg5[%c0_58, %c0_59] : memref<128x32xf32, #tpu.memory_space<vmem>>, vector<64x32xf32>
    tpu.vector_store %arg5[%c0_58, %c0_59], %170 {strides = array<i32>} : memref<128x32xf32, #tpu.memory_space<vmem>>, vector<64x32xf32>,
    %cst_60 = arith.constant 0.000000e+00 : f32
    %172 = vector.broadcast %cst_60 : f32 to vector<64x32xf32>
    %173 = vector.extract_strided_slice %5 {offsets = [64, 0], sizes = [64, 4], strides = [1, 1]} : vector<128x96xf32> to vector<64x4xf32>
    %174 = vector.extract_strided_slice %5 {offsets = [64, 32], sizes = [64, 4], strides = [1, 1]} : vector<128x96xf32> to vector<64x4xf32>
    %175 = vector.extract_strided_slice %5 {offsets = [64, 64], sizes = [64, 4], strides = [1, 1]} : vector<128x96xf32> to vector<64x4xf32>
    %cst_61 = arith.constant dense<0.000000e+00> : vector<64x64xf32>
    %176 = tpu.matmul %173, %174, %cst_61 {dimension_numbers = #tpu.dot_dimension_numbers<[1], [1], [0], [0], [0, 0, 1, 0], [], []>} : vector<64x4xf32>, vector<64x4xf32>, vector<64x64xf32> -> vector<64x64xf32>
    %cst_62 = arith.constant 5.000000e-01 : f32
    %177 = vector.broadcast %cst_62 : f32 to vector<64x64xf32>
    %178 = arith.mulf %176, %177 : vector<64x64xf32>
    %cst_63 = arith.constant dense<0xFF800000> : vector<64xf32>
    %179 = vector.multi_reduction <maximumf>, %178, %cst_63 [1] : vector<64x64xf32> to vector<64xf32>
    %180 = vector.shape_cast %179 : vector<64xf32> to vector<64x1xf32>
    %181 = vector.broadcast %180 : vector<64x1xf32> to vector<64x64xf32>
    %182 = arith.subf %178, %181 : vector<64x64xf32>
    %183 = math.exp %182 : vector<64x64xf32>
    %cst_64 = arith.constant dense<0.000000e+00> : vector<64xf32>
    %184 = vector.multi_reduction <add>, %183, %cst_64 [1] : vector<64x64xf32> to vector<64xf32>
    %185 = vector.shape_cast %184 : vector<64xf32> to vector<64x1xf32>
    %186 = tpu.reciprocal %185 {approx = true} : vector<64x1xf32> -> vector<64x1xf32>
    %187 = vector.broadcast %186 : vector<64x1xf32> to vector<64x64xf32>
    %188 = arith.mulf %183, %187 : vector<64x64xf32>
    %cst_65 = arith.constant dense<0.000000e+00> : vector<64x4xf32>
    %189 = tpu.matmul %188, %175, %cst_65 {dimension_numbers = #tpu.dot_dimension_numbers<[1], [0], [0], [1], [0, 0, 1, 1], [], []>} : vector<64x64xf32>, vector<64x4xf32>, vector<64x4xf32> -> vector<64x4xf32>
    %190 = vector.extract_strided_slice %6 {offsets = [0, 0], sizes = [4, 32], strides = [1, 1]} : vector<32x32xf32> to vector<4x32xf32>
    %cst_66 = arith.constant dense<0.000000e+00> : vector<64x32xf32>
    %191 = tpu.matmul %189, %190, %cst_66 {dimension_numbers = #tpu.dot_dimension_numbers<[1], [0], [0], [1], [0, 0, 1, 1], [], []>} : vector<64x4xf32>, vector<4x32xf32>, vector<64x32xf32> -> vector<64x32xf32>
    %192 = arith.addf %172, %191 : vector<64x32xf32>
    %193 = vector.extract_strided_slice %5 {offsets = [64, 4], sizes = [64, 4], strides = [1, 1]} : vector<128x96xf32> to vector<64x4xf32>
    %194 = vector.extract_strided_slice %5 {offsets = [64, 36], sizes = [64, 4], strides = [1, 1]} : vector<128x96xf32> to vector<64x4xf32>
    %195 = vector.extract_strided_slice %5 {offsets = [64, 68], sizes = [64, 4], strides = [1, 1]} : vector<128x96xf32> to vector<64x4xf32>
    %cst_67 = arith.constant dense<0.000000e+00> : vector<64x64xf32>
    %196 = tpu.matmul %193, %194, %cst_67 {dimension_numbers = #tpu.dot_dimension_numbers<[1], [1], [0], [0], [0, 0, 1, 0], [], []>} : vector<64x4xf32>, vector<64x4xf32>, vector<64x64xf32> -> vector<64x64xf32>
    %cst_68 = arith.constant 5.000000e-01 : f32
    %197 = vector.broadcast %cst_68 : f32 to vector<64x64xf32>
    %198 = arith.mulf %196, %197 : vector<64x64xf32>
    %cst_69 = arith.constant dense<0xFF800000> : vector<64xf32>
    %199 = vector.multi_reduction <maximumf>, %198, %cst_69 [1] : vector<64x64xf32> to vector<64xf32>
    %200 = vector.shape_cast %199 : vector<64xf32> to vector<64x1xf32>
    %201 = vector.broadcast %200 : vector<64x1xf32> to vector<64x64xf32>
    %202 = arith.subf %198, %201 : vector<64x64xf32>
    %203 = math.exp %202 : vector<64x64xf32>
    %cst_70 = arith.constant dense<0.000000e+00> : vector<64xf32>
    %204 = vector.multi_reduction <add>, %203, %cst_70 [1] : vector<64x64xf32> to vector<64xf32>
    %205 = vector.shape_cast %204 : vector<64xf32> to vector<64x1xf32>
    %206 = tpu.reciprocal %205 {approx = true} : vector<64x1xf32> -> vector<64x1xf32>
    %207 = vector.broadcast %206 : vector<64x1xf32> to vector<64x64xf32>
    %208 = arith.mulf %203, %207 : vector<64x64xf32>
    %cst_71 = arith.constant dense<0.000000e+00> : vector<64x4xf32>
    %209 = tpu.matmul %208, %195, %cst_71 {dimension_numbers = #tpu.dot_dimension_numbers<[1], [0], [0], [1], [0, 0, 1, 1], [], []>} : vector<64x64xf32>, vector<64x4xf32>, vector<64x4xf32> -> vector<64x4xf32>
    %210 = vector.extract_strided_slice %6 {offsets = [4, 0], sizes = [4, 32], strides = [1, 1]} : vector<32x32xf32> to vector<4x32xf32>
    %cst_72 = arith.constant dense<0.000000e+00> : vector<64x32xf32>
    %211 = tpu.matmul %209, %210, %cst_72 {dimension_numbers = #tpu.dot_dimension_numbers<[1], [0], [0], [1], [0, 0, 1, 1], [], []>} : vector<64x4xf32>, vector<4x32xf32>, vector<64x32xf32> -> vector<64x32xf32>
    %212 = arith.addf %192, %211 : vector<64x32xf32>
    %213 = vector.extract_strided_slice %5 {offsets = [64, 8], sizes = [64, 4], strides = [1, 1]} : vector<128x96xf32> to vector<64x4xf32>
    %214 = vector.extract_strided_slice %5 {offsets = [64, 40], sizes = [64, 4], strides = [1, 1]} : vector<128x96xf32> to vector<64x4xf32>
    %215 = vector.extract_strided_slice %5 {offsets = [64, 72], sizes = [64, 4], strides = [1, 1]} : vector<128x96xf32> to vector<64x4xf32>
    %cst_73 = arith.constant dense<0.000000e+00> : vector<64x64xf32>
    %216 = tpu.matmul %213, %214, %cst_73 {dimension_numbers = #tpu.dot_dimension_numbers<[1], [1], [0], [0], [0, 0, 1, 0], [], []>} : vector<64x4xf32>, vector<64x4xf32>, vector<64x64xf32> -> vector<64x64xf32>
    %cst_74 = arith.constant 5.000000e-01 : f32
    %217 = vector.broadcast %cst_74 : f32 to vector<64x64xf32>
    %218 = arith.mulf %216, %217 : vector<64x64xf32>
    %cst_75 = arith.constant dense<0xFF800000> : vector<64xf32>
    %219 = vector.multi_reduction <maximumf>, %218, %cst_75 [1] : vector<64x64xf32> to vector<64xf32>
    %220 = vector.shape_cast %219 : vector<64xf32> to vector<64x1xf32>
    %221 = vector.broadcast %220 : vector<64x1xf32> to vector<64x64xf32>
    %222 = arith.subf %218, %221 : vector<64x64xf32>
    %223 = math.exp %222 : vector<64x64xf32>
    %cst_76 = arith.constant dense<0.000000e+00> : vector<64xf32>
    %224 = vector.multi_reduction <add>, %223, %cst_76 [1] : vector<64x64xf32> to vector<64xf32>
    %225 = vector.shape_cast %224 : vector<64xf32> to vector<64x1xf32>
    %226 = tpu.reciprocal %225 {approx = true} : vector<64x1xf32> -> vector<64x1xf32>
    %227 = vector.broadcast %226 : vector<64x1xf32> to vector<64x64xf32>
    %228 = arith.mulf %223, %227 : vector<64x64xf32>
    %cst_77 = arith.constant dense<0.000000e+00> : vector<64x4xf32>
    %229 = tpu.matmul %228, %215, %cst_77 {dimension_numbers = #tpu.dot_dimension_numbers<[1], [0], [0], [1], [0, 0, 1, 1], [], []>} : vector<64x64xf32>, vector<64x4xf32>, vector<64x4xf32> -> vector<64x4xf32>
    %230 = vector.extract_strided_slice %6 {offsets = [8, 0], sizes = [4, 32], strides = [1, 1]} : vector<32x32xf32> to vector<4x32xf32>
    %cst_78 = arith.constant dense<0.000000e+00> : vector<64x32xf32>
    %231 = tpu.matmul %229, %230, %cst_78 {dimension_numbers = #tpu.dot_dimension_numbers<[1], [0], [0], [1], [0, 0, 1, 1], [], []>} : vector<64x4xf32>, vector<4x32xf32>, vector<64x32xf32> -> vector<64x32xf32>
    %232 = arith.addf %212, %231 : vector<64x32xf32>
    %233 = vector.extract_strided_slice %5 {offsets = [64, 12], sizes = [64, 4], strides = [1, 1]} : vector<128x96xf32> to vector<64x4xf32>
    %234 = vector.extract_strided_slice %5 {offsets = [64, 44], sizes = [64, 4], strides = [1, 1]} : vector<128x96xf32> to vector<64x4xf32>
    %235 = vector.extract_strided_slice %5 {offsets = [64, 76], sizes = [64, 4], strides = [1, 1]} : vector<128x96xf32> to vector<64x4xf32>
    %cst_79 = arith.constant dense<0.000000e+00> : vector<64x64xf32>
    %236 = tpu.matmul %233, %234, %cst_79 {dimension_numbers = #tpu.dot_dimension_numbers<[1], [1], [0], [0], [0, 0, 1, 0], [], []>} : vector<64x4xf32>, vector<64x4xf32>, vector<64x64xf32> -> vector<64x64xf32>
    %cst_80 = arith.constant 5.000000e-01 : f32
    %237 = vector.broadcast %cst_80 : f32 to vector<64x64xf32>
    %238 = arith.mulf %236, %237 : vector<64x64xf32>
    %cst_81 = arith.constant dense<0xFF800000> : vector<64xf32>
    %239 = vector.multi_reduction <maximumf>, %238, %cst_81 [1] : vector<64x64xf32> to vector<64xf32>
    %240 = vector.shape_cast %239 : vector<64xf32> to vector<64x1xf32>
    %241 = vector.broadcast %240 : vector<64x1xf32> to vector<64x64xf32>
    %242 = arith.subf %238, %241 : vector<64x64xf32>
    %243 = math.exp %242 : vector<64x64xf32>
    %cst_82 = arith.constant dense<0.000000e+00> : vector<64xf32>
    %244 = vector.multi_reduction <add>, %243, %cst_82 [1] : vector<64x64xf32> to vector<64xf32>
    %245 = vector.shape_cast %244 : vector<64xf32> to vector<64x1xf32>
    %246 = tpu.reciprocal %245 {approx = true} : vector<64x1xf32> -> vector<64x1xf32>
    %247 = vector.broadcast %246 : vector<64x1xf32> to vector<64x64xf32>
    %248 = arith.mulf %243, %247 : vector<64x64xf32>
    %cst_83 = arith.constant dense<0.000000e+00> : vector<64x4xf32>
    %249 = tpu.matmul %248, %235, %cst_83 {dimension_numbers = #tpu.dot_dimension_numbers<[1], [0], [0], [1], [0, 0, 1, 1], [], []>} : vector<64x64xf32>, vector<64x4xf32>, vector<64x4xf32> -> vector<64x4xf32>
    %250 = vector.extract_strided_slice %6 {offsets = [12, 0], sizes = [4, 32], strides = [1, 1]} : vector<32x32xf32> to vector<4x32xf32>
    %cst_84 = arith.constant dense<0.000000e+00> : vector<64x32xf32>
    %251 = tpu.matmul %249, %250, %cst_84 {dimension_numbers = #tpu.dot_dimension_numbers<[1], [0], [0], [1], [0, 0, 1, 1], [], []>} : vector<64x4xf32>, vector<4x32xf32>, vector<64x32xf32> -> vector<64x32xf32>
    %252 = arith.addf %232, %251 : vector<64x32xf32>
    %253 = vector.extract_strided_slice %5 {offsets = [64, 16], sizes = [64, 4], strides = [1, 1]} : vector<128x96xf32> to vector<64x4xf32>
    %254 = vector.extract_strided_slice %5 {offsets = [64, 48], sizes = [64, 4], strides = [1, 1]} : vector<128x96xf32> to vector<64x4xf32>
    %255 = vector.extract_strided_slice %5 {offsets = [64, 80], sizes = [64, 4], strides = [1, 1]} : vector<128x96xf32> to vector<64x4xf32>
    %cst_85 = arith.constant dense<0.000000e+00> : vector<64x64xf32>
    %256 = tpu.matmul %253, %254, %cst_85 {dimension_numbers = #tpu.dot_dimension_numbers<[1], [1], [0], [0], [0, 0, 1, 0], [], []>} : vector<64x4xf32>, vector<64x4xf32>, vector<64x64xf32> -> vector<64x64xf32>
    %cst_86 = arith.constant 5.000000e-01 : f32
    %257 = vector.broadcast %cst_86 : f32 to vector<64x64xf32>
    %258 = arith.mulf %256, %257 : vector<64x64xf32>
    %cst_87 = arith.constant dense<0xFF800000> : vector<64xf32>
    %259 = vector.multi_reduction <maximumf>, %258, %cst_87 [1] : vector<64x64xf32> to vector<64xf32>
    %260 = vector.shape_cast %259 : vector<64xf32> to vector<64x1xf32>
    %261 = vector.broadcast %260 : vector<64x1xf32> to vector<64x64xf32>
    %262 = arith.subf %258, %261 : vector<64x64xf32>
    %263 = math.exp %262 : vector<64x64xf32>
    %cst_88 = arith.constant dense<0.000000e+00> : vector<64xf32>
    %264 = vector.multi_reduction <add>, %263, %cst_88 [1] : vector<64x64xf32> to vector<64xf32>
    %265 = vector.shape_cast %264 : vector<64xf32> to vector<64x1xf32>
    %266 = tpu.reciprocal %265 {approx = true} : vector<64x1xf32> -> vector<64x1xf32>
    %267 = vector.broadcast %266 : vector<64x1xf32> to vector<64x64xf32>
    %268 = arith.mulf %263, %267 : vector<64x64xf32>
    %cst_89 = arith.constant dense<0.000000e+00> : vector<64x4xf32>
    %269 = tpu.matmul %268, %255, %cst_89 {dimension_numbers = #tpu.dot_dimension_numbers<[1], [0], [0], [1], [0, 0, 1, 1], [], []>} : vector<64x64xf32>, vector<64x4xf32>, vector<64x4xf32> -> vector<64x4xf32>
    %270 = vector.extract_strided_slice %6 {offsets = [16, 0], sizes = [4, 32], strides = [1, 1]} : vector<32x32xf32> to vector<4x32xf32>
    %cst_90 = arith.constant dense<0.000000e+00> : vector<64x32xf32>
    %271 = tpu.matmul %269, %270, %cst_90 {dimension_numbers = #tpu.dot_dimension_numbers<[1], [0], [0], [1], [0, 0, 1, 1], [], []>} : vector<64x4xf32>, vector<4x32xf32>, vector<64x32xf32> -> vector<64x32xf32>
    %272 = arith.addf %252, %271 : vector<64x32xf32>
    %273 = vector.extract_strided_slice %5 {offsets = [64, 20], sizes = [64, 4], strides = [1, 1]} : vector<128x96xf32> to vector<64x4xf32>
    %274 = vector.extract_strided_slice %5 {offsets = [64, 52], sizes = [64, 4], strides = [1, 1]} : vector<128x96xf32> to vector<64x4xf32>
    %275 = vector.extract_strided_slice %5 {offsets = [64, 84], sizes = [64, 4], strides = [1, 1]} : vector<128x96xf32> to vector<64x4xf32>
    %cst_91 = arith.constant dense<0.000000e+00> : vector<64x64xf32>
    %276 = tpu.matmul %273, %274, %cst_91 {dimension_numbers = #tpu.dot_dimension_numbers<[1], [1], [0], [0], [0, 0, 1, 0], [], []>} : vector<64x4xf32>, vector<64x4xf32>, vector<64x64xf32> -> vector<64x64xf32>
    %cst_92 = arith.constant 5.000000e-01 : f32
    %277 = vector.broadcast %cst_92 : f32 to vector<64x64xf32>
    %278 = arith.mulf %276, %277 : vector<64x64xf32>
    %cst_93 = arith.constant dense<0xFF800000> : vector<64xf32>
    %279 = vector.multi_reduction <maximumf>, %278, %cst_93 [1] : vector<64x64xf32> to vector<64xf32>
    %280 = vector.shape_cast %279 : vector<64xf32> to vector<64x1xf32>
    %281 = vector.broadcast %280 : vector<64x1xf32> to vector<64x64xf32>
    %282 = arith.subf %278, %281 : vector<64x64xf32>
    %283 = math.exp %282 : vector<64x64xf32>
    %cst_94 = arith.constant dense<0.000000e+00> : vector<64xf32>
    %284 = vector.multi_reduction <add>, %283, %cst_94 [1] : vector<64x64xf32> to vector<64xf32>
    %285 = vector.shape_cast %284 : vector<64xf32> to vector<64x1xf32>
    %286 = tpu.reciprocal %285 {approx = true} : vector<64x1xf32> -> vector<64x1xf32>
    %287 = vector.broadcast %286 : vector<64x1xf32> to vector<64x64xf32>
    %288 = arith.mulf %283, %287 : vector<64x64xf32>
    %cst_95 = arith.constant dense<0.000000e+00> : vector<64x4xf32>
    %289 = tpu.matmul %288, %275, %cst_95 {dimension_numbers = #tpu.dot_dimension_numbers<[1], [0], [0], [1], [0, 0, 1, 1], [], []>} : vector<64x64xf32>, vector<64x4xf32>, vector<64x4xf32> -> vector<64x4xf32>
    %290 = vector.extract_strided_slice %6 {offsets = [20, 0], sizes = [4, 32], strides = [1, 1]} : vector<32x32xf32> to vector<4x32xf32>
    %cst_96 = arith.constant dense<0.000000e+00> : vector<64x32xf32>
    %291 = tpu.matmul %289, %290, %cst_96 {dimension_numbers = #tpu.dot_dimension_numbers<[1], [0], [0], [1], [0, 0, 1, 1], [], []>} : vector<64x4xf32>, vector<4x32xf32>, vector<64x32xf32> -> vector<64x32xf32>
    %292 = arith.addf %272, %291 : vector<64x32xf32>
    %293 = vector.extract_strided_slice %5 {offsets = [64, 24], sizes = [64, 4], strides = [1, 1]} : vector<128x96xf32> to vector<64x4xf32>
    %294 = vector.extract_strided_slice %5 {offsets = [64, 56], sizes = [64, 4], strides = [1, 1]} : vector<128x96xf32> to vector<64x4xf32>
    %295 = vector.extract_strided_slice %5 {offsets = [64, 88], sizes = [64, 4], strides = [1, 1]} : vector<128x96xf32> to vector<64x4xf32>
    %cst_97 = arith.constant dense<0.000000e+00> : vector<64x64xf32>
    %296 = tpu.matmul %293, %294, %cst_97 {dimension_numbers = #tpu.dot_dimension_numbers<[1], [1], [0], [0], [0, 0, 1, 0], [], []>} : vector<64x4xf32>, vector<64x4xf32>, vector<64x64xf32> -> vector<64x64xf32>
    %cst_98 = arith.constant 5.000000e-01 : f32
    %297 = vector.broadcast %cst_98 : f32 to vector<64x64xf32>
    %298 = arith.mulf %296, %297 : vector<64x64xf32>
    %cst_99 = arith.constant dense<0xFF800000> : vector<64xf32>
    %299 = vector.multi_reduction <maximumf>, %298, %cst_99 [1] : vector<64x64xf32> to vector<64xf32>
    %300 = vector.shape_cast %299 : vector<64xf32> to vector<64x1xf32>
    %301 = vector.broadcast %300 : vector<64x1xf32> to vector<64x64xf32>
    %302 = arith.subf %298, %301 : vector<64x64xf32>
    %303 = math.exp %302 : vector<64x64xf32>
    %cst_100 = arith.constant dense<0.000000e+00> : vector<64xf32>
    %304 = vector.multi_reduction <add>, %303, %cst_100 [1] : vector<64x64xf32> to vector<64xf32>
    %305 = vector.shape_cast %304 : vector<64xf32> to vector<64x1xf32>
    %306 = tpu.reciprocal %305 {approx = true} : vector<64x1xf32> -> vector<64x1xf32>
    %307 = vector.broadcast %306 : vector<64x1xf32> to vector<64x64xf32>
    %308 = arith.mulf %303, %307 : vector<64x64xf32>
    %cst_101 = arith.constant dense<0.000000e+00> : vector<64x4xf32>
    %309 = tpu.matmul %308, %295, %cst_101 {dimension_numbers = #tpu.dot_dimension_numbers<[1], [0], [0], [1], [0, 0, 1, 1], [], []>} : vector<64x64xf32>, vector<64x4xf32>, vector<64x4xf32> -> vector<64x4xf32>
    %310 = vector.extract_strided_slice %6 {offsets = [24, 0], sizes = [4, 32], strides = [1, 1]} : vector<32x32xf32> to vector<4x32xf32>
    %cst_102 = arith.constant dense<0.000000e+00> : vector<64x32xf32>
    %311 = tpu.matmul %309, %310, %cst_102 {dimension_numbers = #tpu.dot_dimension_numbers<[1], [0], [0], [1], [0, 0, 1, 1], [], []>} : vector<64x4xf32>, vector<4x32xf32>, vector<64x32xf32> -> vector<64x32xf32>
    %312 = arith.addf %292, %311 : vector<64x32xf32>
    %313 = vector.extract_strided_slice %5 {offsets = [64, 28], sizes = [64, 4], strides = [1, 1]} : vector<128x96xf32> to vector<64x4xf32>
    %314 = vector.extract_strided_slice %5 {offsets = [64, 60], sizes = [64, 4], strides = [1, 1]} : vector<128x96xf32> to vector<64x4xf32>
    %315 = vector.extract_strided_slice %5 {offsets = [64, 92], sizes = [64, 4], strides = [1, 1]} : vector<128x96xf32> to vector<64x4xf32>
    %cst_103 = arith.constant dense<0.000000e+00> : vector<64x64xf32>
    %316 = tpu.matmul %313, %314, %cst_103 {dimension_numbers = #tpu.dot_dimension_numbers<[1], [1], [0], [0], [0, 0, 1, 0], [], []>} : vector<64x4xf32>, vector<64x4xf32>, vector<64x64xf32> -> vector<64x64xf32>
    %cst_104 = arith.constant 5.000000e-01 : f32
    %317 = vector.broadcast %cst_104 : f32 to vector<64x64xf32>
    %318 = arith.mulf %316, %317 : vector<64x64xf32>
    %cst_105 = arith.constant dense<0xFF800000> : vector<64xf32>
    %319 = vector.multi_reduction <maximumf>, %318, %cst_105 [1] : vector<64x64xf32> to vector<64xf32>
    %320 = vector.shape_cast %319 : vector<64xf32> to vector<64x1xf32>
    %321 = vector.broadcast %320 : vector<64x1xf32> to vector<64x64xf32>
    %322 = arith.subf %318, %321 : vector<64x64xf32>
    %323 = math.exp %322 : vector<64x64xf32>
    %cst_106 = arith.constant dense<0.000000e+00> : vector<64xf32>
    %324 = vector.multi_reduction <add>, %323, %cst_106 [1] : vector<64x64xf32> to vector<64xf32>
    %325 = vector.shape_cast %324 : vector<64xf32> to vector<64x1xf32>
    %326 = tpu.reciprocal %325 {approx = true} : vector<64x1xf32> -> vector<64x1xf32>
    %327 = vector.broadcast %326 : vector<64x1xf32> to vector<64x64xf32>
    %328 = arith.mulf %323, %327 : vector<64x64xf32>
    %cst_107 = arith.constant dense<0.000000e+00> : vector<64x4xf32>
    %329 = tpu.matmul %328, %315, %cst_107 {dimension_numbers = #tpu.dot_dimension_numbers<[1], [0], [0], [1], [0, 0, 1, 1], [], []>} : vector<64x64xf32>, vector<64x4xf32>, vector<64x4xf32> -> vector<64x4xf32>
    %330 = vector.extract_strided_slice %6 {offsets = [28, 0], sizes = [4, 32], strides = [1, 1]} : vector<32x32xf32> to vector<4x32xf32>
    %cst_108 = arith.constant dense<0.000000e+00> : vector<64x32xf32>
    %331 = tpu.matmul %329, %330, %cst_108 {dimension_numbers = #tpu.dot_dimension_numbers<[1], [0], [0], [1], [0, 0, 1, 1], [], []>} : vector<64x4xf32>, vector<4x32xf32>, vector<64x32xf32> -> vector<64x32xf32>
    %332 = arith.addf %312, %331 : vector<64x32xf32>
    %333 = vector.broadcast %7 : vector<1x32xf32> to vector<64x32xf32>
    %334 = arith.addf %332, %333 : vector<64x32xf32>
    %c64 = arith.constant 64 : index
    %c0_109 = arith.constant 0 : index
    %335 = vector.load %arg5[%c64, %c0_109] : memref<128x32xf32, #tpu.memory_space<vmem>>, vector<64x32xf32>
    tpu.vector_store %arg5[%c64, %c0_109], %334 {strides = array<i32>} : memref<128x32xf32, #tpu.memory_space<vmem>>, vector<64x32xf32>,
    return
  }
}

</mosaic_0001>

<bundles_post_ra>
// kernel: tpu_custom_call.1
= control target key start
LH: loop header
LB: loop body
LE: loop exit
PB: predicated region body
PF: predicated region fallthrough
CT: control target
= control target key end

     0   :  { %vm44_vm0 = vcmask 261120   ;;  %s7412_s18 = smov 96   ;;  %s7413_s19 = smov 92   ;;  %vm187_vm1 = vcmask 31744   ;;  %vm269_vm2 = vcmask 523264   ;;  %vm763_vm3 = vcmask 1043456   ;;  %s10688_s1 = inlined_call_operand.vmem [shape: f32[32,96], index: 1, kind: input, shape index: {}]   ;;  %s10689_s0 = inlined_call_operand.vmem [shape: f32[128,32], index: 0, kind: input, shape index: {}]   ;;  %s10690_s2 = inlined_call_operand.vmem [shape: f32[1,96], index: 2, kind: input, shape index: {}]   ;;  %s10691_s3 = inlined_call_operand.vmem [shape: f32[32,32], index: 3, kind: input, shape index: {}]   ;;  %s10692_s4 = inlined_call_operand.vmem [shape: f32[1,32], index: 4, kind: input, shape index: {}]   ;;  %s10693_s5 = inlined_call_operand.vmem [shape: f32[128,32], index: 5, kind: output, shape index: {}]  }
   0x1   :  { %v39_v0 = vld [vmem:[%s10688_s1 + $0x18] sm:$0xff]  ;;  %v38_v1 = vld [vmem:[%s10688_s1 + $0x10] sm:$0xff]  ;;  %v37_v2 = vld [vmem:[%s10688_s1 + $0x8] sm:$0xff]  ;;  %s7414_s20 = smov 124   ;;  %s7415_s21 = smov 88  }
   0x2   :  { %105 = vmatpush.msra.mxu0 %v39_v0  ;;  %v36_v3 = vld [vmem:[%s10688_s1] sm:$0xff]  ;;  %v21_v5 = vld [vmem:[%s10689_s0 + $0x8] sm:$0xff]  ;;  %v22_v6 = vld [vmem:[%s10689_s0 + $0x10] sm:$0xff]  ;;  %s7416_s22 = smov 120   ;;  %s7417_s23 = smov 64  }
   0x3   :  { %v20_v4 = vld [vmem:[%s10689_s0] sm:$0xff]  ;;  %v23_v7 = vld [vmem:[%s10689_s0 + $0x18] sm:$0xff]  ;;  %v25_v9 = vld [vmem:[%s10689_s0 + $0x28] sm:$0xff]  ;;  %s7418_s24 = smov 60   ;;  %s7420_s17 = smov 84  }
   0x4   :  { %106 = vmatpush.msra.mxu0 %v38_v1  ;;  %v24_v8 = vld [vmem:[%s10689_s0 + $0x20] sm:$0xff]  ;;  %v26_v10 = vld [vmem:[%s10689_s0 + $0x30] sm:$0xff]  ;;  %v27_v11 = vld [vmem:[%s10689_s0 + $0x38] sm:$0xff]  ;;  %s7421_s25 = smov 116   ;;  %s7422_s26 = smov 80  }
   0x5   :  { %v6892_v15 = vld [vmem:[%s10690_s2] ss:$0 sm:$0xff]  ;;  %v29_v60 = vld [vmem:[%s10689_s0 + $0x48] sm:$0xff]  ;;  %v30_v1 = vld [vmem:[%s10689_s0 + $0x50] sm:$0xff]  ;;  %s7423_s27 = smov 112   ;;  %s7424_s28 = smov 52  }
   0x6   :  { %107 = vmatpush.msra.mxu0 %v37_v2  ;;  %v28_v56 = vld [vmem:[%s10689_s0 + $0x40] sm:$0xff]  ;;  %s7425_s6 = smov 48   ;;  %s7426_s1 = smov 72  }
   0x7   :  { %s7427_s7 = smov 104   ;;  %s7428_s8 = smov 76  }
   0x8   :  { %108 = vmatpush.msra.mxu0 %v36_v3  ;;  %v31_v3 = vld [vmem:[%s10689_s0 + $0x58] sm:$0xff]  ;;  %s7429_s9 = smov 108   ;;  %s7430_s12 = smov 40  }
   0x9   :  { %5989 = vmatmul.msk.f32.vlgmr.msra.gmra.mxu0 %vm44_vm0, %v20_v4  ;;  %s7431_s13 = smov 44   ;;  %s7433_s16 = smov 100  }
   0xa   :  { %s7434_s29 = smov 36  }
  0x11   :  { %5990 = vmatmul.msk.f32.gmra.mxu0 %vm44_vm0, %v21_v5 }
  0x19   :  { %5991 = vmatmul.msk.f32.gmra.mxu0 %vm44_vm0, %v22_v6 }
  0x21   :  { %5992 = vmatmul.msk.f32.gmra.mxu0 %vm44_vm0, %v23_v7  ;;  %v32_v7 = vld [vmem:[%s10689_s0 + $0x60] sm:$0xff] }
  0x29   :  { %5993 = vmatmul.msk.f32.gmra.mxu0 %vm44_vm0, %v24_v8 }
  0x31   :  { %5994 = vmatmul.msk.f32.gmra.mxu0 %vm44_vm0, %v25_v9 }
  0x39   :  { %5995 = vmatmul.msk.f32.gmra.mxu0 %vm44_vm0, %v26_v10 }
  0x41   :  { %5996 = vmatmul.msk.f32.gmra.mxu0 %vm44_vm0, %v27_v11  ;;  %v33_v11 = vld [vmem:[%s10689_s0 + $0x68] sm:$0xff] }
  0x49   :  { %5997 = vmatmul.msk.f32.gmra.mxu0 %vm44_vm0, %v28_v56 }
  0x51   :  { %5998 = vmatmul.msk.f32.gmra.mxu0 %vm44_vm0, %v29_v60 }
  0x59   :  { %5999 = vmatmul.msk.f32.gmra.mxu0 %vm44_vm0, %v30_v1 }
  0x61   :  { %6000 = vmatmul.msk.f32.gmra.mxu0 %vm44_vm0, %v31_v3 }
  0x69   :  { %6001 = vmatmul.msk.f32.gmra.mxu0 %vm44_vm0, %v32_v7 }
  0x71   :  { %6002 = vmatmul.msk.f32.gmra.mxu0 %vm44_vm0, %v33_v11 }
  0x86   :  { %v110_v12 = vpop.f32.mrf.mxu0 }
  0x87   :  { %v7536_v27 = vadd.f32 %v6892_v15, %v110_v12 }
  0x8e   :  { %v113_v13 = vpop.f32.mrf.mxu0 }
  0x8f   :  { %v7528_v24 = vadd.f32 %v6892_v15, %v113_v13 }
  0x91   :  { %v7626_v39 = vpack.i.bf16 %v7536_v27, %v7528_v24 }
  0x96   :  { %v116_v14 = vpop.f32.mrf.mxu0 }
  0x97   :  { %v7516_v19 = vadd.f32 %v6892_v15, %v116_v14 }
  0x9e   :  { %v119_v16 = vpop.f32.mrf.mxu0 }
  0x9f   :  { %v7512_v17 = vadd.f32 %v6892_v15, %v119_v16 }
  0xa1   :  { %177 = vrot.lane.b32.xlu2 %v7512_v17, %s7412_s18  ;;  %v7618_v36 = vpack.i.bf16 %v7516_v19, %v7512_v17 }
  0xa6   :  { %v122_v18 = vpop.f32.mrf.mxu0 }
  0xa7   :  { %v7520_v21 = vadd.f32 %v6892_v15, %v122_v18 }
  0xa9   :  { %175 = vrot.lane.b32.xlu2 %v7516_v19, %s7412_s18 }
  0xae   :  { %v125_v20 = vpop.f32.mrf.mxu0 }
  0xaf   :  { %v7522_v22 = vadd.f32 %v6892_v15, %v125_v20  ;;  %v34_v20 = vld [vmem:[%s10689_s0 + $0x70] sm:$0xff] }
  0xb0   :  { %6003 = vmatmul.msk.f32.gmra.mxu0 %vm44_vm0, %v34_v20 }
  0xb1   :  { %181 = vrot.lane.b32.xlu1 %v7522_v22, %s7412_s18  ;;  %471 = vrot.lane.b32.xlu2 %v7520_v21, %s7413_s19  ;;  %v7596_v31 = vpack.i.bf16 %v7520_v21, %v7522_v22 }
  0xb6   :  { %v128_v23 = vpop.f32.mrf.mxu0 }
  0xb7   :  { %v7544_v28 = vadd.f32 %v6892_v15, %v128_v23 }
  0xb9   :  { %179 = vrot.lane.b32.xlu1 %v7520_v21, %s7412_s18  ;;  %465 = vrot.lane.b32.xlu2 %v7528_v24, %s7413_s19 }
  0xbe   :  { %v131_v25 = vpop.f32.mrf.mxu0 }
  0xbf   :  { %v7534_v26 = vadd.f32 %v6892_v15, %v131_v25 }
  0xc1   :  { %185 = vrot.lane.b32.xlu0 %v7534_v26, %s7412_s18  ;;  %449 = vrot.lane.b32.xlu2 %v7528_v24, %s7414_s20  ;;  %v7610_v34 = vpack.i.bf16 %v7544_v28, %v7534_v26 }
  0xc2   :  { %171 = vrot.lane.b32.xlu1 %v7536_v27, %s7412_s18 }
  0xc9   :  { %183 = vrot.lane.b32.xlu0 %v7544_v28, %s7412_s18  ;;  %455 = vrot.lane.b32.xlu2 %v7520_v21, %s7414_s20 }
  0xca   :  { %473 = vrot.lane.b32.xlu1 %v7522_v22, %s7413_s19 }
  0xd1   :  { %902 = vrot.lane.b32.xlu2 %v7544_v28, %s7415_s21  ;;  %173 = vrot.lane.b32.xlu0 %v7528_v24, %s7412_s18 }
  0xd2   :  { %467 = vrot.lane.b32.xlu1 %v7516_v19, %s7413_s19 }
  0xd9   :  { %898 = vrot.lane.b32.xlu2 %v7520_v21, %s7415_s21  ;;  %475 = vrot.lane.b32.xlu0 %v7544_v28, %s7413_s19 }
  0xda   :  { %447 = vrot.lane.b32.xlu1 %v7536_v27, %s7414_s20 }
  0xe1   :  { %477 = vrot.lane.b32.xlu2 %v7534_v26, %s7413_s19  ;;  %469 = vrot.lane.b32.xlu0 %v7512_v17, %s7413_s19 }
  0xe2   :  { %453 = vrot.lane.b32.xlu1 %v7512_v17, %s7414_s20 }
  0xe9   :  { %894 = vrot.lane.b32.xlu2 %v7516_v19, %s7415_s21  ;;  %463 = vrot.lane.b32.xlu0 %v7536_v27, %s7413_s19 }
  0xea   :  { %457 = vrot.lane.b32.xlu1 %v7522_v22, %s7414_s20 }
  0xf1   :  { %874 = vrot.lane.b32.xlu2 %v7536_v27, %s7416_s22  ;;  %451 = vrot.lane.b32.xlu0 %v7516_v19, %s7414_s20 }
  0xf2   :  { %459 = vrot.lane.b32.xlu1 %v7544_v28, %s7414_s20 }
  0xf9   :  { %880 = vrot.lane.b32.xlu2 %v7512_v17, %s7416_s22  ;;  %900 = vrot.lane.b32.xlu0 %v7522_v22, %s7415_s21 }
  0xfa   :  { %890 = vrot.lane.b32.xlu1 %v7536_v27, %s7415_s21 }
  0xfb   :  { %v178_v29 = vpop.permute.xlu2 %177 }
 0x101   :  { %886 = vrot.lane.b32.xlu2 %v7544_v28, %s7416_s22  ;;  %896 = vrot.lane.b32.xlu0 %v7512_v17, %s7415_s21 }
 0x102   :  { %878 = vrot.lane.b32.xlu1 %v7516_v19, %s7416_s22 }
 0x103   :  { %v176_v30 = vpop.permute.xlu2 %175 }
 0x109   :  { %6573 = vrot.lane.b32.xlu2 %v7596_v31, %s7417_s23  ;;  %892 = vrot.lane.b32.xlu0 %v7528_v24, %s7415_s21 }
 0x10a   :  { %884 = vrot.lane.b32.xlu1 %v7522_v22, %s7416_s22 }
 0x10b   :  { %v472_v32 = vpop.permute.xlu2 %471 }
 0x111   :  { %876 = vrot.lane.b32.xlu0 %v7528_v24, %s7416_s22 }
 0x112   :  { %461 = vrot.lane.b32.xlu1 %v7534_v26, %s7414_s20 }
 0x113   :  { %v466_v33 = vpop.permute.xlu2 %465 }
 0x119   :  { %882 = vrot.lane.b32.xlu0 %v7520_v21, %s7416_s22 }
 0x11a   :  { %6588 = vrot.lane.b32.xlu1 %v7610_v34, %s7417_s23 }
 0x11b   :  { %v450_v35 = vpop.permute.xlu2 %449 }
 0x121   :  { %6578 = vrot.lane.b32.xlu0 %v7618_v36, %s7417_s23 }
 0x123   :  { %v182_v37 = vpop.permute.xlu1 %181  ;;  %v7622_v38 = vpop.permute.xlu2 %455 }
 0x129   :  { %6583 = vrot.lane.b32.xlu0 %v7626_v39, %s7417_s23 }
 0x12b   :  { %v180_v40 = vpop.permute.xlu1 %179  ;;  %v7630_v41 = vpop.permute.xlu2 %902 }
 0x131   :  { %904 = vrot.lane.b32.xlu0 %v7534_v26, %s7415_s21 }
 0x133   :  { %v186_v42 = vpop.permute.xlu0 %185  ;;  %v7634_v43 = vpop.permute.xlu2 %898 }
 0x134   :  { %v172_v44 = vpop.permute.xlu1 %171  ;;  %6005 = vmatpush.xpose.msk.msra.mxu1 %vm187_vm1, %v186_v42 }
 0x139   :  { %888 = vrot.lane.b32.xlu0 %v7534_v26, %s7416_s22 }
 0x13b   :  { %v184_v45 = vpop.permute.xlu0 %183  ;;  %v478_v46 = vpop.permute.xlu2 %477 }
 0x13c   :  { %v474_v47 = vpop.permute.xlu1 %473  ;;  %6006 = vmatpush.xpose.msk.msra.mxu1 %vm187_vm1, %v184_v45  ;;  %6029 = vmatpush.xpose.msk.msra.mxu3 %vm187_vm1, %v478_v46 }
 0x140   :  { %6007 = vmatpush.xpose.msk.msra.mxu1 %vm187_vm1, %v182_v37 }
 0x141   :  { %6593 = vrot.lane.b32.xlu0 %v7610_v34, %s7418_s24 }
 0x143   :  { %v174_v48 = vpop.permute.xlu0 %173  ;;  %v7664_v59 = vpop.permute.xlu2 %894 }
 0x144   :  { %v468_v49 = vpop.permute.xlu1 %467  ;;  %6008 = vmatpush.xpose.msk.msra.mxu1 %vm187_vm1, %v180_v40 }
 0x148   :  { %6009 = vmatpush.xpose.msk.msra.mxu1 %vm187_vm1, %v178_v29 }
 0x14b   :  { %v476_v50 = vpop.permute.xlu0 %475  ;;  %v7680_v63 = vpop.permute.xlu2 %874 }
 0x14c   :  { %v448_v51 = vpop.permute.xlu1 %447  ;;  %6010 = vmatpush.xpose.msk.msra.mxu1 %vm187_vm1, %v176_v30  ;;  %6030 = vmatpush.xpose.msk.msra.mxu3 %vm187_vm1, %v476_v50 }
 0x150   :  { %6011 = vmatpush.xpose.msk.msra.mxu1 %vm187_vm1, %v174_v48  ;;  %6031 = vmatpush.xpose.msk.msra.mxu3 %vm187_vm1, %v474_v47 }
 0x153   :  { %v470_v52 = vpop.permute.xlu0 %469  ;;  %v7696_v4 = vpop.permute.xlu2 %880 }
 0x154   :  { %v454_v53 = vpop.permute.xlu1 %453  ;;  %6012 = vmatpush.xpose.msk.msra.mxu1 %vm187_vm1, %v172_v44  ;;  %6032 = vmatpush.xpose.msk.msra.mxu3 %vm187_vm1, %v472_v32  ;;  %v35_v32 = vld [vmem:[%s10689_s0 + $0x78] sm:$0xff]  ;;  %s7419_s0 = smov 56  }
 0x155   :  { %6004 = vmatmul.msk.f32.gmra.mxu0 %vm44_vm0, %v35_v32 }
 0x157   :  { %6013 = vmatmul.msk.f32.vlgmr.msra.gmra.mxu1 %vm187_vm1, %v7536_v27 }
 0x158   :  { %6033 = vmatpush.xpose.msk.msra.mxu3 %vm187_vm1, %v470_v52 }
 0x15b   :  { %v464_v54 = vpop.permute.xlu0 %463  ;;  %v7709_v9 = vpop.permute.xlu2 %886 }
 0x15c   :  { %v458_v55 = vpop.permute.xlu1 %457  ;;  %6034 = vmatpush.xpose.msk.msra.mxu3 %vm187_vm1, %v468_v49 }
 0x15f   :  { %6014 = vmatmul.msk.f32.gmra.mxu1 %vm187_vm1, %v7528_v24 }
 0x160   :  { %6035 = vmatpush.xpose.msk.msra.mxu3 %vm187_vm1, %v466_v33 }
 0x163   :  { %v452_v57 = vpop.permute.xlu0 %451  ;;  %v6574_v15 = vpop.permute.xlu2 %6573 }
 0x164   :  { %v460_v58 = vpop.permute.xlu1 %459  ;;  %6036 = vmatpush.xpose.msk.msra.mxu3 %vm187_vm1, %v464_v54  ;;  %v6575_v18 = vunpack.i.l.bf16 %v6574_v15  ;;  %v6576_v25 = vunpack.i.h.bf16 %v6574_v15 }
 0x167   :  { %6015 = vmatmul.msk.f32.gmra.mxu1 %vm187_vm1, %v7516_v19  ;;  %6037 = vmatmul.msk.f32.vlgmr.msra.gmra.mxu3 %vm187_vm1, %v448_v51 }
 0x16b   :  { %v7673_v61 = vpop.permute.xlu0 %900 }
 0x16c   :  { %v7675_v62 = vpop.permute.xlu1 %890 }
 0x16f   :  { %6016 = vmatmul.msk.f32.gmra.mxu1 %vm187_vm1, %v7512_v17  ;;  %6038 = vmatmul.msk.f32.gmra.mxu3 %vm187_vm1, %v450_v35 }
 0x173   :  { %v7682_v0 = vpop.permute.xlu0 %896 }
 0x174   :  { %v7687_v2 = vpop.permute.xlu1 %878 }
 0x177   :  { %6017 = vmatmul.msk.f32.gmra.mxu1 %vm187_vm1, %v7520_v21  ;;  %6039 = vmatmul.msk.f32.gmra.mxu3 %vm187_vm1, %v452_v57 }
 0x17b   :  { %v7698_v5 = vpop.permute.xlu0 %892 }
 0x17c   :  { %v7700_v6 = vpop.permute.xlu1 %884 }
 0x17f   :  { %6018 = vmatmul.msk.f32.gmra.mxu1 %vm187_vm1, %v7522_v22  ;;  %6040 = vmatmul.msk.f32.gmra.mxu3 %vm187_vm1, %v454_v53 }
 0x183   :  { %v877_v8 = vpop.permute.xlu0 %876 }
 0x184   :  { %v462_v10 = vpop.permute.xlu1 %461 }
 0x187   :  { %6019 = vmatmul.msk.f32.gmra.mxu1 %vm187_vm1, %v7544_v28  ;;  %6041 = vmatmul.msk.f32.gmra.mxu3 %vm187_vm1, %v7622_v38 }
 0x18b   :  { %v7719_v12 = vpop.permute.xlu0 %882 }
 0x18c   :  { %v6589_v13 = vpop.permute.xlu1 %6588 }
 0x18d   :  { %v6590_v14 = vunpack.i.l.bf16 %v6589_v13  ;;  %v6591_v16 = vunpack.i.h.bf16 %v6589_v13 }
 0x18f   :  { %414 = vmatpush.msrb.mxu1 %v6590_v14  ;;  %6533 = vmatpush.msra.mxu2 %v6590_v14 }
 0x190   :  { %6020 = vmatmul.msk.f32.gmra.mxu1 %vm187_vm1, %v7534_v26  ;;  %6042 = vmatmul.msk.f32.gmra.mxu3 %vm187_vm1, %v458_v55 }
 0x191   :  { %415 = vmatpush.msrb.mxu1 %v6591_v16  ;;  %6534 = vmatpush.msra.mxu2 %v6591_v16 }
 0x193   :  { %416 = vmatpush.msrb.mxu1 %v6575_v18  ;;  %6535 = vmatpush.msra.mxu2 %v6575_v18  ;;  %v6579_v23 = vpop.permute.xlu0 %6578 }
 0x194   :  { %v6580_v29 = vunpack.i.l.bf16 %v6579_v23  ;;  %v6581_v30 = vunpack.i.h.bf16 %v6579_v23 }
 0x195   :  { %417 = vmatpush.msrb.mxu1 %v6576_v25  ;;  %6536 = vmatpush.msra.mxu2 %v6576_v25 }
 0x197   :  { %418 = vmatpush.msrb.mxu1 %v6580_v29  ;;  %6537 = vmatpush.msra.mxu2 %v6580_v29 }
 0x198   :  { %6043 = vmatmul.msk.f32.gmra.mxu3 %vm187_vm1, %v460_v58 }
 0x199   :  { %419 = vmatpush.msrb.mxu1 %v6581_v30  ;;  %6538 = vmatpush.msra.mxu2 %v6581_v30 }
 0x19b   :  { %v6584_v33 = vpop.permute.xlu0 %6583 }
 0x19c   :  { %v6585_v35 = vunpack.i.l.bf16 %v6584_v33  ;;  %v6586_v37 = vunpack.i.h.bf16 %v6584_v33 }
 0x19e   :  { %420 = vmatpush.msrb.mxu1 %v6585_v35  ;;  %6539 = vmatpush.msra.mxu2 %v6585_v35 }
 0x1a0   :  { %6044 = vmatmul.msk.f32.gmra.mxu3 %vm187_vm1, %v462_v10  ;;  %421 = vmatpush.msrb.mxu1 %v6586_v37 }
 0x1a1   :  { %6540 = vmatpush.msra.mxu2 %v6586_v37 }
 0x1a3   :  { %v905_v38 = vpop.permute.xlu0 %904 }
 0x1a4   :  { %6071 = vmatpush.xpose.msk.msrb.mxu0 %vm187_vm1, %v905_v38 }
 0x1a8   :  { %6072 = vmatpush.xpose.msk.msrb.mxu0 %vm187_vm1, %v7630_v41 }
 0x1ab   :  { %v889_v40 = vpop.permute.xlu0 %888 }
 0x1ac   :  { %6073 = vmatpush.xpose.msk.msrb.mxu0 %vm187_vm1, %v7673_v61 }
 0x1b0   :  { %6074 = vmatpush.xpose.msk.msrb.mxu0 %vm187_vm1, %v7634_v43 }
 0x1b3   :  { %v6594_v42 = vpop.permute.xlu0 %6593 }
 0x1b4   :  { %6075 = vmatpush.xpose.msk.msrb.mxu0 %vm187_vm1, %v7682_v0  ;;  %v6595_v44 = vunpack.i.l.bf16 %v6594_v42  ;;  %v6596_v45 = vunpack.i.h.bf16 %v6594_v42 }
 0x1b6   :  { %704 = vmatpush.msrb.mxu2 %v6595_v44 }
 0x1b8   :  { %705 = vmatpush.msrb.mxu2 %v6596_v45  ;;  %6076 = vmatpush.xpose.msk.msrb.mxu0 %vm187_vm1, %v7664_v59 }
 0x1bc   :  { %6077 = vmatpush.xpose.msk.msrb.mxu0 %vm187_vm1, %v7698_v5 }
 0x1c0   :  { %6078 = vmatpush.xpose.msk.msrb.mxu0 %vm187_vm1, %v7675_v62 }
 0x1c3   :  { %6079 = vmatmul.msk.f32.vlgmr.msrb.gmra.mxu0 %vm187_vm1, %v7680_v63 }
 0x1cb   :  { %6080 = vmatmul.msk.f32.gmra.mxu0 %vm187_vm1, %v877_v8 }
 0x1d3   :  { %6081 = vmatmul.msk.f32.gmra.mxu0 %vm187_vm1, %v7687_v2  ;;  %v7790_v2 = vpop.f32.mrf.mxu0 }
 0x1d4   :  { %v237_v41 = vpop.f32.mrf.mxu1 }
 0x1d5   :  { %v7755_v43 = vmul.f32 0.5, %v237_v41 }
 0x1d7   :  { %v270_v46 = vsel %vm269_vm2, %v7755_v43, -inf }
 0x1d8   :  { %271 = vmax.xlane.f32.xlu2 %v270_v46 }
 0x1db   :  { %6082 = vmatmul.msk.f32.gmra.mxu0 %vm187_vm1, %v7696_v4 }
 0x1dc   :  { %v240_v47 = vpop.f32.mrf.mxu1 }
 0x1dd   :  { %v7761_v48 = vmul.f32 0.5, %v240_v47 }
 0x1df   :  { %v273_v49 = vsel %vm269_vm2, %v7761_v48, -inf }
 0x1e0   :  { %274 = vmax.xlane.f32.xlu2 %v273_v49 }
 0x1e3   :  { %6083 = vmatmul.msk.f32.gmra.mxu0 %vm187_vm1, %v7719_v12  ;;  %v7806_v12 = vpop.f32.mrf.mxu0 }
 0x1e4   :  { %v243_v50 = vpop.f32.mrf.mxu1 }
 0x1e5   :  { %v7767_v51 = vmul.f32 0.5, %v243_v50 }
 0x1e7   :  { %v276_v52 = vsel %vm269_vm2, %v7767_v51, -inf }
 0x1e8   :  { %277 = vmax.xlane.f32.xlu1 %v276_v52 }
 0x1ea   :  { %v528_v53 = vpop.f32.mrf.mxu3 }
 0x1eb   :  { %v7771_v54 = vmul.f32 0.5, %v528_v53  ;;  %6084 = vmatmul.msk.f32.gmra.mxu0 %vm187_vm1, %v7700_v6  ;;  %v7814_v20 = vpop.f32.mrf.mxu0 }
 0x1ec   :  { %v246_v55 = vpop.f32.mrf.mxu1 }
 0x1ed   :  { %v7775_v56 = vmul.f32 0.5, %v246_v55  ;;  %v560_v57 = vsel %vm269_vm2, %v7771_v54, -inf }
 0x1ee   :  { %561 = vmax.xlane.f32.xlu0 %v560_v57 }
 0x1ef   :  { %v279_v58 = vsel %vm269_vm2, %v7775_v56, -inf }
 0x1f0   :  { %280 = vmax.xlane.f32.xlu1 %v279_v58 }
 0x1f2   :  { %v531_v59 = vpop.f32.mrf.mxu3 }
 0x1f3   :  { %v7781_v60 = vmul.f32 0.5, %v531_v59  ;;  %6085 = vmatmul.msk.f32.gmra.mxu0 %vm187_vm1, %v7709_v9  ;;  %v7826_v33 = vpop.f32.mrf.mxu0 }
 0x1f4   :  { %v249_v61 = vpop.f32.mrf.mxu1 }
 0x1f5   :  { %v563_v62 = vsel %vm269_vm2, %v7781_v60, -inf  ;;  %v7798_v6 = vmul.f32 0.5, %v249_v61 }
 0x1f6   :  { %564 = vmax.xlane.f32.xlu0 %v563_v62 }
 0x1f7   :  { %v282_v10 = vsel %vm269_vm2, %v7798_v6, -inf }
 0x1fa   :  { %v534_v63 = vpop.f32.mrf.mxu3 }
 0x1fb   :  { %v7787_v0 = vmul.f32 0.5, %v534_v63  ;;  %6086 = vmatmul.msk.f32.gmra.mxu0 %vm187_vm1, %v889_v40  ;;  %v7832_v40 = vpop.f32.mrf.mxu0 }
 0x1fc   :  { %v252_v1 = vpop.f32.mrf.mxu1 }
 0x1fd   :  { %v7792_v3 = vmul.f32 0.5, %v252_v1  ;;  %v566_v4 = vsel %vm269_vm2, %v7787_v0, -inf }
 0x1fe   :  { %567 = vmax.xlane.f32.xlu2 %v566_v4 }
 0x1ff   :  { %v285_v5 = vsel %vm269_vm2, %v7792_v3, -inf }
 0x200   :  { %286 = vmax.xlane.f32.xlu0 %v285_v5 }
 0x202   :  { %v537_v7 = vpop.f32.mrf.mxu3 }
 0x203   :  { %v7800_v8 = vmul.f32 0.5, %v537_v7  ;;  %v7840_v41 = vpop.f32.mrf.mxu0 }
 0x204   :  { %v255_v9 = vpop.f32.mrf.mxu1 }
 0x205   :  { %v569_v11 = vsel %vm269_vm2, %v7800_v8, -inf  ;;  %v7824_v32 = vmul.f32 0.5, %v255_v9 }
 0x206   :  { %283 = vmax.xlane.f32.xlu2 %v282_v10  ;;  %570 = vmax.xlane.f32.xlu1 %v569_v11 }
 0x207   :  { %v288_v37 = vsel %vm269_vm2, %v7824_v32, -inf }
 0x20a   :  { %v540_v13 = vpop.f32.mrf.mxu3 }
 0x20b   :  { %v7808_v14 = vmul.f32 0.5, %v540_v13  ;;  %v7844_v47 = vpop.f32.mrf.mxu0 }
 0x20d   :  { %v258_v15 = vpop.f32.mrf.mxu1  ;;  %v572_v16 = vsel %vm269_vm2, %v7808_v14, -inf }
 0x20e   :  { %v7812_v18 = vmul.f32 0.5, %v258_v15  ;;  %573 = vmax.xlane.f32.xlu2 %v572_v16 }
 0x210   :  { %v291_v23 = vsel %vm269_vm2, %v7812_v18, -inf }
 0x211   :  { %292 = vmax.xlane.f32.xlu1 %v291_v23 }
 0x213   :  { %v543_v25 = vpop.f32.mrf.mxu3  ;;  %v7846_v49 = vpop.f32.mrf.mxu0 }
 0x214   :  { %v7818_v29 = vmul.f32 0.5, %v543_v25  ;;  %6603 = vrot.lane.b32.xlu0 %v7618_v36, %s7418_s24 }
 0x216   :  { %v575_v30 = vsel %vm269_vm2, %v7818_v29, -inf }
 0x217   :  { %576 = vmax.xlane.f32.xlu2 %v575_v30 }
 0x21b   :  { %v546_v35 = vpop.f32.mrf.mxu3 }
 0x21c   :  { %v7830_v38 = vmul.f32 0.5, %v546_v35 }
 0x21e   :  { %v578_v42 = vsel %vm269_vm2, %v7830_v38, -inf }
 0x21f   :  { %289 = vmax.xlane.f32.xlu2 %v288_v37 }
 0x223   :  { %v549_v44 = vpop.f32.mrf.mxu3 }
 0x224   :  { %v7836_v45 = vmul.f32 0.5, %v549_v44 }
 0x226   :  { %v581_v46 = vsel %vm269_vm2, %v7836_v45, -inf }
 0x227   :  { %579 = vmax.xlane.f32.xlu2 %v578_v42 }
 0x22a   :  { %6598 = vrot.lane.b32.xlu1 %v7596_v31, %s7418_s24 }
 0x22f   :  { %582 = vmax.xlane.f32.xlu2 %v581_v46 }
 0x240   :  { %v7848_v52 = vpop.f32.mrf.mxu0 }
 0x248   :  { %v7854_v61 = vpop.f32.mrf.mxu0 }
 0x24b   :  { %v272_v50 = vpop.xlane.xlu2 %271 }
 0x24c   :  { %v294_v53 = vsub.f32 %v7755_v43, %v272_v50 }
 0x24e   :  { %v302_v55 = vmul.f32 1.442695, %v294_v53 }
 0x250   :  { %6894 = vpow2.f32 %v302_v55  ;;  %v961_v5 = vpop.f32.mrf.mxu0 }
 0x251   :  { %v7863_v9 = vmul.f32 0.5, %v961_v5 }
 0x253   :  { %v275_v57 = vpop.xlane.xlu2 %274  ;;  %v993_v16 = vsel %vm269_vm2, %v7863_v9, -inf }
 0x254   :  { %v295_v58 = vsub.f32 %v7761_v48, %v275_v57 }
 0x256   :  { %v7852_v59 = vpop.eup %6894  ;;  %v304_v62 = vmul.f32 1.442695, %v295_v58 }
 0x257   :  { %v318_v63 = vsel %vm269_vm2, %v7852_v59, 0.0 }
 0x258   :  { %6896 = vpow2.f32 %v304_v62  ;;  %319 = vadd.xlane.f32.xlu2 %v318_v63 }
 0x25b   :  { %v278_v1 = vpop.xlane.xlu1 %277 }
 0x25e   :  { %v7858_v4 = vpop.eup %6896 }
 0x25f   :  { %v321_v43 = vsel %vm269_vm2, %v7858_v4, 0.0 }
 0x260   :  { %322 = vadd.xlane.f32.xlu1 %v321_v43 }
 0x261   :  { %v562_v7 = vpop.xlane.xlu0 %561 }
 0x262   :  { %v584_v48 = vsub.f32 %v7771_v54, %v562_v7  ;;  %v296_v54 = vsub.f32 %v7767_v51, %v278_v1 }
 0x263   :  { %v281_v10 = vpop.xlane.xlu1 %280 }
 0x264   :  { %v592_v11 = vmul.f32 1.442695, %v584_v48  ;;  %v297_v13 = vsub.f32 %v7775_v56, %v281_v10  ;;  %v306_v44 = vmul.f32 1.442695, %v296_v54 }
 0x266   :  { %6898 = vpow2.f32 %v592_v11  ;;  %v308_v15 = vmul.f32 1.442695, %v297_v13 }
 0x268   :  { %6900 = vpow2.f32 %v308_v15  ;;  %994 = vmax.xlane.f32.xlu1 %v993_v16 }
 0x269   :  { %v565_v23 = vpop.xlane.xlu0 %564 }
 0x26a   :  { %v585_v25 = vsub.f32 %v7781_v60, %v565_v23  ;;  %v7903_v23 = vmul.f32 0.5, %v7854_v61 }
 0x26c   :  { %v7869_v30 = vpop.eup %6898  ;;  %v594_v35 = vmul.f32 1.442695, %v585_v25 }
 0x26d   :  { %v608_v37 = vsel %vm269_vm2, %v7869_v30, 0.0 }
 0x26e   :  { %v7874_v42 = vpop.eup %6900  ;;  %6902 = vpow2.f32 %v594_v35  ;;  %609 = vadd.xlane.f32.xlu2 %v608_v37  ;;  %v7906_v35 = vpop.f32.mrf.mxu0 }
 0x26f   :  { %v327_v56 = vsel %vm269_vm2, %v7874_v42, 0.0  ;;  %6904 = vpow2.f32 %v306_v44 }
 0x270   :  { %328 = vadd.xlane.f32.xlu0 %v327_v56 }
 0x271   :  { %v568_v46 = vpop.xlane.xlu2 %567 }
 0x272   :  { %v586_v51 = vsub.f32 %v7787_v0, %v568_v46 }
 0x273   :  { %v287_v50 = vpop.xlane.xlu0 %286 }
 0x274   :  { %v7878_v60 = vpop.eup %6902  ;;  %v299_v53 = vsub.f32 %v7792_v3, %v287_v50  ;;  %v596_v58 = vmul.f32 1.442695, %v586_v51 }
 0x275   :  { %v611_v55 = vsel %vm269_vm2, %v7878_v60, 0.0  ;;  %v7884_v63 = vpop.eup %6904 }
 0x276   :  { %v312_v57 = vmul.f32 1.442695, %v299_v53  ;;  %612 = vadd.xlane.f32.xlu2 %v611_v55  ;;  %v324_v5 = vsel %vm269_vm2, %v7884_v63, 0.0 }
 0x278   :  { %6906 = vpow2.f32 %v312_v57  ;;  %v967_v57 = vpop.f32.mrf.mxu0 }
 0x279   :  { %v284_v62 = vpop.xlane.xlu2 %283  ;;  %6908 = vpow2.f32 %v596_v58  ;;  %v571_v7 = vpop.xlane.xlu1 %570 }
 0x27a   :  { %v298_v1 = vsub.f32 %v7798_v6, %v284_v62  ;;  %v587_v6 = vsub.f32 %v7800_v8, %v571_v7  ;;  %v990_v8 = vsel %vm269_vm2, %v7903_v23, -inf }
 0x27c   :  { %v310_v43 = vmul.f32 1.442695, %v298_v1  ;;  %v598_v16 = vmul.f32 1.442695, %v587_v6  ;;  %v7921_v1 = vmul.f32 0.5, %v967_v57 }
 0x27e   :  { %v7889_v0 = vpop.eup %6906  ;;  %6910 = vpow2.f32 %v310_v43  ;;  %325 = vadd.xlane.f32.xlu2 %v324_v5  ;;  %v999_v43 = vsel %vm269_vm2, %v7921_v1, -inf }
 0x27f   :  { %v333_v3 = vsel %vm269_vm2, %v7889_v0, 0.0  ;;  %v7893_v10 = vpop.eup %6908  ;;  %6912 = vpow2.f32 %v598_v16 }
 0x280   :  { %334 = vadd.xlane.f32.xlu1 %v333_v3  ;;  %v614_v13 = vsel %vm269_vm2, %v7893_v10, 0.0 }
 0x281   :  { %v574_v48 = vpop.xlane.xlu2 %573 }
 0x282   :  { %v588_v61 = vsub.f32 %v7808_v14, %v574_v48 }
 0x284   :  { %v7895_v11 = vpop.eup %6910  ;;  %v293_v44 = vpop.xlane.xlu1 %292  ;;  %v600_v62 = vmul.f32 1.442695, %v588_v61 }
 0x285   :  { %v330_v15 = vsel %vm269_vm2, %v7895_v11, 0.0  ;;  %v7910_v56 = vpop.eup %6912 }
 0x286   :  { %615 = vadd.xlane.f32.xlu2 %v614_v13  ;;  %331 = vadd.xlane.f32.xlu0 %v330_v15  ;;  %v617_v55 = vsel %vm269_vm2, %v7910_v56, 0.0  ;;  %v6604_v3 = vpop.permute.xlu0 %6603 }
 0x287   :  { %v6605_v6 = vunpack.i.l.bf16 %v6604_v3  ;;  %v6606_v16 = vunpack.i.h.bf16 %v6604_v3 }
 0x28a   :  { %v577_v25 = vpop.xlane.xlu2 %576 }
 0x28b   :  { %v589_v54 = vsub.f32 %v7818_v29, %v577_v25  ;;  %v301_v29 = vsub.f32 %v7812_v18, %v293_v44  ;;  %v970_v25 = vpop.f32.mrf.mxu0 }
 0x28d   :  { %v602_v37 = vmul.f32 1.442695, %v589_v54 }
 0x28e   :  { %991 = vmax.xlane.f32.xlu2 %v990_v8  ;;  %v7939_v8 = vmul.f32 0.5, %v970_v25 }
 0x28f   :  { %6914 = vpow2.f32 %v602_v37 }
 0x290   :  { %v1002_v44 = vsel %vm269_vm2, %v7939_v8, -inf }
 0x292   :  { %v290_v46 = vpop.xlane.xlu2 %289 }
 0x293   :  { %v300_v50 = vsub.f32 %v7824_v32, %v290_v46  ;;  %v316_v32 = vmul.f32 1.442695, %v301_v29  ;;  %v973_v46 = vpop.f32.mrf.mxu0 }
 0x295   :  { %v7914_v51 = vpop.eup %6914  ;;  %v314_v53 = vmul.f32 1.442695, %v300_v50  ;;  %v7943_v50 = vmul.f32 0.5, %v973_v46 }
 0x296   :  { %v623_v58 = vsel %vm269_vm2, %v7914_v51, 0.0  ;;  %618 = vadd.xlane.f32.xlu2 %v617_v55 }
 0x297   :  { %6916 = vpow2.f32 %v314_v53  ;;  %624 = vadd.xlane.f32.xlu1 %v623_v58  ;;  %v1005_v61 = vsel %vm269_vm2, %v7943_v50, -inf  ;;  %v7950_v53 = vmul.f32 0.5, %v7848_v52 }
 0x298   :  { %6918 = vpow2.f32 %v600_v62 }
 0x299   :  { %6920 = vpow2.f32 %v316_v32  ;;  %v987_v58 = vsel %vm269_vm2, %v7950_v53, -inf  ;;  %v7956_v32 = vmul.f32 0.5, %v7906_v35 }
 0x29a   :  { %6608 = vrot.lane.b32.xlu0 %v7626_v39, %s7418_s24  ;;  %v580_v29 = vpop.xlane.xlu2 %579 }
 0x29b   :  { %v590_v55 = vsub.f32 %v7830_v38, %v580_v29 }
 0x29c   :  { %v6599_v14 = vpop.permute.xlu1 %6598 }
 0x29d   :  { %v7925_v18 = vpop.eup %6916  ;;  %v6600_v5 = vunpack.i.l.bf16 %v6599_v14  ;;  %v6601_v48 = vunpack.i.h.bf16 %v6599_v14  ;;  %v604_v62 = vmul.f32 1.442695, %v590_v55 }
 0x29e   :  { %v336_v7 = vsel %vm269_vm2, %v7925_v18, 0.0  ;;  %1000 = vmax.xlane.f32.xlu2 %v999_v43  ;;  %v7931_v13 = vpop.eup %6918  ;;  %v996_v43 = vsel %vm269_vm2, %v7956_v32, -inf }
 0x29f   :  { %337 = vadd.xlane.f32.xlu1 %v336_v7  ;;  %706 = vmatpush.msrb.mxu2 %v6600_v5  ;;  %v7933_v15 = vpop.eup %6920  ;;  %v620_v54 = vsel %vm269_vm2, %v7931_v13, 0.0  ;;  %6922 = vpow2.f32 %v604_v62 }
 0x2a0   :  { %v339_v37 = vsel %vm269_vm2, %v7933_v15, 0.0 }
 0x2a1   :  { %707 = vmatpush.msrb.mxu2 %v6601_v48 }
 0x2a2   :  { %v583_v57 = vpop.xlane.xlu2 %582 }
 0x2a3   :  { %708 = vmatpush.msrb.mxu2 %v6605_v6  ;;  %v591_v35 = vsub.f32 %v7836_v45, %v583_v57 }
 0x2a5   :  { %709 = vmatpush.msrb.mxu2 %v6606_v16  ;;  %v7960_v52 = vpop.eup %6922  ;;  %v606_v48 = vmul.f32 1.442695, %v591_v35 }
 0x2a6   :  { %621 = vadd.xlane.f32.xlu2 %v620_v54  ;;  %v626_v3 = vsel %vm269_vm2, %v7960_v52, 0.0 }
 0x2a7   :  { %340 = vadd.xlane.f32.xlu1 %v339_v37 }
 0x2af   :  { %1003 = vmax.xlane.f32.xlu1 %v1002_v44 }
 0x2b7   :  { %1006 = vmax.xlane.f32.xlu1 %v1005_v61 }
 0x2be   :  { %6618 = vrot.lane.b32.xlu2 %v7596_v31, %s7419_s0 }
 0x2c4   :  { %988 = vmax.xlane.f32.xlu0 %v987_v58 }
 0x2cb   :  { %v320_v14 = vpop.xlane.xlu2 %319 }
 0x2cc   :  { %6924 = vrcp.f32 %v320_v14  ;;  %997 = vmax.xlane.f32.xlu0 %v996_v43 }
 0x2d2   :  { %v6925_v5 = vpop.eup %6924 }
 0x2d3   :  { %v323_v38 = vpop.xlane.xlu1 %322  ;;  %v350_v7 = vmul.f32 %v6925_v5, %v7852_v59  ;;  %v976_v5 = vpop.f32.mrf.mxu0 }
 0x2d4   :  { %6926 = vrcp.f32 %v323_v38  ;;  %627 = vadd.xlane.f32.xlu0 %v626_v3 }
 0x2d5   :  { %6021 = vmatmul.msk.f32.vlgmr.msrb.gmra.mxu1 %vm269_vm2, %v350_v7  ;;  %6928 = vpow2.f32 %v606_v48  ;;  %v7989_v7 = vmul.f32 0.5, %v976_v5 }
 0x2da   :  { %v6927_v6 = vpop.eup %6926 }
 0x2db   :  { %v351_v16 = vmul.f32 %v6927_v6, %v7858_v4  ;;  %v7969_v54 = vpop.eup %6928  ;;  %v7977_v61 = vpop.xlane.xlu1 %994 }
 0x2dc   :  { %v629_v59 = vsel %vm269_vm2, %v7969_v54, 0.0 }
 0x2dd   :  { %6022 = vmatmul.msk.f32.gmra.mxu1 %vm269_vm2, %v351_v16 }
 0x2e1   :  { %v610_v25 = vpop.xlane.xlu2 %609 }
 0x2e3   :  { %v329_v37 = vpop.xlane.xlu0 %328 }
 0x2e4   :  { %6930 = vrcp.f32 %v329_v37 }
 0x2e7   :  { %630 = vadd.xlane.f32.xlu2 %v629_v59 }
 0x2e8   :  { %6613 = vrot.lane.b32.xlu0 %v7610_v34, %s7419_s0 }
 0x2e9   :  { %v613_v45 = vpop.xlane.xlu2 %612 }
 0x2ea   :  { %v6931_v44 = vpop.eup %6930 }
 0x2eb   :  { %v353_v46 = vmul.f32 %v6931_v44, %v7874_v42 }
 0x2ed   :  { %6024 = vmatmul.msk.f32.vlgmr.msra.gmra.mxu2 %vm269_vm2, %v353_v46 }
 0x2f1   :  { %v326_v4 = vpop.xlane.xlu2 %325 }
 0x2f2   :  { %6932 = vrcp.f32 %v326_v4 }
 0x2f3   :  { %v335_v58 = vpop.xlane.xlu1 %334 }
 0x2f8   :  { %v6933_v29 = vpop.eup %6932 }
 0x2f9   :  { %v332_v55 = vpop.xlane.xlu0 %331  ;;  %v352_v57 = vmul.f32 %v6933_v29, %v7884_v63  ;;  %v616_v43 = vpop.xlane.xlu2 %615 }
 0x2fa   :  { %6934 = vrcp.f32 %v332_v55 }
 0x2fb   :  { %6023 = vmatmul.msk.f32.gmra.mxu1 %vm269_vm2, %v352_v57  ;;  %6936 = vrcp.f32 %v335_v58 }
 0x2ff   :  { %6628 = vrot.lane.b32.xlu2 %v7626_v39, %s7419_s0 }
 0x300   :  { %v6935_v62 = vpop.eup %6934 }
 0x301   :  { %v354_v42 = vmul.f32 %v6935_v62, %v7895_v11  ;;  %v6937_v14 = vpop.eup %6936  ;;  %v1008_v11 = vsel %vm269_vm2, %v7989_v7, -inf  ;;  %v992_v16 = vpop.xlane.xlu2 %991 }
 0x302   :  { %v355_v63 = vmul.f32 %v6937_v14, %v7889_v0  ;;  %v1012_v37 = vsub.f32 %v7903_v23, %v992_v16 }
 0x303   :  { %6025 = vmatmul.msk.f32.gmra.mxu2 %vm269_vm2, %v354_v42 }
 0x304   :  { %v1021_v0 = vmul.f32 1.442695, %v1012_v37 }
 0x309   :  { %v619_v42 = vpop.xlane.xlu2 %618 }
 0x30a   :  { %v7985_v38 = vpop.xlane.xlu1 %624 }
 0x30b   :  { %6026 = vmatmul.msk.f32.gmra.mxu2 %vm269_vm2, %v355_v63  ;;  %v8013_v63 = vld [vmem:[%s10691_s3] sm:$0xff] }
 0x30c   :  { %v6609_v3 = vpop.permute.xlu0 %6608  ;;  %6062 = vmatpush.msk.msrb.mxu3 %vm763_vm3, %v8013_v63 }
 0x30d   :  { %v6610_v35 = vunpack.i.l.bf16 %v6609_v3  ;;  %v6611_v48 = vunpack.i.h.bf16 %v6609_v3 }
 0x30f   :  { %710 = vmatpush.msrb.mxu2 %v6610_v35 }
 0x311   :  { %711 = vmatpush.msrb.mxu2 %v6611_v48 }
 0x312   :  { %v338_v6 = vpop.xlane.xlu1 %337  ;;  %1009 = vmax.xlane.f32.xlu0 %v1008_v11 }
 0x313   :  { %6938 = vrcp.f32 %v338_v6 }
 0x319   :  { %v6939_v59 = vpop.eup %6938 }
 0x31a   :  { %v341_v44 = vpop.xlane.xlu1 %340  ;;  %v356_v46 = vmul.f32 %v6939_v59, %v7925_v18 }
 0x31b   :  { %6940 = vrcp.f32 %v341_v44 }
 0x31c   :  { %6027 = vmatmul.msk.f32.gmra.mxu2 %vm269_vm2, %v356_v46  ;;  %6942 = vpow2.f32 %v1021_v0 }
 0x31d   :  { %6944 = vrcp.f32 %v610_v25 }
 0x321   :  { %v6941_v4 = vpop.eup %6940 }
 0x322   :  { %v1004_v29 = vpop.xlane.xlu1 %1003  ;;  %v357_v55 = vmul.f32 %v6941_v4, %v7933_v15  ;;  %v7998_v58 = vpop.eup %6942 }
 0x323   :  { %v1016_v57 = vsub.f32 %v7939_v8, %v1004_v29  ;;  %v6945_v62 = vpop.eup %6944  ;;  %v1038_v18 = vsel %vm269_vm2, %v7998_v58, 0.0 }
 0x324   :  { %6028 = vmatmul.msk.f32.gmra.mxu2 %vm269_vm2, %v357_v55  ;;  %v640_v25 = vmul.f32 %v6945_v62, %v7869_v30  ;;  %v10695_v30 = vrot.slane %v8013_v63, 4 }
 0x325   :  { %v1029_v23 = vmul.f32 1.442695, %v1016_v57 }
 0x326   :  { %6053 = vmatpush.msk.msra.mxu1 %vm763_vm3, %v10695_v30 }
 0x327   :  { %6946 = vpow2.f32 %v1029_v23 }
 0x328   :  { %1039 = vadd.xlane.f32.xlu2 %v1038_v18  ;;  %6948 = vrcp.f32 %v613_v45  ;;  %v1001_v45 = vpop.xlane.xlu2 %1000 }
 0x329   :  { %6950 = vrcp.f32 %v616_v43  ;;  %v1015_v0 = vsub.f32 %v7921_v1, %v1001_v45 }
 0x32a   :  { %6952 = vrcp.f32 %v619_v42  ;;  %v1007_v29 = vpop.xlane.xlu1 %1006 }
 0x32c   :  { %6045 = vmatmul.msk.f32.vlgmr.msrb.gmra.mxu2 %vm269_vm2, %v640_v25 }
 0x32d   :  { %v8005_v15 = vpop.eup %6946 }
 0x32e   :  { %v6949_v8 = vpop.eup %6948  ;;  %v1050_v14 = vsel %vm269_vm2, %v8005_v15, 0.0 }
 0x32f   :  { %v641_v5 = vmul.f32 %v6949_v8, %v7878_v60  ;;  %v6951_v43 = vpop.eup %6950 }
 0x330   :  { %1051 = vadd.xlane.f32.xlu2 %v1050_v14  ;;  %v642_v48 = vmul.f32 %v6951_v43, %v7893_v10  ;;  %v622_v11 = vpop.xlane.xlu2 %621  ;;  %v6953_v6 = vpop.eup %6952  ;;  %v1027_v10 = vmul.f32 1.442695, %v1015_v0 }
 0x334   :  { %6046 = vmatmul.msk.f32.gmra.mxu2 %vm269_vm2, %v641_v5 }
 0x337   :  { %v989_v60 = vpop.xlane.xlu0 %988 }
 0x338   :  { %v1011_v3 = vsub.f32 %v7950_v53, %v989_v60  ;;  %v643_v53 = vmul.f32 %v6953_v6, %v7910_v56  ;;  %v1013_v6 = vsub.f32 %v7863_v9, %v7977_v61 }
 0x33a   :  { %v1019_v35 = vmul.f32 1.442695, %v1011_v3 }
 0x33c   :  { %6954 = vpow2.f32 %v1019_v35  ;;  %6047 = vmatmul.msk.f32.gmra.mxu2 %vm269_vm2, %v642_v48 }
 0x33d   :  { %6956 = vrcp.f32 %v622_v11 }
 0x33f   :  { %v998_v16 = vpop.xlane.xlu0 %997 }
 0x340   :  { %v1014_v37 = vsub.f32 %v7956_v32, %v998_v16  ;;  %v1017_v32 = vsub.f32 %v7943_v50, %v1007_v29  ;;  %v1023_v16 = vmul.f32 1.442695, %v1013_v6 }
 0x342   :  { %v8026_v59 = vpop.eup %6954  ;;  %v1025_v44 = vmul.f32 1.442695, %v1014_v37  ;;  %v1031_v62 = vmul.f32 1.442695, %v1017_v32 }
 0x343   :  { %v1035_v46 = vsel %vm269_vm2, %v8026_v59, 0.0  ;;  %v6957_v4 = vpop.eup %6956 }
 0x344   :  { %6958 = vpow2.f32 %v1025_v44  ;;  %6048 = vmatmul.msk.f32.gmra.mxu2 %vm269_vm2, %v643_v53  ;;  %1036 = vadd.xlane.f32.xlu1 %v1035_v46  ;;  %v644_v56 = vmul.f32 %v6957_v4, %v7931_v13 }
 0x345   :  { %6960 = vrcp.f32 %v7985_v38  ;;  %v6619_v38 = vpop.permute.xlu2 %6618 }
 0x346   :  { %6962 = vpow2.f32 %v1027_v10  ;;  %v6620_v35 = vunpack.i.l.bf16 %v6619_v38  ;;  %v6621_v48 = vunpack.i.h.bf16 %v6619_v38 }
 0x347   :  { %v628_v57 = vpop.xlane.xlu0 %627 }
 0x348   :  { %1270 = vrot.lane.b32.xlu2 %v7534_v26, %s7420_s17  ;;  %6964 = vrcp.f32 %v628_v57 }
 0x349   :  { %6966 = vpow2.f32 %v1031_v62 }
 0x34a   :  { %v8036_v1 = vpop.eup %6958 }
 0x34b   :  { %v1044_v55 = vsel %vm269_vm2, %v8036_v1, 0.0  ;;  %v6961_v23 = vpop.eup %6960 }
 0x34c   :  { %6049 = vmatmul.msk.f32.gmra.mxu2 %vm269_vm2, %v644_v56  ;;  %1045 = vadd.xlane.f32.xlu0 %v1044_v55  ;;  %v8043_v18 = vpop.eup %6962  ;;  %v645_v13 = vmul.f32 %v6961_v23, %v7914_v51 }
 0x34d   :  { %v1047_v50 = vsel %vm269_vm2, %v8043_v18, 0.0 }
 0x34e   :  { %v6965_v25 = vpop.eup %6964 }
 0x34f   :  { %v8054_v8 = vpop.eup %6966  ;;  %v646_v45 = vmul.f32 %v6965_v25, %v7960_v52 }
 0x350   :  { %1262 = vrot.lane.b32.xlu2 %v7512_v17, %s7420_s17  ;;  %v1053_v60 = vsel %vm269_vm2, %v8054_v8, 0.0 }
 0x352   :  { %v423_v42 = vpop.f32.mrf.mxu1 }
 0x353   :  { %6063 = vmatmul.msk.f32.vlgmr.msrb.gmra.mxu3 %vm187_vm1, %v423_v42 }
 0x354   :  { %6050 = vmatmul.msk.f32.gmra.mxu2 %vm269_vm2, %v645_v13  ;;  %1048 = vadd.xlane.f32.xlu0 %v1047_v50 }
 0x358   :  { %1258 = vrot.lane.b32.xlu2 %v7528_v24, %s7420_s17 }
 0x35a   :  { %v6614_v14 = vpop.permute.xlu0 %6613  ;;  %v631_v5 = vpop.xlane.xlu2 %630 }
 0x35b   :  { %v6615_v51 = vunpack.i.l.bf16 %v6614_v14  ;;  %6968 = vrcp.f32 %v631_v5  ;;  %v426_v43 = vpop.f32.mrf.mxu1  ;;  %v6616_v3 = vunpack.i.h.bf16 %v6614_v14 }
 0x35c   :  { %6051 = vmatmul.msk.f32.gmra.mxu2 %vm269_vm2, %v646_v45  ;;  %6064 = vmatmul.msk.f32.gmra.mxu3 %vm187_vm1, %v426_v43  ;;  %6970 = vpow2.f32 %v1023_v16 }
 0x35d   :  { %1054 = vadd.xlane.f32.xlu0 %v1053_v60  ;;  %6623 = vrot.lane.b32.xlu1 %v7618_v36, %s7419_s0 }
 0x35e   :  { %1131 = vmatpush.msra.mxu2 %v6615_v51 }
 0x360   :  { %1132 = vmatpush.msra.mxu2 %v6616_v3  ;;  %1242 = vrot.lane.b32.xlu2 %v7528_v24, %s7421_s25 }
 0x361   :  { %v6969_v52 = vpop.eup %6968 }
 0x362   :  { %1133 = vmatpush.msra.mxu2 %v6620_v35  ;;  %v647_v11 = vmul.f32 %v6969_v52, %v7969_v54  ;;  %v8085_v9 = vpop.eup %6970  ;;  %v6629_v29 = vpop.permute.xlu2 %6628 }
 0x363   :  { %v1041_v44 = vsel %vm269_vm2, %v8085_v9, 0.0  ;;  %v6630_v3 = vunpack.i.l.bf16 %v6629_v29  ;;  %v6631_v35 = vunpack.i.h.bf16 %v6629_v29 }
 0x364   :  { %1134 = vmatpush.msra.mxu2 %v6621_v48 }
 0x365   :  { %6052 = vmatmul.msk.f32.gmra.mxu2 %vm269_vm2, %v647_v11 }
 0x368   :  { %1248 = vrot.lane.b32.xlu2 %v7520_v21, %s7421_s25 }
 0x370   :  { %1634 = vrot.lane.b32.xlu2 %v7544_v28, %s7422_s26  ;;  %v432_v37 = vpop.f32.mrf.mxu2 }
 0x371   :  { %1268 = vrot.lane.b32.xlu0 %v7544_v28, %s7420_s17 }
 0x378   :  { %1630 = vrot.lane.b32.xlu2 %v7520_v21, %s7422_s26  ;;  %v429_v54 = vpop.f32.mrf.mxu1 }
 0x379   :  { %1264 = vrot.lane.b32.xlu0 %v7520_v21, %s7420_s17  ;;  %6065 = vmatmul.msk.f32.gmra.mxu3 %vm187_vm1, %v429_v54 }
 0x380   :  { %1626 = vrot.lane.b32.xlu2 %v7516_v19, %s7422_s26 }
 0x381   :  { %1260 = vrot.lane.b32.xlu0 %v7516_v19, %s7420_s17  ;;  %6066 = vmatmul.msk.f32.gmra.mxu3 %vm187_vm1, %v432_v37 }
 0x385   :  { %v1010_v61 = vpop.xlane.xlu0 %1009 }
 0x386   :  { %v1018_v0 = vsub.f32 %v7989_v7, %v1010_v61  ;;  %v435_v53 = vpop.f32.mrf.mxu2 }
 0x387   :  { %1042 = vadd.xlane.f32.xlu1 %v1041_v44 }
 0x388   :  { %v1033_v46 = vmul.f32 1.442695, %v1018_v0  ;;  %1606 = vrot.lane.b32.xlu2 %v7536_v27, %s7423_s27 }
 0x389   :  { %1240 = vrot.lane.b32.xlu0 %v7536_v27, %s7421_s25  ;;  %6067 = vmatmul.msk.f32.gmra.mxu3 %vm187_vm1, %v435_v53 }
 0x38a   :  { %6972 = vpow2.f32 %v1033_v46 }
 0x38e   :  { %v438_v4 = vpop.f32.mrf.mxu2 }
 0x390   :  { %v8095_v10 = vpop.eup %6972  ;;  %1612 = vrot.lane.b32.xlu2 %v7512_v17, %s7423_s27 }
 0x391   :  { %1246 = vrot.lane.b32.xlu0 %v7512_v17, %s7421_s25  ;;  %6068 = vmatmul.msk.f32.gmra.mxu3 %vm187_vm1, %v438_v4  ;;  %v1056_v7 = vsel %vm269_vm2, %v8095_v10, 0.0 }
 0x392   :  { %1057 = vadd.xlane.f32.xlu1 %v1056_v7 }
 0x398   :  { %1618 = vrot.lane.b32.xlu2 %v7544_v28, %s7423_s27 }
 0x399   :  { %1250 = vrot.lane.b32.xlu0 %v7522_v22, %s7421_s25 }
 0x39b   :  { %v1040_v56 = vpop.xlane.xlu2 %1039 }
 0x39f   :  { %v441_v32 = vpop.f32.mrf.mxu2 }
 0x3a0   :  { %6069 = vmatmul.msk.f32.gmra.mxu3 %vm187_vm1, %v441_v32  ;;  %6643 = vrot.lane.b32.xlu2 %v7618_v36, %s7424_s28 }
 0x3a1   :  { %1252 = vrot.lane.b32.xlu0 %v7544_v28, %s7421_s25 }
 0x3a3   :  { %v8113_v55 = vpop.xlane.xlu2 %1051 }
 0x3a7   :  { %v444_v57 = vpop.f32.mrf.mxu2 }
 0x3a8   :  { %6070 = vmatmul.msk.f32.gmra.mxu3 %vm187_vm1, %v444_v57 }
 0x3a9   :  { %1254 = vrot.lane.b32.xlu0 %v7534_v26, %s7421_s25 }
 0x3ab   :  { %1266 = vrot.lane.b32.xlu1 %v7522_v22, %s7420_s17  ;;  %v1271_v23 = vpop.permute.xlu2 %1270 }
 0x3ac   :  { %6104 = vmatpush.xpose.msk.msra.mxu3 %vm187_vm1, %v1271_v23 }
 0x3af   :  { %v713_v62 = vpop.f32.mrf.mxu2 }
 0x3b0   :  { %6054 = vmatmul.msk.f32.vlgmr.msra.gmra.mxu1 %vm187_vm1, %v713_v62 }
 0x3b1   :  { %1622 = vrot.lane.b32.xlu0 %v7536_v27, %s7422_s26 }
 0x3b3   :  { %1256 = vrot.lane.b32.xlu1 %v7536_v27, %s7420_s17 }
 0x3b7   :  { %v716_v38 = vpop.f32.mrf.mxu2  ;;  %v1037_v13 = vpop.xlane.xlu1 %1036 }
 0x3b8   :  { %6055 = vmatmul.msk.f32.gmra.mxu1 %vm187_vm1, %v716_v38  ;;  %6974 = vrcp.f32 %v1037_v13 }
 0x3b9   :  { %1610 = vrot.lane.b32.xlu0 %v7516_v19, %s7423_s27  ;;  %6976 = vrcp.f32 %v1040_v56  ;;  %v1263_v56 = vpop.permute.xlu2 %1262 }
 0x3bb   :  { %1244 = vrot.lane.b32.xlu1 %v7516_v19, %s7421_s25 }
 0x3be   :  { %v6975_v60 = vpop.eup %6974 }
 0x3bf   :  { %v719_v42 = vpop.f32.mrf.mxu2  ;;  %v1046_v50 = vpop.xlane.xlu0 %1045  ;;  %v1067_v52 = vmul.f32 %v6975_v60, %v8026_v59 }
 0x3c0   :  { %6056 = vmatmul.msk.f32.gmra.mxu1 %vm187_vm1, %v719_v42  ;;  %v6977_v6 = vpop.eup %6976 }
 0x3c1   :  { %1616 = vrot.lane.b32.xlu0 %v7522_v22, %s7423_s27  ;;  %v1068_v16 = vmul.f32 %v6977_v6, %v7998_v58 }
 0x3c3   :  { %1636 = vrot.lane.b32.xlu1 %v7534_v26, %s7422_s26 }
 0x3c7   :  { %v722_v25 = vpop.f32.mrf.mxu2  ;;  %v1049_v51 = vpop.xlane.xlu0 %1048 }
 0x3c8   :  { %6057 = vmatmul.msk.f32.gmra.mxu1 %vm187_vm1, %v722_v25 }
 0x3c9   :  { %6633 = vrot.lane.b32.xlu0 %v7610_v34, %s7424_s28 }
 0x3cb   :  { %1632 = vrot.lane.b32.xlu1 %v7522_v22, %s7422_s26 }
 0x3cf   :  { %v725_v14 = vpop.f32.mrf.mxu2  ;;  %v6624_v5 = vpop.permute.xlu1 %6623 }
 0x3d0   :  { %v6625_v45 = vunpack.i.l.bf16 %v6624_v5  ;;  %6058 = vmatmul.msk.f32.gmra.mxu1 %vm187_vm1, %v725_v14  ;;  %v6626_v43 = vunpack.i.h.bf16 %v6624_v5  ;;  %v1055_v11 = vpop.xlane.xlu0 %1054 }
 0x3d2   :  { %1135 = vmatpush.msra.mxu2 %v6625_v45 }
 0x3d3   :  { %1628 = vrot.lane.b32.xlu1 %v7512_v17, %s7422_s26 }
 0x3d4   :  { %1136 = vmatpush.msra.mxu2 %v6626_v43 }
 0x3d6   :  { %1137 = vmatpush.msra.mxu2 %v6630_v3 }
 0x3d7   :  { %v728_v48 = vpop.f32.mrf.mxu2 }
 0x3d8   :  { %6059 = vmatmul.msk.f32.gmra.mxu1 %vm187_vm1, %v728_v48  ;;  %1138 = vmatpush.msra.mxu2 %v6631_v35 }
 0x3d9   :  { %6087 = vmatmul.msk.f32.vlgmr.msra.gmra.mxu2 %vm269_vm2, %v1067_v52 }
 0x3db   :  { %1624 = vrot.lane.b32.xlu1 %v7528_v24, %s7422_s26 }
 0x3df   :  { %v731_v54 = vpop.f32.mrf.mxu2 }
 0x3e0   :  { %6060 = vmatmul.msk.f32.gmra.mxu1 %vm187_vm1, %v731_v54 }
 0x3e1   :  { %6088 = vmatmul.msk.f32.gmra.mxu2 %vm269_vm2, %v1068_v16 }
 0x3e3   :  { %v1269_v37 = vpop.permute.xlu0 %1268  ;;  %1608 = vrot.lane.b32.xlu1 %v7528_v24, %s7423_s27 }
 0x3e4   :  { %6105 = vmatpush.xpose.msk.msra.mxu3 %vm187_vm1, %v1269_v37 }
 0x3e8   :  { %v734_v59 = vpop.f32.mrf.mxu2 }
 0x3e9   :  { %6061 = vmatmul.msk.f32.gmra.mxu1 %vm187_vm1, %v734_v59 }
 0x3eb   :  { %v1265_v61 = vpop.permute.xlu0 %1264  ;;  %1614 = vrot.lane.b32.xlu1 %v7520_v21, %s7423_s27 }
 0x3f3   :  { %v1261_v0 = vpop.permute.xlu0 %1260  ;;  %1620 = vrot.lane.b32.xlu1 %v7534_v26, %s7423_s27 }
 0x3fa   :  { %v1043_v58 = vpop.xlane.xlu1 %1042 }
 0x3fb   :  { %v1241_v44 = vpop.permute.xlu0 %1240  ;;  %6978 = vrcp.f32 %v1043_v58  ;;  %6638 = vrot.lane.b32.xlu1 %v7596_v31, %s7424_s28 }
 0x3fc   :  { %6980 = vrcp.f32 %v1046_v50 }
 0x3fd   :  { %6982 = vrcp.f32 %v1049_v51 }
 0x3fe   :  { %6984 = vrcp.f32 %v8113_v55 }
 0x3ff   :  { %6986 = vrcp.f32 %v1055_v11 }
 0x401   :  { %v6979_v53 = vpop.eup %6978 }
 0x402   :  { %v1069_v46 = vmul.f32 %v6979_v53, %v8085_v9  ;;  %v6981_v7 = vpop.eup %6980  ;;  %v1259_v9 = vpop.permute.xlu2 %1258 }
 0x403   :  { %v8163_v4 = vpop.permute.xlu0 %1246  ;;  %v1070_v29 = vmul.f32 %v6981_v7, %v8036_v1  ;;  %v6983_v57 = vpop.eup %6982  ;;  %v8178_v1 = vld [vmem:[%s10691_s3 + $0x8] sm:$0xff] }
 0x404   :  { %6089 = vmatmul.msk.f32.gmra.mxu2 %vm269_vm2, %v1069_v46  ;;  %v1071_v23 = vmul.f32 %v6983_v57, %v8043_v18  ;;  %10705 = vst [vmem:[#allocation2_spill] sm:$0xff] %v8178_v1  ;;  %6095 = vmatpush.msk.msrb.mxu1 %vm763_vm3, %v8178_v1  ;;  %v10694_v42 = vrot.slane %v8178_v1, 4  ;;  %v6985_v13 = vpop.eup %6984  ;;  %v8228_v57 = vpop.f32.mrf.mxu3 }
 0x405   :  { %v1058_v38 = vpop.xlane.xlu1 %1057  ;;  %v1072_v18 = vmul.f32 %v6985_v13, %v8005_v15  ;;  %v6987_v25 = vpop.eup %6986 }
 0x406   :  { %6128 = vmatpush.msk.msrb.mxu2 %vm763_vm3, %v10694_v42  ;;  %6988 = vrcp.f32 %v1058_v38  ;;  %v1073_v5 = vmul.f32 %v6987_v25, %v8054_v8 }
 0x40a   :  { %v1243_v14 = vpop.permute.xlu2 %1242 }
 0x40b   :  { %v8167_v32 = vpop.permute.xlu0 %1250 }
 0x40c   :  { %6090 = vmatmul.msk.f32.gmra.mxu2 %vm269_vm2, %v1070_v29  ;;  %v6989_v15 = vpop.eup %6988 }
 0x40d   :  { %v1074_v60 = vmul.f32 %v6989_v15, %v8095_v10 }
 0x412   :  { %v1249_v43 = vpop.permute.xlu2 %1248 }
 0x413   :  { %v8172_v62 = vpop.permute.xlu0 %1252 }
 0x414   :  { %6091 = vmatmul.msk.f32.gmra.mxu2 %vm269_vm2, %v1071_v23 }
 0x41a   :  { %v1635_v8 = vpop.permute.xlu2 %1634 }
 0x41b   :  { %v8187_v55 = vpop.permute.xlu0 %1254 }
 0x41c   :  { %6092 = vmatmul.msk.f32.gmra.mxu2 %vm269_vm2, %v1072_v18 }
 0x41d   :  { %v1267_v50 = vpop.permute.xlu1 %1266 }
 0x41e   :  { %6106 = vmatpush.xpose.msk.msra.mxu3 %vm187_vm1, %v1267_v50 }
 0x422   :  { %6107 = vmatpush.xpose.msk.msra.mxu3 %vm187_vm1, %v1265_v61  ;;  %v1631_v6 = vpop.permute.xlu2 %1630 }
 0x423   :  { %v1623_v45 = vpop.permute.xlu0 %1622 }
 0x424   :  { %6093 = vmatmul.msk.f32.gmra.mxu2 %vm269_vm2, %v1073_v5 }
 0x425   :  { %v1257_v51 = vpop.permute.xlu1 %1256 }
 0x426   :  { %6108 = vmatpush.xpose.msk.msra.mxu3 %vm187_vm1, %v1263_v56 }
 0x42a   :  { %6109 = vmatpush.xpose.msk.msra.mxu3 %vm187_vm1, %v1261_v0  ;;  %v1627_v59 = vpop.permute.xlu2 %1626 }
 0x42b   :  { %v8197_v3 = vpop.permute.xlu0 %1610 }
 0x42c   :  { %6094 = vmatmul.msk.f32.gmra.mxu2 %vm269_vm2, %v1074_v60 }
 0x42d   :  { %v1245_v35 = vpop.permute.xlu1 %1244  ;;  %v8244_v15 = vpop.f32.mrf.mxu1 }
 0x42e   :  { %6110 = vmatpush.xpose.msk.msra.mxu3 %vm187_vm1, %v1259_v9 }
 0x432   :  { %6111 = vmatpush.xpose.msk.msra.mxu3 %vm187_vm1, %v1257_v51  ;;  %v1607_v0 = vpop.permute.xlu2 %1606 }
 0x433   :  { %v8202_v52 = vpop.permute.xlu0 %1616 }
 0x435   :  { %v1637_v48 = vpop.permute.xlu1 %1636  ;;  %6112 = vmatmul.msk.f32.vlgmr.msra.gmra.mxu3 %vm187_vm1, %v1241_v44 }
 0x436   :  { %6137 = vmatpush.xpose.msk.msra.mxu1 %vm187_vm1, %v1637_v48 }
 0x43a   :  { %6138 = vmatpush.xpose.msk.msra.mxu1 %vm187_vm1, %v1635_v8  ;;  %v1613_v44 = vpop.permute.xlu2 %1612 }
 0x43b   :  { %v6634_v10 = vpop.permute.xlu0 %6633 }
 0x43c   :  { %v6635_v11 = vunpack.i.l.bf16 %v6634_v10  ;;  %v6636_v16 = vunpack.i.h.bf16 %v6634_v10 }
 0x43d   :  { %v1633_v54 = vpop.permute.xlu1 %1632  ;;  %6113 = vmatmul.msk.f32.gmra.mxu3 %vm187_vm1, %v1243_v14 }
 0x43e   :  { %1497 = vmatpush.msra.mxu0 %v6635_v11  ;;  %6541 = vmatpush.msrb.mxu3 %v6635_v11 }
 0x43f   :  { %6139 = vmatpush.xpose.msk.msra.mxu1 %vm187_vm1, %v1633_v54 }
 0x440   :  { %1498 = vmatpush.msra.mxu0 %v6636_v16  ;;  %6542 = vmatpush.msrb.mxu3 %v6636_v16 }
 0x442   :  { %v1619_v29 = vpop.permute.xlu2 %1618 }
 0x443   :  { %6140 = vmatpush.xpose.msk.msra.mxu1 %vm187_vm1, %v1631_v6 }
 0x445   :  { %v1629_v37 = vpop.permute.xlu1 %1628  ;;  %6114 = vmatmul.msk.f32.gmra.mxu3 %vm187_vm1, %v1245_v35  ;;  %v8249_v35 = vpop.f32.mrf.mxu1 }
 0x447   :  { %6141 = vmatpush.xpose.msk.msra.mxu1 %vm187_vm1, %v1629_v37 }
 0x44a   :  { %v6644_v9 = vpop.permute.xlu2 %6643 }
 0x44b   :  { %6142 = vmatpush.xpose.msk.msra.mxu1 %vm187_vm1, %v1627_v59  ;;  %v6646_v13 = vunpack.i.h.bf16 %v6644_v9 }
 0x44d   :  { %v1625_v61 = vpop.permute.xlu1 %1624  ;;  %6115 = vmatmul.msk.f32.gmra.mxu3 %vm187_vm1, %v8163_v4  ;;  %v8257_v11 = vpop.f32.mrf.mxu1 }
 0x44f   :  { %6143 = vmatpush.xpose.msk.msra.mxu1 %vm187_vm1, %v1625_v61 }
 0x453   :  { %6144 = vmatpush.xpose.msk.msra.mxu1 %vm187_vm1, %v1623_v45 }
 0x455   :  { %v1609_v58 = vpop.permute.xlu1 %1608  ;;  %6116 = vmatmul.msk.f32.gmra.mxu3 %vm187_vm1, %v1249_v43  ;;  %v8262_v54 = vpop.f32.mrf.mxu1 }
 0x456   :  { %10712 = vst [vmem:[#allocation9_spill] sm:$0xff] %v8262_v54 }
 0x45c   :  { %v1140_v53 = vpop.f32.mrf.mxu2 }
 0x45d   :  { %v1615_v46 = vpop.permute.xlu1 %1614  ;;  %6096 = vmatmul.msk.f32.vlgmr.msrb.gmra.mxu1 %vm187_vm1, %v1140_v53  ;;  %6117 = vmatmul.msk.f32.gmra.mxu3 %vm187_vm1, %v8167_v32  ;;  %v6645_v32 = vunpack.i.l.bf16 %v6644_v9  ;;  %v8268_v37 = vpop.f32.mrf.mxu1 }
 0x45e   :  { %10713 = vst [vmem:[#allocation10_spill] sm:$0xff] %v8268_v37 }
 0x464   :  { %v1143_v7 = vpop.f32.mrf.mxu2 }
 0x465   :  { %v8221_v56 = vpop.permute.xlu1 %1620  ;;  %6097 = vmatmul.msk.f32.gmra.mxu1 %vm187_vm1, %v1143_v7  ;;  %6118 = vmatmul.msk.f32.gmra.mxu3 %vm187_vm1, %v8172_v62  ;;  %v8230_v62 = vpop.f32.mrf.mxu3 }
 0x466   :  { %v8273_v61 = vpop.f32.mrf.mxu1 }
 0x467   :  { %10714 = vst [vmem:[#allocation11_spill] sm:$0xff] %v8273_v61 }
 0x46d   :  { %v6639_v4 = vpop.permute.xlu1 %6638  ;;  %6119 = vmatmul.msk.f32.gmra.mxu3 %vm187_vm1, %v8187_v55  ;;  %v8232_v18 = vpop.f32.mrf.mxu3 }
 0x46e   :  { %v6640_v23 = vunpack.i.l.bf16 %v6639_v4  ;;  %v6641_v38 = vunpack.i.h.bf16 %v6639_v4  ;;  %10706 = vst [vmem:[#allocation3_spill] sm:$0xff] %v8232_v18  ;;  %v8282_v53 = vpop.f32.mrf.mxu1 }
 0x46f   :  { %10715 = vst [vmem:[#allocation12_spill] sm:$0xff] %v8282_v53 }
 0x470   :  { %1499 = vmatpush.msra.mxu0 %v6640_v23  ;;  %6543 = vmatpush.msrb.mxu3 %v6640_v23 }
 0x472   :  { %1500 = vmatpush.msra.mxu0 %v6641_v38  ;;  %6544 = vmatpush.msrb.mxu3 %v6641_v38 }
 0x474   :  { %1501 = vmatpush.msra.mxu0 %v6645_v32  ;;  %6545 = vmatpush.msrb.mxu3 %v6645_v32 }
 0x475   :  { %v8235_v50 = vpop.f32.mrf.mxu3 }
 0x476   :  { %1502 = vmatpush.msra.mxu0 %v6646_v13  ;;  %6546 = vmatpush.msrb.mxu3 %v6646_v13  ;;  %10707 = vst [vmem:[#allocation4_spill] sm:$0xff] %v8235_v50  ;;  %v8285_v4 = vpop.f32.mrf.mxu1 }
 0x477   :  { %10716 = vst [vmem:[#allocation13_spill] sm:$0xff] %v8285_v4 }
 0x47d   :  { %v8238_v14 = vpop.f32.mrf.mxu3 }
 0x47e   :  { %10708 = vst [vmem:[#allocation5_spill] sm:$0xff] %v8238_v14 }
 0x485   :  { %v8241_v45 = vpop.f32.mrf.mxu3 }
 0x486   :  { %10709 = vst [vmem:[#allocation6_spill] sm:$0xff] %v8241_v45 }
 0x487   :  { %v1146_v55 = vpop.f32.mrf.mxu2 }
 0x488   :  { %6098 = vmatmul.msk.f32.gmra.mxu1 %vm187_vm1, %v1146_v55 }
 0x48d   :  { %v8246_v43 = vpop.f32.mrf.mxu3 }
 0x48e   :  { %10710 = vst [vmem:[#allocation7_spill] sm:$0xff] %v8246_v43 }
 0x48f   :  { %v1149_v25 = vpop.f32.mrf.mxu2 }
 0x490   :  { %6099 = vmatmul.msk.f32.gmra.mxu1 %vm187_vm1, %v1149_v25 }
 0x495   :  { %v8251_v48 = vpop.f32.mrf.mxu3 }
 0x496   :  { %10711 = vst [vmem:[#allocation8_spill] sm:$0xff] %v8251_v48 }
 0x497   :  { %v1152_v5 = vpop.f32.mrf.mxu2 }
 0x498   :  { %6100 = vmatmul.msk.f32.gmra.mxu1 %vm187_vm1, %v1152_v5 }
 0x49f   :  { %v1155_v51 = vpop.f32.mrf.mxu2 }
 0x4a0   :  { %6101 = vmatmul.msk.f32.gmra.mxu1 %vm187_vm1, %v1155_v51 }
 0x4a7   :  { %v1158_v60 = vpop.f32.mrf.mxu2 }
 0x4a8   :  { %6102 = vmatmul.msk.f32.gmra.mxu1 %vm187_vm1, %v1158_v60 }
 0x4af   :  { %v1161_v8 = vpop.f32.mrf.mxu2 }
 0x4b0   :  { %6103 = vmatmul.msk.f32.gmra.mxu1 %vm187_vm1, %v1161_v8 }
 0x4b8   :  { %v8254_v10 = vpop.f32.mrf.mxu3  ;;  %6145 = vmatmul.msk.f32.vlgmr.msra.gmra.mxu1 %vm187_vm1, %v1607_v0 }
 0x4c0   :  { %v8259_v6 = vpop.f32.mrf.mxu3  ;;  %6146 = vmatmul.msk.f32.gmra.mxu1 %vm187_vm1, %v1609_v58 }
 0x4c8   :  { %v8264_v16 = vpop.f32.mrf.mxu3  ;;  %6147 = vmatmul.msk.f32.gmra.mxu1 %vm187_vm1, %v8197_v3 }
 0x4d0   :  { %v8270_v59 = vpop.f32.mrf.mxu3  ;;  %6148 = vmatmul.msk.f32.gmra.mxu1 %vm187_vm1, %v1613_v44 }
 0x4d8   :  { %v8275_v0 = vpop.f32.mrf.mxu3  ;;  %6149 = vmatmul.msk.f32.gmra.mxu1 %vm187_vm1, %v1615_v46 }
 0x4da   :  { %v8290_v9 = vpop.f32.mrf.mxu1 }
 0x4e0   :  { %v8278_v58 = vpop.f32.mrf.mxu3  ;;  %6150 = vmatmul.msk.f32.gmra.mxu1 %vm187_vm1, %v8202_v52 }
 0x4e2   :  { %v8293_v38 = vpop.f32.mrf.mxu1 }
 0x4e8   :  { %v1339_v3 = vpop.f32.mrf.mxu3  ;;  %6151 = vmatmul.msk.f32.gmra.mxu1 %vm187_vm1, %v1619_v29 }
 0x4e9   :  { %v1351_v7 = vmul.f32 0.5, %v1339_v3 }
 0x4eb   :  { %v1371_v44 = vsel %vm269_vm2, %v1351_v7, -inf }
 0x4ec   :  { %1372 = vmax.xlane.f32.xlu0 %v1371_v44 }
 0x4f0   :  { %v1342_v23 = vpop.f32.mrf.mxu3  ;;  %6152 = vmatmul.msk.f32.gmra.mxu1 %vm187_vm1, %v8221_v56 }
 0x4f1   :  { %v1352_v46 = vmul.f32 0.5, %v1342_v23 }
 0x4f3   :  { %v1374_v52 = vsel %vm269_vm2, %v1352_v46, -inf }
 0x4f4   :  { %1375 = vmax.xlane.f32.xlu2 %v1374_v52 }
 0x505   :  { %v8295_v32 = vpop.f32.mrf.mxu1 }
 0x506   :  { %10717 = vst [vmem:[#allocation14_spill] sm:$0xff] %v8295_v32 }
 0x50d   :  { %v8297_v29 = vpop.f32.mrf.mxu1 }
 0x50e   :  { %10718 = vst [vmem:[#allocation15_spill] sm:$0xff] %v8297_v29 }
 0x515   :  { %v8299_v13 = vpop.f32.mrf.mxu1 }
 0x516   :  { %10719 = vst [vmem:[#allocation16_spill] sm:$0xff] %v8299_v13 }
 0x51d   :  { %v8301_v55 = vpop.f32.mrf.mxu1 }
 0x51e   :  { %10720 = vst [vmem:[#allocation17_spill] sm:$0xff] %v8301_v55 }
 0x525   :  { %v8303_v25 = vpop.f32.mrf.mxu1 }
 0x526   :  { %10721 = vst [vmem:[#allocation18_spill] sm:$0xff] %v8303_v25 }
 0x52d   :  { %v8305_v5 = vpop.f32.mrf.mxu1 }
 0x52e   :  { %10722 = vst [vmem:[#allocation19_spill] sm:$0xff] %v8305_v5 }
 0x535   :  { %v1687_v56 = vpop.f32.mrf.mxu1 }
 0x536   :  { %v1711_v51 = vmul.f32 0.5, %v1687_v56 }
 0x538   :  { %v1719_v60 = vsel %vm269_vm2, %v1711_v51, -inf }
 0x539   :  { %1720 = vmax.xlane.f32.xlu1 %v1719_v60 }
 0x53d   :  { %v1690_v8 = vpop.f32.mrf.mxu1 }
 0x53e   :  { %v1712_v3 = vmul.f32 0.5, %v1690_v8 }
 0x540   :  { %v1722_v44 = vsel %vm269_vm2, %v1712_v3, -inf }
 0x541   :  { %1723 = vmax.xlane.f32.xlu0 %v1722_v44 }
 0x545   :  { %v1693_v23 = vpop.f32.mrf.mxu1 }
 0x546   :  { %v1713_v52 = vmul.f32 0.5, %v1693_v23 }
 0x548   :  { %v1725_v42 = vsel %vm269_vm2, %v1713_v52, -inf }
 0x549   :  { %1726 = vmax.xlane.f32.xlu2 %v1725_v42 }
 0x54d   :  { %v1696_v30 = vpop.f32.mrf.mxu1 }
 0x54e   :  { %v1714_v1 = vmul.f32 0.5, %v1696_v30 }
 0x550   :  { %v1728_v48 = vsel %vm269_vm2, %v1714_v1, -inf }
 0x551   :  { %1729 = vmax.xlane.f32.xlu1 %v1728_v48 }
 0x555   :  { %v1699_v5 = vpop.f32.mrf.mxu1 }
 0x556   :  { %v8311_v56 = vmul.f32 0.5, %v1699_v5 }
 0x558   :  { %v1731_v60 = vsel %vm269_vm2, %v8311_v56, -inf }
 0x559   :  { %1732 = vmax.xlane.f32.xlu2 %v1731_v60 }
 0x55d   :  { %v1702_v8 = vpop.f32.mrf.mxu1 }
 0x55e   :  { %v8315_v4 = vmul.f32 0.5, %v1702_v8 }
 0x55f   :  { %v1373_v44 = vpop.xlane.xlu0 %1372 }
 0x560   :  { %v1383_v23 = vsub.f32 %v1351_v7, %v1373_v44  ;;  %v1734_v42 = vsel %vm269_vm2, %v8315_v4, -inf }
 0x561   :  { %1735 = vmax.xlane.f32.xlu0 %v1734_v42 }
 0x562   :  { %v1397_v30 = vmul.f32 1.442695, %v1383_v23 }
 0x564   :  { %6990 = vpow2.f32 %v1397_v30 }
 0x565   :  { %v1705_v23 = vpop.f32.mrf.mxu1 }
 0x566   :  { %v8337_v42 = vmul.f32 0.5, %v1705_v23 }
 0x567   :  { %v1376_v7 = vpop.xlane.xlu2 %1375 }
 0x568   :  { %v1384_v5 = vsub.f32 %v1352_v46, %v1376_v7  ;;  %v1737_v46 = vsel %vm269_vm2, %v8337_v42, -inf }
 0x56a   :  { %v8319_v25 = vpop.eup %6990  ;;  %6648 = vrot.lane.b32.xlu1 %v7626_v39, %s7424_s28  ;;  %v1399_v60 = vmul.f32 1.442695, %v1384_v5 }
 0x56b   :  { %v1419_v48 = vsel %vm269_vm2, %v8319_v25, 0.0 }
 0x56c   :  { %1420 = vadd.xlane.f32.xlu2 %v1419_v48  ;;  %6992 = vpow2.f32 %v1399_v60 }
 0x572   :  { %v8333_v8 = vpop.eup %6992 }
 0x573   :  { %v1422_v44 = vsel %vm269_vm2, %v8333_v8, 0.0 }
 0x575   :  { %6658 = vrot.lane.b32.xlu0 %v7596_v31, %s7425_s6 }
 0x57d   :  { %6663 = vrot.lane.b32.xlu0 %v7618_v36, %s7425_s6 }
 0x584   :  { %6653 = vrot.lane.b32.xlu2 %v7610_v34, %s7425_s6 }
 0x585   :  { %6668 = vrot.lane.b32.xlu0 %v7626_v39, %s7425_s6 }
 0x594   :  { %1423 = vadd.xlane.f32.xlu1 %v1422_v44  ;;  %v1708_v44 = vpop.f32.mrf.mxu1 }
 0x595   :  { %v8345_v23 = vmul.f32 0.5, %v1708_v44 }
 0x5ac   :  { %v1721_v30 = vpop.xlane.xlu1 %1720 }
 0x5ad   :  { %v1743_v48 = vsub.f32 %v1711_v51, %v1721_v30  ;;  %1738 = vmax.xlane.f32.xlu2 %v1737_v46 }
 0x5af   :  { %v1751_v7 = vmul.f32 1.442695, %v1743_v48 }
 0x5b1   :  { %6994 = vpow2.f32 %v1751_v7 }
 0x5b4   :  { %v1724_v43 = vpop.xlane.xlu0 %1723 }
 0x5b5   :  { %v1744_v5 = vsub.f32 %v1712_v3, %v1724_v43  ;;  %v1740_v43 = vsel %vm269_vm2, %v8345_v23, -inf  ;;  %v8354_v3 = vmul.f32 0.5, %v8259_v6 }
 0x5b7   :  { %v8341_v60 = vpop.eup %6994  ;;  %v1753_v53 = vmul.f32 1.442695, %v1744_v5  ;;  %v1356_v48 = vsel %vm269_vm2, %v8354_v3, -inf }
 0x5b8   :  { %v1767_v55 = vsel %vm269_vm2, %v8341_v60, 0.0 }
 0x5b9   :  { %6996 = vpow2.f32 %v1753_v53  ;;  %1768 = vadd.xlane.f32.xlu1 %v1767_v55  ;;  %v8357_v55 = vmul.f32 0.5, %v8254_v10  ;;  %v8368_v10 = vmul.f32 0.5, %v8264_v16 }
 0x5bb   :  { %v1353_v6 = vsel %vm269_vm2, %v8357_v55, -inf }
 0x5bc   :  { %v1727_v45 = vpop.xlane.xlu2 %1726 }
 0x5bd   :  { %v1745_v61 = vsub.f32 %v1713_v52, %v1727_v45 }
 0x5bf   :  { %v8347_v13 = vpop.eup %6996  ;;  %v1755_v51 = vmul.f32 1.442695, %v1745_v61 }
 0x5c0   :  { %v1770_v30 = vsel %vm269_vm2, %v8347_v13, 0.0 }
 0x5c1   :  { %6998 = vpow2.f32 %v1755_v51  ;;  %1771 = vadd.xlane.f32.xlu2 %v1770_v30  ;;  %1741 = vmax.xlane.f32.xlu1 %v1740_v43  ;;  %v1359_v51 = vsel %vm269_vm2, %v8368_v10, -inf  ;;  %v8378_v43 = vmul.f32 0.5, %v8270_v59 }
 0x5c4   :  { %v1730_v53 = vpop.xlane.xlu1 %1729 }
 0x5c5   :  { %v1746_v45 = vsub.f32 %v1714_v1, %v1730_v53 }
 0x5c7   :  { %v8359_v52 = vpop.eup %6998  ;;  %v1757_v61 = vmul.f32 1.442695, %v1746_v45 }
 0x5c8   :  { %v1773_v46 = vsel %vm269_vm2, %v8359_v52, 0.0 }
 0x5c9   :  { %7000 = vpow2.f32 %v1757_v61  ;;  %1774 = vadd.xlane.f32.xlu0 %v1773_v46  ;;  %1357 = vmax.xlane.f32.xlu2 %v1356_v48  ;;  %v1362_v61 = vsel %vm269_vm2, %v8378_v43, -inf }
 0x5ca   :  { %1354 = vmax.xlane.f32.xlu1 %v1353_v6  ;;  %v8388_v6 = vmul.f32 0.5, %v8275_v0  ;;  %v8397_v0 = vmul.f32 0.5, %v8278_v58 }
 0x5cc   :  { %v1733_v1 = vpop.xlane.xlu2 %1732 }
 0x5cd   :  { %v1747_v7 = vsub.f32 %v8311_v56, %v1733_v1 }
 0x5cf   :  { %v8371_v5 = vpop.eup %7000  ;;  %v1759_v44 = vmul.f32 1.442695, %v1747_v7 }
 0x5d0   :  { %v1776_v30 = vsel %vm269_vm2, %v8371_v5, 0.0 }
 0x5d1   :  { %7002 = vpow2.f32 %v1759_v44  ;;  %1360 = vmax.xlane.f32.xlu2 %v1359_v51  ;;  %v1365_v51 = vsel %vm269_vm2, %v8388_v6, -inf }
 0x5d2   :  { %1777 = vadd.xlane.f32.xlu1 %v1776_v30 }
 0x5d4   :  { %v1736_v16 = vpop.xlane.xlu0 %1735 }
 0x5d5   :  { %v1748_v53 = vsub.f32 %v8315_v4, %v1736_v16 }
 0x5d7   :  { %v8381_v45 = vpop.eup %7002  ;;  %v1761_v56 = vmul.f32 1.442695, %v1748_v53 }
 0x5d8   :  { %v1779_v46 = vsel %vm269_vm2, %v8381_v45, 0.0 }
 0x5d9   :  { %7004 = vpow2.f32 %v1761_v56  ;;  %1363 = vmax.xlane.f32.xlu2 %v1362_v61 }
 0x5da   :  { %1780 = vadd.xlane.f32.xlu1 %v1779_v46  ;;  %v1368_v46 = vsel %vm269_vm2, %v8397_v0, -inf }
 0x5dc   :  { %v6649_v48 = vpop.permute.xlu1 %6648 }
 0x5dd   :  { %v6650_v59 = vunpack.i.l.bf16 %v6649_v48  ;;  %v6651_v4 = vunpack.i.h.bf16 %v6649_v48 }
 0x5df   :  { %v8390_v1 = vpop.eup %7004  ;;  %1503 = vmatpush.msra.mxu0 %v6650_v59  ;;  %6547 = vmatpush.msrb.mxu3 %v6650_v59  ;;  %v1421_v7 = vpop.xlane.xlu2 %1420 }
 0x5e0   :  { %7006 = vrcp.f32 %v1421_v7  ;;  %v1782_v44 = vsel %vm269_vm2, %v8390_v1, 0.0 }
 0x5e1   :  { %1504 = vmatpush.msra.mxu0 %v6651_v4  ;;  %6548 = vmatpush.msrb.mxu3 %v6651_v4 }
 0x5e2   :  { %1366 = vmax.xlane.f32.xlu2 %v1365_v51  ;;  %1783 = vadd.xlane.f32.xlu1 %v1782_v44 }
 0x5e6   :  { %v7007_v30 = vpop.eup %7006 }
 0x5e7   :  { %v1439_v16 = vmul.f32 %v7007_v30, %v8319_v25  ;;  %v6654_v53 = vpop.permute.xlu2 %6653  ;;  %v6659_v56 = vpop.permute.xlu0 %6658 }
 0x5e8   :  { %v6655_v61 = vunpack.i.l.bf16 %v6654_v53  ;;  %v6656_v48 = vunpack.i.h.bf16 %v6654_v53  ;;  %v6660_v59 = vunpack.i.l.bf16 %v6659_v56  ;;  %v6661_v4 = vunpack.i.h.bf16 %v6659_v56 }
 0x5e9   :  { %6126 = vmatmul.msk.f32.vlgmr.msrb.gmra.mxu3 %vm269_vm2, %v1439_v16 }
 0x5ea   :  { %1369 = vmax.xlane.f32.xlu2 %v1368_v46  ;;  %1863 = vmatpush.msra.mxu3 %v6655_v61 }
 0x5ec   :  { %1864 = vmatpush.msra.mxu3 %v6656_v48 }
 0x5ee   :  { %1865 = vmatpush.msra.mxu3 %v6660_v59 }
 0x5ef   :  { %v6664_v58 = vpop.permute.xlu0 %6663 }
 0x5f0   :  { %v6665_v7 = vunpack.i.l.bf16 %v6664_v58  ;;  %1866 = vmatpush.msra.mxu3 %v6661_v4  ;;  %v6666_v44 = vunpack.i.h.bf16 %v6664_v58 }
 0x5f2   :  { %1867 = vmatpush.msra.mxu3 %v6665_v7 }
 0x5f4   :  { %1868 = vmatpush.msra.mxu3 %v6666_v44 }
 0x5f7   :  { %v6669_v25 = vpop.permute.xlu0 %6668 }
 0x5f8   :  { %v6670_v51 = vunpack.i.l.bf16 %v6669_v25  ;;  %v6671_v30 = vunpack.i.h.bf16 %v6669_v25 }
 0x5fa   :  { %1869 = vmatpush.msra.mxu3 %v6670_v51 }
 0x5fc   :  { %1870 = vmatpush.msra.mxu3 %v6671_v30 }
 0x607   :  { %v1424_v16 = vpop.xlane.xlu1 %1423 }
 0x608   :  { %7008 = vrcp.f32 %v1424_v16 }
 0x60e   :  { %v7009_v53 = vpop.eup %7008 }
 0x60f   :  { %v1440_v61 = vmul.f32 %v7009_v53, %v8333_v8 }
 0x611   :  { %6127 = vmatmul.msk.f32.gmra.mxu3 %vm269_vm2, %v1440_v61 }
 0x620   :  { %v1739_v56 = vpop.xlane.xlu2 %1738 }
 0x621   :  { %v1749_v46 = vsub.f32 %v8337_v42, %v1739_v56 }
 0x623   :  { %v1763_v48 = vmul.f32 1.442695, %v1749_v46 }
 0x625   :  { %7010 = vpow2.f32 %v1763_v48 }
 0x62b   :  { %v8406_v59 = vpop.eup %7010 }
 0x62c   :  { %v1769_v4 = vpop.xlane.xlu1 %1768  ;;  %v1785_v58 = vsel %vm269_vm2, %v8406_v59, 0.0 }
 0x62d   :  { %7012 = vrcp.f32 %v1769_v4  ;;  %1786 = vadd.xlane.f32.xlu1 %v1785_v58 }
 0x633   :  { %v7013_v7 = vpop.eup %7012 }
 0x634   :  { %v1799_v44 = vmul.f32 %v7013_v7, %v8341_v60  ;;  %v1772_v25 = vpop.xlane.xlu2 %1771  ;;  %v1742_v8 = vpop.xlane.xlu1 %1741 }
 0x635   :  { %7014 = vrcp.f32 %v1772_v25  ;;  %v1750_v51 = vsub.f32 %v8345_v23, %v1742_v8 }
 0x636   :  { %6153 = vmatmul.msk.f32.vlgmr.msra.gmra.mxu3 %vm269_vm2, %v1799_v44 }
 0x637   :  { %v1765_v42 = vmul.f32 1.442695, %v1750_v51 }
 0x639   :  { %7016 = vpow2.f32 %v1765_v42 }
 0x63b   :  { %v7015_v30 = vpop.eup %7014 }
 0x63c   :  { %v1775_v16 = vpop.xlane.xlu0 %1774  ;;  %v1358_v53 = vpop.xlane.xlu2 %1357  ;;  %v1800_v61 = vmul.f32 %v7015_v30, %v8347_v13 }
 0x63d   :  { %7018 = vrcp.f32 %v1775_v16  ;;  %v1378_v56 = vsub.f32 %v8354_v3, %v1358_v53  ;;  %v1355_v46 = vpop.xlane.xlu1 %1354 }
 0x63e   :  { %v1377_v60 = vsub.f32 %v8357_v55, %v1355_v46  ;;  %6154 = vmatmul.msk.f32.gmra.mxu3 %vm269_vm2, %v1800_v61 }
 0x63f   :  { %v8417_v48 = vpop.eup %7016  ;;  %v1387_v23 = vmul.f32 1.442695, %v1378_v56 }
 0x640   :  { %v1385_v4 = vmul.f32 1.442695, %v1377_v60  ;;  %v1788_v58 = vsel %vm269_vm2, %v8417_v48, 0.0 }
 0x641   :  { %7020 = vpow2.f32 %v1387_v23  ;;  %1789 = vadd.xlane.f32.xlu1 %v1788_v58 }
 0x642   :  { %7022 = vpow2.f32 %v1385_v4 }
 0x643   :  { %v7019_v7 = vpop.eup %7018 }
 0x644   :  { %v1361_v13 = vpop.xlane.xlu2 %1360  ;;  %v1801_v44 = vmul.f32 %v7019_v7, %v8359_v52 }
 0x645   :  { %v1379_v3 = vsub.f32 %v8368_v10, %v1361_v13  ;;  %v1778_v25 = vpop.xlane.xlu1 %1777 }
 0x646   :  { %7024 = vrcp.f32 %v1778_v25  ;;  %6155 = vmatmul.msk.f32.gmra.mxu3 %vm269_vm2, %v1801_v44 }
 0x647   :  { %v8424_v55 = vpop.eup %7020  ;;  %v1389_v8 = vmul.f32 1.442695, %v1379_v3 }
 0x648   :  { %v8426_v51 = vpop.eup %7022  ;;  %v1404_v42 = vsel %vm269_vm2, %v8424_v55, 0.0 }
 0x649   :  { %7026 = vpow2.f32 %v1389_v8  ;;  %1405 = vadd.xlane.f32.xlu0 %v1404_v42  ;;  %v1401_v30 = vsel %vm269_vm2, %v8426_v51, 0.0 }
 0x64a   :  { %1402 = vadd.xlane.f32.xlu2 %v1401_v30 }
 0x64c   :  { %v7025_v52 = vpop.eup %7024  ;;  %v1364_v10 = vpop.xlane.xlu2 %1363 }
 0x64d   :  { %v1380_v16 = vsub.f32 %v8378_v43, %v1364_v10  ;;  %v1781_v53 = vpop.xlane.xlu1 %1780  ;;  %v1802_v61 = vmul.f32 %v7025_v52, %v8371_v5 }
 0x64e   :  { %7028 = vrcp.f32 %v1781_v53 }
 0x64f   :  { %v8434_v56 = vpop.eup %7026  ;;  %v1391_v46 = vmul.f32 1.442695, %v1380_v16  ;;  %6156 = vmatmul.msk.f32.gmra.mxu3 %vm269_vm2, %v1802_v61 }
 0x650   :  { %v1407_v60 = vsel %vm269_vm2, %v8434_v56, 0.0 }
 0x651   :  { %7030 = vpow2.f32 %v1391_v46  ;;  %1408 = vadd.xlane.f32.xlu1 %v1407_v60 }
 0x654   :  { %v7029_v23 = vpop.eup %7028 }
 0x655   :  { %v1367_v4 = vpop.xlane.xlu2 %1366  ;;  %v1784_v58 = vpop.xlane.xlu1 %1783  ;;  %v1803_v7 = vmul.f32 %v7029_v23, %v8381_v45 }
 0x656   :  { %v1381_v43 = vsub.f32 %v8388_v6, %v1367_v4  ;;  %7032 = vrcp.f32 %v1784_v58 }
 0x657   :  { %v8441_v5 = vpop.eup %7030  ;;  %6157 = vmatmul.msk.f32.gmra.mxu3 %vm269_vm2, %v1803_v7 }
 0x658   :  { %v1393_v13 = vmul.f32 1.442695, %v1381_v43  ;;  %v1410_v44 = vsel %vm269_vm2, %v8441_v5, 0.0 }
 0x659   :  { %1411 = vadd.xlane.f32.xlu2 %v1410_v44 }
 0x65a   :  { %7034 = vpow2.f32 %v1393_v13 }
 0x65c   :  { %v7033_v3 = vpop.eup %7032 }
 0x65d   :  { %v1370_v25 = vpop.xlane.xlu2 %1369  ;;  %v1804_v8 = vmul.f32 %v7033_v3, %v8390_v1 }
 0x65e   :  { %v1382_v42 = vsub.f32 %v8397_v0, %v1370_v25 }
 0x65f   :  { %6158 = vmatmul.msk.f32.gmra.mxu3 %vm269_vm2, %v1804_v8 }
 0x660   :  { %v8449_v45 = vpop.eup %7034  ;;  %v1395_v6 = vmul.f32 1.442695, %v1382_v42 }
 0x661   :  { %v1413_v30 = vsel %vm269_vm2, %v8449_v45, 0.0 }
 0x662   :  { %7036 = vpow2.f32 %v1395_v6  ;;  %1414 = vadd.xlane.f32.xlu0 %v1413_v30 }
 0x668   :  { %v8453_v52 = vpop.eup %7036 }
 0x669   :  { %v1416_v10 = vsel %vm269_vm2, %v8453_v52, 0.0 }
 0x66a   :  { %1417 = vadd.xlane.f32.xlu1 %v1416_v10 }
 0x671   :  { %2368 = vrot.lane.b32.xlu2 %v7534_v26, %s7426_s1 }
 0x676   :  { %2366 = vrot.lane.b32.xlu0 %v7544_v28, %s7426_s1 }
 0x679   :  { %2360 = vrot.lane.b32.xlu2 %v7512_v17, %s7426_s1 }
 0x67e   :  { %2362 = vrot.lane.b32.xlu0 %v7520_v21, %s7426_s1 }
 0x681   :  { %2354 = vrot.lane.b32.xlu2 %v7536_v27, %s7426_s1 }
 0x683   :  { %2364 = vrot.lane.b32.xlu1 %v7522_v22, %s7426_s1 }
 0x686   :  { %2358 = vrot.lane.b32.xlu0 %v7516_v19, %s7426_s1 }
 0x689   :  { %2342 = vrot.lane.b32.xlu2 %v7516_v19, %s7427_s7 }
 0x68b   :  { %2356 = vrot.lane.b32.xlu1 %v7528_v24, %s7426_s1 }
 0x68e   :  { %2338 = vrot.lane.b32.xlu0 %v7536_v27, %s7427_s7 }
 0x691   :  { %2346 = vrot.lane.b32.xlu2 %v7520_v21, %s7427_s7 }
 0x693   :  { %2340 = vrot.lane.b32.xlu1 %v7528_v24, %s7427_s7 }
 0x696   :  { %2344 = vrot.lane.b32.xlu0 %v7512_v17, %s7427_s7 }
 0x699   :  { %2348 = vrot.lane.b32.xlu2 %v7522_v22, %s7427_s7 }
 0x69b   :  { %2002 = vrot.lane.b32.xlu1 %v7534_v26, %s7428_s8 }
 0x69e   :  { %2000 = vrot.lane.b32.xlu0 %v7544_v28, %s7428_s8 }
 0x6a0   :  { %v1787_v1 = vpop.xlane.xlu1 %1786 }
 0x6a1   :  { %7038 = vrcp.f32 %v1787_v1  ;;  %2350 = vrot.lane.b32.xlu2 %v7544_v28, %s7427_s7 }
 0x6a3   :  { %1998 = vrot.lane.b32.xlu1 %v7522_v22, %s7428_s8 }
 0x6a6   :  { %1996 = vrot.lane.b32.xlu0 %v7520_v21, %s7428_s8 }
 0x6a7   :  { %v7039_v0 = vpop.eup %7038 }
 0x6a8   :  { %v1805_v16 = vmul.f32 %v7039_v0, %v8406_v59  ;;  %v8510_v59 = vld [vmem:[%s10691_s3 + $0x10] sm:$0xff] }
 0x6a9   :  { %2352 = vrot.lane.b32.xlu2 %v7534_v26, %s7427_s7  ;;  %10723 = vst [vmem:[#allocation20_spill] sm:$0xff] %v8510_v59  ;;  %6161 = vmatpush.msk.msrb.mxu0 %vm763_vm3, %v8510_v59  ;;  %v10697_v61 = vrot.slane %v8510_v59, 4 }
 0x6aa   :  { %6159 = vmatmul.msk.f32.gmra.mxu3 %vm269_vm2, %v1805_v16 }
 0x6ab   :  { %1994 = vrot.lane.b32.xlu1 %v7512_v17, %s7428_s8  ;;  %6194 = vmatpush.msk.msrb.mxu3 %vm763_vm3, %v10697_v61 }
 0x6ae   :  { %1992 = vrot.lane.b32.xlu0 %v7516_v19, %s7428_s8 }
 0x6b1   :  { %1974 = vrot.lane.b32.xlu2 %v7528_v24, %s7429_s9 }
 0x6b3   :  { %1990 = vrot.lane.b32.xlu1 %v7528_v24, %s7428_s8 }
 0x6b4   :  { %v1790_v53 = vpop.xlane.xlu1 %1789 }
 0x6b5   :  { %7040 = vrcp.f32 %v1790_v53 }
 0x6b6   :  { %1988 = vrot.lane.b32.xlu0 %v7536_v27, %s7428_s8 }
 0x6b9   :  { %1980 = vrot.lane.b32.xlu2 %v7520_v21, %s7429_s9 }
 0x6bb   :  { %v7041_v46 = vpop.eup %7040  ;;  %1972 = vrot.lane.b32.xlu1 %v7536_v27, %s7429_s9 }
 0x6bc   :  { %v1806_v60 = vmul.f32 %v7041_v46, %v8417_v48  ;;  %v1406_v4 = vpop.xlane.xlu0 %1405 }
 0x6bd   :  { %v1403_v23 = vpop.xlane.xlu2 %1402 }
 0x6be   :  { %7042 = vrcp.f32 %v1403_v23  ;;  %1976 = vrot.lane.b32.xlu0 %v7516_v19, %s7429_s9  ;;  %6160 = vmatmul.msk.f32.gmra.mxu3 %vm269_vm2, %v1806_v60 }
 0x6bf   :  { %7044 = vrcp.f32 %v1406_v4 }
 0x6c1   :  { %1986 = vrot.lane.b32.xlu2 %v7534_v26, %s7429_s9 }
 0x6c3   :  { %1978 = vrot.lane.b32.xlu1 %v7512_v17, %s7429_s9 }
 0x6c4   :  { %v7043_v58 = vpop.eup %7042  ;;  %v1409_v48 = vpop.xlane.xlu1 %1408 }
 0x6c5   :  { %v1433_v7 = vmul.f32 %v7043_v58, %v8426_v51  ;;  %v7045_v43 = vpop.eup %7044  ;;  %7046 = vrcp.f32 %v1409_v48 }
 0x6c6   :  { %1982 = vrot.lane.b32.xlu0 %v7522_v22, %s7429_s9  ;;  %v1434_v44 = vmul.f32 %v7045_v43, %v8424_v55  ;;  %v8549_v55 = vpop.f32.mrf.mxu3 }
 0x6c7   :  { %6120 = vmatmul.msk.f32.vlgmr.msra.gmra.mxu0 %vm269_vm2, %v1433_v7 }
 0x6c9   :  { %6678 = vrot.lane.b32.xlu2 %v7596_v31, %s7430_s12 }
 0x6cb   :  { %1984 = vrot.lane.b32.xlu1 %v7544_v28, %s7429_s9  ;;  %v7047_v51 = vpop.eup %7046 }
 0x6cc   :  { %v1412_v13 = vpop.xlane.xlu2 %1411  ;;  %v1435_v25 = vmul.f32 %v7047_v51, %v8434_v56 }
 0x6cd   :  { %7048 = vrcp.f32 %v1412_v13 }
 0x6ce   :  { %6673 = vrot.lane.b32.xlu0 %v7610_v34, %s7430_s12  ;;  %v8553_v0 = vpop.f32.mrf.mxu3 }
 0x6cf   :  { %6121 = vmatmul.msk.f32.gmra.mxu0 %vm269_vm2, %v1434_v44 }
 0x6d3   :  { %6683 = vrot.lane.b32.xlu1 %v7618_v36, %s7430_s12  ;;  %v7049_v42 = vpop.eup %7048 }
 0x6d4   :  { %v2369_v3 = vpop.permute.xlu2 %2368  ;;  %v1436_v6 = vmul.f32 %v7049_v42, %v8441_v5 }
 0x6d5   :  { %6203 = vmatpush.xpose.msk.msra.mxu0 %vm187_vm1, %v2369_v3  ;;  %v1415_v8 = vpop.xlane.xlu0 %1414 }
 0x6d6   :  { %7050 = vrcp.f32 %v1415_v8  ;;  %v1872_v60 = vpop.f32.mrf.mxu3 }
 0x6d7   :  { %6122 = vmatmul.msk.f32.gmra.mxu0 %vm269_vm2, %v1435_v25 }
 0x6dc   :  { %v2361_v30 = vpop.permute.xlu2 %2360  ;;  %v7051_v1 = vpop.eup %7050 }
 0x6dd   :  { %v1418_v10 = vpop.xlane.xlu1 %1417  ;;  %v1437_v16 = vmul.f32 %v7051_v1, %v8449_v45 }
 0x6de   :  { %7052 = vrcp.f32 %v1418_v10  ;;  %v1875_v7 = vpop.f32.mrf.mxu3 }
 0x6df   :  { %6123 = vmatmul.msk.f32.gmra.mxu0 %vm269_vm2, %v1436_v6 }
 0x6e4   :  { %v7053_v53 = vpop.eup %7052  ;;  %v2355_v46 = vpop.permute.xlu2 %2354 }
 0x6e5   :  { %v1438_v5 = vmul.f32 %v7053_v53, %v8453_v52 }
 0x6e6   :  { %v1878_v52 = vpop.f32.mrf.mxu3 }
 0x6e7   :  { %6124 = vmatmul.msk.f32.gmra.mxu0 %vm269_vm2, %v1437_v16 }
 0x6e8   :  { %v2367_v56 = vpop.permute.xlu0 %2366 }
 0x6e9   :  { %6204 = vmatpush.xpose.msk.msra.mxu0 %vm187_vm1, %v2367_v56 }
 0x6ec   :  { %v8560_v4 = vpop.permute.xlu2 %2342 }
 0x6ee   :  { %v1881_v25 = vpop.f32.mrf.mxu3 }
 0x6ef   :  { %6125 = vmatmul.msk.f32.gmra.mxu0 %vm269_vm2, %v1438_v5 }
 0x6f0   :  { %v2363_v23 = vpop.permute.xlu0 %2362 }
 0x6f4   :  { %v8566_v43 = vpop.permute.xlu2 %2346 }
 0x6f5   :  { %v2365_v58 = vpop.permute.xlu1 %2364 }
 0x6f6   :  { %6205 = vmatpush.xpose.msk.msra.mxu0 %vm187_vm1, %v2365_v58 }
 0x6f7   :  { %6162 = vmatmul.msk.f32.vlgmr.msrb.gmra.mxu0 %vm187_vm1, %v1872_v60 }
 0x6f8   :  { %v2359_v45 = vpop.permute.xlu0 %2358 }
 0x6fa   :  { %6206 = vmatpush.xpose.msk.msra.mxu0 %vm187_vm1, %v2363_v23 }
 0x6fc   :  { %v8574_v3 = vpop.permute.xlu2 %2348 }
 0x6fd   :  { %v2357_v48 = vpop.permute.xlu1 %2356 }
 0x6fe   :  { %6207 = vmatpush.xpose.msk.msra.mxu0 %vm187_vm1, %v2361_v30  ;;  %v1884_v30 = vpop.f32.mrf.mxu3 }
 0x6ff   :  { %6163 = vmatmul.msk.f32.gmra.mxu0 %vm187_vm1, %v1875_v7 }
 0x700   :  { %v2339_v13 = vpop.permute.xlu0 %2338 }
 0x702   :  { %6208 = vmatpush.xpose.msk.msra.mxu0 %vm187_vm1, %v2359_v45 }
 0x704   :  { %v8580_v6 = vpop.permute.xlu2 %2350 }
 0x705   :  { %v2341_v44 = vpop.permute.xlu1 %2340 }
 0x706   :  { %6209 = vmatpush.xpose.msk.msra.mxu0 %vm187_vm1, %v2357_v48  ;;  %v1887_v53 = vpop.f32.mrf.mxu3 }
 0x707   :  { %6164 = vmatmul.msk.f32.gmra.mxu0 %vm187_vm1, %v1878_v52 }
 0x708   :  { %v8572_v51 = vpop.permute.xlu0 %2344 }
 0x70a   :  { %6210 = vmatpush.xpose.msk.msra.mxu0 %vm187_vm1, %v2355_v46 }
 0x70c   :  { %v2353_v16 = vpop.permute.xlu2 %2352 }
 0x70d   :  { %v2003_v8 = vpop.permute.xlu1 %2002 }
 0x70e   :  { %6170 = vmatpush.xpose.msk.msra.mxu2 %vm187_vm1, %v2003_v8 }
 0x70f   :  { %6165 = vmatmul.msk.f32.gmra.mxu0 %vm187_vm1, %v1881_v25 }
 0x710   :  { %v2001_v42 = vpop.permute.xlu0 %2000 }
 0x712   :  { %6171 = vmatpush.xpose.msk.msra.mxu2 %vm187_vm1, %v2001_v42 }
 0x714   :  { %v1975_v5 = vpop.permute.xlu2 %1974 }
 0x715   :  { %v1999_v10 = vpop.permute.xlu1 %1998 }
 0x716   :  { %6172 = vmatpush.xpose.msk.msra.mxu2 %vm187_vm1, %v1999_v10 }
 0x717   :  { %6166 = vmatmul.msk.f32.gmra.mxu0 %vm187_vm1, %v1884_v30 }
 0x718   :  { %v1997_v1 = vpop.permute.xlu0 %1996 }
 0x71a   :  { %6173 = vmatpush.xpose.msk.msra.mxu2 %vm187_vm1, %v1997_v1 }
 0x71c   :  { %v1981_v48 = vpop.permute.xlu2 %1980 }
 0x71d   :  { %v1995_v56 = vpop.permute.xlu1 %1994 }
 0x71e   :  { %6174 = vmatpush.xpose.msk.msra.mxu2 %vm187_vm1, %v1995_v56 }
 0x71f   :  { %6167 = vmatmul.msk.f32.gmra.mxu0 %vm187_vm1, %v1887_v53 }
 0x720   :  { %v1993_v46 = vpop.permute.xlu0 %1992 }
 0x722   :  { %6175 = vmatpush.xpose.msk.msra.mxu2 %vm187_vm1, %v1993_v46 }
 0x724   :  { %v1987_v8 = vpop.permute.xlu2 %1986 }
 0x725   :  { %v1991_v60 = vpop.permute.xlu1 %1990 }
 0x726   :  { %6176 = vmatpush.xpose.msk.msra.mxu2 %vm187_vm1, %v1991_v60 }
 0x728   :  { %v1989_v23 = vpop.permute.xlu0 %1988 }
 0x72a   :  { %6177 = vmatpush.xpose.msk.msra.mxu2 %vm187_vm1, %v1989_v23 }
 0x72c   :  { %v6679_v53 = vpop.permute.xlu2 %6678 }
 0x72d   :  { %v1973_v58 = vpop.permute.xlu1 %1972  ;;  %v1890_v7 = vpop.f32.mrf.mxu3  ;;  %v6680_v60 = vunpack.i.l.bf16 %v6679_v53 }
 0x72e   :  { %6168 = vmatmul.msk.f32.gmra.mxu0 %vm187_vm1, %v1890_v7  ;;  %v6681_v7 = vunpack.i.h.bf16 %v6679_v53 }
 0x730   :  { %v1977_v45 = vpop.permute.xlu0 %1976 }
 0x735   :  { %v1979_v52 = vpop.permute.xlu1 %1978 }
 0x738   :  { %v1983_v25 = vpop.permute.xlu0 %1982 }
 0x73d   :  { %v1985_v42 = vpop.permute.xlu1 %1984 }
 0x740   :  { %v6674_v30 = vpop.permute.xlu0 %6673 }
 0x741   :  { %v1893_v10 = vpop.f32.mrf.mxu3  ;;  %v6675_v1 = vunpack.i.l.bf16 %v6674_v30  ;;  %v6676_v46 = vunpack.i.h.bf16 %v6674_v30 }
 0x742   :  { %6169 = vmatmul.msk.f32.gmra.mxu0 %vm187_vm1, %v1893_v10 }
 0x744   :  { %v1506_v56 = vpop.f32.mrf.mxu0 }
 0x745   :  { %6129 = vmatmul.msk.f32.vlgmr.msrb.gmra.mxu2 %vm187_vm1, %v1506_v56  ;;  %v6684_v23 = vpop.permute.xlu1 %6683 }
 0x746   :  { %2595 = vmatpush.msrb.mxu2 %v6675_v1  ;;  %v6685_v61 = vunpack.i.l.bf16 %v6684_v23  ;;  %v6686_v10 = vunpack.i.h.bf16 %v6684_v23 }
 0x748   :  { %2596 = vmatpush.msrb.mxu2 %v6676_v46 }
 0x74a   :  { %2597 = vmatpush.msrb.mxu2 %v6680_v60  ;;  %6211 = vmatmul.msk.f32.vlgmr.msra.gmra.mxu0 %vm187_vm1, %v2339_v13 }
 0x74c   :  { %2598 = vmatpush.msrb.mxu2 %v6681_v7  ;;  %v1509_v59 = vpop.f32.mrf.mxu0 }
 0x74d   :  { %6130 = vmatmul.msk.f32.gmra.mxu2 %vm187_vm1, %v1509_v59 }
 0x74e   :  { %2599 = vmatpush.msrb.mxu2 %v6685_v61 }
 0x750   :  { %2600 = vmatpush.msrb.mxu2 %v6686_v10 }
 0x752   :  { %6212 = vmatmul.msk.f32.gmra.mxu0 %vm187_vm1, %v2341_v44 }
 0x754   :  { %v1512_v56 = vpop.f32.mrf.mxu0 }
 0x755   :  { %6131 = vmatmul.msk.f32.gmra.mxu2 %vm187_vm1, %v1512_v56 }
 0x75a   :  { %6213 = vmatmul.msk.f32.gmra.mxu0 %vm187_vm1, %v8560_v4 }
 0x75c   :  { %v1515_v30 = vpop.f32.mrf.mxu0 }
 0x75d   :  { %6132 = vmatmul.msk.f32.gmra.mxu2 %vm187_vm1, %v1515_v30 }
 0x762   :  { %6214 = vmatmul.msk.f32.gmra.mxu0 %vm187_vm1, %v8572_v51 }
 0x764   :  { %v1518_v13 = vpop.f32.mrf.mxu0 }
 0x765   :  { %6133 = vmatmul.msk.f32.gmra.mxu2 %vm187_vm1, %v1518_v13 }
 0x76a   :  { %6215 = vmatmul.msk.f32.gmra.mxu0 %vm187_vm1, %v8566_v43 }
 0x76c   :  { %v1521_v59 = vpop.f32.mrf.mxu0 }
 0x76d   :  { %6134 = vmatmul.msk.f32.gmra.mxu2 %vm187_vm1, %v1521_v59 }
 0x772   :  { %6216 = vmatmul.msk.f32.gmra.mxu0 %vm187_vm1, %v8574_v3 }
 0x774   :  { %v8612_v61 = vpop.f32.mrf.mxu0 }
 0x775   :  { %6135 = vmatmul.msk.f32.gmra.mxu2 %vm187_vm1, %v8549_v55 }
 0x77a   :  { %6217 = vmatmul.msk.f32.gmra.mxu0 %vm187_vm1, %v8580_v6 }
 0x77c   :  { %v8618_v4 = vpop.f32.mrf.mxu0 }
 0x77d   :  { %6136 = vmatmul.msk.f32.gmra.mxu2 %vm187_vm1, %v8553_v0 }
 0x782   :  { %6218 = vmatmul.msk.f32.gmra.mxu0 %vm187_vm1, %v2353_v16 }
 0x784   :  { %v8621_v43 = vpop.f32.mrf.mxu0 }
 0x785   :  { %6178 = vmatmul.msk.f32.vlgmr.msra.gmra.mxu2 %vm187_vm1, %v1973_v58  ;;  %10724 = vst [vmem:[#allocation21_spill] sm:$0xff] %v8621_v43 }
 0x78c   :  { %v8624_v55 = vpop.f32.mrf.mxu0 }
 0x78d   :  { %6179 = vmatmul.msk.f32.gmra.mxu2 %vm187_vm1, %v1975_v5  ;;  %10725 = vst [vmem:[#allocation22_spill] sm:$0xff] %v8624_v55 }
 0x794   :  { %v8627_v44 = vpop.f32.mrf.mxu0 }
 0x795   :  { %6180 = vmatmul.msk.f32.gmra.mxu2 %vm187_vm1, %v1977_v45  ;;  %10726 = vst [vmem:[#allocation23_spill] sm:$0xff] %v8627_v44 }
 0x79c   :  { %v8631_v0 = vpop.f32.mrf.mxu0 }
 0x79d   :  { %6181 = vmatmul.msk.f32.gmra.mxu2 %vm187_vm1, %v1979_v52  ;;  %10727 = vst [vmem:[#allocation24_spill] sm:$0xff] %v8631_v0 }
 0x7a5   :  { %6182 = vmatmul.msk.f32.gmra.mxu2 %vm187_vm1, %v1981_v48 }
 0x7ab   :  { %v8634_v51 = vpop.f32.mrf.mxu0 }
 0x7ac   :  { %10728 = vst [vmem:[#allocation25_spill] sm:$0xff] %v8634_v51 }
 0x7ad   :  { %6183 = vmatmul.msk.f32.gmra.mxu2 %vm187_vm1, %v1983_v25 }
 0x7b5   :  { %6184 = vmatmul.msk.f32.gmra.mxu2 %vm187_vm1, %v1985_v42 }
 0x7bd   :  { %6185 = vmatmul.msk.f32.gmra.mxu2 %vm187_vm1, %v1987_v8 }
 0x7bf   :  { %v8637_v3 = vpop.f32.mrf.mxu0 }
 0x7c0   :  { %10729 = vst [vmem:[#allocation26_spill] sm:$0xff] %v8637_v3 }
 0x7c7   :  { %v2419_v6 = vpop.f32.mrf.mxu0 }
 0x7c8   :  { %v8639_v16 = vpop.f32.mrf.mxu2  ;;  %v8641_v5 = vmul.f32 0.5, %v2419_v6 }
 0x7ca   :  { %v2451_v58 = vsel %vm269_vm2, %v8641_v5, -inf }
 0x7cb   :  { %2452 = vmax.xlane.f32.xlu0 %v2451_v58 }
 0x7cf   :  { %v2422_v45 = vpop.f32.mrf.mxu0 }
 0x7d0   :  { %v8645_v48 = vpop.f32.mrf.mxu2  ;;  %v8647_v52 = vmul.f32 0.5, %v2422_v45 }
 0x7d2   :  { %v2454_v25 = vsel %vm269_vm2, %v8647_v52, -inf }
 0x7d3   :  { %2455 = vmax.xlane.f32.xlu1 %v2454_v25 }
 0x7d7   :  { %v2425_v8 = vpop.f32.mrf.mxu0 }
 0x7d8   :  { %v8651_v42 = vpop.f32.mrf.mxu2  ;;  %v8653_v1 = vmul.f32 0.5, %v2425_v8 }
 0x7d9   :  { %10730 = vst [vmem:[#allocation27_spill] sm:$0xff] %v8651_v42 }
 0x7da   :  { %v2457_v53 = vsel %vm269_vm2, %v8653_v1, -inf }
 0x7db   :  { %2458 = vmax.xlane.f32.xlu2 %v2457_v53 }
 0x7df   :  { %v2428_v59 = vpop.f32.mrf.mxu0 }
 0x7e0   :  { %v8657_v46 = vpop.f32.mrf.mxu2  ;;  %v2446_v3 = vmul.f32 0.5, %v2428_v59 }
 0x7e1   :  { %10731 = vst [vmem:[#allocation28_spill] sm:$0xff] %v8657_v46 }
 0x7e7   :  { %v2431_v25 = vpop.f32.mrf.mxu0 }
 0x7e8   :  { %v8659_v60 = vpop.f32.mrf.mxu2 }
 0x7e9   :  { %10732 = vst [vmem:[#allocation29_spill] sm:$0xff] %v8659_v60 }
 0x7f0   :  { %v8661_v23 = vpop.f32.mrf.mxu2 }
 0x7f1   :  { %10733 = vst [vmem:[#allocation30_spill] sm:$0xff] %v8661_v23 }
 0x7f3   :  { %6688 = vrot.lane.b32.xlu2 %v7626_v39, %s7430_s12 }
 0x7f8   :  { %v8665_v7 = vpop.f32.mrf.mxu2 }
 0x7f9   :  { %10734 = vst [vmem:[#allocation31_spill] sm:$0xff] %v8665_v7 }
 0x800   :  { %v8667_v10 = vpop.f32.mrf.mxu2 }
 0x801   :  { %10735 = vst [vmem:[#allocation32_spill] sm:$0xff] %v8667_v10  ;;  %v2434_v10 = vpop.f32.mrf.mxu0 }
 0x808   :  { %v2053_v56 = vpop.f32.mrf.mxu2 }
 0x809   :  { %v8669_v30 = vmul.f32 0.5, %v2053_v56  ;;  %v2437_v23 = vpop.f32.mrf.mxu0 }
 0x80b   :  { %v2085_v13 = vsel %vm269_vm2, %v8669_v30, -inf }
 0x80c   :  { %2086 = vmax.xlane.f32.xlu1 %v2085_v13  ;;  %v2460_v13 = vsel %vm269_vm2, %v2446_v3, -inf }
 0x810   :  { %v2056_v6 = vpop.f32.mrf.mxu2 }
 0x811   :  { %v8673_v58 = vmul.f32 0.5, %v2056_v6 }
 0x813   :  { %v2088_v45 = vsel %vm269_vm2, %v8673_v58, -inf }
 0x814   :  { %2089 = vmax.xlane.f32.xlu0 %v2088_v45  ;;  %v2448_v45 = vmul.f32 0.5, %v2434_v10 }
 0x816   :  { %v2466_v44 = vsel %vm269_vm2, %v2448_v45, -inf }
 0x818   :  { %v2059_v8 = vpop.f32.mrf.mxu2 }
 0x819   :  { %v8677_v53 = vmul.f32 0.5, %v2059_v8 }
 0x81b   :  { %v2091_v56 = vsel %vm269_vm2, %v8677_v53, -inf }
 0x81c   :  { %2092 = vmax.xlane.f32.xlu0 %v2091_v56 }
 0x820   :  { %v2062_v51 = vpop.f32.mrf.mxu2 }
 0x821   :  { %v8681_v7 = vmul.f32 0.5, %v2062_v51  ;;  %v2447_v51 = vmul.f32 0.5, %v2431_v25 }
 0x823   :  { %v2094_v6 = vsel %vm269_vm2, %v8681_v7, -inf  ;;  %v2463_v55 = vsel %vm269_vm2, %v2447_v51, -inf }
 0x824   :  { %2461 = vmax.xlane.f32.xlu0 %v2460_v13  ;;  %2095 = vmax.xlane.f32.xlu2 %v2094_v6  ;;  %v2440_v13 = vpop.f32.mrf.mxu0 }
 0x825   :  { %v8696_v6 = vmul.f32 0.5, %v2440_v13 }
 0x828   :  { %v2065_v0 = vpop.f32.mrf.mxu2 }
 0x829   :  { %v8686_v8 = vmul.f32 0.5, %v2065_v0  ;;  %v2449_v0 = vmul.f32 0.5, %v2437_v23 }
 0x82b   :  { %v2097_v59 = vsel %vm269_vm2, %v8686_v8, -inf  ;;  %v2469_v14 = vsel %vm269_vm2, %v2449_v0, -inf }
 0x82c   :  { %2467 = vmax.xlane.f32.xlu2 %v2466_v44  ;;  %2098 = vmax.xlane.f32.xlu1 %v2097_v59  ;;  %v2472_v44 = vsel %vm269_vm2, %v8696_v6, -inf }
 0x830   :  { %v2068_v56 = vpop.f32.mrf.mxu2 }
 0x831   :  { %v8691_v60 = vmul.f32 0.5, %v2068_v56 }
 0x833   :  { %v2100_v10 = vsel %vm269_vm2, %v8691_v60, -inf }
 0x834   :  { %2464 = vmax.xlane.f32.xlu1 %v2463_v55  ;;  %2101 = vmax.xlane.f32.xlu0 %v2100_v10 }
 0x83c   :  { %2470 = vmax.xlane.f32.xlu1 %v2469_v14  ;;  %2473 = vmax.xlane.f32.xlu0 %v2472_v44 }
 0x83e   :  { %v2453_v25 = vpop.xlane.xlu0 %2452 }
 0x83f   :  { %v2475_v59 = vsub.f32 %v8641_v5, %v2453_v25 }
 0x841   :  { %v2483_v56 = vmul.f32 1.442695, %v2475_v59 }
 0x843   :  { %7054 = vpow2.f32 %v2483_v56 }
 0x846   :  { %v2456_v37 = vpop.xlane.xlu1 %2455 }
 0x847   :  { %v2476_v46 = vsub.f32 %v8647_v52, %v2456_v37 }
 0x849   :  { %v8703_v55 = vpop.eup %7054  ;;  %v2485_v23 = vmul.f32 1.442695, %v2476_v46 }
 0x84a   :  { %v2499_v10 = vsel %vm269_vm2, %v8703_v55, 0.0 }
 0x84b   :  { %7056 = vpow2.f32 %v2485_v23  ;;  %2500 = vadd.xlane.f32.xlu1 %v2499_v10 }
 0x84e   :  { %v2459_v13 = vpop.xlane.xlu2 %2458 }
 0x84f   :  { %v2477_v14 = vsub.f32 %v8653_v1, %v2459_v13 }
 0x851   :  { %v8708_v44 = vpop.eup %7056  ;;  %v2487_v29 = vmul.f32 1.442695, %v2477_v14 }
 0x852   :  { %v2502_v5 = vsel %vm269_vm2, %v8708_v44, 0.0 }
 0x853   :  { %7058 = vpow2.f32 %v2487_v29  ;;  %2503 = vadd.xlane.f32.xlu2 %v2502_v5 }
 0x856   :  { %v6689_v37 = vpop.permute.xlu2 %6688 }
 0x857   :  { %v6690_v52 = vunpack.i.l.bf16 %v6689_v37  ;;  %v6691_v46 = vunpack.i.h.bf16 %v6689_v37 }
 0x859   :  { %v8712_v25 = vpop.eup %7058  ;;  %2601 = vmatpush.msrb.mxu2 %v6690_v52 }
 0x85a   :  { %v2505_v59 = vsel %vm269_vm2, %v8712_v25, 0.0 }
 0x85b   :  { %2506 = vadd.xlane.f32.xlu0 %v2505_v59  ;;  %2602 = vmatpush.msrb.mxu2 %v6691_v46 }
 0x87f   :  { %v2087_v23 = vpop.xlane.xlu1 %2086 }
 0x887   :  { %v8716_v1 = vpop.xlane.xlu0 %2089 }
 0x88f   :  { %v8718_v56 = vpop.xlane.xlu0 %2092 }
 0x897   :  { %v2462_v10 = vpop.xlane.xlu0 %2461  ;;  %v8720_v13 = vpop.xlane.xlu2 %2095 }
 0x898   :  { %v2478_v29 = vsub.f32 %v2446_v3, %v2462_v10  ;;  %v2109_v3 = vsub.f32 %v8669_v30, %v2087_v23 }
 0x89a   :  { %v2489_v14 = vmul.f32 1.442695, %v2478_v29 }
 0x89c   :  { %7060 = vpow2.f32 %v2489_v14  ;;  %v2071_v14 = vpop.f32.mrf.mxu2 }
 0x89f   :  { %v2468_v5 = vpop.xlane.xlu2 %2467  ;;  %v8722_v43 = vpop.xlane.xlu1 %2098 }
 0x8a0   :  { %v2480_v37 = vsub.f32 %v2448_v45, %v2468_v5  ;;  %v2117_v45 = vmul.f32 1.442695, %v2109_v3  ;;  %v8733_v5 = vmul.f32 0.5, %v2071_v14 }
 0x8a2   :  { %v8724_v52 = vpop.eup %7060  ;;  %v2493_v50 = vmul.f32 1.442695, %v2480_v37 }
 0x8a3   :  { %v2508_v46 = vsel %vm269_vm2, %v8724_v52, 0.0 }
 0x8a4   :  { %7062 = vpow2.f32 %v2493_v50  ;;  %2509 = vadd.xlane.f32.xlu2 %v2508_v46 }
 0x8a7   :  { %v2465_v59 = vpop.xlane.xlu1 %2464 }
 0x8a8   :  { %v2479_v54 = vsub.f32 %v2447_v51, %v2465_v59  ;;  %v2103_v51 = vsel %vm269_vm2, %v8733_v5, -inf  ;;  %v2102_v59 = vpop.xlane.xlu0 %2101 }
 0x8aa   :  { %v8728_v42 = vpop.eup %7062  ;;  %v2491_v10 = vmul.f32 1.442695, %v2479_v54 }
 0x8ab   :  { %v2514_v29 = vsel %vm269_vm2, %v8728_v42, 0.0 }
 0x8ac   :  { %2515 = vadd.xlane.f32.xlu0 %v2514_v29  ;;  %7064 = vpow2.f32 %v2491_v10 }
 0x8ad   :  { %7066 = vpow2.f32 %v2117_v45 }
 0x8af   :  { %v2471_v37 = vpop.xlane.xlu1 %2470 }
 0x8b0   :  { %v2481_v32 = vsub.f32 %v2449_v0, %v2471_v37  ;;  %v2474_v29 = vpop.xlane.xlu0 %2473 }
 0x8b2   :  { %v2495_v50 = vmul.f32 1.442695, %v2481_v32  ;;  %v8735_v46 = vpop.eup %7064 }
 0x8b3   :  { %v2511_v54 = vsel %vm269_vm2, %v8735_v46, 0.0  ;;  %v8741_v30 = vpop.eup %7066 }
 0x8b4   :  { %2104 = vmax.xlane.f32.xlu0 %v2103_v51  ;;  %7068 = vpow2.f32 %v2495_v50  ;;  %2512 = vadd.xlane.f32.xlu1 %v2511_v54  ;;  %v2133_v0 = vsel %vm269_vm2, %v8741_v30, 0.0 }
 0x8ba   :  { %v8743_v23 = vpop.eup %7068 }
 0x8bb   :  { %v2517_v32 = vsel %vm269_vm2, %v8743_v23, 0.0 }
 0x8bc   :  { %2134 = vadd.xlane.f32.xlu0 %v2133_v0  ;;  %2518 = vadd.xlane.f32.xlu2 %v2517_v32  ;;  %v2482_v0 = vsub.f32 %v8696_v6, %v2474_v29  ;;  %v2110_v32 = vsub.f32 %v8673_v58, %v8716_v1 }
 0x8be   :  { %v2501_v3 = vpop.xlane.xlu1 %2500 }
 0x8bf   :  { %7070 = vrcp.f32 %v2501_v3  ;;  %v2119_v3 = vmul.f32 1.442695, %v2110_v32 }
 0x8c5   :  { %v7071_v10 = vpop.eup %7070 }
 0x8c6   :  { %v2531_v14 = vmul.f32 %v7071_v10, %v8703_v55  ;;  %v2504_v45 = vpop.xlane.xlu2 %2503  ;;  %v2114_v10 = vsub.f32 %v8691_v60, %v2102_v59 }
 0x8c7   :  { %7072 = vrcp.f32 %v2504_v45  ;;  %v2112_v45 = vsub.f32 %v8681_v7, %v8720_v13  ;;  %v2113_v7 = vsub.f32 %v8686_v8, %v8722_v43  ;;  %v8798_v8 = vld [vmem:[%s10690_s2] ss:$0 sm:$0xff]  ;;  %s7432_s2 = smov 68  }
 0x8c8   :  { %6219 = vmatmul.msk.f32.vlgmr.msrb.gmra.mxu2 %vm269_vm2, %v2531_v14  ;;  %v8802_v32 = vadd.f32 %v8798_v8, %v7846_v49  ;;  %v8816_v49 = vadd.f32 %v8798_v8, %v7806_v12 }
 0x8c9   :  { %v2123_v29 = vmul.f32 1.442695, %v2112_v45  ;;  %v2125_v59 = vmul.f32 1.442695, %v2113_v7 }
 0x8cd   :  { %v7073_v37 = vpop.eup %7072  ;;  %6698 = vrot.lane.b32.xlu1 %v7596_v31, %s7431_s13 }
 0x8ce   :  { %v2507_v50 = vpop.xlane.xlu0 %2506  ;;  %v2532_v51 = vmul.f32 %v7073_v37, %v8708_v44  ;;  %v2497_v44 = vmul.f32 1.442695, %v2482_v0  ;;  %v2127_v37 = vmul.f32 1.442695, %v2114_v10 }
 0x8cf   :  { %7074 = vrcp.f32 %v2507_v50  ;;  %v2074_v50 = vpop.f32.mrf.mxu2 }
 0x8d0   :  { %6703 = vrot.lane.b32.xlu0 %v7618_v36, %s7431_s13  ;;  %6220 = vmatmul.msk.f32.gmra.mxu2 %vm269_vm2, %v2532_v51  ;;  %7076 = vpow2.f32 %v2497_v44  ;;  %v8773_v58 = vmul.f32 0.5, %v2074_v50 }
 0x8d1   :  { %7078 = vpow2.f32 %v2119_v3  ;;  %v8808_v3 = vadd.f32 %v8798_v8, %v7832_v40 }
 0x8d2   :  { %7080 = vpow2.f32 %v2127_v37  ;;  %v2106_v1 = vsel %vm269_vm2, %v8773_v58, -inf }
 0x8d3   :  { %7082 = vpow2.f32 %v2123_v29  ;;  %v2111_v29 = vsub.f32 %v8677_v53, %v8718_v56 }
 0x8d4   :  { %6693 = vrot.lane.b32.xlu2 %v7610_v34, %s7431_s13  ;;  %7084 = vpow2.f32 %v2125_v59 }
 0x8d5   :  { %v7075_v54 = vpop.eup %7074 }
 0x8d6   :  { %v2533_v55 = vmul.f32 %v7075_v54, %v8712_v25  ;;  %v8765_v14 = vpop.eup %7076 }
 0x8d7   :  { %v8769_v25 = vpop.eup %7078  ;;  %v2520_v6 = vsel %vm269_vm2, %v8765_v14, 0.0 }
 0x8d8   :  { %6221 = vmatmul.msk.f32.gmra.mxu2 %vm269_vm2, %v2533_v55  ;;  %v2136_v60 = vsel %vm269_vm2, %v8769_v25, 0.0  ;;  %v8781_v13 = vpop.eup %7080 }
 0x8d9   :  { %v2148_v51 = vsel %vm269_vm2, %v8781_v13, 0.0  ;;  %v8785_v54 = vpop.eup %7082 }
 0x8da   :  { %v2142_v55 = vsel %vm269_vm2, %v8785_v54, 0.0  ;;  %v8789_v0 = vpop.eup %7084 }
 0x8db   :  { %v2145_v43 = vsel %vm269_vm2, %v8789_v0, 0.0 }
 0x8f7   :  { %2521 = vadd.xlane.f32.xlu1 %v2520_v6 }
 0x8fa   :  { %2137 = vadd.xlane.f32.xlu0 %v2136_v60 }
 0x8fd   :  { %2107 = vmax.xlane.f32.xlu2 %v2106_v1 }
 0x902   :  { %2149 = vadd.xlane.f32.xlu0 %v2148_v51 }
 0x905   :  { %2143 = vadd.xlane.f32.xlu2 %v2142_v55 }
 0x90d   :  { %2146 = vadd.xlane.f32.xlu2 %v2145_v43 }
 0x910   :  { %6708 = vrot.lane.b32.xlu1 %v7626_v39, %s7431_s13 }
 0x916   :  { %3111 = vrot.lane.b32.xlu0 %v8802_v32, %s7412_s18 }
 0x917   :  { %v2510_v44 = vpop.xlane.xlu2 %2509 }
 0x918   :  { %7086 = vrcp.f32 %v2510_v44 }
 0x91e   :  { %v7087_v10 = vpop.eup %7086  ;;  %3105 = vrot.lane.b32.xlu0 %v8808_v3, %s7412_s18 }
 0x91f   :  { %v2516_v45 = vpop.xlane.xlu0 %2515  ;;  %v2534_v37 = vmul.f32 %v7087_v10, %v8724_v52  ;;  %v2121_v52 = vmul.f32 1.442695, %v2111_v29 }
 0x921   :  { %6222 = vmatmul.msk.f32.gmra.mxu2 %vm269_vm2, %v2534_v37 }
 0x926   :  { %3099 = vrot.lane.b32.xlu0 %v8816_v49, %s7412_s18 }
 0x927   :  { %v2105_v50 = vpop.xlane.xlu0 %2104  ;;  %v2513_v6 = vpop.xlane.xlu1 %2512 }
 0x928   :  { %v2115_v40 = vsub.f32 %v8733_v5, %v2105_v50  ;;  %7088 = vrcp.f32 %v2513_v6 }
 0x92a   :  { %v2129_v60 = vmul.f32 1.442695, %v2115_v40 }
 0x92c   :  { %7090 = vpow2.f32 %v2129_v60 }
 0x92d   :  { %7092 = vrcp.f32 %v2516_v45 }
 0x92e   :  { %2732 = vrot.lane.b32.xlu0 %v7544_v28, %s7432_s2  ;;  %v7089_v12 = vpop.eup %7088  ;;  %7094 = vpow2.f32 %v2121_v52  ;;  %v8847_v52 = vadd.f32 %v8798_v8, %v7844_v47  ;;  %v8867_v47 = vadd.f32 %v8798_v8, %v7790_v2 }
 0x92f   :  { %v2519_v7 = vpop.xlane.xlu2 %2518  ;;  %v2535_v1 = vmul.f32 %v7089_v12, %v8735_v46  ;;  %v2135_v43 = vpop.xlane.xlu0 %2134 }
 0x930   :  { %7096 = vrcp.f32 %v2519_v7  ;;  %v8861_v12 = vpack.i.bf16 %v8847_v52, %v8802_v32 }
 0x931   :  { %6223 = vmatmul.msk.f32.gmra.mxu2 %vm269_vm2, %v2535_v1 }
 0x932   :  { %v8826_v59 = vpop.eup %7090 }
 0x933   :  { %v2151_v53 = vsel %vm269_vm2, %v8826_v59, 0.0  ;;  %v7093_v56 = vpop.eup %7092 }
 0x934   :  { %2152 = vadd.xlane.f32.xlu2 %v2151_v53  ;;  %v8833_v5 = vpop.eup %7094  ;;  %v2536_v55 = vmul.f32 %v7093_v56, %v8728_v42 }
 0x935   :  { %v2139_v44 = vsel %vm269_vm2, %v8833_v5, 0.0 }
 0x936   :  { %2726 = vrot.lane.b32.xlu0 %v7512_v17, %s7432_s2  ;;  %v7097_v45 = vpop.eup %7096 }
 0x937   :  { %v6694_v51 = vpop.permute.xlu2 %6693  ;;  %v2537_v50 = vmul.f32 %v7097_v45, %v8743_v23  ;;  %v8855_v23 = vadd.f32 %v8798_v8, %v7826_v33  ;;  %v8878_v33 = vld [vmem:[%s10691_s3 + $0x18] sm:$0xff] }
 0x938   :  { %v6695_v46 = vunpack.i.l.bf16 %v6694_v51  ;;  %v6696_v10 = vunpack.i.h.bf16 %v6694_v51  ;;  %10736 = vst [vmem:[#allocation33_spill] sm:$0xff] %v8878_v33  ;;  %v10699_v7 = vrot.slane %v8878_v33, 4 }
 0x939   :  { %6224 = vmatmul.msk.f32.gmra.mxu2 %vm269_vm2, %v2536_v55 }
 0x93a   :  { %2140 = vadd.xlane.f32.xlu1 %v2139_v44  ;;  %2229 = vmatpush.msrb.mxu1 %v6695_v46 }
 0x93b   :  { %6260 = vmatpush.msk.msra.mxu2 %vm763_vm3, %v10699_v7 }
 0x93c   :  { %2230 = vmatpush.msrb.mxu1 %v6696_v10 }
 0x93e   :  { %2720 = vrot.lane.b32.xlu0 %v7536_v27, %s7432_s2 }
 0x93f   :  { %v6699_v37 = vpop.permute.xlu1 %6698 }
 0x940   :  { %v6700_v40 = vunpack.i.l.bf16 %v6699_v37  ;;  %v6701_v6 = vunpack.i.h.bf16 %v6699_v37  ;;  %v8920_v37 = vadd.f32 %v8798_v8, %v7840_v41 }
 0x941   :  { %6225 = vmatmul.msk.f32.gmra.mxu2 %vm269_vm2, %v2537_v50 }
 0x942   :  { %v6704_v42 = vpop.permute.xlu0 %6703  ;;  %2231 = vmatpush.msrb.mxu1 %v6700_v40 }
 0x943   :  { %v6705_v29 = vunpack.i.l.bf16 %v6704_v42  ;;  %v6706_v60 = vunpack.i.h.bf16 %v6704_v42 }
 0x944   :  { %2232 = vmatpush.msrb.mxu1 %v6701_v6 }
 0x946   :  { %2708 = vrot.lane.b32.xlu0 %v7516_v19, %s7433_s16  ;;  %2233 = vmatpush.msrb.mxu1 %v6705_v29 }
 0x948   :  { %2234 = vmatpush.msrb.mxu1 %v6706_v60 }
 0x94c   :  { %3109 = vrot.lane.b32.xlu2 %v8847_v52, %s7412_s18 }
 0x94e   :  { %2714 = vrot.lane.b32.xlu0 %v7522_v22, %s7433_s16 }
 0x954   :  { %3103 = vrot.lane.b32.xlu2 %v8855_v23, %s7412_s18 }
 0x956   :  { %6713 = vrot.lane.b32.xlu0 %v8861_v12, %s7417_s23 }
 0x95c   :  { %3097 = vrot.lane.b32.xlu2 %v8867_v47, %s7412_s18 }
 0x95e   :  { %6733 = vrot.lane.b32.xlu0 %v7610_v34, %s7434_s29 }
 0x964   :  { %2730 = vrot.lane.b32.xlu2 %v7522_v22, %s7432_s2 }
 0x96a   :  { %v2522_v1 = vpop.xlane.xlu1 %2521 }
 0x96b   :  { %7098 = vrcp.f32 %v2522_v1 }
 0x96c   :  { %2724 = vrot.lane.b32.xlu2 %v7516_v19, %s7432_s2 }
 0x96d   :  { %v2138_v51 = vpop.xlane.xlu0 %2137 }
 0x970   :  { %v2108_v34 = vpop.xlane.xlu2 %2107 }
 0x971   :  { %v7099_v2 = vpop.eup %7098  ;;  %v2116_v22 = vsub.f32 %v8773_v58, %v2108_v34 }
 0x972   :  { %v2538_v53 = vmul.f32 %v7099_v2, %v8765_v14 }
 0x973   :  { %v2131_v56 = vmul.f32 1.442695, %v2116_v22 }
 0x974   :  { %2704 = vrot.lane.b32.xlu2 %v7536_v27, %s7433_s16  ;;  %6226 = vmatmul.msk.f32.gmra.mxu2 %vm269_vm2, %v2538_v53  ;;  %v8901_v27 = vadd.f32 %v8798_v8, %v7814_v20 }
 0x975   :  { %7100 = vpow2.f32 %v2131_v56  ;;  %v2150_v58 = vpop.xlane.xlu0 %2149 }
 0x976   :  { %7102 = vrcp.f32 %v2135_v43  ;;  %v8909_v43 = vpack.i.bf16 %v8901_v27, %v8855_v23 }
 0x977   :  { %7104 = vrcp.f32 %v2138_v51 }
 0x978   :  { %10737 = vst [vmem:[#allocation34_spill] sm:$0xff] %v8909_v43  ;;  %v2144_v50 = vpop.xlane.xlu2 %2143 }
 0x97b   :  { %v8891_v55 = vpop.eup %7100 }
 0x97c   :  { %2710 = vrot.lane.b32.xlu2 %v7512_v17, %s7433_s16  ;;  %v2154_v19 = vsel %vm269_vm2, %v8891_v55, 0.0  ;;  %v7103_v46 = vpop.eup %7102 }
 0x97d   :  { %2155 = vadd.xlane.f32.xlu1 %v2154_v19  ;;  %v2165_v17 = vmul.f32 %v7103_v46, %v8741_v30 }
 0x980   :  { %v2147_v42 = vpop.xlane.xlu2 %2146 }
 0x982   :  { %v6709_v14 = vpop.permute.xlu1 %6708 }
 0x983   :  { %v6710_v44 = vunpack.i.l.bf16 %v6709_v14  ;;  %v6711_v10 = vunpack.i.h.bf16 %v6709_v14 }
 0x984   :  { %2716 = vrot.lane.b32.xlu2 %v7544_v28, %s7433_s16  ;;  %v7105_v28 = vpop.eup %7104 }
 0x985   :  { %2235 = vmatpush.msrb.mxu1 %v6710_v44  ;;  %v2166_v20 = vmul.f32 %v7105_v28, %v8769_v25 }
 0x987   :  { %2236 = vmatpush.msrb.mxu1 %v6711_v10 }
 0x988   :  { %v3112_v45 = vpop.permute.xlu0 %3111  ;;  %6186 = vmatmul.msk.f32.vlgmr.msrb.gmra.mxu1 %vm269_vm2, %v2165_v17 }
 0x989   :  { %6227 = vmatpush.msk.msra.mxu1 %vm763_vm3, %v8878_v33 }
 0x98b   :  { %6269 = vmatpush.xpose.msk.msrb.mxu1 %vm187_vm1, %v3112_v45  ;;  %v2604_v45 = vpop.f32.mrf.mxu2 }
 0x98c   :  { %6723 = vrot.lane.b32.xlu2 %v8909_v43, %s7417_s23 }
 0x990   :  { %v8915_v30 = vpop.permute.xlu0 %3105  ;;  %6187 = vmatmul.msk.f32.gmra.mxu1 %vm269_vm2, %v2166_v20 }
 0x996   :  { %3107 = vrot.lane.b32.xlu1 %v8920_v37, %s7412_s18 }
 0x998   :  { %v8924_v40 = vpop.permute.xlu0 %3099 }
 0x99e   :  { %3101 = vrot.lane.b32.xlu1 %v8901_v27, %s7412_s18 }
 0x9a0   :  { %v8928_v6 = vpop.permute.xlu0 %2732 }
 0x9a6   :  { %2734 = vrot.lane.b32.xlu1 %v7534_v26, %s7432_s2 }
 0x9a7   :  { %v2153_v25 = vpop.xlane.xlu2 %2152 }
 0x9a8   :  { %v8932_v29 = vpop.permute.xlu0 %2726 }
 0x9ad   :  { %v2141_v41 = vpop.xlane.xlu1 %2140 }
 0x9ae   :  { %7106 = vrcp.f32 %v2141_v41  ;;  %2728 = vrot.lane.b32.xlu1 %v7520_v21, %s7432_s2 }
 0x9af   :  { %v3110_v8 = vpop.permute.xlu2 %3109  ;;  %7108 = vrcp.f32 %v2144_v50 }
 0x9b0   :  { %v8936_v60 = vpop.permute.xlu0 %2720  ;;  %6270 = vmatpush.xpose.msk.msrb.mxu1 %vm187_vm1, %v3110_v8  ;;  %7110 = vrcp.f32 %v2147_v42 }
 0x9b1   :  { %7112 = vrcp.f32 %v2150_v58 }
 0x9b2   :  { %7114 = vrcp.f32 %v2153_v25 }
 0x9b4   :  { %v7107_v1 = vpop.eup %7106 }
 0x9b5   :  { %v2167_v34 = vmul.f32 %v7107_v1, %v8833_v5  ;;  %v7109_v22 = vpop.eup %7108 }
 0x9b6   :  { %2722 = vrot.lane.b32.xlu1 %v7528_v24, %s7432_s2  ;;  %v2168_v53 = vmul.f32 %v7109_v22, %v8785_v54  ;;  %v7111_v51 = vpop.eup %7110  ;;  %v10739_v22 = vrot.slane %v8013_v63, 4 }
 0x9b7   :  { %6188 = vmatmul.msk.f32.gmra.mxu1 %vm269_vm2, %v2167_v34  ;;  %v2169_v5 = vmul.f32 %v7111_v51, %v8789_v0  ;;  %v7113_v14 = vpop.eup %7112  ;;  %v3104_v28 = vpop.permute.xlu2 %3103 }
 0x9b8   :  { %v8943_v2 = vpop.permute.xlu0 %2708  ;;  %v2170_v54 = vmul.f32 %v7113_v14, %v8781_v13  ;;  %v7115_v46 = vpop.eup %7114 }
 0x9b9   :  { %v2171_v44 = vmul.f32 %v7115_v46, %v8826_v59  ;;  %v2607_v59 = vpop.f32.mrf.mxu2 }
 0x9be   :  { %2706 = vrot.lane.b32.xlu1 %v7528_v24, %s7433_s16 }
 0x9bf   :  { %6189 = vmatmul.msk.f32.gmra.mxu1 %vm269_vm2, %v2168_v53 }
 0x9c0   :  { %v8949_v56 = vpop.permute.xlu0 %2714 }
 0x9c1   :  { %v2610_v42 = vpop.f32.mrf.mxu2 }
 0x9c6   :  { %2712 = vrot.lane.b32.xlu1 %v7520_v21, %s7433_s16  ;;  %v8963_v21 = vpack.i.bf16 %v8808_v3, %v8920_v37 }
 0x9c7   :  { %6190 = vmatmul.msk.f32.gmra.mxu1 %vm269_vm2, %v2169_v5 }
 0x9c8   :  { %v8955_v19 = vpop.permute.xlu0 %6713 }
 0x9c9   :  { %v2613_v8 = vpop.f32.mrf.mxu2 }
 0x9ce   :  { %2718 = vrot.lane.b32.xlu1 %v7534_v26, %s7433_s16  ;;  %v8971_v26 = vpack.i.bf16 %v8867_v47, %v8816_v49 }
 0x9cf   :  { %6191 = vmatmul.msk.f32.gmra.mxu1 %vm269_vm2, %v2170_v54 }
 0x9d0   :  { %v6734_v24 = vpop.permute.xlu0 %6733  ;;  %10738 = vst [vmem:[#allocation35_spill] sm:$0xff] %v8971_v26 }
 0x9d1   :  { %v6735_v58 = vunpack.i.l.bf16 %v6734_v24  ;;  %v6736_v0 = vunpack.i.h.bf16 %v6734_v24  ;;  %v6715_v24 = vunpack.i.l.bf16 %v8955_v19 }
 0x9d3   :  { %2961 = vmatpush.msrb.mxu0 %v6735_v58 }
 0x9d5   :  { %2962 = vmatpush.msrb.mxu0 %v6736_v0 }
 0x9d6   :  { %6718 = vrot.lane.b32.xlu1 %v8963_v21, %s7417_s23 }
 0x9d7   :  { %6192 = vmatmul.msk.f32.gmra.mxu1 %vm269_vm2, %v2171_v44 }
 0x9de   :  { %6728 = vrot.lane.b32.xlu1 %v8971_v26, %s7417_s23 }
 0x9f0   :  { %v2156_v13 = vpop.xlane.xlu1 %2155 }
 0x9f1   :  { %7116 = vrcp.f32 %v2156_v13 }
 0x9f7   :  { %v7117_v10 = vpop.eup %7116 }
 0x9f8   :  { %v2172_v17 = vmul.f32 %v7117_v10, %v8891_v55  ;;  %v3098_v55 = vpop.permute.xlu2 %3097 }
 0x9fa   :  { %6193 = vmatmul.msk.f32.gmra.mxu1 %vm269_vm2, %v2172_v17 }
 0xa00   :  { %v2731_v34 = vpop.permute.xlu2 %2730 }
 0xa02   :  { %6228 = vmatmul.msk.f32.vlgmr.msra.gmra.mxu1 %vm187_vm1, %v2604_v45 }
 0xa05   :  { %v2238_v20 = vpop.f32.mrf.mxu1 }
 0xa06   :  { %6195 = vmatmul.msk.f32.vlgmr.msrb.gmra.mxu3 %vm187_vm1, %v2238_v20 }
 0xa08   :  { %v3108_v50 = vpop.permute.xlu1 %3107  ;;  %v2725_v51 = vpop.permute.xlu2 %2724 }
 0xa09   :  { %6271 = vmatpush.xpose.msk.msrb.mxu1 %vm187_vm1, %v3108_v50 }
 0xa0a   :  { %6229 = vmatmul.msk.f32.gmra.mxu1 %vm187_vm1, %v2607_v59 }
 0xa0d   :  { %v2241_v25 = vpop.f32.mrf.mxu1  ;;  %6272 = vmatpush.xpose.msk.msrb.mxu1 %vm187_vm1, %v8915_v30  ;;  %v2616_v30 = vpop.f32.mrf.mxu2 }
 0xa0e   :  { %6196 = vmatmul.msk.f32.gmra.mxu3 %vm187_vm1, %v2241_v25 }
 0xa10   :  { %v3102_v41 = vpop.permute.xlu1 %3101 }
 0xa11   :  { %6273 = vmatpush.xpose.msk.msrb.mxu1 %vm187_vm1, %v3104_v28 }
 0xa12   :  { %6230 = vmatmul.msk.f32.gmra.mxu1 %vm187_vm1, %v2610_v42 }
 0xa15   :  { %6274 = vmatpush.xpose.msk.msrb.mxu1 %vm187_vm1, %v3102_v41 }
 0xa18   :  { %v2735_v1 = vpop.permute.xlu1 %2734 }
 0xa19   :  { %6236 = vmatpush.xpose.msk.msra.mxu3 %vm187_vm1, %v2735_v1  ;;  %6275 = vmatpush.xpose.msk.msrb.mxu1 %vm187_vm1, %v8924_v40  ;;  %v2619_v40 = vpop.f32.mrf.mxu2 }
 0xa1a   :  { %6231 = vmatmul.msk.f32.gmra.mxu1 %vm187_vm1, %v2613_v8 }
 0xa1d   :  { %6237 = vmatpush.xpose.msk.msra.mxu3 %vm187_vm1, %v8928_v6  ;;  %6276 = vmatpush.xpose.msk.msrb.mxu1 %vm187_vm1, %v3098_v55  ;;  %v2705_v6 = vpop.permute.xlu2 %2704 }
 0xa20   :  { %v2729_v53 = vpop.permute.xlu1 %2728 }
 0xa21   :  { %6317 = vmatpush.msk.msra.mxu1 %vm763_vm3, %v10739_v22  ;;  %6238 = vmatpush.xpose.msk.msra.mxu3 %vm187_vm1, %v2731_v34  ;;  %v2622_v14 = vpop.f32.mrf.mxu2  ;;  %v7408_v34 = vld [vmem:[%s10691_s3] sm:$0xff] }
 0xa22   :  { %6232 = vmatmul.msk.f32.gmra.mxu1 %vm187_vm1, %v2616_v30 }
 0xa25   :  { %6239 = vmatpush.xpose.msk.msra.mxu3 %vm187_vm1, %v2729_v53  ;;  %v2711_v58 = vpop.permute.xlu2 %2710 }
 0xa28   :  { %v2723_v5 = vpop.permute.xlu1 %2722 }
 0xa29   :  { %6240 = vmatpush.xpose.msk.msra.mxu3 %vm187_vm1, %v8932_v29  ;;  %v6716_v29 = vunpack.i.h.bf16 %v8955_v19  ;;  %v2625_v0 = vpop.f32.mrf.mxu2 }
 0xa2a   :  { %6233 = vmatmul.msk.f32.gmra.mxu1 %vm187_vm1, %v2619_v40 }
 0xa2d   :  { %6241 = vmatpush.xpose.msk.msra.mxu3 %vm187_vm1, %v2725_v51  ;;  %v2717_v10 = vpop.permute.xlu2 %2716 }
 0xa30   :  { %v2707_v63 = vpop.permute.xlu1 %2706 }
 0xa31   :  { %6242 = vmatpush.xpose.msk.msra.mxu3 %vm187_vm1, %v2723_v5 }
 0xa32   :  { %6234 = vmatmul.msk.f32.gmra.mxu1 %vm187_vm1, %v2622_v14 }
 0xa34   :  { %v2244_v54 = vpop.f32.mrf.mxu1 }
 0xa35   :  { %6197 = vmatmul.msk.f32.gmra.mxu3 %vm187_vm1, %v2244_v54  ;;  %v6724_v59 = vpop.permute.xlu2 %6723 }
 0xa36   :  { %6243 = vmatpush.xpose.msk.msra.mxu3 %vm187_vm1, %v8936_v60  ;;  %v7407_v60 = vld [vmem:[%s10691_s3 + $0x8] sm:$0xff]  ;;  %v6725_v50 = vunpack.i.l.bf16 %v6724_v59  ;;  %v6726_v42 = vunpack.i.h.bf16 %v6724_v59 }
 0xa38   :  { %v2713_v46 = vpop.permute.xlu1 %2712 }
 0xa3a   :  { %3338 = vmatpush.msrb.mxu3 %v6715_v24  ;;  %6235 = vmatmul.msk.f32.gmra.mxu1 %vm187_vm1, %v2625_v0 }
 0xa3c   :  { %3339 = vmatpush.msrb.mxu3 %v6716_v29  ;;  %v2247_v44 = vpop.f32.mrf.mxu1 }
 0xa3d   :  { %6198 = vmatmul.msk.f32.gmra.mxu3 %vm187_vm1, %v2247_v44 }
 0xa40   :  { %v2719_v13 = vpop.permute.xlu1 %2718 }
 0xa42   :  { %6277 = vmatmul.msk.f32.vlgmr.msrb.gmra.mxu1 %vm187_vm1, %v8867_v47 }
 0xa43   :  { %6359 = vmatpush.msk.msrb.mxu1 %vm763_vm3, %v7407_v60 }
 0xa44   :  { %v2250_v19 = vpop.f32.mrf.mxu1 }
 0xa45   :  { %6199 = vmatmul.msk.f32.gmra.mxu3 %vm187_vm1, %v2250_v19 }
 0xa48   :  { %v6719_v17 = vpop.permute.xlu1 %6718 }
 0xa49   :  { %v6720_v45 = vunpack.i.l.bf16 %v6719_v17  ;;  %v6721_v28 = vunpack.i.h.bf16 %v6719_v17 }
 0xa4a   :  { %6278 = vmatmul.msk.f32.gmra.mxu1 %vm187_vm1, %v8816_v49 }
 0xa4b   :  { %3340 = vmatpush.msrb.mxu3 %v6720_v45 }
 0xa4c   :  { %v2253_v20 = vpop.f32.mrf.mxu1 }
 0xa4d   :  { %6200 = vmatmul.msk.f32.gmra.mxu3 %vm187_vm1, %v2253_v20 }
 0xa4e   :  { %3341 = vmatpush.msrb.mxu3 %v6721_v28 }
 0xa50   :  { %3342 = vmatpush.msrb.mxu3 %v6725_v50  ;;  %v6729_v25 = vpop.permute.xlu1 %6728 }
 0xa51   :  { %v6730_v55 = vunpack.i.l.bf16 %v6729_v25  ;;  %v6731_v41 = vunpack.i.h.bf16 %v6729_v25 }
 0xa52   :  { %3343 = vmatpush.msrb.mxu3 %v6726_v42  ;;  %6279 = vmatmul.msk.f32.gmra.mxu1 %vm187_vm1, %v8901_v27 }
 0xa54   :  { %3344 = vmatpush.msrb.mxu3 %v6730_v55  ;;  %v2256_v8 = vpop.f32.mrf.mxu1 }
 0xa55   :  { %6201 = vmatmul.msk.f32.gmra.mxu3 %vm187_vm1, %v2256_v8 }
 0xa56   :  { %3345 = vmatpush.msrb.mxu3 %v6731_v41 }
 0xa5a   :  { %6280 = vmatmul.msk.f32.gmra.mxu1 %vm187_vm1, %v8855_v23 }
 0xa62   :  { %6281 = vmatmul.msk.f32.gmra.mxu1 %vm187_vm1, %v8808_v3 }
 0xa6a   :  { %6282 = vmatmul.msk.f32.gmra.mxu1 %vm187_vm1, %v8920_v37 }
 0xa72   :  { %6283 = vmatmul.msk.f32.gmra.mxu1 %vm187_vm1, %v8847_v52 }
 0xa77   :  { %v2259_v1 = vpop.f32.mrf.mxu1 }
 0xa78   :  { %6202 = vmatmul.msk.f32.gmra.mxu3 %vm187_vm1, %v2259_v1 }
 0xa7a   :  { %6284 = vmatmul.msk.f32.gmra.mxu1 %vm187_vm1, %v8802_v32 }
 0xa7f   :  { %v9047_v30 = vpop.f32.mrf.mxu1 }
 0xa80   :  { %6244 = vmatmul.msk.f32.vlgmr.msra.gmra.mxu3 %vm187_vm1, %v2705_v6 }
 0xa81   :  { %6326 = vmatpush.msk.msra.mxu3 %vm763_vm3, %v7408_v34 }
 0xa87   :  { %v9051_v22 = vpop.f32.mrf.mxu1 }
 0xa88   :  { %6245 = vmatmul.msk.f32.gmra.mxu3 %vm187_vm1, %v2707_v63 }
 0xa89   :  { %v9057_v51 = vpop.f32.mrf.mxu3 }
 0xa8f   :  { %v9054_v53 = vpop.f32.mrf.mxu1 }
 0xa90   :  { %6246 = vmatmul.msk.f32.gmra.mxu3 %vm187_vm1, %v8943_v2  ;;  %10740 = vst [vmem:[#allocation36_spill] sm:$0xff] %v9054_v53 }
 0xa91   :  { %v9061_v40 = vpop.f32.mrf.mxu3 }
 0xa97   :  { %v9059_v2 = vpop.f32.mrf.mxu1 }
 0xa98   :  { %6247 = vmatmul.msk.f32.gmra.mxu3 %vm187_vm1, %v2711_v58  ;;  %10741 = vst [vmem:[#allocation37_spill] sm:$0xff] %v9059_v2 }
 0xa9f   :  { %v9063_v5 = vpop.f32.mrf.mxu1 }
 0xaa0   :  { %6248 = vmatmul.msk.f32.gmra.mxu3 %vm187_vm1, %v2713_v46  ;;  %10742 = vst [vmem:[#allocation38_spill] sm:$0xff] %v9063_v5 }
 0xaa7   :  { %v9067_v63 = vpop.f32.mrf.mxu1 }
 0xaa8   :  { %6249 = vmatmul.msk.f32.gmra.mxu3 %vm187_vm1, %v8949_v56  ;;  %10744 = vst [vmem:[#allocation40_spill] sm:$0xff] %v9067_v63 }
 0xaaf   :  { %v9071_v14 = vpop.f32.mrf.mxu1 }
 0xab0   :  { %6250 = vmatmul.msk.f32.gmra.mxu3 %vm187_vm1, %v2717_v10  ;;  %10746 = vst [vmem:[#allocation42_spill] sm:$0xff] %v9071_v14 }
 0xab7   :  { %v9075_v24 = vpop.f32.mrf.mxu1 }
 0xab8   :  { %6251 = vmatmul.msk.f32.gmra.mxu3 %vm187_vm1, %v2719_v13  ;;  %v9065_v6 = vpop.f32.mrf.mxu3  ;;  %10748 = vst [vmem:[#allocation44_spill] sm:$0xff] %v9075_v24 }
 0xab9   :  { %10743 = vst [vmem:[#allocation39_spill] sm:$0xff] %v9065_v6 }
 0xabf   :  { %v3162_v58 = vpop.f32.mrf.mxu1 }
 0xac0   :  { %v9069_v56 = vpop.f32.mrf.mxu3 }
 0xac1   :  { %10745 = vst [vmem:[#allocation41_spill] sm:$0xff] %v9069_v56 }
 0xac7   :  { %v3165_v44 = vpop.f32.mrf.mxu1 }
 0xac8   :  { %v9073_v54 = vpop.f32.mrf.mxu3 }
 0xac9   :  { %10747 = vst [vmem:[#allocation43_spill] sm:$0xff] %v9073_v54 }
 0xacf   :  { %v3168_v60 = vpop.f32.mrf.mxu1 }
 0xad0   :  { %v9077_v29 = vpop.f32.mrf.mxu3  ;;  %v3188_v14 = vmul.f32 0.5, %v3168_v60 }
 0xad1   :  { %10749 = vst [vmem:[#allocation45_spill] sm:$0xff] %v9077_v29 }
 0xad7   :  { %v3171_v28 = vpop.f32.mrf.mxu1 }
 0xad8   :  { %v9079_v46 = vpop.f32.mrf.mxu3  ;;  %v3189_v33 = vmul.f32 0.5, %v3171_v28 }
 0xad9   :  { %10750 = vst [vmem:[#allocation46_spill] sm:$0xff] %v9079_v46 }
 0xadf   :  { %v3174_v25 = vpop.f32.mrf.mxu1 }
 0xae0   :  { %v9114_v46 = vmul.f32 0.5, %v3174_v25 }
 0xae2   :  { %v3206_v28 = vsel %vm269_vm2, %v9114_v46, -inf }
 0xae7   :  { %v3177_v34 = vpop.f32.mrf.mxu1 }
 0xafb   :  { %v9081_v0 = vpop.f32.mrf.mxu3 }
 0xafc   :  { %10751 = vst [vmem:[#allocation47_spill] sm:$0xff] %v9081_v0 }
 0xb03   :  { %v2785_v13 = vpop.f32.mrf.mxu3 }
 0xb04   :  { %v9083_v10 = vmul.f32 0.5, %v2785_v13 }
 0xb06   :  { %v2817_v19 = vsel %vm269_vm2, %v9083_v10, -inf }
 0xb07   :  { %2818 = vmax.xlane.f32.xlu0 %v2817_v19 }
 0xb0b   :  { %v2788_v17 = vpop.f32.mrf.mxu3 }
 0xb0c   :  { %v9087_v45 = vmul.f32 0.5, %v2788_v17  ;;  %v3186_v17 = vmul.f32 0.5, %v3162_v58 }
 0xb0e   :  { %v2820_v59 = vsel %vm269_vm2, %v9087_v45, -inf  ;;  %v3194_v7 = vsel %vm269_vm2, %v3186_v17, -inf }
 0xb0f   :  { %2821 = vmax.xlane.f32.xlu0 %v2820_v59 }
 0xb13   :  { %v2791_v20 = vpop.f32.mrf.mxu3 }
 0xb14   :  { %v9091_v50 = vmul.f32 0.5, %v2791_v20 }
 0xb16   :  { %v2823_v42 = vsel %vm269_vm2, %v9091_v50, -inf }
 0xb17   :  { %2824 = vmax.xlane.f32.xlu2 %v2823_v42  ;;  %v3180_v42 = vpop.f32.mrf.mxu1 }
 0xb1b   :  { %v2794_v55 = vpop.f32.mrf.mxu3 }
 0xb1c   :  { %v9095_v41 = vmul.f32 0.5, %v2794_v55 }
 0xb1e   :  { %v2826_v8 = vsel %vm269_vm2, %v9095_v41, -inf }
 0xb1f   :  { %2827 = vmax.xlane.f32.xlu1 %v2826_v8  ;;  %v3187_v8 = vmul.f32 0.5, %v3165_v44  ;;  %v3183_v0 = vpop.f32.mrf.mxu1  ;;  %v3200_v44 = vsel %vm269_vm2, %v3188_v14, -inf }
 0xb21   :  { %v3197_v58 = vsel %vm269_vm2, %v3187_v8, -inf }
 0xb23   :  { %v2797_v1 = vpop.f32.mrf.mxu3 }
 0xb24   :  { %v9099_v13 = vmul.f32 0.5, %v2797_v1 }
 0xb26   :  { %v2829_v19 = vsel %vm269_vm2, %v9099_v13, -inf }
 0xb27   :  { %2830 = vmax.xlane.f32.xlu0 %v2829_v19 }
 0xb2b   :  { %v2800_v59 = vpop.f32.mrf.mxu3 }
 0xb2c   :  { %v9103_v20 = vmul.f32 0.5, %v2800_v59  ;;  %v3203_v59 = vsel %vm269_vm2, %v3189_v33, -inf }
 0xb2e   :  { %v2832_v55 = vsel %vm269_vm2, %v9103_v20, -inf }
 0xb2f   :  { %2833 = vmax.xlane.f32.xlu2 %v2832_v55  ;;  %3195 = vmax.xlane.f32.xlu0 %v3194_v7  ;;  %v9116_v7 = vmul.f32 0.5, %v3183_v0 }
 0xb31   :  { %v3215_v55 = vsel %vm269_vm2, %v9116_v7, -inf }
 0xb33   :  { %v2803_v1 = vpop.f32.mrf.mxu3 }
 0xb34   :  { %v9108_v24 = vmul.f32 0.5, %v2803_v1  ;;  %v3191_v1 = vmul.f32 0.5, %v3177_v34 }
 0xb36   :  { %v2835_v19 = vsel %vm269_vm2, %v9108_v24, -inf  ;;  %v3209_v60 = vsel %vm269_vm2, %v3191_v1, -inf }
 0xb37   :  { %2836 = vmax.xlane.f32.xlu1 %v2835_v19  ;;  %3198 = vmax.xlane.f32.xlu2 %v3197_v58  ;;  %v9123_v19 = vmul.f32 0.5, %v3180_v42 }
 0xb38   :  { %3204 = vmax.xlane.f32.xlu0 %v3203_v59 }
 0xb39   :  { %v3212_v0 = vsel %vm269_vm2, %v9123_v19, -inf }
 0xb3f   :  { %3201 = vmax.xlane.f32.xlu1 %v3200_v44  ;;  %3207 = vmax.xlane.f32.xlu2 %v3206_v28 }
 0xb40   :  { %3216 = vmax.xlane.f32.xlu0 %v3215_v55 }
 0xb47   :  { %3210 = vmax.xlane.f32.xlu1 %v3209_v60  ;;  %3213 = vmax.xlane.f32.xlu2 %v3212_v0 }
 0xb54   :  { %6743 = vrot.lane.b32.xlu0 %v7618_v36, %s7434_s29 }
 0xb7a   :  { %v2819_v25 = vpop.xlane.xlu0 %2818 }
 0xb7b   :  { %v2841_v56 = vsub.f32 %v9083_v10, %v2819_v25 }
 0xb82   :  { %v2822_v58 = vpop.xlane.xlu0 %2821 }
 0xb8a   :  { %v9130_v59 = vpop.xlane.xlu2 %2824 }
 0xb92   :  { %v9132_v28 = vpop.xlane.xlu1 %2827 }
 0xb9a   :  { %v2831_v44 = vpop.xlane.xlu0 %2830 }
 0xba2   :  { %v9134_v34 = vpop.xlane.xlu2 %2833  ;;  %v3196_v42 = vpop.xlane.xlu0 %3195 }
 0xba3   :  { %v3218_v55 = vsub.f32 %v3186_v17, %v3196_v42  ;;  %v2849_v17 = vmul.f32 1.442695, %v2841_v56 }
 0xba5   :  { %v3226_v63 = vmul.f32 1.442695, %v3218_v55 }
 0xba7   :  { %7118 = vpow2.f32 %v3226_v63 }
 0xbaa   :  { %v9136_v29 = vpop.xlane.xlu1 %2836  ;;  %v3199_v60 = vpop.xlane.xlu2 %3198 }
 0xbab   :  { %v3219_v0 = vsub.f32 %v3187_v8, %v3199_v60  ;;  %v3205_v5 = vpop.xlane.xlu0 %3204 }
 0xbac   :  { %v3221_v54 = vsub.f32 %v3189_v33, %v3205_v5 }
 0xbad   :  { %v3228_v36 = vmul.f32 1.442695, %v3219_v0  ;;  %v9138_v2 = vpop.eup %7118 }
 0xbae   :  { %v3232_v53 = vmul.f32 1.442695, %v3221_v54  ;;  %v3242_v6 = vsel %vm269_vm2, %v9138_v2, 0.0 }
 0xbaf   :  { %7120 = vpow2.f32 %v3228_v36  ;;  %3243 = vadd.xlane.f32.xlu2 %v3242_v6  ;;  %v2806_v36 = vpop.f32.mrf.mxu3 }
 0xbb0   :  { %7122 = vpow2.f32 %v3232_v53 }
 0xbb1   :  { %7124 = vpow2.f32 %v2849_v17 }
 0xbb2   :  { %v3202_v63 = vpop.xlane.xlu1 %3201  ;;  %v3208_v53 = vpop.xlane.xlu2 %3207 }
 0xbb3   :  { %v3220_v42 = vsub.f32 %v3188_v14, %v3202_v63  ;;  %v3222_v25 = vsub.f32 %v9114_v46, %v3208_v53  ;;  %v9160_v63 = vmul.f32 0.5, %v2806_v36 }
 0xbb5   :  { %v3230_v55 = vmul.f32 1.442695, %v3220_v42  ;;  %v9143_v18 = vpop.eup %7120  ;;  %v3234_v17 = vmul.f32 1.442695, %v3222_v25  ;;  %v2842_v42 = vsub.f32 %v9087_v45, %v2822_v58 }
 0xbb6   :  { %v9145_v33 = vpop.eup %7122  ;;  %v3245_v5 = vsel %vm269_vm2, %v9143_v18, 0.0 }
 0xbb7   :  { %7126 = vpow2.f32 %v3230_v55  ;;  %3246 = vadd.xlane.f32.xlu1 %v3245_v5  ;;  %v3251_v54 = vsel %vm269_vm2, %v9145_v33, 0.0  ;;  %v9151_v10 = vpop.eup %7124  ;;  %v2838_v55 = vsel %vm269_vm2, %v9160_v63, -inf  ;;  %v2851_v5 = vmul.f32 1.442695, %v2842_v42 }
 0xbb8   :  { %3252 = vadd.xlane.f32.xlu0 %v3251_v54  ;;  %v2865_v0 = vsel %vm269_vm2, %v9151_v10, 0.0 }
 0xbba   :  { %v3211_v6 = vpop.xlane.xlu1 %3210  ;;  %v3214_v36 = vpop.xlane.xlu2 %3213 }
 0xbbb   :  { %v3223_v56 = vsub.f32 %v3191_v1, %v3211_v6  ;;  %v2845_v6 = vsub.f32 %v9099_v13, %v2831_v44  ;;  %v3217_v13 = vpop.xlane.xlu0 %3216 }
 0xbbd   :  { %v9153_v14 = vpop.eup %7126  ;;  %v3236_v8 = vmul.f32 1.442695, %v3223_v56  ;;  %v2857_v45 = vmul.f32 1.442695, %v2845_v6  ;;  %v2846_v56 = vsub.f32 %v9103_v20, %v9134_v34 }
 0xbbe   :  { %v3248_v60 = vsel %vm269_vm2, %v9153_v14, 0.0 }
 0xbbf   :  { %7128 = vpow2.f32 %v3236_v8  ;;  %3249 = vadd.xlane.f32.xlu2 %v3248_v60  ;;  %2866 = vadd.xlane.f32.xlu1 %v2865_v0  ;;  %v2859_v25 = vmul.f32 1.442695, %v2846_v56  ;;  %v3225_v60 = vsub.f32 %v9116_v7, %v3217_v13 }
 0xbc0   :  { %7130 = vpow2.f32 %v3234_v17 }
 0xbc1   :  { %7132 = vpow2.f32 %v2851_v5  ;;  %v3240_v34 = vmul.f32 1.442695, %v3225_v60 }
 0xbc2   :  { %7134 = vpow2.f32 %v2857_v45 }
 0xbc3   :  { %7136 = vpow2.f32 %v2859_v25 }
 0xbc4   :  { %7138 = vpow2.f32 %v3240_v34 }
 0xbc5   :  { %v9162_v1 = vpop.eup %7128 }
 0xbc6   :  { %v3257_v46 = vsel %vm269_vm2, %v9162_v1, 0.0  ;;  %v9169_v54 = vpop.eup %7130  ;;  %v6744_v34 = vpop.permute.xlu0 %6743 }
 0xbc7   :  { %3258 = vadd.xlane.f32.xlu0 %v3257_v46  ;;  %2839 = vmax.xlane.f32.xlu1 %v2838_v55  ;;  %v3254_v53 = vsel %vm269_vm2, %v9169_v54, 0.0  ;;  %v9174_v58 = vpop.eup %7132  ;;  %v2844_v46 = vsub.f32 %v9095_v41, %v9132_v28  ;;  %v2843_v55 = vsub.f32 %v9091_v50, %v9130_v59  ;;  %v2847_v59 = vsub.f32 %v9108_v24, %v9136_v29 }
 0xbc8   :  { %v2868_v8 = vsel %vm269_vm2, %v9174_v58, 0.0  ;;  %v9184_v44 = vpop.eup %7134 }
 0xbc9   :  { %v2877_v20 = vsel %vm269_vm2, %v9184_v44, 0.0  ;;  %v9189_v0 = vpop.eup %7136  ;;  %v2855_v5 = vmul.f32 1.442695, %v2844_v46  ;;  %v2853_v6 = vmul.f32 1.442695, %v2843_v55 }
 0xbca   :  { %v9193_v17 = vpop.eup %7138 }
 0xbcb   :  { %v3263_v7 = vsel %vm269_vm2, %v9193_v17, 0.0 }
 0xbcf   :  { %3255 = vadd.xlane.f32.xlu1 %v3254_v53 }
 0xbd7   :  { %6738 = vrot.lane.b32.xlu2 %v7596_v31, %s7434_s29  ;;  %2869 = vadd.xlane.f32.xlu1 %v2868_v8  ;;  %v2880_v31 = vsel %vm269_vm2, %v9189_v0, 0.0  ;;  %v2861_v8 = vmul.f32 1.442695, %v2847_v59  ;;  %v6746_v59 = vunpack.i.h.bf16 %v6744_v34 }
 0xbdb   :  { %6748 = vrot.lane.b32.xlu0 %v7626_v39, %s7434_s29  ;;  %v3224_v39 = vsub.f32 %v9123_v19, %v3214_v36 }
 0xbdd   :  { %v3238_v42 = vmul.f32 1.442695, %v3224_v39 }
 0xbdf   :  { %2878 = vadd.xlane.f32.xlu1 %v2877_v20  ;;  %7140 = vpow2.f32 %v3238_v42 }
 0xbe0   :  { %7142 = vpow2.f32 %v2855_v5 }
 0xbe1   :  { %7144 = vpow2.f32 %v2853_v6 }
 0xbe5   :  { %v9202_v53 = vpop.eup %7140 }
 0xbe6   :  { %v3260_v19 = vsel %vm269_vm2, %v9202_v53, 0.0  ;;  %v9206_v45 = vpop.eup %7142 }
 0xbe7   :  { %2881 = vadd.xlane.f32.xlu1 %v2880_v31  ;;  %v9208_v56 = vpop.eup %7144  ;;  %v2874_v41 = vsel %vm269_vm2, %v9206_v45, 0.0 }
 0xbe8   :  { %v2871_v50 = vsel %vm269_vm2, %v9208_v56, 0.0 }
 0xbef   :  { %3264 = vadd.xlane.f32.xlu1 %v3263_v7 }
 0xc00   :  { %3261 = vadd.xlane.f32.xlu2 %v3260_v19 }
 0xc05   :  { %2875 = vadd.xlane.f32.xlu0 %v2874_v41  ;;  %v6745_v41 = vunpack.i.l.bf16 %v6744_v34 }
 0xc08   :  { %2872 = vadd.xlane.f32.xlu2 %v2871_v50  ;;  %3401 = vrot.lane.b32.xlu1 %v8802_v32, %s7413_s19 }
 0xc19   :  { %3397 = vrot.lane.b32.xlu0 %v8920_v37, %s7413_s19 }
 0xc20   :  { %3399 = vrot.lane.b32.xlu2 %v8847_v52, %s7413_s19 }
 0xc22   :  { %v3244_v28 = vpop.xlane.xlu2 %3243 }
 0xc23   :  { %7146 = vrcp.f32 %v3244_v28 }
 0xc24   :  { %7148 = vpow2.f32 %v2861_v8 }
 0xc28   :  { %3395 = vrot.lane.b32.xlu2 %v8808_v3, %s7413_s19 }
 0xc29   :  { %v7147_v25 = vpop.eup %7146 }
 0xc2a   :  { %v3274_v13 = vmul.f32 %v7147_v25, %v9138_v2  ;;  %v3247_v60 = vpop.xlane.xlu1 %3246  ;;  %v9226_v20 = vpop.eup %7148 }
 0xc2b   :  { %7150 = vrcp.f32 %v3247_v60  ;;  %v2883_v31 = vsel %vm269_vm2, %v9226_v20, 0.0  ;;  %v3253_v39 = vpop.xlane.xlu0 %3252 }
 0xc2c   :  { %6285 = vmatmul.msk.f32.vlgmr.msrb.gmra.mxu3 %vm269_vm2, %v3274_v13 }
 0xc30   :  { %3393 = vrot.lane.b32.xlu2 %v8855_v23, %s7413_s19 }
 0xc31   :  { %v7151_v24 = vpop.eup %7150 }
 0xc32   :  { %v3250_v29 = vpop.xlane.xlu2 %3249  ;;  %v2867_v36 = vpop.xlane.xlu1 %2866  ;;  %2884 = vadd.xlane.f32.xlu1 %v2883_v31  ;;  %v3275_v2 = vmul.f32 %v7151_v24, %v9143_v18 }
 0xc33   :  { %7152 = vrcp.f32 %v3250_v29 }
 0xc34   :  { %6286 = vmatmul.msk.f32.gmra.mxu3 %vm269_vm2, %v3275_v2  ;;  %7154 = vrcp.f32 %v3253_v39 }
 0xc38   :  { %3391 = vrot.lane.b32.xlu2 %v8901_v27, %s7413_s19 }
 0xc39   :  { %v7153_v7 = vpop.eup %7152 }
 0xc3a   :  { %v6739_v42 = vpop.permute.xlu2 %6738  ;;  %v3276_v46 = vmul.f32 %v7153_v7, %v9153_v14  ;;  %v2840_v55 = vpop.xlane.xlu1 %2839 }
 0xc3b   :  { %v6740_v5 = vunpack.i.l.bf16 %v6739_v42  ;;  %v2848_v6 = vsub.f32 %v9160_v63, %v2840_v55  ;;  %v6741_v19 = vunpack.i.h.bf16 %v6739_v42  ;;  %v7155_v50 = vpop.eup %7154  ;;  %v3259_v63 = vpop.xlane.xlu0 %3258 }
 0xc3c   :  { %6287 = vmatmul.msk.f32.gmra.mxu3 %vm269_vm2, %v3276_v46  ;;  %v3277_v14 = vmul.f32 %v7155_v50, %v9145_v33 }
 0xc3d   :  { %2963 = vmatpush.msrb.mxu0 %v6740_v5  ;;  %v2863_v18 = vmul.f32 1.442695, %v2848_v6 }
 0xc3f   :  { %2964 = vmatpush.msrb.mxu0 %v6741_v19  ;;  %7156 = vpow2.f32 %v2863_v18 }
 0xc40   :  { %3387 = vrot.lane.b32.xlu2 %v8867_v47, %s7413_s19 }
 0xc41   :  { %2965 = vmatpush.msrb.mxu0 %v6745_v41 }
 0xc42   :  { %v3256_v28 = vpop.xlane.xlu1 %3255 }
 0xc43   :  { %2966 = vmatpush.msrb.mxu0 %v6746_v59  ;;  %7158 = vrcp.f32 %v3256_v28 }
 0xc44   :  { %6288 = vmatmul.msk.f32.gmra.mxu3 %vm269_vm2, %v3277_v14  ;;  %7160 = vrcp.f32 %v2867_v36 }
 0xc45   :  { %v9243_v8 = vpop.eup %7156  ;;  %7162 = vrcp.f32 %v3259_v63 }
 0xc46   :  { %v2886_v25 = vsel %vm269_vm2, %v9243_v8, 0.0 }
 0xc47   :  { %2887 = vadd.xlane.f32.xlu0 %v2886_v25 }
 0xc48   :  { %3371 = vrot.lane.b32.xlu2 %v8867_v47, %s7414_s20 }
 0xc49   :  { %v7159_v13 = vpop.eup %7158 }
 0xc4a   :  { %v3278_v60 = vmul.f32 %v7159_v13, %v9169_v54  ;;  %v2870_v33 = vpop.xlane.xlu1 %2869  ;;  %v7161_v24 = vpop.eup %7160 }
 0xc4b   :  { %3389 = vrot.lane.b32.xlu1 %v8816_v49, %s7413_s19  ;;  %v7163_v31 = vpop.eup %7162  ;;  %7164 = vrcp.f32 %v2870_v33  ;;  %v2897_v2 = vmul.f32 %v7161_v24, %v9151_v10 }
 0xc4c   :  { %6289 = vmatmul.msk.f32.gmra.mxu3 %vm269_vm2, %v3278_v60  ;;  %v3279_v54 = vmul.f32 %v7163_v31, %v9162_v1 }
 0xc4d   :  { %v6749_v34 = vpop.permute.xlu0 %6748 }
 0xc4e   :  { %v6750_v29 = vunpack.i.l.bf16 %v6749_v34  ;;  %v6751_v36 = vunpack.i.h.bf16 %v6749_v34 }
 0xc50   :  { %3373 = vrot.lane.b32.xlu2 %v8816_v49, %s7414_s20  ;;  %2967 = vmatpush.msrb.mxu0 %v6750_v29 }
 0xc51   :  { %v7165_v39 = vpop.eup %7164 }
 0xc52   :  { %2968 = vmatpush.msrb.mxu0 %v6751_v36  ;;  %v2898_v7 = vmul.f32 %v7165_v39, %v9174_v58  ;;  %v2879_v10 = vpop.xlane.xlu1 %2878 }
 0xc53   :  { %6252 = vmatmul.msk.f32.vlgmr.msrb.gmra.mxu0 %vm269_vm2, %v2897_v2  ;;  %4184 = vrot.lane.b32.xlu1 %v8802_v32, %s7420_s17 }
 0xc54   :  { %6290 = vmatmul.msk.f32.gmra.mxu3 %vm269_vm2, %v3279_v54 }
 0xc58   :  { %3377 = vrot.lane.b32.xlu2 %v8855_v23, %s7414_s20 }
 0xc5a   :  { %v2882_v1 = vpop.xlane.xlu1 %2881 }
 0xc5b   :  { %6253 = vmatmul.msk.f32.gmra.mxu0 %vm269_vm2, %v2898_v7  ;;  %3375 = vrot.lane.b32.xlu0 %v8901_v27, %s7414_s20 }
 0xc5c   :  { %3821 = vrot.lane.b32.xlu1 %v8802_v32, %s7415_s21 }
 0xc60   :  { %3379 = vrot.lane.b32.xlu2 %v8808_v3, %s7414_s20 }
 0xc62   :  { %v3265_v58 = vpop.xlane.xlu1 %3264 }
 0xc63   :  { %3819 = vrot.lane.b32.xlu0 %v8847_v52, %s7415_s21 }
 0xc64   :  { %4180 = vrot.lane.b32.xlu1 %v8920_v37, %s7420_s17 }
 0xc68   :  { %4182 = vrot.lane.b32.xlu2 %v8847_v52, %s7420_s17 }
 0xc6b   :  { %3817 = vrot.lane.b32.xlu0 %v8920_v37, %s7415_s21 }
 0xc6c   :  { %4178 = vrot.lane.b32.xlu1 %v8808_v3, %s7420_s17 }
 0xc70   :  { %3381 = vrot.lane.b32.xlu2 %v8920_v37, %s7414_s20 }
 0xc73   :  { %v3262_v42 = vpop.xlane.xlu2 %3261  ;;  %4176 = vrot.lane.b32.xlu0 %v8855_v23, %s7420_s17 }
 0xc74   :  { %7166 = vrcp.f32 %v3262_v42  ;;  %3383 = vrot.lane.b32.xlu1 %v8847_v52, %s7414_s20 }
 0xc75   :  { %7168 = vrcp.f32 %v3265_v58 }
 0xc78   :  { %3815 = vrot.lane.b32.xlu2 %v8808_v3, %s7415_s21  ;;  %v2876_v18 = vpop.xlane.xlu0 %2875 }
 0xc7a   :  { %v7167_v46 = vpop.eup %7166  ;;  %v3402_v55 = vpop.permute.xlu1 %3401 }
 0xc7b   :  { %v2873_v5 = vpop.xlane.xlu2 %2872  ;;  %v3280_v6 = vmul.f32 %v7167_v46, %v9202_v53  ;;  %4174 = vrot.lane.b32.xlu0 %v8901_v27, %s7420_s17  ;;  %6293 = vmatpush.xpose.msk.msra.mxu0 %vm187_vm1, %v3402_v55  ;;  %v7169_v19 = vpop.eup %7168 }
 0xc7c   :  { %7170 = vrcp.f32 %v2873_v5  ;;  %3811 = vrot.lane.b32.xlu1 %v8901_v27, %s7415_s21  ;;  %v3281_v59 = vmul.f32 %v7169_v19, %v9193_v17 }
 0xc7d   :  { %6291 = vmatmul.msk.f32.gmra.mxu3 %vm269_vm2, %v3280_v6  ;;  %7172 = vrcp.f32 %v2876_v18 }
 0xc7e   :  { %7174 = vrcp.f32 %v2879_v10 }
 0xc7f   :  { %7176 = vrcp.f32 %v2882_v1 }
 0xc80   :  { %3813 = vrot.lane.b32.xlu2 %v8855_v23, %s7415_s21 }
 0xc82   :  { %v7171_v41 = vpop.eup %7170 }
 0xc83   :  { %v3400_v50 = vpop.permute.xlu2 %3399  ;;  %v2899_v53 = vmul.f32 %v7171_v41, %v9208_v56  ;;  %3385 = vrot.lane.b32.xlu0 %v8802_v32, %s7414_s20  ;;  %v7173_v28 = vpop.eup %7172 }
 0xc84   :  { %3809 = vrot.lane.b32.xlu1 %v8816_v49, %s7415_s21  ;;  %6294 = vmatpush.xpose.msk.msra.mxu0 %vm187_vm1, %v3400_v50  ;;  %v2900_v17 = vmul.f32 %v7173_v28, %v9206_v45  ;;  %v7175_v63 = vpop.eup %7174 }
 0xc85   :  { %6292 = vmatmul.msk.f32.gmra.mxu3 %vm269_vm2, %v3281_v59  ;;  %6254 = vmatmul.msk.f32.gmra.mxu0 %vm269_vm2, %v2899_v53  ;;  %v2901_v45 = vmul.f32 %v7175_v63, %v9184_v44  ;;  %v7177_v13 = vpop.eup %7176 }
 0xc86   :  { %v2902_v33 = vmul.f32 %v7177_v13, %v9189_v0 }
 0xc88   :  { %4172 = vrot.lane.b32.xlu2 %v8816_v49, %s7420_s17 }
 0xc8b   :  { %v3396_v56 = vpop.permute.xlu2 %3395  ;;  %v3398_v14 = vpop.permute.xlu0 %3397  ;;  %4154 = vrot.lane.b32.xlu0 %v8867_v47, %s7421_s25 }
 0xc8c   :  { %3807 = vrot.lane.b32.xlu1 %v8867_v47, %s7415_s21  ;;  %6295 = vmatpush.xpose.msk.msra.mxu0 %vm187_vm1, %v3398_v14 }
 0xc8d   :  { %6255 = vmatmul.msk.f32.gmra.mxu0 %vm269_vm2, %v2900_v17 }
 0xc90   :  { %4170 = vrot.lane.b32.xlu2 %v8867_v47, %s7420_s17  ;;  %6296 = vmatpush.xpose.msk.msra.mxu0 %vm187_vm1, %v3396_v56 }
 0xc93   :  { %v3394_v25 = vpop.permute.xlu2 %3393  ;;  %4156 = vrot.lane.b32.xlu0 %v8816_v49, %s7421_s25 }
 0xc94   :  { %3793 = vrot.lane.b32.xlu1 %v8816_v49, %s7416_s22  ;;  %6297 = vmatpush.xpose.msk.msra.mxu0 %vm187_vm1, %v3394_v25 }
 0xc95   :  { %6256 = vmatmul.msk.f32.gmra.mxu0 %vm269_vm2, %v2901_v45 }
 0xc98   :  { %3791 = vrot.lane.b32.xlu2 %v8867_v47, %s7416_s22 }
 0xc9b   :  { %v3392_v60 = vpop.permute.xlu2 %3391  ;;  %3795 = vrot.lane.b32.xlu0 %v8901_v27, %s7416_s22 }
 0xc9c   :  { %4160 = vrot.lane.b32.xlu1 %v8855_v23, %s7421_s25  ;;  %6298 = vmatpush.xpose.msk.msra.mxu0 %vm187_vm1, %v3392_v60 }
 0xc9d   :  { %6257 = vmatmul.msk.f32.gmra.mxu0 %vm269_vm2, %v2902_v33 }
 0xca0   :  { %4158 = vrot.lane.b32.xlu2 %v8901_v27, %s7421_s25 }
 0xca3   :  { %v3388_v44 = vpop.permute.xlu2 %3387  ;;  %4162 = vrot.lane.b32.xlu0 %v8808_v3, %s7421_s25 }
 0xca4   :  { %3799 = vrot.lane.b32.xlu1 %v8808_v3, %s7416_s22 }
 0xca5   :  { %v2885_v34 = vpop.xlane.xlu1 %2884 }
 0xca6   :  { %7178 = vrcp.f32 %v2885_v34 }
 0xca8   :  { %3797 = vrot.lane.b32.xlu2 %v8855_v23, %s7416_s22 }
 0xcab   :  { %v3372_v0 = vpop.permute.xlu2 %3371  ;;  %3801 = vrot.lane.b32.xlu0 %v8920_v37, %s7416_s22 }
 0xcac   :  { %4166 = vrot.lane.b32.xlu1 %v8847_v52, %s7421_s25  ;;  %v7179_v24 = vpop.eup %7178 }
 0xcad   :  { %v2903_v29 = vmul.f32 %v7179_v24, %v9226_v20 }
 0xcaf   :  { %6258 = vmatmul.msk.f32.gmra.mxu0 %vm269_vm2, %v2903_v29  ;;  %v3347_v31 = vpop.f32.mrf.mxu3 }
 0xcb0   :  { %4164 = vrot.lane.b32.xlu2 %v8920_v37, %s7421_s25  ;;  %6327 = vmatmul.msk.f32.vlgmr.msra.gmra.mxu3 %vm187_vm1, %v3347_v31 }
 0xcb3   :  { %v3374_v36 = vpop.permute.xlu2 %3373  ;;  %4168 = vrot.lane.b32.xlu0 %v8802_v32, %s7421_s25 }
 0xcb4   :  { %3805 = vrot.lane.b32.xlu1 %v8802_v32, %s7416_s22 }
 0xcb7   :  { %v3350_v2 = vpop.f32.mrf.mxu3 }
 0xcb8   :  { %3803 = vrot.lane.b32.xlu2 %v8847_v52, %s7416_s22  ;;  %6328 = vmatmul.msk.f32.gmra.mxu3 %vm187_vm1, %v3350_v2 }
 0xcba   :  { %v2888_v20 = vpop.xlane.xlu0 %2887 }
 0xcbb   :  { %v3378_v54 = vpop.permute.xlu2 %3377  ;;  %7180 = vrcp.f32 %v2888_v20  ;;  %6763 = vrot.lane.b32.xlu0 %v8909_v43, %s7418_s24 }
 0xcbc   :  { %6758 = vrot.lane.b32.xlu1 %v8963_v21, %s7418_s24 }
 0xcbd   :  { %v3390_v39 = vpop.permute.xlu1 %3389 }
 0xcbe   :  { %6299 = vmatpush.xpose.msk.msra.mxu0 %vm187_vm1, %v3390_v39 }
 0xcbf   :  { %v3353_v7 = vpop.f32.mrf.mxu3 }
 0xcc0   :  { %6753 = vrot.lane.b32.xlu2 %v8861_v12, %s7418_s24  ;;  %6329 = vmatmul.msk.f32.gmra.mxu3 %vm187_vm1, %v3353_v7 }
 0xcc1   :  { %v7181_v10 = vpop.eup %7180 }
 0xcc2   :  { %6300 = vmatpush.xpose.msk.msra.mxu0 %vm187_vm1, %v3388_v44  ;;  %v2904_v58 = vmul.f32 %v7181_v10, %v9243_v8 }
 0xcc3   :  { %v3380_v1 = vpop.permute.xlu2 %3379  ;;  %6783 = vrot.lane.b32.xlu0 %v8963_v21, %s7419_s0 }
 0xcc4   :  { %6768 = vrot.lane.b32.xlu1 %v8971_v26, %s7418_s24  ;;  %6259 = vmatmul.msk.f32.gmra.mxu0 %vm269_vm2, %v2904_v58 }
 0xcc5   :  { %v4185_v42 = vpop.permute.xlu1 %4184 }
 0xcc6   :  { %6368 = vmatpush.xpose.msk.msrb.mxu3 %vm187_vm1, %v4185_v42 }
 0xcc7   :  { %v3356_v46 = vpop.f32.mrf.mxu3 }
 0xcc8   :  { %6778 = vrot.lane.b32.xlu2 %v8861_v12, %s7424_s28  ;;  %6330 = vmatmul.msk.f32.gmra.mxu3 %vm187_vm1, %v3356_v46 }
 0xccb   :  { %v4183_v55 = vpop.permute.xlu2 %4182  ;;  %6793 = vrot.lane.b32.xlu0 %v8909_v43, %s7419_s0 }
 0xccc   :  { %6773 = vrot.lane.b32.xlu1 %v8861_v12, %s7419_s0  ;;  %6301 = vmatmul.msk.f32.vlgmr.msra.gmra.mxu0 %vm187_vm1, %v3372_v0 }
 0xccd   :  { %6369 = vmatpush.xpose.msk.msrb.mxu3 %vm187_vm1, %v4183_v55  ;;  %v3376_v5 = vpop.permute.xlu0 %3375 }
 0xcce   :  { %v3822_v8 = vpop.permute.xlu1 %3821 }
 0xccf   :  { %6335 = vmatpush.xpose.msk.msrb.mxu0 %vm187_vm1, %v3822_v8  ;;  %v3359_v6 = vpop.f32.mrf.mxu3 }
 0xcd0   :  { %6788 = vrot.lane.b32.xlu2 %v8963_v21, %s7424_s28  ;;  %v2970_v19 = vpop.f32.mrf.mxu0  ;;  %6331 = vmatmul.msk.f32.gmra.mxu3 %vm187_vm1, %v3359_v6 }
 0xcd1   :  { %6261 = vmatmul.msk.f32.vlgmr.msra.gmra.mxu2 %vm187_vm1, %v2970_v19 }
 0xcd3   :  { %v3382_v18 = vpop.permute.xlu2 %3381 }
 0xcd4   :  { %6798 = vrot.lane.b32.xlu1 %v8909_v43, %s7424_s28  ;;  %6302 = vmatmul.msk.f32.gmra.mxu0 %vm187_vm1, %v3374_v36 }
 0xcd5   :  { %v3820_v50 = vpop.permute.xlu0 %3819 }
 0xcd6   :  { %v4181_v41 = vpop.permute.xlu1 %4180  ;;  %6336 = vmatpush.xpose.msk.msrb.mxu0 %vm187_vm1, %v3820_v50 }
 0xcd7   :  { %6370 = vmatpush.xpose.msk.msrb.mxu3 %vm187_vm1, %v4181_v41  ;;  %v3362_v53 = vpop.f32.mrf.mxu3 }
 0xcd8   :  { %v2973_v59 = vpop.f32.mrf.mxu0  ;;  %6332 = vmatmul.msk.f32.gmra.mxu3 %vm187_vm1, %v3362_v53 }
 0xcd9   :  { %6262 = vmatmul.msk.f32.gmra.mxu2 %vm187_vm1, %v2973_v59 }
 0xcdb   :  { %v3816_v28 = vpop.permute.xlu2 %3815 }
 0xcdc   :  { %6303 = vmatmul.msk.f32.gmra.mxu0 %vm187_vm1, %v3376_v5 }
 0xcdd   :  { %v3818_v14 = vpop.permute.xlu0 %3817 }
 0xcde   :  { %v4179_v56 = vpop.permute.xlu1 %4178  ;;  %6337 = vmatpush.xpose.msk.msrb.mxu0 %vm187_vm1, %v3818_v14 }
 0xcdf   :  { %6371 = vmatpush.xpose.msk.msrb.mxu3 %vm187_vm1, %v4179_v56 }
 0xce2   :  { %6338 = vmatpush.xpose.msk.msrb.mxu0 %vm187_vm1, %v3816_v28 }
 0xce3   :  { %v3814_v17 = vpop.permute.xlu2 %3813 }
 0xce4   :  { %6304 = vmatmul.msk.f32.gmra.mxu0 %vm187_vm1, %v3378_v54 }
 0xce5   :  { %v4177_v25 = vpop.permute.xlu0 %4176 }
 0xce6   :  { %v3384_v63 = vpop.permute.xlu1 %3383  ;;  %6339 = vmatpush.xpose.msk.msrb.mxu0 %vm187_vm1, %v3814_v17  ;;  %6372 = vmatpush.xpose.msk.msrb.mxu3 %vm187_vm1, %v4177_v25 }
 0xceb   :  { %v4173_v45 = vpop.permute.xlu2 %4172 }
 0xcec   :  { %6305 = vmatmul.msk.f32.gmra.mxu0 %vm187_vm1, %v3380_v1 }
 0xced   :  { %v4175_v60 = vpop.permute.xlu0 %4174 }
 0xcee   :  { %v3812_v13 = vpop.permute.xlu1 %3811  ;;  %6373 = vmatpush.xpose.msk.msrb.mxu3 %vm187_vm1, %v4175_v60 }
 0xcef   :  { %6340 = vmatpush.xpose.msk.msrb.mxu0 %vm187_vm1, %v3812_v13 }
 0xcf2   :  { %6374 = vmatpush.xpose.msk.msrb.mxu3 %vm187_vm1, %v4173_v45 }
 0xcf3   :  { %v4171_v33 = vpop.permute.xlu2 %4170 }
 0xcf4   :  { %6306 = vmatmul.msk.f32.gmra.mxu0 %vm187_vm1, %v3382_v18 }
 0xcf5   :  { %v3386_v34 = vpop.permute.xlu0 %3385 }
 0xcf6   :  { %v3810_v44 = vpop.permute.xlu1 %3809  ;;  %6375 = vmatpush.xpose.msk.msrb.mxu3 %vm187_vm1, %v4171_v33 }
 0xcf7   :  { %6341 = vmatpush.xpose.msk.msrb.mxu0 %vm187_vm1, %v3810_v44 }
 0xcfb   :  { %v3792_v0 = vpop.permute.xlu2 %3791 }
 0xcfc   :  { %6307 = vmatmul.msk.f32.gmra.mxu0 %vm187_vm1, %v3384_v63 }
 0xcfd   :  { %v4155_v29 = vpop.permute.xlu0 %4154 }
 0xcfe   :  { %v3808_v24 = vpop.permute.xlu1 %3807 }
 0xcff   :  { %6342 = vmatpush.xpose.msk.msrb.mxu0 %vm187_vm1, %v3808_v24 }
 0xd00   :  { %v3365_v31 = vpop.f32.mrf.mxu3 }
 0xd01   :  { %6333 = vmatmul.msk.f32.gmra.mxu3 %vm187_vm1, %v3365_v31 }
 0xd02   :  { %v2976_v36 = vpop.f32.mrf.mxu0 }
 0xd03   :  { %v4159_v2 = vpop.permute.xlu2 %4158  ;;  %6263 = vmatmul.msk.f32.gmra.mxu2 %vm187_vm1, %v2976_v36 }
 0xd04   :  { %6308 = vmatmul.msk.f32.gmra.mxu0 %vm187_vm1, %v3386_v34 }
 0xd05   :  { %v4157_v54 = vpop.permute.xlu0 %4156 }
 0xd06   :  { %v3794_v20 = vpop.permute.xlu1 %3793 }
 0xd08   :  { %v3368_v39 = vpop.f32.mrf.mxu3 }
 0xd09   :  { %6334 = vmatmul.msk.f32.gmra.mxu3 %vm187_vm1, %v3368_v39 }
 0xd0a   :  { %v2979_v7 = vpop.f32.mrf.mxu0 }
 0xd0b   :  { %v3798_v10 = vpop.permute.xlu2 %3797  ;;  %6264 = vmatmul.msk.f32.gmra.mxu2 %vm187_vm1, %v2979_v7 }
 0xd0c   :  { %6343 = vmatmul.msk.f32.vlgmr.msrb.gmra.mxu0 %vm187_vm1, %v3792_v0 }
 0xd0d   :  { %v3796_v58 = vpop.permute.xlu0 %3795 }
 0xd0e   :  { %v4161_v1 = vpop.permute.xlu1 %4160 }
 0xd11   :  { %6376 = vmatmul.msk.f32.vlgmr.msrb.gmra.mxu3 %vm187_vm1, %v4155_v29 }
 0xd12   :  { %v2982_v42 = vpop.f32.mrf.mxu0 }
 0xd13   :  { %v4165_v46 = vpop.permute.xlu2 %4164  ;;  %6265 = vmatmul.msk.f32.gmra.mxu2 %vm187_vm1, %v2982_v42 }
 0xd14   :  { %6344 = vmatmul.msk.f32.gmra.mxu0 %vm187_vm1, %v3794_v20 }
 0xd15   :  { %v4163_v8 = vpop.permute.xlu0 %4162 }
 0xd16   :  { %v3800_v55 = vpop.permute.xlu1 %3799 }
 0xd19   :  { %6377 = vmatmul.msk.f32.gmra.mxu3 %vm187_vm1, %v4157_v54 }
 0xd1a   :  { %v2985_v5 = vpop.f32.mrf.mxu0 }
 0xd1b   :  { %v3804_v6 = vpop.permute.xlu2 %3803  ;;  %6266 = vmatmul.msk.f32.gmra.mxu2 %vm187_vm1, %v2985_v5 }
 0xd1c   :  { %6345 = vmatmul.msk.f32.gmra.mxu0 %vm187_vm1, %v3796_v58 }
 0xd1d   :  { %v3802_v18 = vpop.permute.xlu0 %3801 }
 0xd1e   :  { %v4167_v19 = vpop.permute.xlu1 %4166 }
 0xd21   :  { %6378 = vmatmul.msk.f32.gmra.mxu3 %vm187_vm1, %v4159_v2 }
 0xd23   :  { %v6754_v41 = vpop.permute.xlu2 %6753 }
 0xd24   :  { %v6755_v50 = vunpack.i.l.bf16 %v6754_v41  ;;  %6346 = vmatmul.msk.f32.gmra.mxu0 %vm187_vm1, %v3798_v10  ;;  %v6756_v53 = vunpack.i.h.bf16 %v6754_v41  ;;  %v854_v41 = vadd.f32 %v8230_v62, %v8249_v35  ;;  %v9457_v62 = vld [vmem:[%s10692_s4] ss:$0 sm:$0xff] }
 0xd25   :  { %v4169_v28 = vpop.permute.xlu0 %4168 }
 0xd26   :  { %v3806_v59 = vpop.permute.xlu1 %3805  ;;  %3628 = vmatpush.msrb.mxu2 %v6755_v50 }
 0xd28   :  { %3629 = vmatpush.msrb.mxu2 %v6756_v53 }
 0xd29   :  { %6379 = vmatmul.msk.f32.gmra.mxu3 %vm187_vm1, %v4161_v1  ;;  %v851_v1 = vadd.f32 %v8228_v57, %v8244_v15 }
 0xd2b   :  { %v6779_v56 = vpop.permute.xlu2 %6778 }
 0xd2c   :  { %v6780_v14 = vunpack.i.l.bf16 %v6779_v56  ;;  %v2988_v17 = vpop.f32.mrf.mxu0  ;;  %6347 = vmatmul.msk.f32.gmra.mxu0 %vm187_vm1, %v3800_v55  ;;  %v6781_v63 = vunpack.i.h.bf16 %v6779_v56  ;;  %v1232_v55 = vadd.f32 %v8290_v9, %v851_v1 }
 0xd2d   :  { %6267 = vmatmul.msk.f32.gmra.mxu2 %vm187_vm1, %v2988_v17  ;;  %v6764_v13 = vpop.permute.xlu0 %6763 }
 0xd2e   :  { %v6759_v25 = vpop.permute.xlu1 %6758  ;;  %4411 = vmatpush.msra.mxu0 %v6780_v14  ;;  %v6765_v33 = vunpack.i.l.bf16 %v6764_v13  ;;  %v6766_v0 = vunpack.i.h.bf16 %v6764_v13 }
 0xd2f   :  { %v6760_v45 = vunpack.i.l.bf16 %v6759_v25  ;;  %v6761_v60 = vunpack.i.h.bf16 %v6759_v25 }
 0xd30   :  { %4412 = vmatpush.msra.mxu0 %v6781_v63 }
 0xd31   :  { %3630 = vmatpush.msrb.mxu2 %v6760_v45  ;;  %6380 = vmatmul.msk.f32.gmra.mxu3 %vm187_vm1, %v4163_v8 }
 0xd33   :  { %3631 = vmatpush.msrb.mxu2 %v6761_v60  ;;  %v6789_v44 = vpop.permute.xlu2 %6788 }
 0xd34   :  { %v6790_v34 = vunpack.i.l.bf16 %v6789_v44  ;;  %6348 = vmatmul.msk.f32.gmra.mxu0 %vm187_vm1, %v3802_v18  ;;  %v6791_v24 = vunpack.i.h.bf16 %v6789_v44 }
 0xd35   :  { %3632 = vmatpush.msrb.mxu2 %v6765_v33  ;;  %v6784_v2 = vpop.permute.xlu0 %6783 }
 0xd36   :  { %v6769_v29 = vpop.permute.xlu1 %6768  ;;  %4413 = vmatpush.msra.mxu0 %v6790_v34  ;;  %v6785_v10 = vunpack.i.l.bf16 %v6784_v2  ;;  %v6786_v42 = vunpack.i.h.bf16 %v6784_v2 }
 0xd37   :  { %v6770_v31 = vunpack.i.l.bf16 %v6769_v29  ;;  %3633 = vmatpush.msrb.mxu2 %v6766_v0  ;;  %v6771_v36 = vunpack.i.h.bf16 %v6769_v29  ;;  %v9484_v0 = vpop.f32.mrf.mxu3 }
 0xd38   :  { %4414 = vmatpush.msra.mxu0 %v6791_v24 }
 0xd39   :  { %3634 = vmatpush.msrb.mxu2 %v6770_v31  ;;  %6381 = vmatmul.msk.f32.gmra.mxu3 %vm187_vm1, %v4165_v46 }
 0xd3b   :  { %3635 = vmatpush.msrb.mxu2 %v6771_v36 }
 0xd3c   :  { %6349 = vmatmul.msk.f32.gmra.mxu0 %vm187_vm1, %v3804_v6  ;;  %v1598_v6 = vadd.f32 %v8639_v16, %v1232_v55  ;;  %v1233_v16 = vadd.f32 %v8293_v38, %v854_v41  ;;  %v10756_v55 = vld [vmem:[#allocation9_spill] sm:$0xff]  ;;  %v10760_v41 = vld [vmem:[#allocation39_spill] sm:$0xff] }
 0xd3d   :  { %v6794_v58 = vpop.permute.xlu0 %6793 }
 0xd3e   :  { %v6774_v20 = vpop.permute.xlu1 %6773  ;;  %v6795_v5 = vunpack.i.l.bf16 %v6794_v58  ;;  %v6796_v18 = vunpack.i.h.bf16 %v6794_v58  ;;  %v1964_v9 = vadd.f32 %v8612_v61, %v1598_v6  ;;  %v10755_v58 = vld [vmem:[#allocation27_spill] sm:$0xff]  ;;  %v10758_v6 = vld [vmem:[#allocation21_spill] sm:$0xff] }
 0xd3f   :  { %v6775_v54 = vunpack.i.l.bf16 %v6774_v20  ;;  %v6776_v39 = vunpack.i.h.bf16 %v6774_v20  ;;  %v9492_v2 = vpop.f32.mrf.mxu3  ;;  %v10753_v20 = vld [vmem:[#allocation3_spill] sm:$0xff] }
 0xd40   :  { %v2330_v53 = vadd.f32 %v9057_v51, %v1964_v9  ;;  %10752 = vst [vmem:[#allocation48_spill] sm:$0xff] %v9492_v2 }
 0xd41   :  { %4048 = vmatpush.msra.mxu2 %v6775_v54  ;;  %6382 = vmatmul.msk.f32.gmra.mxu3 %vm187_vm1, %v4167_v19  ;;  %v2991_v7 = vpop.f32.mrf.mxu0  ;;  %v857_v54 = vadd.f32 %v10753_v20, %v8257_v11 }
 0xd42   :  { %6268 = vmatmul.msk.f32.gmra.mxu2 %vm187_vm1, %v2991_v7  ;;  %v2696_v14 = vadd.f32 %v9047_v30, %v2330_v53  ;;  %v10761_v53 = vld [vmem:[#allocation28_spill] sm:$0xff] }
 0xd43   :  { %4049 = vmatpush.msra.mxu2 %v6776_v39  ;;  %v10754_v39 = vld [vmem:[#allocation14_spill] sm:$0xff] }
 0xd44   :  { %6350 = vmatmul.msk.f32.gmra.mxu0 %vm187_vm1, %v3806_v59  ;;  %v1599_v59 = vadd.f32 %v8645_v48, %v1233_v16  ;;  %v1234_v7 = vadd.f32 %v10754_v39, %v857_v54  ;;  %v10769_v54 = vld [vmem:[#allocation37_spill] sm:$0xff] }
 0xd45   :  { %4050 = vmatpush.msra.mxu2 %v6785_v10 }
 0xd46   :  { %v6799_v46 = vpop.permute.xlu1 %6798  ;;  %v1965_v61 = vadd.f32 %v8618_v4, %v1599_v59 }
 0xd47   :  { %v6800_v8 = vunpack.i.l.bf16 %v6799_v46  ;;  %4051 = vmatpush.msra.mxu2 %v6786_v42  ;;  %v6801_v19 = vunpack.i.h.bf16 %v6799_v46  ;;  %v1600_v42 = vadd.f32 %v10755_v58, %v1234_v7  ;;  %v10771_v58 = vld [vmem:[#allocation6_spill] sm:$0xff] }
 0xd48   :  { %v2331_v48 = vadd.f32 %v9061_v40, %v1965_v61 }
 0xd49   :  { %4415 = vmatpush.msra.mxu0 %v6800_v8  ;;  %6383 = vmatmul.msk.f32.gmra.mxu3 %vm187_vm1, %v4169_v28  ;;  %v3452_v57 = vpop.f32.mrf.mxu0  ;;  %v10757_v8 = vld [vmem:[#allocation4_spill] sm:$0xff] }
 0xd4a   :  { %4052 = vmatpush.msra.mxu2 %v6795_v5  ;;  %v9441_v15 = vmul.f32 0.5, %v3452_v57  ;;  %v2697_v25 = vadd.f32 %v9051_v22, %v2331_v48  ;;  %v860_v5 = vadd.f32 %v10757_v8, %v10756_v55  ;;  %v10759_v57 = vld [vmem:[#allocation15_spill] sm:$0xff] }
 0xd4b   :  { %4416 = vmatpush.msra.mxu0 %v6801_v19  ;;  %v1966_v19 = vadd.f32 %v10758_v6, %v1600_v42 }
 0xd4c   :  { %4053 = vmatpush.msra.mxu2 %v6796_v18  ;;  %v3484_v50 = vsel %vm269_vm2, %v9441_v15, -inf  ;;  %v9505_v18 = vpop.f32.mrf.mxu3  ;;  %v1235_v11 = vadd.f32 %v10759_v57, %v860_v5  ;;  %v10773_v5 = vld [vmem:[#allocation17_spill] sm:$0xff] }
 0xd4d   :  { %3485 = vmax.xlane.f32.xlu2 %v3484_v50  ;;  %v2332_v9 = vadd.f32 %v10760_v41, %v1966_v19  ;;  %v10774_v19 = vld [vmem:[#allocation43_spill] sm:$0xff] }
 0xd4e   :  { %v1601_v59 = vadd.f32 %v10761_v53, %v1235_v11 }
 0xd51   :  { %v3455_v28 = vpop.f32.mrf.mxu0 }
 0xd52   :  { %v9451_v56 = vmul.f32 0.5, %v3455_v28 }
 0xd54   :  { %v3038_v35 = vpop.f32.mrf.mxu2  ;;  %v3487_v38 = vsel %vm269_vm2, %v9451_v56, -inf }
 0xd55   :  { %v3062_v17 = vadd.f32 %v3038_v35, %v2696_v14  ;;  %3488 = vmax.xlane.f32.xlu0 %v3487_v38  ;;  %v10762_v14 = vld [vmem:[#allocation36_spill] sm:$0xff]  ;;  %v10764_v38 = vld [vmem:[#allocation5_spill] sm:$0xff] }
 0xd56   :  { %v2698_v35 = vadd.f32 %v10762_v14, %v2332_v9  ;;  %v10776_v14 = vld [vmem:[#allocation38_spill] sm:$0xff] }
 0xd57   :  { %v3073_v51 = vadd.f32 %v9457_v62, %v3062_v17  ;;  %v10763_v17 = vld [vmem:[#allocation10_spill] sm:$0xff] }
 0xd58   :  { %v863_v48 = vadd.f32 %v10764_v38, %v10763_v17  ;;  %v10777_v17 = vld [vmem:[#allocation24_spill] sm:$0xff] }
 0xd59   :  { %3081 = vst.msk [vmem:[%s10693_s5] sm:$0xff] %vm44_vm0, %v3073_v51  ;;  %v3458_v30 = vpop.f32.mrf.mxu0  ;;  %v10765_v51 = vld [vmem:[#allocation22_spill] sm:$0xff] }
 0xd5a   :  { %v9468_v63 = vmul.f32 0.5, %v3458_v30  ;;  %v1967_v30 = vadd.f32 %v10765_v51, %v1601_v59  ;;  %v10778_v51 = vld [vmem:[#allocation45_spill] sm:$0xff] }
 0xd5c   :  { %v3041_v4 = vpop.f32.mrf.mxu2  ;;  %v3490_v13 = vsel %vm269_vm2, %v9468_v63, -inf }
 0xd5d   :  { %v3063_v45 = vadd.f32 %v3041_v4, %v2697_v25  ;;  %3491 = vmax.xlane.f32.xlu1 %v3490_v13  ;;  %v10766_v4 = vld [vmem:[#allocation16_spill] sm:$0xff]  ;;  %v10767_v13 = vld [vmem:[#allocation41_spill] sm:$0xff] }
 0xd5f   :  { %v3074_v40 = vadd.f32 %v9457_v62, %v3063_v45  ;;  %v1236_v45 = vadd.f32 %v10766_v4, %v863_v48 }
 0xd61   :  { %3082 = vst.msk [vmem:[%s10693_s5 + $0x8] sm:$0xff] %vm44_vm0, %v3074_v40  ;;  %v3461_v60 = vpop.f32.mrf.mxu0  ;;  %v2333_v40 = vadd.f32 %v10767_v13, %v1967_v30 }
 0xd62   :  { %v9478_v33 = vmul.f32 0.5, %v3461_v60  ;;  %v9520_v60 = vpop.f32.mrf.mxu3 }
 0xd63   :  { %v2699_v39 = vadd.f32 %v10769_v54, %v2333_v40  ;;  %v10781_v54 = vld [vmem:[#allocation7_spill] sm:$0xff] }
 0xd64   :  { %v3493_v44 = vsel %vm269_vm2, %v9478_v33, -inf }
 0xd65   :  { %3494 = vmax.xlane.f32.xlu2 %v3493_v44 }
 0xd69   :  { %v3464_v22 = vpop.f32.mrf.mxu0 }
 0xd6a   :  { %v9482_v34 = vmul.f32 0.5, %v3464_v22  ;;  %v9542_v59 = vpop.f32.mrf.mxu3 }
 0xd6c   :  { %v3496_v24 = vsel %vm269_vm2, %v9482_v34, -inf }
 0xd6d   :  { %3497 = vmax.xlane.f32.xlu0 %v3496_v24 }
 0xd71   :  { %v3467_v29 = vpop.f32.mrf.mxu0 }
 0xd72   :  { %v9488_v31 = vmul.f32 0.5, %v3467_v29  ;;  %v10768_v29 = vld [vmem:[#allocation29_spill] sm:$0xff]  ;;  %v9562_v40 = vpop.f32.mrf.mxu3 }
 0xd74   :  { %v3499_v36 = vsel %vm269_vm2, %v9488_v31, -inf }
 0xd75   :  { %3500 = vmax.xlane.f32.xlu1 %v3499_v36  ;;  %v1602_v36 = vadd.f32 %v10768_v29, %v1236_v45 }
 0xd79   :  { %v3470_v10 = vpop.f32.mrf.mxu0 }
 0xd7a   :  { %v9497_v1 = vmul.f32 0.5, %v3470_v10  ;;  %v10770_v10 = vld [vmem:[#allocation11_spill] sm:$0xff] }
 0xd7b   :  { %v866_v42 = vadd.f32 %v10771_v58, %v10770_v10 }
 0xd7c   :  { %v3502_v46 = vsel %vm269_vm2, %v9497_v1, -inf }
 0xd7d   :  { %3503 = vmax.xlane.f32.xlu0 %v3502_v46  ;;  %v10772_v46 = vld [vmem:[#allocation23_spill] sm:$0xff]  ;;  %v1237_v6 = vadd.f32 %v10773_v5, %v866_v42  ;;  %v10782_v42 = vld [vmem:[#allocation18_spill] sm:$0xff] }
 0xd7e   :  { %v1968_v55 = vadd.f32 %v10772_v46, %v1602_v36 }
 0xd80   :  { %v2334_v57 = vadd.f32 %v10774_v19, %v1968_v55  ;;  %v10785_v19 = vld [vmem:[#allocation25_spill] sm:$0xff] }
 0xd81   :  { %v3473_v50 = vpop.f32.mrf.mxu0 }
 0xd82   :  { %v9509_v16 = vmul.f32 0.5, %v3473_v50  ;;  %v10775_v50 = vld [vmem:[#allocation30_spill] sm:$0xff] }
 0xd83   :  { %v1603_v53 = vadd.f32 %v10775_v50, %v1237_v6  ;;  %v10786_v50 = vld [vmem:[#allocation46_spill] sm:$0xff] }
 0xd84   :  { %v3505_v28 = vsel %vm269_vm2, %v9509_v16, -inf  ;;  %v9578_v6 = vpop.f32.mrf.mxu3 }
 0xd85   :  { %3506 = vmax.xlane.f32.xlu2 %v3505_v28  ;;  %v1969_v38 = vadd.f32 %v10777_v17, %v1603_v53  ;;  %10784 = vst [vmem:[#allocation3_spill] sm:$0xff] %v9578_v6 }
 0xd86   :  { %v3044_v61 = vpop.f32.mrf.mxu2 }
 0xd87   :  { %v3064_v25 = vadd.f32 %v3044_v61, %v2698_v35  ;;  %v2700_v35 = vadd.f32 %v10776_v14, %v2334_v57  ;;  %v2335_v30 = vadd.f32 %v10778_v51, %v1969_v38 }
 0xd89   :  { %v3075_v44 = vadd.f32 %v9457_v62, %v3064_v25  ;;  %v3872_v22 = vpop.f32.mrf.mxu0 }
 0xd8a   :  { %v9523_v24 = vmul.f32 0.5, %v3872_v22 }
 0xd8b   :  { %3083 = vst.msk [vmem:[%s10693_s5 + $0x10] sm:$0xff] %vm44_vm0, %v3075_v44  ;;  %v10779_v44 = vld [vmem:[#allocation40_spill] sm:$0xff] }
 0xd8c   :  { %v3904_v20 = vsel %vm269_vm2, %v9523_v24, -inf  ;;  %v2701_v22 = vadd.f32 %v10779_v44, %v2335_v30  ;;  %v9586_v14 = vpop.f32.mrf.mxu3 }
 0xd8d   :  { %3905 = vmax.xlane.f32.xlu0 %v3904_v20  ;;  %v10780_v20 = vld [vmem:[#allocation12_spill] sm:$0xff]  ;;  %10787 = vst [vmem:[#allocation14_spill] sm:$0xff] %v9586_v14 }
 0xd8e   :  { %v3047_v7 = vpop.f32.mrf.mxu2 }
 0xd8f   :  { %v3065_v8 = vadd.f32 %v3047_v7, %v2699_v39  ;;  %v869_v39 = vadd.f32 %v10781_v54, %v10780_v20  ;;  %v10792_v54 = vld [vmem:[#allocation32_spill] sm:$0xff] }
 0xd91   :  { %v3076_v11 = vadd.f32 %v9457_v62, %v3065_v8  ;;  %v3875_v41 = vpop.f32.mrf.mxu0  ;;  %v1238_v46 = vadd.f32 %v10782_v42, %v869_v39  ;;  %v10783_v8 = vld [vmem:[#allocation31_spill] sm:$0xff]  ;;  %v10793_v42 = vld [vmem:[#allocation26_spill] sm:$0xff] }
 0xd92   :  { %v9539_v9 = vmul.f32 0.5, %v3875_v41 }
 0xd93   :  { %3084 = vst.msk [vmem:[%s10693_s5 + $0x18] sm:$0xff] %vm44_vm0, %v3076_v11  ;;  %v1604_v5 = vadd.f32 %v10783_v8, %v1238_v46 }
 0xd94   :  { %v3907_v28 = vsel %vm269_vm2, %v9539_v9, -inf }
 0xd95   :  { %3908 = vmax.xlane.f32.xlu1 %v3907_v28  ;;  %v1970_v57 = vadd.f32 %v10785_v19, %v1604_v5 }
 0xd96   :  { %v3050_v61 = vpop.f32.mrf.mxu2 }
 0xd97   :  { %v3066_v48 = vadd.f32 %v3050_v61, %v2700_v35  ;;  %v2336_v53 = vadd.f32 %v10786_v50, %v1970_v57  ;;  %v10788_v35 = vld [vmem:[#allocation42_spill] sm:$0xff] }
 0xd99   :  { %v3077_v25 = vadd.f32 %v9457_v62, %v3066_v48  ;;  %v3878_v4 = vpop.f32.mrf.mxu0  ;;  %v2702_v61 = vadd.f32 %v10788_v35, %v2336_v53  ;;  %v10795_v35 = vld [vmem:[#allocation44_spill] sm:$0xff] }
 0xd9a   :  { %v9554_v45 = vmul.f32 0.5, %v3878_v4  ;;  %v10789_v4 = vld [vmem:[#allocation13_spill] sm:$0xff] }
 0xd9b   :  { %3085 = vst.msk [vmem:[%s10693_s5 + $0x20] sm:$0xff] %vm44_vm0, %v3077_v25 }
 0xd9c   :  { %v3910_v13 = vsel %vm269_vm2, %v9554_v45, -inf }
 0xd9d   :  { %3911 = vmax.xlane.f32.xlu1 %v3910_v13  ;;  %v10790_v13 = vld [vmem:[#allocation8_spill] sm:$0xff] }
 0xd9e   :  { %v3053_v29 = vpop.f32.mrf.mxu2  ;;  %v872_v44 = vadd.f32 %v10790_v13, %v10789_v4 }
 0xd9f   :  { %v3067_v36 = vadd.f32 %v3053_v29, %v2701_v22  ;;  %v10791_v22 = vld [vmem:[#allocation19_spill] sm:$0xff] }
 0xda0   :  { %v1239_v29 = vadd.f32 %v10791_v22, %v872_v44 }
 0xda1   :  { %v3078_v7 = vadd.f32 %v9457_v62, %v3067_v36  ;;  %v3881_v10 = vpop.f32.mrf.mxu0  ;;  %v9601_v36 = vpop.f32.mrf.mxu3 }
 0xda2   :  { %v9568_v58 = vmul.f32 0.5, %v3881_v10  ;;  %v1605_v39 = vadd.f32 %v10792_v54, %v1239_v29 }
 0xda3   :  { %3086 = vst.msk [vmem:[%s10693_s5 + $0x28] sm:$0xff] %vm44_vm0, %v3078_v7 }
 0xda4   :  { %v3913_v55 = vsel %vm269_vm2, %v9568_v58, -inf  ;;  %v1971_v46 = vadd.f32 %v10793_v42, %v1605_v39 }
 0xda5   :  { %3914 = vmax.xlane.f32.xlu1 %v3913_v55  ;;  %v10794_v55 = vld [vmem:[#allocation47_spill] sm:$0xff] }
 0xda6   :  { %v2337_v8 = vadd.f32 %v10794_v55, %v1971_v46 }
 0xda9   :  { %v3884_v11 = vpop.f32.mrf.mxu0  ;;  %v4238_v50 = vpop.f32.mrf.mxu3 }
 0xdaa   :  { %v9581_v41 = vmul.f32 0.5, %v3884_v11  ;;  %v9626_v22 = vmul.f32 0.5, %v4238_v50 }
 0xdac   :  { %v3916_v28 = vsel %vm269_vm2, %v9581_v41, -inf  ;;  %v4270_v39 = vsel %vm269_vm2, %v9626_v22, -inf }
 0xdad   :  { %3917 = vmax.xlane.f32.xlu1 %v3916_v28 }
 0xdb0   :  { %v3056_v17 = vpop.f32.mrf.mxu2 }
 0xdb1   :  { %v3068_v38 = vadd.f32 %v3056_v17, %v2702_v61  ;;  %v3887_v48 = vpop.f32.mrf.mxu0  ;;  %v2703_v61 = vadd.f32 %v10795_v35, %v2337_v8  ;;  %v4241_v44 = vpop.f32.mrf.mxu3 }
 0xdb2   :  { %v9589_v51 = vmul.f32 0.5, %v3887_v48  ;;  %v9635_v42 = vmul.f32 0.5, %v4241_v44 }
 0xdb3   :  { %v3079_v30 = vadd.f32 %v9457_v62, %v3068_v38 }
 0xdb4   :  { %v3919_v25 = vsel %vm269_vm2, %v9589_v51, -inf }
 0xdb5   :  { %3087 = vst.msk [vmem:[%s10693_s5 + $0x30] sm:$0xff] %vm44_vm0, %v3079_v30  ;;  %3920 = vmax.xlane.f32.xlu1 %v3919_v25 }
 0xdb9   :  { %v3890_v20 = vpop.f32.mrf.mxu0 }
 0xdba   :  { %v9604_v7 = vmul.f32 0.5, %v3890_v20 }
 0xdbc   :  { %v3922_v10 = vsel %vm269_vm2, %v9604_v7, -inf }
 0xdbd   :  { %3923 = vmax.xlane.f32.xlu0 %v3922_v10  ;;  %v4244_v10 = vpop.f32.mrf.mxu3 }
 0xdc0   :  { %v3486_v5 = vpop.xlane.xlu2 %3485 }
 0xdc1   :  { %v3508_v19 = vsub.f32 %v9441_v15, %v3486_v5  ;;  %v3893_v57 = vpop.f32.mrf.mxu0  ;;  %v4273_v5 = vsel %vm269_vm2, %v9635_v42, -inf }
 0xdc2   :  { %v9611_v11 = vmul.f32 0.5, %v3893_v57  ;;  %v9644_v57 = vmul.f32 0.5, %v4244_v10 }
 0xdc3   :  { %v3516_v53 = vmul.f32 1.442695, %v3508_v19 }
 0xdc4   :  { %v3925_v28 = vsel %vm269_vm2, %v9611_v11, -inf }
 0xdc5   :  { %7182 = vpow2.f32 %v3516_v53  ;;  %3926 = vmax.xlane.f32.xlu0 %v3925_v28  ;;  %v3059_v17 = vpop.f32.mrf.mxu2  ;;  %v4247_v53 = vpop.f32.mrf.mxu3 }
 0xdc6   :  { %v3069_v38 = vadd.f32 %v3059_v17, %v2703_v61  ;;  %v4276_v61 = vsel %vm269_vm2, %v9644_v57, -inf }
 0xdc8   :  { %v3080_v48 = vadd.f32 %v9457_v62, %v3069_v38  ;;  %v3489_v30 = vpop.xlane.xlu0 %3488  ;;  %v9653_v38 = vmul.f32 0.5, %v4247_v53 }
 0xdc9   :  { %v3509_v25 = vsub.f32 %v9451_v56, %v3489_v30 }
 0xdca   :  { %3088 = vst.msk [vmem:[%s10693_s5 + $0x38] sm:$0xff] %vm44_vm0, %v3080_v48 }
 0xdcb   :  { %v9622_v15 = vpop.eup %7182  ;;  %v3518_v4 = vmul.f32 1.442695, %v3509_v25 }
 0xdcc   :  { %v3532_v13 = vsel %vm269_vm2, %v9622_v15, 0.0 }
 0xdcd   :  { %7184 = vpow2.f32 %v3518_v4  ;;  %3533 = vadd.xlane.f32.xlu0 %v3532_v13  ;;  %v4279_v13 = vsel %vm269_vm2, %v9653_v38, -inf }
 0xdd0   :  { %v3492_v62 = vpop.xlane.xlu1 %3491 }
 0xdd1   :  { %v3510_v29 = vsub.f32 %v9468_v63, %v3492_v62 }
 0xdd3   :  { %v9629_v56 = vpop.eup %7184  ;;  %v3520_v20 = vmul.f32 1.442695, %v3510_v29 }
 0xdd4   :  { %v3535_v54 = vsel %vm269_vm2, %v9629_v56, 0.0 }
 0xdd5   :  { %7186 = vpow2.f32 %v3520_v20  ;;  %3536 = vadd.xlane.f32.xlu1 %v3535_v54  ;;  %4271 = vmax.xlane.f32.xlu0 %v4270_v39 }
 0xdd8   :  { %v3495_v46 = vpop.xlane.xlu2 %3494 }
 0xdd9   :  { %v3511_v55 = vsub.f32 %v9478_v33, %v3495_v46 }
 0xddb   :  { %v9638_v8 = vpop.eup %7186  ;;  %v3522_v63 = vmul.f32 1.442695, %v3511_v55 }
 0xddc   :  { %v3538_v19 = vsel %vm269_vm2, %v9638_v8, 0.0 }
 0xddd   :  { %7188 = vpow2.f32 %v3522_v63  ;;  %4274 = vmax.xlane.f32.xlu0 %v4273_v5  ;;  %3539 = vadd.xlane.f32.xlu2 %v3538_v19 }
 0xde0   :  { %v3498_v50 = vpop.xlane.xlu0 %3497 }
 0xde1   :  { %v3512_v28 = vsub.f32 %v9482_v34, %v3498_v50  ;;  %v4250_v34 = vpop.f32.mrf.mxu3 }
 0xde2   :  { %v9662_v62 = vmul.f32 0.5, %v4250_v34 }
 0xde3   :  { %v9647_v35 = vpop.eup %7188  ;;  %v3524_v33 = vmul.f32 1.442695, %v3512_v28 }
 0xde4   :  { %v3541_v17 = vsel %vm269_vm2, %v9647_v35, 0.0  ;;  %v4282_v39 = vsel %vm269_vm2, %v9662_v62, -inf }
 0xde5   :  { %7190 = vpow2.f32 %v3524_v33  ;;  %4277 = vmax.xlane.f32.xlu0 %v4276_v61  ;;  %3542 = vadd.xlane.f32.xlu2 %v3541_v17 }
 0xde8   :  { %v3501_v48 = vpop.xlane.xlu1 %3500 }
 0xde9   :  { %v3513_v30 = vsub.f32 %v9488_v31, %v3501_v48  ;;  %v4253_v46 = vpop.f32.mrf.mxu3  ;;  %v9686_v48 = vmul.f32 0.5, %v9601_v36 }
 0xdea   :  { %v9671_v55 = vmul.f32 0.5, %v4253_v46 }
 0xdeb   :  { %v9656_v25 = vpop.eup %7190  ;;  %v3526_v4 = vmul.f32 1.442695, %v3513_v30 }
 0xdec   :  { %v3544_v44 = vsel %vm269_vm2, %v9656_v25, 0.0  ;;  %v4285_v50 = vsel %vm269_vm2, %v9671_v55, -inf }
 0xded   :  { %7192 = vpow2.f32 %v3526_v4  ;;  %4280 = vmax.xlane.f32.xlu0 %v4279_v13  ;;  %3545 = vadd.xlane.f32.xlu2 %v3544_v44  ;;  %v4267_v44 = vsel %vm269_vm2, %v9686_v48, -inf }
 0xdf0   :  { %v3504_v29 = vpop.xlane.xlu0 %3503 }
 0xdf1   :  { %v3514_v20 = vsub.f32 %v9497_v1, %v3504_v29  ;;  %v4256_v29 = vpop.f32.mrf.mxu3 }
 0xdf3   :  { %v9665_v54 = vpop.eup %7192  ;;  %v3528_v31 = vmul.f32 1.442695, %v3514_v20  ;;  %v9695_v20 = vmul.f32 0.5, %v4256_v29 }
 0xdf4   :  { %v3547_v10 = vsel %vm269_vm2, %v9665_v54, 0.0 }
 0xdf5   :  { %7194 = vpow2.f32 %v3528_v31  ;;  %4283 = vmax.xlane.f32.xlu0 %v4282_v39  ;;  %3548 = vadd.xlane.f32.xlu2 %v3547_v10  ;;  %v4288_v39 = vsel %vm269_vm2, %v9695_v20, -inf }
 0xdf8   :  { %v3507_v63 = vpop.xlane.xlu2 %3506 }
 0xdf9   :  { %v3515_v5 = vsub.f32 %v9509_v16, %v3507_v63 }
 0xdfb   :  { %v9674_v19 = vpop.eup %7194  ;;  %v3530_v1 = vmul.f32 1.442695, %v3515_v5 }
 0xdfc   :  { %v3550_v53 = vsel %vm269_vm2, %v9674_v19, 0.0 }
 0xdfd   :  { %7196 = vpow2.f32 %v3530_v1  ;;  %4286 = vmax.xlane.f32.xlu0 %v4285_v50  ;;  %3551 = vadd.xlane.f32.xlu2 %v3550_v53 }
 0xe00   :  { %v3906_v28 = vpop.xlane.xlu0 %3905 }
 0xe01   :  { %v3928_v33 = vsub.f32 %v9523_v24, %v3906_v28 }
 0xe03   :  { %v9681_v61 = vpop.eup %7196  ;;  %v3936_v17 = vmul.f32 1.442695, %v3928_v33 }
 0xe04   :  { %v3553_v16 = vsel %vm269_vm2, %v9681_v61, 0.0 }
 0xe05   :  { %7198 = vpow2.f32 %v3936_v17  ;;  %3554 = vadd.xlane.f32.xlu2 %v3553_v16 }
 0xe08   :  { %v3909_v30 = vpop.xlane.xlu1 %3908 }
 0xe09   :  { %v3929_v34 = vsub.f32 %v9539_v9, %v3909_v30 }
 0xe0b   :  { %v9689_v4 = vpop.eup %7198  ;;  %v3938_v13 = vmul.f32 1.442695, %v3929_v34 }
 0xe0c   :  { %v3952_v24 = vsel %vm269_vm2, %v9689_v4, 0.0 }
 0xe0d   :  { %7200 = vpow2.f32 %v3938_v13  ;;  %3953 = vadd.xlane.f32.xlu1 %v3952_v24  ;;  %4268 = vmax.xlane.f32.xlu2 %v4267_v44 }
 0xe10   :  { %v3912_v36 = vpop.xlane.xlu1 %3911 }
 0xe11   :  { %v3930_v33 = vsub.f32 %v9554_v45, %v3912_v36 }
 0xe13   :  { %v9697_v31 = vpop.eup %7200 }
 0xe14   :  { %v3955_v9 = vsel %vm269_vm2, %v9697_v31, 0.0 }
 0xe15   :  { %3956 = vadd.xlane.f32.xlu0 %v3955_v9  ;;  %4289 = vmax.xlane.f32.xlu2 %v4288_v39 }
 0xe18   :  { %v9703_v10 = vpop.xlane.xlu1 %3914 }
 0xe20   :  { %v3918_v46 = vpop.xlane.xlu1 %3917 }
 0xe21   :  { %v3932_v63 = vsub.f32 %v9581_v41, %v3918_v46  ;;  %v3940_v41 = vmul.f32 1.442695, %v3930_v33 }
 0xe23   :  { %v3944_v5 = vmul.f32 1.442695, %v3932_v63 }
 0xe25   :  { %7202 = vpow2.f32 %v3944_v5 }
 0xe26   :  { %6808 = vrot.lane.b32.xlu1 %v8971_v26, %s7424_s28 }
 0xe28   :  { %v3921_v17 = vpop.xlane.xlu1 %3920 }
 0xe2b   :  { %v9708_v1 = vpop.eup %7202 }
 0xe2c   :  { %v3964_v50 = vsel %vm269_vm2, %v9708_v1, 0.0 }
 0xe2d   :  { %3965 = vadd.xlane.f32.xlu0 %v3964_v50 }
 0xe30   :  { %v9712_v53 = vpop.xlane.xlu0 %3923 }
 0xe38   :  { %v9714_v28 = vpop.xlane.xlu0 %3926 }
 0xe40   :  { %v3534_v16 = vpop.xlane.xlu0 %3533 }
 0xe41   :  { %7204 = vrcp.f32 %v3534_v16 }
 0xe42   :  { %7206 = vpow2.f32 %v3940_v41 }
 0xe47   :  { %v7205_v30 = vpop.eup %7204 }
 0xe48   :  { %v3564_v34 = vmul.f32 %v7205_v30, %v9622_v15  ;;  %v3537_v13 = vpop.xlane.xlu1 %3536  ;;  %v4272_v24 = vpop.xlane.xlu0 %4271 }
 0xe49   :  { %7208 = vrcp.f32 %v3537_v13  ;;  %v4292_v44 = vsub.f32 %v9626_v22, %v4272_v24  ;;  %v9720_v9 = vpop.eup %7206 }
 0xe4a   :  { %6309 = vmatmul.msk.f32.vlgmr.msrb.gmra.mxu2 %vm269_vm2, %v3564_v34  ;;  %v3958_v36 = vsel %vm269_vm2, %v9720_v9, 0.0 }
 0xe4b   :  { %v4301_v29 = vmul.f32 1.442695, %v4292_v44 }
 0xe4d   :  { %7210 = vpow2.f32 %v4301_v29 }
 0xe4f   :  { %v7209_v45 = vpop.eup %7208 }
 0xe50   :  { %3959 = vadd.xlane.f32.xlu1 %v3958_v36  ;;  %v4275_v39 = vpop.xlane.xlu0 %4274  ;;  %v3540_v46 = vpop.xlane.xlu2 %3539  ;;  %v3565_v15 = vmul.f32 %v7209_v45, %v9629_v56  ;;  %v3933_v36 = vsub.f32 %v9589_v51, %v3921_v17  ;;  %v3934_v51 = vsub.f32 %v9604_v7, %v9712_v53 }
 0xe51   :  { %v4293_v63 = vsub.f32 %v9635_v42, %v4275_v39  ;;  %7212 = vrcp.f32 %v3540_v46 }
 0xe52   :  { %6310 = vmatmul.msk.f32.gmra.mxu2 %vm269_vm2, %v3565_v15 }
 0xe53   :  { %v9727_v22 = vpop.eup %7210  ;;  %v4303_v5 = vmul.f32 1.442695, %v4293_v63  ;;  %v3946_v63 = vmul.f32 1.442695, %v3933_v36 }
 0xe54   :  { %v4318_v50 = vsel %vm269_vm2, %v9727_v22, 0.0 }
 0xe55   :  { %7214 = vpow2.f32 %v4303_v5  ;;  %4319 = vadd.xlane.f32.xlu0 %v4318_v50 }
 0xe57   :  { %v7213_v33 = vpop.eup %7212 }
 0xe58   :  { %v4278_v16 = vpop.xlane.xlu0 %4277  ;;  %v3543_v41 = vpop.xlane.xlu2 %3542  ;;  %v3566_v30 = vmul.f32 %v7213_v33, %v9638_v8 }
 0xe59   :  { %v4294_v56 = vsub.f32 %v9644_v57, %v4278_v16  ;;  %7216 = vrcp.f32 %v3543_v41 }
 0xe5a   :  { %6311 = vmatmul.msk.f32.gmra.mxu2 %vm269_vm2, %v3566_v30  ;;  %v3948_v30 = vmul.f32 1.442695, %v3934_v51 }
 0xe5b   :  { %v9734_v42 = vpop.eup %7214  ;;  %v4305_v34 = vmul.f32 1.442695, %v4294_v56 }
 0xe5c   :  { %v4321_v13 = vsel %vm269_vm2, %v9734_v42, 0.0 }
 0xe5d   :  { %7218 = vpow2.f32 %v4305_v34  ;;  %4322 = vadd.xlane.f32.xlu0 %v4321_v13 }
 0xe5f   :  { %v7217_v24 = vpop.eup %7216 }
 0xe60   :  { %v4281_v44 = vpop.xlane.xlu0 %4280  ;;  %v3546_v29 = vpop.xlane.xlu2 %3545  ;;  %v3567_v45 = vmul.f32 %v7217_v24, %v9647_v35 }
 0xe61   :  { %v4295_v8 = vsub.f32 %v9653_v38, %v4281_v44  ;;  %7220 = vrcp.f32 %v3546_v29 }
 0xe62   :  { %6312 = vmatmul.msk.f32.gmra.mxu2 %vm269_vm2, %v3567_v45 }
 0xe63   :  { %v9741_v57 = vpop.eup %7218  ;;  %v4307_v39 = vmul.f32 1.442695, %v4295_v8 }
 0xe64   :  { %v4324_v46 = vsel %vm269_vm2, %v9741_v57, 0.0 }
 0xe65   :  { %7222 = vpow2.f32 %v4307_v39  ;;  %4325 = vadd.xlane.f32.xlu0 %v4324_v46 }
 0xe67   :  { %v7221_v15 = vpop.eup %7220 }
 0xe68   :  { %v4284_v5 = vpop.xlane.xlu0 %4283  ;;  %v3549_v50 = vpop.xlane.xlu2 %3548  ;;  %v3568_v35 = vmul.f32 %v7221_v15, %v9656_v25 }
 0xe69   :  { %v4296_v38 = vsub.f32 %v9662_v62, %v4284_v5  ;;  %7224 = vrcp.f32 %v3549_v50 }
 0xe6a   :  { %6313 = vmatmul.msk.f32.gmra.mxu2 %vm269_vm2, %v3568_v35  ;;  %7226 = vpow2.f32 %v3946_v63 }
 0xe6b   :  { %v9749_v33 = vpop.eup %7222  ;;  %v4309_v17 = vmul.f32 1.442695, %v4296_v38 }
 0xe6c   :  { %v4327_v16 = vsel %vm269_vm2, %v9749_v33, 0.0 }
 0xe6d   :  { %7228 = vpow2.f32 %v4309_v17  ;;  %4328 = vadd.xlane.f32.xlu0 %v4327_v16 }
 0xe6f   :  { %v7225_v41 = vpop.eup %7224 }
 0xe70   :  { %v4287_v25 = vpop.xlane.xlu0 %4286  ;;  %v3552_v56 = vpop.xlane.xlu2 %3551  ;;  %v3569_v62 = vmul.f32 %v7225_v41, %v9665_v54 }
 0xe71   :  { %v9756_v34 = vpop.eup %7226  ;;  %v4297_v13 = vsub.f32 %v9671_v55, %v4287_v25  ;;  %7230 = vrcp.f32 %v3552_v56  ;;  %v7409_v25 = vld [vmem:[%s10691_s3 + $0x10] sm:$0xff]  ;;  %v3931_v56 = vsub.f32 %v9568_v58, %v9703_v10 }
 0xe72   :  { %6314 = vmatmul.msk.f32.gmra.mxu2 %vm269_vm2, %v3569_v62  ;;  %7232 = vpow2.f32 %v3948_v30  ;;  %v3967_v24 = vsel %vm269_vm2, %v9756_v34, 0.0 }
 0xe73   :  { %v9760_v7 = vpop.eup %7228  ;;  %v4311_v53 = vmul.f32 1.442695, %v4297_v13  ;;  %v3942_v62 = vmul.f32 1.442695, %v3931_v56  ;;  %v3935_v13 = vsub.f32 %v9611_v11, %v9714_v28 }
 0xe74   :  { %v4330_v44 = vsel %vm269_vm2, %v9760_v7, 0.0 }
 0xe75   :  { %7234 = vpow2.f32 %v4311_v53  ;;  %3968 = vadd.xlane.f32.xlu0 %v3967_v24  ;;  %4331 = vadd.xlane.f32.xlu1 %v4330_v44  ;;  %v3950_v53 = vmul.f32 1.442695, %v3935_v13 }
 0xe77   :  { %v7231_v54 = vpop.eup %7230 }
 0xe78   :  { %v3555_v29 = vpop.xlane.xlu2 %3554  ;;  %v3570_v55 = vmul.f32 %v7231_v54, %v9674_v19  ;;  %v9767_v45 = vpop.eup %7232 }
 0xe79   :  { %7236 = vrcp.f32 %v3555_v29  ;;  %v3970_v36 = vsel %vm269_vm2, %v9767_v45, 0.0 }
 0xe7a   :  { %6315 = vmatmul.msk.f32.gmra.mxu2 %vm269_vm2, %v3570_v55 }
 0xe7b   :  { %v9770_v8 = vpop.eup %7234 }
 0xe7c   :  { %v4333_v39 = vsel %vm269_vm2, %v9770_v8, 0.0 }
 0xe7d   :  { %3971 = vadd.xlane.f32.xlu0 %v3970_v36  ;;  %4334 = vadd.xlane.f32.xlu1 %v4333_v39 }
 0xe7f   :  { %v7237_v46 = vpop.eup %7236 }
 0xe80   :  { %v4269_v15 = vpop.xlane.xlu2 %4268  ;;  %v3571_v63 = vmul.f32 %v7237_v46, %v9681_v61  ;;  %v9784_v16 = vpop.xlane.xlu1 %3953 }
 0xe81   :  { %v4291_v19 = vsub.f32 %v9686_v48, %v4269_v15 }
 0xe82   :  { %6316 = vmatmul.msk.f32.gmra.mxu2 %vm269_vm2, %v3571_v63 }
 0xe83   :  { %v4299_v5 = vmul.f32 1.442695, %v4291_v19 }
 0xe85   :  { %7238 = vpow2.f32 %v4299_v5 }
 0xe88   :  { %v4290_v50 = vpop.xlane.xlu2 %4289  ;;  %v3957_v24 = vpop.xlane.xlu0 %3956 }
 0xe89   :  { %v4298_v35 = vsub.f32 %v9695_v20, %v4290_v50 }
 0xe8b   :  { %v9780_v38 = vpop.eup %7238  ;;  %v4313_v51 = vmul.f32 1.442695, %v4298_v35 }
 0xe8c   :  { %v4315_v17 = vsel %vm269_vm2, %v9780_v38, 0.0 }
 0xe8d   :  { %7240 = vpow2.f32 %v4313_v51  ;;  %4316 = vadd.xlane.f32.xlu2 %v4315_v17 }
 0xe8e   :  { %7242 = vpow2.f32 %v3942_v62 }
 0xe8f   :  { %7244 = vpow2.f32 %v3950_v53 }
 0xe93   :  { %v9786_v61 = vpop.eup %7240 }
 0xe94   :  { %v4336_v48 = vsel %vm269_vm2, %v9786_v61, 0.0  ;;  %v9824_v58 = vpop.eup %7242 }
 0xe95   :  { %4337 = vadd.xlane.f32.xlu0 %v4336_v48  ;;  %v3961_v44 = vsel %vm269_vm2, %v9824_v58, 0.0  ;;  %v9835_v28 = vpop.eup %7244 }
 0xe96   :  { %4910 = vrot.lane.b32.xlu1 %v8802_v32, %s7428_s8  ;;  %v3973_v29 = vsel %vm269_vm2, %v9835_v28, 0.0 }
 0xe98   :  { %v6809_v20 = vpop.permute.xlu1 %6808 }
 0xe99   :  { %v6810_v41 = vunpack.i.l.bf16 %v6809_v20  ;;  %v6811_v30 = vunpack.i.h.bf16 %v6809_v20 }
 0xe9b   :  { %4417 = vmatpush.msra.mxu0 %v6810_v41 }
 0xe9d   :  { %4418 = vmatpush.msra.mxu0 %v6811_v30 }
 0xe9e   :  { %4543 = vrot.lane.b32.xlu1 %v8920_v37, %s7422_s26 }
 0xe9f   :  { %6425 = vmatpush.msk.msrb.mxu0 %vm763_vm3, %v7409_v25 }
 0xea0   :  { %v9831_v11 = vpop.xlane.xlu0 %3965 }
 0xea5   :  { %6803 = vrot.lane.b32.xlu2 %v8971_v26, %s7419_s0 }
 0xea6   :  { %4902 = vrot.lane.b32.xlu1 %v8855_v23, %s7428_s8 }
 0xea9   :  { %4908 = vrot.lane.b32.xlu0 %v8847_v52, %s7428_s8 }
 0xeae   :  { %4537 = vrot.lane.b32.xlu1 %v8901_v27, %s7422_s26 }
 0xeb1   :  { %4545 = vrot.lane.b32.xlu0 %v8847_v52, %s7422_s26 }
 0xeb6   :  { %4896 = vrot.lane.b32.xlu1 %v8867_v47, %s7428_s8 }
 0xeb9   :  { %4904 = vrot.lane.b32.xlu0 %v8808_v3, %s7428_s8 }
 0xebe   :  { %4517 = vrot.lane.b32.xlu1 %v8867_v47, %s7423_s27 }
 0xec1   :  { %4539 = vrot.lane.b32.xlu0 %v8855_v23, %s7422_s26 }
 0xec3   :  { %v3960_v19 = vpop.xlane.xlu1 %3959 }
 0xec6   :  { %4884 = vrot.lane.b32.xlu1 %v8901_v27, %s7429_s9 }
 0xec8   :  { %v4320_v55 = vpop.xlane.xlu0 %4319 }
 0xec9   :  { %4898 = vrot.lane.b32.xlu0 %v8816_v49, %s7428_s8 }
 0xecd   :  { %v3637_v10 = vpop.f32.mrf.mxu2 }
 0xece   :  { %4523 = vrot.lane.b32.xlu1 %v8855_v23, %s7423_s27  ;;  %3962 = vadd.xlane.f32.xlu2 %v3961_v44 }
 0xecf   :  { %6318 = vmatmul.msk.f32.vlgmr.msra.gmra.mxu1 %vm187_vm1, %v3637_v10 }
 0xed0   :  { %v4323_v39 = vpop.xlane.xlu0 %4322 }
 0xed1   :  { %4880 = vrot.lane.b32.xlu0 %v8867_v47, %s7429_s9 }
 0xed5   :  { %v3640_v54 = vpop.f32.mrf.mxu2 }
 0xed6   :  { %4890 = vrot.lane.b32.xlu1 %v8920_v37, %s7429_s9  ;;  %3974 = vadd.xlane.f32.xlu2 %v3973_v29 }
 0xed7   :  { %6319 = vmatmul.msk.f32.gmra.mxu1 %vm187_vm1, %v3640_v54 }
 0xed8   :  { %v4326_v15 = vpop.xlane.xlu0 %4325 }
 0xed9   :  { %4882 = vrot.lane.b32.xlu0 %v8816_v49, %s7429_s9 }
 0xedd   :  { %v3643_v36 = vpop.f32.mrf.mxu2 }
 0xede   :  { %4529 = vrot.lane.b32.xlu1 %v8847_v52, %s7423_s27 }
 0xedf   :  { %6320 = vmatmul.msk.f32.gmra.mxu1 %vm187_vm1, %v3643_v36 }
 0xee0   :  { %v4329_v35 = vpop.xlane.xlu0 %4328 }
 0xee1   :  { %4521 = vrot.lane.b32.xlu0 %v8901_v27, %s7423_s27 }
 0xee5   :  { %v3646_v46 = vpop.f32.mrf.mxu2 }
 0xee6   :  { %6813 = vrot.lane.b32.xlu1 %v8861_v12, %s7425_s6 }
 0xee7   :  { %6321 = vmatmul.msk.f32.gmra.mxu1 %vm187_vm1, %v3646_v46 }
 0xee8   :  { %v9859_v50 = vpop.xlane.xlu1 %4331  ;;  %v9871_v20 = vpop.xlane.xlu0 %3968 }
 0xee9   :  { %4888 = vrot.lane.b32.xlu0 %v8808_v3, %s7429_s9 }
 0xeed   :  { %v3649_v63 = vpop.f32.mrf.mxu2 }
 0xeee   :  { %4547 = vrot.lane.b32.xlu2 %v8802_v32, %s7422_s26 }
 0xeef   :  { %6322 = vmatmul.msk.f32.gmra.mxu1 %vm187_vm1, %v3649_v63 }
 0xef0   :  { %v9869_v17 = vpop.xlane.xlu1 %4334  ;;  %v9881_v10 = vpop.xlane.xlu0 %3971 }
 0xef1   :  { %4527 = vrot.lane.b32.xlu0 %v8920_v37, %s7423_s27 }
 0xef5   :  { %v3652_v5 = vpop.f32.mrf.mxu2 }
 0xef6   :  { %4906 = vrot.lane.b32.xlu2 %v8920_v37, %s7428_s8 }
 0xef7   :  { %6323 = vmatmul.msk.f32.gmra.mxu1 %vm187_vm1, %v3652_v5 }
 0xef9   :  { %4894 = vrot.lane.b32.xlu0 %v8802_v32, %s7429_s9 }
 0xefd   :  { %v3655_v51 = vpop.f32.mrf.mxu2 }
 0xefe   :  { %4541 = vrot.lane.b32.xlu2 %v8808_v3, %s7422_s26 }
 0xeff   :  { %6324 = vmatmul.msk.f32.gmra.mxu1 %vm187_vm1, %v3655_v51 }
 0xf00   :  { %v4317_v48 = vpop.xlane.xlu2 %4316 }
 0xf01   :  { %7246 = vrcp.f32 %v4317_v48  ;;  %6823 = vrot.lane.b32.xlu0 %v8963_v21, %s7425_s6 }
 0xf02   :  { %7248 = vrcp.f32 %v9784_v16 }
 0xf03   :  { %7250 = vrcp.f32 %v4320_v55 }
 0xf04   :  { %7252 = vrcp.f32 %v3957_v24 }
 0xf05   :  { %v3658_v41 = vpop.f32.mrf.mxu2  ;;  %7254 = vrcp.f32 %v4323_v39 }
 0xf06   :  { %4900 = vrot.lane.b32.xlu2 %v8901_v27, %s7428_s8  ;;  %7256 = vrcp.f32 %v3960_v19 }
 0xf07   :  { %v7247_v30 = vpop.eup %7246  ;;  %6325 = vmatmul.msk.f32.gmra.mxu1 %vm187_vm1, %v3658_v41  ;;  %7258 = vrcp.f32 %v4326_v15 }
 0xf08   :  { %v4347_v25 = vmul.f32 %v7247_v30, %v9780_v38  ;;  %v4911_v56 = vpop.permute.xlu1 %4910  ;;  %v6804_v62 = vpop.permute.xlu2 %6803  ;;  %v10796_v38 = vld [vmem:[#allocation2_spill] sm:$0xff]  ;;  %7260 = vrcp.f32 %v4329_v35 }
 0xf09   :  { %v7249_v13 = vpop.eup %7248  ;;  %v6805_v53 = vunpack.i.l.bf16 %v6804_v62  ;;  %v6806_v16 = vunpack.i.h.bf16 %v6804_v62  ;;  %v10797_v29 = vrot.slane %v10796_v38, 4  ;;  %7262 = vrcp.f32 %v9859_v50 }
 0xf0a   :  { %6384 = vmatmul.msk.f32.vlgmr.msra.gmra.mxu0 %vm269_vm2, %v4347_v25  ;;  %v7251_v44 = vpop.eup %7250  ;;  %v3984_v54 = vmul.f32 %v7249_v13, %v9689_v4  ;;  %v4338_v4 = vpop.xlane.xlu0 %4337  ;;  %7264 = vrcp.f32 %v9869_v17 }
 0xf0b   :  { %4054 = vmatpush.msra.mxu2 %v6805_v53  ;;  %v4348_v24 = vmul.f32 %v7251_v44, %v9727_v22  ;;  %v7253_v36 = vpop.eup %7252  ;;  %7266 = vrcp.f32 %v4338_v4 }
 0xf0c   :  { %v7255_v46 = vpop.eup %7254  ;;  %v3985_v39 = vmul.f32 %v7253_v36, %v9697_v31 }
 0xf0d   :  { %4055 = vmatpush.msra.mxu2 %v6806_v16  ;;  %v4349_v22 = vmul.f32 %v7255_v46, %v9734_v42  ;;  %v7257_v5 = vpop.eup %7256 }
 0xf0e   :  { %4535 = vrot.lane.b32.xlu2 %v8816_v49, %s7422_s26  ;;  %6351 = vmatmul.msk.f32.vlgmr.msra.gmra.mxu2 %vm269_vm2, %v3984_v54  ;;  %v7259_v19 = vpop.eup %7258  ;;  %v3986_v48 = vmul.f32 %v7257_v5, %v9720_v9 }
 0xf0f   :  { %6392 = vmatpush.msk.msrb.mxu2 %vm763_vm3, %v10797_v29  ;;  %v4350_v15 = vmul.f32 %v7259_v19, %v9741_v57  ;;  %v7261_v41 = vpop.eup %7260 }
 0xf10   :  { %v9890_v55 = vpop.permute.xlu1 %4543  ;;  %v4351_v30 = vmul.f32 %v7261_v41, %v9749_v33  ;;  %v7263_v25 = vpop.eup %7262 }
 0xf11   :  { %6434 = vmatpush.xpose.msk.msra.mxu2 %vm187_vm1, %v4911_v56  ;;  %v4352_v56 = vmul.f32 %v7263_v25, %v9760_v7  ;;  %v7265_v62 = vpop.eup %7264 }
 0xf12   :  { %6385 = vmatmul.msk.f32.gmra.mxu0 %vm269_vm2, %v4348_v24  ;;  %v4353_v13 = vmul.f32 %v7265_v62, %v9770_v8  ;;  %v7267_v17 = vpop.eup %7266 }
 0xf13   :  { %v4354_v16 = vmul.f32 %v7267_v17, %v9786_v61 }
 0xf16   :  { %4533 = vrot.lane.b32.xlu2 %v8867_v47, %s7422_s26  ;;  %6352 = vmatmul.msk.f32.gmra.mxu2 %vm269_vm2, %v3985_v39 }
 0xf18   :  { %v9899_v63 = vpop.permute.xlu1 %4902 }
 0xf1a   :  { %6386 = vmatmul.msk.f32.gmra.mxu0 %vm269_vm2, %v4349_v22 }
 0xf1b   :  { %v4909_v51 = vpop.permute.xlu0 %4908 }
 0xf1c   :  { %6435 = vmatpush.xpose.msk.msra.mxu2 %vm187_vm1, %v4909_v51 }
 0xf1e   :  { %4519 = vrot.lane.b32.xlu2 %v8816_v49, %s7423_s27  ;;  %6353 = vmatmul.msk.f32.gmra.mxu2 %vm269_vm2, %v3986_v48 }
 0xf20   :  { %v9908_v31 = vpop.permute.xlu1 %4537 }
 0xf22   :  { %6387 = vmatmul.msk.f32.gmra.mxu0 %vm269_vm2, %v4350_v15 }
 0xf23   :  { %v4546_v42 = vpop.permute.xlu0 %4545 }
 0xf26   :  { %4886 = vrot.lane.b32.xlu2 %v8855_v23, %s7429_s9 }
 0xf28   :  { %v9915_v9 = vpop.permute.xlu1 %4896 }
 0xf2a   :  { %6388 = vmatmul.msk.f32.gmra.mxu0 %vm269_vm2, %v4351_v30 }
 0xf2b   :  { %v4905_v35 = vpop.permute.xlu0 %4904 }
 0xf2e   :  { %4525 = vrot.lane.b32.xlu2 %v8808_v3, %s7423_s27 }
 0xf30   :  { %v9922_v57 = vpop.permute.xlu1 %4517 }
 0xf32   :  { %6389 = vmatmul.msk.f32.gmra.mxu0 %vm269_vm2, %v4352_v56 }
 0xf33   :  { %v4540_v50 = vpop.permute.xlu0 %4539 }
 0xf36   :  { %4892 = vrot.lane.b32.xlu2 %v8847_v52, %s7429_s9 }
 0xf38   :  { %v9928_v33 = vpop.permute.xlu1 %4884 }
 0xf3a   :  { %6390 = vmatmul.msk.f32.gmra.mxu0 %vm269_vm2, %v4353_v13 }
 0xf3b   :  { %v4899_v53 = vpop.permute.xlu0 %4898 }
 0xf3e   :  { %4531 = vrot.lane.b32.xlu2 %v8802_v32, %s7423_s27 }
 0xf40   :  { %v9934_v7 = vpop.permute.xlu1 %4523 }
 0xf41   :  { %v3963_v44 = vpop.xlane.xlu2 %3962 }
 0xf42   :  { %7268 = vrcp.f32 %v3963_v44  ;;  %6391 = vmatmul.msk.f32.gmra.mxu0 %vm269_vm2, %v4354_v16 }
 0xf43   :  { %v9938_v54 = vpop.permute.xlu0 %4880  ;;  %7270 = vrcp.f32 %v9831_v11 }
 0xf44   :  { %7272 = vrcp.f32 %v9871_v20 }
 0xf45   :  { %7274 = vrcp.f32 %v9881_v10 }
 0xf46   :  { %6818 = vrot.lane.b32.xlu2 %v8861_v12, %s7431_s13 }
 0xf48   :  { %v7269_v8 = vpop.eup %7268  ;;  %v9943_v38 = vpop.permute.xlu1 %4890 }
 0xf49   :  { %v3975_v29 = vpop.xlane.xlu2 %3974  ;;  %v3987_v24 = vmul.f32 %v7269_v8, %v9824_v58  ;;  %v7271_v61 = vpop.eup %7270 }
 0xf4a   :  { %v3988_v11 = vmul.f32 %v7271_v61, %v9708_v1  ;;  %v7273_v58 = vpop.eup %7272  ;;  %7276 = vrcp.f32 %v3975_v29 }
 0xf4b   :  { %v9946_v36 = vpop.permute.xlu0 %4882  ;;  %6354 = vmatmul.msk.f32.gmra.mxu2 %vm269_vm2, %v3987_v24  ;;  %v3989_v20 = vmul.f32 %v7273_v58, %v9756_v34  ;;  %v7275_v48 = vpop.eup %7274 }
 0xf4c   :  { %v3990_v15 = vmul.f32 %v7275_v48, %v9767_v45 }
 0xf4e   :  { %6828 = vrot.lane.b32.xlu2 %v8963_v21, %s7431_s13 }
 0xf50   :  { %v9952_v4 = vpop.permute.xlu1 %4529 }
 0xf51   :  { %v4548_v46 = vpop.permute.xlu2 %4547 }
 0xf52   :  { %6401 = vmatpush.xpose.msk.msra.mxu1 %vm187_vm1, %v4548_v46 }
 0xf53   :  { %v9956_v39 = vpop.permute.xlu0 %4521  ;;  %6355 = vmatmul.msk.f32.gmra.mxu2 %vm269_vm2, %v3988_v11 }
 0xf56   :  { %6402 = vmatpush.xpose.msk.msra.mxu1 %vm187_vm1, %v4546_v42 }
 0xf58   :  { %v6814_v22 = vpop.permute.xlu1 %6813 }
 0xf59   :  { %v6815_v5 = vunpack.i.l.bf16 %v6814_v22  ;;  %v4907_v51 = vpop.permute.xlu2 %4906  ;;  %v6816_v1 = vunpack.i.h.bf16 %v6814_v22 }
 0xf5a   :  { %6403 = vmatpush.xpose.msk.msra.mxu1 %vm187_vm1, %v9890_v55  ;;  %6436 = vmatpush.xpose.msk.msra.mxu2 %vm187_vm1, %v4907_v51  ;;  %v7277_v55 = vpop.eup %7276 }
 0xf5b   :  { %4774 = vmatpush.msra.mxu3 %v6815_v5  ;;  %v9965_v19 = vpop.permute.xlu0 %4888  ;;  %6356 = vmatmul.msk.f32.gmra.mxu2 %vm269_vm2, %v3989_v20  ;;  %v3991_v41 = vmul.f32 %v7277_v55, %v9835_v28  ;;  %v10010_v55 = vpop.f32.mrf.mxu1 }
 0xf5d   :  { %4775 = vmatpush.msra.mxu3 %v6816_v1 }
 0xf5e   :  { %6437 = vmatpush.xpose.msk.msra.mxu2 %vm187_vm1, %v4905_v35 }
 0xf61   :  { %v4542_v10 = vpop.permute.xlu2 %4541 }
 0xf62   :  { %6404 = vmatpush.xpose.msk.msra.mxu1 %vm187_vm1, %v4542_v10  ;;  %6438 = vmatpush.xpose.msk.msra.mxu2 %vm187_vm1, %v9899_v63 }
 0xf63   :  { %v9973_v34 = vpop.permute.xlu0 %4527  ;;  %6357 = vmatmul.msk.f32.gmra.mxu2 %vm269_vm2, %v3990_v15 }
 0xf66   :  { %6405 = vmatpush.xpose.msk.msra.mxu1 %vm187_vm1, %v4540_v50 }
 0xf69   :  { %v4901_v42 = vpop.permute.xlu2 %4900 }
 0xf6a   :  { %6406 = vmatpush.xpose.msk.msra.mxu1 %vm187_vm1, %v9908_v31  ;;  %6439 = vmatpush.xpose.msk.msra.mxu2 %vm187_vm1, %v4901_v42 }
 0xf6b   :  { %v9981_v45 = vpop.permute.xlu0 %4894  ;;  %6358 = vmatmul.msk.f32.gmra.mxu2 %vm269_vm2, %v3991_v41 }
 0xf6e   :  { %6440 = vmatpush.xpose.msk.msra.mxu2 %vm187_vm1, %v4899_v53 }
 0xf71   :  { %v4536_v63 = vpop.permute.xlu2 %4535 }
 0xf72   :  { %6407 = vmatpush.xpose.msk.msra.mxu1 %vm187_vm1, %v4536_v63  ;;  %6441 = vmatpush.xpose.msk.msra.mxu2 %vm187_vm1, %v9915_v9 }
 0xf73   :  { %v6824_v30 = vpop.permute.xlu0 %6823 }
 0xf74   :  { %v6825_v35 = vunpack.i.l.bf16 %v6824_v30  ;;  %v6826_v28 = vunpack.i.h.bf16 %v6824_v30 }
 0xf76   :  { %4776 = vmatpush.msra.mxu3 %v6825_v35 }
 0xf78   :  { %4777 = vmatpush.msra.mxu3 %v6826_v28 }
 0xf79   :  { %v4534_v31 = vpop.permute.xlu2 %4533 }
 0xf7a   :  { %6408 = vmatpush.xpose.msk.msra.mxu1 %vm187_vm1, %v4534_v31 }
 0xf81   :  { %v4520_v25 = vpop.permute.xlu2 %4519 }
 0xf87   :  { %v4420_v56 = vpop.f32.mrf.mxu0 }
 0xf88   :  { %6393 = vmatmul.msk.f32.vlgmr.msrb.gmra.mxu2 %vm187_vm1, %v4420_v56 }
 0xf89   :  { %v4887_v50 = vpop.permute.xlu2 %4886 }
 0xf8f   :  { %v4423_v62 = vpop.f32.mrf.mxu0 }
 0xf90   :  { %6394 = vmatmul.msk.f32.gmra.mxu2 %vm187_vm1, %v4423_v62 }
 0xf91   :  { %v4526_v13 = vpop.permute.xlu2 %4525  ;;  %v4057_v53 = vpop.f32.mrf.mxu2 }
 0xf92   :  { %6360 = vmatmul.msk.f32.vlgmr.msrb.gmra.mxu1 %vm187_vm1, %v4057_v53 }
 0xf97   :  { %v4426_v9 = vpop.f32.mrf.mxu0 }
 0xf98   :  { %6395 = vmatmul.msk.f32.gmra.mxu2 %vm187_vm1, %v4426_v9 }
 0xf99   :  { %v4893_v17 = vpop.permute.xlu2 %4892  ;;  %v4060_v16 = vpop.f32.mrf.mxu2 }
 0xf9a   :  { %6361 = vmatmul.msk.f32.gmra.mxu1 %vm187_vm1, %v4060_v16 }
 0xf9f   :  { %v4429_v44 = vpop.f32.mrf.mxu0 }
 0xfa0   :  { %6396 = vmatmul.msk.f32.gmra.mxu2 %vm187_vm1, %v4429_v44 }
 0xfa1   :  { %v4532_v8 = vpop.permute.xlu2 %4531  ;;  %v4063_v29 = vpop.f32.mrf.mxu2 }
 0xfa2   :  { %6362 = vmatmul.msk.f32.gmra.mxu1 %vm187_vm1, %v4063_v29 }
 0xfa7   :  { %v4432_v24 = vpop.f32.mrf.mxu0 }
 0xfa8   :  { %6397 = vmatmul.msk.f32.gmra.mxu2 %vm187_vm1, %v4432_v24 }
 0xfa9   :  { %v6819_v61 = vpop.permute.xlu2 %6818 }
 0xfaa   :  { %v6820_v46 = vunpack.i.l.bf16 %v6819_v61  ;;  %v6821_v11 = vunpack.i.h.bf16 %v6819_v61 }
 0xfac   :  { %5137 = vmatpush.msrb.mxu1 %v6820_v46 }
 0xfae   :  { %5138 = vmatpush.msrb.mxu1 %v6821_v11 }
 0xfaf   :  { %v4435_v58 = vpop.f32.mrf.mxu0 }
 0xfb0   :  { %6398 = vmatmul.msk.f32.gmra.mxu2 %vm187_vm1, %v4435_v58 }
 0xfb1   :  { %v6829_v22 = vpop.permute.xlu2 %6828 }
 0xfb2   :  { %v6830_v5 = vunpack.i.l.bf16 %v6829_v22  ;;  %v6831_v51 = vunpack.i.h.bf16 %v6829_v22 }
 0xfb4   :  { %5139 = vmatpush.msrb.mxu1 %v6830_v5 }
 0xfb6   :  { %5140 = vmatpush.msrb.mxu1 %v6831_v51 }
 0xfb7   :  { %v4438_v20 = vpop.f32.mrf.mxu0 }
 0xfb8   :  { %6399 = vmatmul.msk.f32.gmra.mxu2 %vm187_vm1, %v4438_v20 }
 0xfbf   :  { %v4441_v1 = vpop.f32.mrf.mxu0 }
 0xfc0   :  { %6400 = vmatmul.msk.f32.gmra.mxu2 %vm187_vm1, %v4441_v1 }
 0xfc8   :  { %6442 = vmatmul.msk.f32.vlgmr.msra.gmra.mxu2 %vm187_vm1, %v9938_v54 }
 0xfce   :  { %v4066_v48 = vpop.f32.mrf.mxu2 }
 0xfcf   :  { %6363 = vmatmul.msk.f32.gmra.mxu1 %vm187_vm1, %v4066_v48 }
 0xfd0   :  { %6443 = vmatmul.msk.f32.gmra.mxu2 %vm187_vm1, %v9946_v36  ;;  %v10015_v36 = vpop.f32.mrf.mxu1 }
 0xfd1   :  { %10798 = vst [vmem:[#allocation27_spill] sm:$0xff] %v10015_v36 }
 0xfd6   :  { %v4069_v10 = vpop.f32.mrf.mxu2 }
 0xfd7   :  { %6364 = vmatmul.msk.f32.gmra.mxu1 %vm187_vm1, %v4069_v10 }
 0xfd8   :  { %6444 = vmatmul.msk.f32.gmra.mxu2 %vm187_vm1, %v9928_v33  ;;  %v10020_v33 = vpop.f32.mrf.mxu1 }
 0xfde   :  { %v4072_v15 = vpop.f32.mrf.mxu2 }
 0xfdf   :  { %6365 = vmatmul.msk.f32.gmra.mxu1 %vm187_vm1, %v4072_v15 }
 0xfe0   :  { %6445 = vmatmul.msk.f32.gmra.mxu2 %vm187_vm1, %v4887_v50  ;;  %v10026_v41 = vpop.f32.mrf.mxu1 }
 0xfe6   :  { %v4075_v54 = vpop.f32.mrf.mxu2 }
 0xfe7   :  { %6366 = vmatmul.msk.f32.gmra.mxu1 %vm187_vm1, %v4075_v54 }
 0xfe8   :  { %6446 = vmatmul.msk.f32.gmra.mxu2 %vm187_vm1, %v9965_v19  ;;  %v10032_v19 = vpop.f32.mrf.mxu1 }
 0xfee   :  { %v4078_v42 = vpop.f32.mrf.mxu2 }
 0xfef   :  { %6367 = vmatmul.msk.f32.gmra.mxu1 %vm187_vm1, %v4078_v42 }
 0xff0   :  { %6447 = vmatmul.msk.f32.gmra.mxu2 %vm187_vm1, %v9943_v38 }
 0xff7   :  { %6409 = vmatmul.msk.f32.vlgmr.msra.gmra.mxu1 %vm187_vm1, %v9922_v57  ;;  %v10038_v57 = vpop.f32.mrf.mxu1 }
 0xff8   :  { %6448 = vmatmul.msk.f32.gmra.mxu2 %vm187_vm1, %v4893_v17 }
 0xfff   :  { %6410 = vmatmul.msk.f32.gmra.mxu1 %vm187_vm1, %v4520_v25  ;;  %v10043_v30 = vpop.f32.mrf.mxu1 }
0x1000   :  { %6449 = vmatmul.msk.f32.gmra.mxu2 %vm187_vm1, %v9981_v45 }
0x1007   :  { %6411 = vmatmul.msk.f32.gmra.mxu1 %vm187_vm1, %v9956_v39  ;;  %v10051_v39 = vpop.f32.mrf.mxu1 }
0x1008   :  { %10800 = vst [vmem:[#allocation4_spill] sm:$0xff] %v10051_v39 }
0x100b   :  { %v10036_v38 = vpop.f32.mrf.mxu2 }
0x100f   :  { %6412 = vmatmul.msk.f32.gmra.mxu1 %vm187_vm1, %v9934_v7  ;;  %v10054_v7 = vpop.f32.mrf.mxu1 }
0x1013   :  { %v10041_v63 = vpop.f32.mrf.mxu2 }
0x1014   :  { %10799 = vst [vmem:[#allocation9_spill] sm:$0xff] %v10041_v63 }
0x1017   :  { %6413 = vmatmul.msk.f32.gmra.mxu1 %vm187_vm1, %v4526_v13  ;;  %v10058_v28 = vpop.f32.mrf.mxu1 }
0x1018   :  { %10801 = vst [vmem:[#allocation21_spill] sm:$0xff] %v10058_v28 }
0x101b   :  { %v10047_v45 = vpop.f32.mrf.mxu2 }
0x101f   :  { %6414 = vmatmul.msk.f32.gmra.mxu1 %vm187_vm1, %v9973_v34  ;;  %v10062_v25 = vpop.f32.mrf.mxu1 }
0x1023   :  { %v10056_v35 = vpop.f32.mrf.mxu2 }
0x1027   :  { %6415 = vmatmul.msk.f32.gmra.mxu1 %vm187_vm1, %v9952_v4 }
0x102b   :  { %v10060_v31 = vpop.f32.mrf.mxu2 }
0x102f   :  { %6416 = vmatmul.msk.f32.gmra.mxu1 %vm187_vm1, %v4532_v8 }
0x1033   :  { %v10064_v34 = vpop.f32.mrf.mxu2 }
0x103b   :  { %v10068_v50 = vpop.f32.mrf.mxu2 }
0x103c   :  { %10802 = vst [vmem:[#allocation15_spill] sm:$0xff] %v10068_v50 }
0x1043   :  { %v10072_v62 = vpop.f32.mrf.mxu2 }
0x1044   :  { %10803 = vst [vmem:[#allocation39_spill] sm:$0xff] %v10072_v62 }
0x104b   :  { %v4961_v53 = vpop.f32.mrf.mxu2 }
0x104c   :  { %v10066_v56 = vpop.f32.mrf.mxu1  ;;  %v4985_v28 = vmul.f32 0.5, %v4961_v53 }
0x1053   :  { %v10078_v17 = vpop.f32.mrf.mxu2 }
0x1054   :  { %v10070_v4 = vpop.f32.mrf.mxu1 }
0x105b   :  { %v4967_v29 = vpop.f32.mrf.mxu2 }
0x105c   :  { %v10074_v13 = vpop.f32.mrf.mxu1 }
0x1063   :  { %v4970_v58 = vpop.f32.mrf.mxu2 }
0x1064   :  { %v10076_v9 = vpop.f32.mrf.mxu1 }
0x1065   :  { %10804 = vst [vmem:[#allocation28_spill] sm:$0xff] %v10076_v9 }
0x106b   :  { %v10088_v20 = vpop.f32.mrf.mxu2 }
0x106c   :  { %v10080_v16 = vpop.f32.mrf.mxu1 }
0x106d   :  { %10805 = vst [vmem:[#allocation36_spill] sm:$0xff] %v10080_v16 }
0x1073   :  { %v4976_v15 = vpop.f32.mrf.mxu2 }
0x1074   :  { %v4598_v44 = vpop.f32.mrf.mxu1 }
0x1075   :  { %v4622_v8 = vmul.f32 0.5, %v4598_v44 }
0x1077   :  { %v4630_v24 = vsel %vm269_vm2, %v4622_v8, -inf }
0x1078   :  { %4631 = vmax.xlane.f32.xlu1 %v4630_v24  ;;  %v10095_v24 = vmul.f32 0.5, %v4967_v29 }
0x107c   :  { %v4601_v61 = vpop.f32.mrf.mxu1 }
0x107d   :  { %v4623_v46 = vmul.f32 0.5, %v4601_v61 }
0x107f   :  { %v4633_v11 = vsel %vm269_vm2, %v4623_v46, -inf }
0x1080   :  { %4634 = vmax.xlane.f32.xlu2 %v4633_v11 }
0x1084   :  { %v4604_v22 = vpop.f32.mrf.mxu1 }
0x1085   :  { %v10084_v5 = vmul.f32 0.5, %v4604_v22  ;;  %v4979_v22 = vpop.f32.mrf.mxu2 }
0x1087   :  { %v4636_v51 = vsel %vm269_vm2, %v10084_v5, -inf }
0x1088   :  { %4637 = vmax.xlane.f32.xlu0 %v4636_v51  ;;  %v4999_v51 = vsel %vm269_vm2, %v10095_v24, -inf }
0x108c   :  { %v4607_v1 = vpop.f32.mrf.mxu1 }
0x108d   :  { %v10090_v48 = vmul.f32 0.5, %v4607_v1 }
0x108f   :  { %v4639_v10 = vsel %vm269_vm2, %v10090_v48, -inf }
0x1090   :  { %4640 = vmax.xlane.f32.xlu1 %v4639_v10  ;;  %v10103_v10 = vmul.f32 0.5, %v4976_v15  ;;  %v4993_v15 = vsel %vm269_vm2, %v4985_v28, -inf }
0x1092   :  { %v5008_v29 = vsel %vm269_vm2, %v10103_v10, -inf }
0x1094   :  { %v4610_v54 = vpop.f32.mrf.mxu1 }
0x1095   :  { %v4626_v42 = vmul.f32 0.5, %v4610_v54 }
0x1097   :  { %v4642_v44 = vsel %vm269_vm2, %v4626_v42, -inf }
0x1098   :  { %4643 = vmax.xlane.f32.xlu2 %v4642_v44 }
0x109c   :  { %v4613_v61 = vpop.f32.mrf.mxu1 }
0x109d   :  { %v10097_v11 = vmul.f32 0.5, %v4613_v61  ;;  %v4982_v61 = vpop.f32.mrf.mxu2 }
0x109e   :  { %v10111_v2 = vmul.f32 0.5, %v4982_v61 }
0x109f   :  { %v4645_v1 = vsel %vm269_vm2, %v10097_v11, -inf }
0x10a0   :  { %5000 = vmax.xlane.f32.xlu2 %v4999_v51  ;;  %4646 = vmax.xlane.f32.xlu0 %v4645_v1  ;;  %v5014_v51 = vsel %vm269_vm2, %v10111_v2, -inf  ;;  %v10118_v1 = vmul.f32 0.5, %v4970_v58 }
0x10a4   :  { %v4616_v54 = vpop.f32.mrf.mxu1 }
0x10a5   :  { %v10105_v63 = vmul.f32 0.5, %v4616_v54 }
0x10a7   :  { %v4648_v44 = vsel %vm269_vm2, %v10105_v63, -inf }
0x10a8   :  { %5009 = vmax.xlane.f32.xlu2 %v5008_v29  ;;  %4649 = vmax.xlane.f32.xlu0 %v4648_v44  ;;  %v5002_v29 = vsel %vm269_vm2, %v10118_v1, -inf }
0x10ac   :  { %v4619_v53 = vpop.f32.mrf.mxu1 }
0x10ad   :  { %v4629_v61 = vmul.f32 0.5, %v4619_v53 }
0x10b0   :  { %5015 = vmax.xlane.f32.xlu2 %v5014_v51  ;;  %4994 = vmax.xlane.f32.xlu0 %v4993_v15  ;;  %v4651_v51 = vsel %vm269_vm2, %v4629_v61, -inf }
0x10c4   :  { %6833 = vrot.lane.b32.xlu0 %v8909_v43, %s7425_s6 }
0x10eb   :  { %v4632_v54 = vpop.xlane.xlu1 %4631 }
0x10ec   :  { %v4654_v36 = vsub.f32 %v4622_v8, %v4632_v54  ;;  %v10127_v8 = vmul.f32 0.5, %v4979_v22  ;;  %v4986_v54 = vmul.f32 0.5, %v10078_v17 }
0x10ee   :  { %v4662_v44 = vmul.f32 1.442695, %v4654_v36  ;;  %5003 = vmax.xlane.f32.xlu0 %v5002_v29  ;;  %v5011_v36 = vsel %vm269_vm2, %v10127_v8, -inf }
0x10f0   :  { %7278 = vpow2.f32 %v4662_v44 }
0x10f3   :  { %v4635_v62 = vpop.xlane.xlu2 %4634 }
0x10f4   :  { %v4655_v16 = vsub.f32 %v4623_v46, %v4635_v62  ;;  %v4996_v62 = vsel %vm269_vm2, %v4986_v54, -inf }
0x10f6   :  { %v10123_v15 = vpop.eup %7278  ;;  %4652 = vmax.xlane.f32.xlu0 %v4651_v51  ;;  %v4664_v14 = vmul.f32 1.442695, %v4655_v16 }
0x10f7   :  { %v4678_v58 = vsel %vm269_vm2, %v10123_v15, 0.0 }
0x10f8   :  { %4679 = vadd.xlane.f32.xlu1 %v4678_v58  ;;  %7280 = vpow2.f32 %v4664_v14 }
0x10fb   :  { %v4638_v16 = vpop.xlane.xlu0 %4637 }
0x10fe   :  { %5012 = vmax.xlane.f32.xlu0 %v5011_v36  ;;  %v10133_v46 = vpop.eup %7280 }
0x10ff   :  { %v4681_v29 = vsel %vm269_vm2, %v10133_v46, 0.0 }
0x1100   :  { %4997 = vmax.xlane.f32.xlu1 %v4996_v62 }
0x1106   :  { %4682 = vadd.xlane.f32.xlu0 %v4681_v29 }
0x110b   :  { %v4644_v53 = vpop.xlane.xlu2 %4643 }
0x110c   :  { %v4658_v22 = vsub.f32 %v4626_v42, %v4644_v53 }
0x110e   :  { %v4670_v44 = vmul.f32 1.442695, %v4658_v22 }
0x1110   :  { %7282 = vpow2.f32 %v4670_v44 }
0x1113   :  { %v10137_v17 = vpop.xlane.xlu0 %4646  ;;  %v5001_v50 = vpop.xlane.xlu2 %5000 }
0x1116   :  { %v10139_v14 = vpop.eup %7282 }
0x1117   :  { %v4690_v51 = vsel %vm269_vm2, %v10139_v14, 0.0 }
0x1118   :  { %4691 = vadd.xlane.f32.xlu0 %v4690_v51  ;;  %v10152_v51 = vmul.f32 0.5, %v10088_v20 }
0x1119   :  { %6838 = vrot.lane.b32.xlu1 %v8909_v43, %s7431_s13 }
0x111a   :  { %v5005_v43 = vsel %vm269_vm2, %v10152_v51, -inf }
0x111b   :  { %v10145_v58 = vpop.xlane.xlu0 %4649 }
0x1123   :  { %v4995_v36 = vpop.xlane.xlu0 %4994 }
0x1124   :  { %v5017_v62 = vsub.f32 %v4985_v28, %v4995_v36  ;;  %v4641_v28 = vpop.xlane.xlu1 %4640 }
0x1125   :  { %v4657_v36 = vsub.f32 %v10090_v48, %v4641_v28  ;;  %v5019_v28 = vsub.f32 %v10095_v24, %v5001_v50 }
0x1126   :  { %v5025_v29 = vmul.f32 1.442695, %v5017_v62 }
0x1128   :  { %7284 = vpow2.f32 %v5025_v29  ;;  %v4668_v29 = vmul.f32 1.442695, %v4657_v36 }
0x112a   :  { %7286 = vpow2.f32 %v4668_v29  ;;  %v5010_v29 = vpop.xlane.xlu2 %5009 }
0x112e   :  { %v10147_v42 = vpop.eup %7284 }
0x112f   :  { %v5041_v53 = vsel %vm269_vm2, %v10147_v42, 0.0 }
0x1130   :  { %5042 = vadd.xlane.f32.xlu2 %v5041_v53 }
0x1136   :  { %v6834_v22 = vpop.permute.xlu0 %6833 }
0x1137   :  { %v6835_v44 = vunpack.i.l.bf16 %v6834_v22  ;;  %v6836_v39 = vunpack.i.h.bf16 %v6834_v22 }
0x1139   :  { %4778 = vmatpush.msra.mxu3 %v6835_v44  ;;  %v10161_v44 = vpop.eup %7286 }
0x113b   :  { %4779 = vmatpush.msra.mxu3 %v6836_v39 }
0x1143   :  { %5006 = vmax.xlane.f32.xlu1 %v5005_v43  ;;  %v4687_v43 = vsel %vm269_vm2, %v10161_v44, 0.0 }
0x1148   :  { %6843 = vrot.lane.b32.xlu2 %v8971_v26, %s7425_s6 }
0x115c   :  { %6848 = vrot.lane.b32.xlu1 %v8971_v26, %s7431_s13  ;;  %v4656_v26 = vsub.f32 %v10084_v5, %v4638_v16 }
0x1161   :  { %v5004_v62 = vpop.xlane.xlu0 %5003 }
0x1169   :  { %v4653_v39 = vpop.xlane.xlu0 %4652 }
0x116a   :  { %v4661_v53 = vsub.f32 %v4629_v61, %v4653_v39  ;;  %v4666_v61 = vmul.f32 1.442695, %v4656_v26 }
0x116b   :  { %v4680_v20 = vpop.xlane.xlu1 %4679 }
0x116c   :  { %v4676_v22 = vmul.f32 1.442695, %v4661_v53  ;;  %v5029_v53 = vmul.f32 1.442695, %v5019_v28 }
0x116e   :  { %7288 = vpow2.f32 %v4676_v22  ;;  %v5022_v22 = vsub.f32 %v10103_v10, %v5010_v29 }
0x1171   :  { %4688 = vadd.xlane.f32.xlu2 %v4687_v43  ;;  %v5013_v26 = vpop.xlane.xlu0 %5012 }
0x1172   :  { %v5023_v16 = vsub.f32 %v10127_v8, %v5013_v26 }
0x1173   :  { %v4998_v9 = vpop.xlane.xlu1 %4997 }
0x1174   :  { %v5018_v6 = vsub.f32 %v4986_v54, %v4998_v9  ;;  %v10166_v48 = vpop.eup %7288  ;;  %v5020_v9 = vsub.f32 %v10118_v1, %v5004_v62  ;;  %v5037_v62 = vmul.f32 1.442695, %v5023_v16 }
0x1175   :  { %v4699_v39 = vsel %vm269_vm2, %v10166_v48, 0.0 }
0x1176   :  { %v5027_v36 = vmul.f32 1.442695, %v5018_v6  ;;  %v5035_v6 = vmul.f32 1.442695, %v5022_v22  ;;  %v5031_v24 = vmul.f32 1.442695, %v5020_v9 }
0x1178   :  { %7290 = vpow2.f32 %v5027_v36 }
0x1179   :  { %4700 = vadd.xlane.f32.xlu2 %v4699_v39  ;;  %7292 = vpow2.f32 %v4666_v61  ;;  %v4683_v26 = vpop.xlane.xlu0 %4682 }
0x117a   :  { %7294 = vpow2.f32 %v5029_v53 }
0x117b   :  { %7296 = vpow2.f32 %v5035_v6 }
0x117c   :  { %7298 = vpow2.f32 %v5031_v24 }
0x117d   :  { %7300 = vpow2.f32 %v5037_v62 }
0x117e   :  { %v10172_v43 = vpop.eup %7290  ;;  %7302 = vrcp.f32 %v4680_v20  ;;  %v10806_v20 = vld [vmem:[#allocation20_spill] sm:$0xff] }
0x117f   :  { %v5044_v50 = vsel %vm269_vm2, %v10172_v43, 0.0  ;;  %v10177_v5 = vpop.eup %7292  ;;  %7304 = vrcp.f32 %v4683_v26 }
0x1180   :  { %5045 = vadd.xlane.f32.xlu0 %v5044_v50  ;;  %v10179_v54 = vpop.eup %7294  ;;  %v4684_v10 = vsel %vm269_vm2, %v10177_v5, 0.0  ;;  %v5016_v50 = vpop.xlane.xlu2 %5015 }
0x1181   :  { %v5047_v1 = vsel %vm269_vm2, %v10179_v54, 0.0  ;;  %v10186_v28 = vpop.eup %7296 }
0x1182   :  { %v10188_v61 = vpop.eup %7298  ;;  %v5056_v8 = vsel %vm269_vm2, %v10186_v28, 0.0 }
0x1183   :  { %v5050_v53 = vsel %vm269_vm2, %v10188_v61, 0.0  ;;  %v10194_v22 = vpop.eup %7300 }
0x1184   :  { %v5059_v9 = vsel %vm269_vm2, %v10194_v22, 0.0  ;;  %v7303_v16 = vpop.eup %7302 }
0x1185   :  { %v4710_v62 = vmul.f32 %v7303_v16, %v10123_v15  ;;  %v4659_v15 = vsub.f32 %v10097_v11, %v10137_v17  ;;  %v5024_v16 = vsub.f32 %v10111_v2, %v5016_v50 }
0x1186   :  { %4685 = vadd.xlane.f32.xlu1 %v4684_v10 }
0x1187   :  { %v4672_v26 = vmul.f32 1.442695, %v4659_v15 }
0x1188   :  { %5048 = vadd.xlane.f32.xlu0 %v5047_v1 }
0x118b   :  { %v6839_v36 = vpop.permute.xlu1 %6838 }
0x118c   :  { %v6840_v29 = vunpack.i.l.bf16 %v6839_v36  ;;  %v6841_v39 = vunpack.i.h.bf16 %v6839_v36  ;;  %v10807_v36 = vrot.slane %v10806_v20, 4 }
0x118e   :  { %5141 = vmatpush.msrb.mxu1 %v6840_v29  ;;  %5057 = vadd.xlane.f32.xlu1 %v5056_v8  ;;  %v7305_v29 = vpop.eup %7304 }
0x1190   :  { %5142 = vmatpush.msrb.mxu1 %v6841_v39  ;;  %5051 = vadd.xlane.f32.xlu0 %v5050_v53  ;;  %v4711_v53 = vmul.f32 %v7305_v29, %v10133_v46 }
0x1191   :  { %5273 = vrot.lane.b32.xlu2 %v8802_v32, %s7426_s1 }
0x1196   :  { %5060 = vadd.xlane.f32.xlu1 %v5059_v9 }
0x1199   :  { %5269 = vrot.lane.b32.xlu2 %v8920_v37, %s7426_s1 }
0x11a1   :  { %5628 = vrot.lane.b32.xlu2 %v8855_v23, %s7432_s2 }
0x11a3   :  { %v5043_v6 = vpop.xlane.xlu2 %5042 }
0x11a9   :  { %5263 = vrot.lane.b32.xlu2 %v8901_v27, %s7426_s1 }
0x11ab   :  { %v6844_v24 = vpop.permute.xlu2 %6843 }
0x11ac   :  { %v6845_v10 = vunpack.i.l.bf16 %v6844_v24  ;;  %v6846_v1 = vunpack.i.h.bf16 %v6844_v24 }
0x11ae   :  { %4780 = vmatpush.msra.mxu3 %v6845_v10 }
0x11af   :  { %5636 = vrot.lane.b32.xlu1 %v8802_v32, %s7432_s2 }
0x11b0   :  { %4781 = vmatpush.msra.mxu3 %v6846_v1 }
0x11b1   :  { %6417 = vmatmul.msk.f32.vlgmr.msra.gmra.mxu3 %vm269_vm2, %v4710_v62  ;;  %5622 = vrot.lane.b32.xlu2 %v8867_v47, %s7432_s2 }
0x11b2   :  { %6458 = vmatpush.msk.msrb.mxu3 %vm763_vm3, %v10807_v36 }
0x11b6   :  { %v5007_v8 = vpop.xlane.xlu1 %5006 }
0x11b7   :  { %v5021_v39 = vsub.f32 %v10152_v51, %v5007_v8  ;;  %5271 = vrot.lane.b32.xlu1 %v8847_v52, %s7426_s1  ;;  %v4660_v51 = vsub.f32 %v10105_v63, %v10145_v58  ;;  %v5039_v58 = vmul.f32 1.442695, %v5024_v16 }
0x11b9   :  { %v5033_v9 = vmul.f32 1.442695, %v5021_v39  ;;  %5243 = vrot.lane.b32.xlu2 %v8867_v47, %s7427_s7  ;;  %6418 = vmatmul.msk.f32.gmra.mxu3 %vm269_vm2, %v4711_v53  ;;  %v4674_v46 = vmul.f32 1.442695, %v4660_v51  ;;  %v4692_v39 = vpop.xlane.xlu0 %4691 }
0x11bb   :  { %7306 = vpow2.f32 %v5033_v9 }
0x11bc   :  { %7308 = vpow2.f32 %v4672_v26 }
0x11bd   :  { %7310 = vpow2.f32 %v4674_v46 }
0x11be   :  { %7312 = vrcp.f32 %v5043_v6  ;;  %v7410_v6 = vld [vmem:[%s10691_s3 + $0x18] sm:$0xff] }
0x11bf   :  { %5630 = vrot.lane.b32.xlu1 %v8808_v3, %s7432_s2  ;;  %7314 = vpow2.f32 %v5039_v58 }
0x11c1   :  { %v10228_v24 = vpop.eup %7306  ;;  %5610 = vrot.lane.b32.xlu2 %v8901_v27, %s7433_s16 }
0x11c2   :  { %v5053_v11 = vsel %vm269_vm2, %v10228_v24, 0.0  ;;  %v10234_v17 = vpop.eup %7308 }
0x11c3   :  { %5054 = vadd.xlane.f32.xlu0 %v5053_v11  ;;  %v4693_v63 = vsel %vm269_vm2, %v10234_v17, 0.0  ;;  %v10243_v10 = vpop.eup %7310 }
0x11c4   :  { %v7313_v62 = vpop.eup %7312  ;;  %v4696_v50 = vsel %vm269_vm2, %v10243_v10, 0.0 }
0x11c5   :  { %v5073_v2 = vmul.f32 %v7313_v62, %v10147_v42  ;;  %v10257_v29 = vpop.eup %7314 }
0x11c6   :  { %v5062_v42 = vsel %vm269_vm2, %v10257_v29, 0.0 }
0x11c7   :  { %5265 = vrot.lane.b32.xlu1 %v8855_v23, %s7426_s1 }
0x11c9   :  { %5249 = vrot.lane.b32.xlu2 %v8855_v23, %s7427_s7 }
0x11cb   :  { %4694 = vadd.xlane.f32.xlu0 %v4693_v63 }
0x11ce   :  { %v6849_v1 = vpop.permute.xlu1 %6848 }
0x11cf   :  { %v6850_v20 = vunpack.i.l.bf16 %v6849_v1  ;;  %5624 = vrot.lane.b32.xlu1 %v8816_v49, %s7432_s2  ;;  %v6851_v36 = vunpack.i.h.bf16 %v6849_v1 }
0x11d1   :  { %5143 = vmatpush.msrb.mxu1 %v6850_v20  ;;  %5616 = vrot.lane.b32.xlu2 %v8920_v37, %s7433_s16 }
0x11d3   :  { %5144 = vmatpush.msrb.mxu1 %v6851_v36  ;;  %4697 = vadd.xlane.f32.xlu0 %v4696_v50 }
0x11d4   :  { %6450 = vmatmul.msk.f32.vlgmr.msrb.gmra.mxu1 %vm269_vm2, %v5073_v2 }
0x11d5   :  { %6491 = vmatpush.msk.msra.mxu1 %vm763_vm3, %v7410_v6 }
0x11d7   :  { %5606 = vrot.lane.b32.xlu1 %v8867_v47, %s7433_s16 }
0x11d9   :  { %5255 = vrot.lane.b32.xlu2 %v8847_v52, %s7427_s7 }
0x11db   :  { %5063 = vadd.xlane.f32.xlu0 %v5062_v42 }
0x11df   :  { %5608 = vrot.lane.b32.xlu1 %v8816_v49, %s7433_s16 }
0x11e1   :  { %6858 = vrot.lane.b32.xlu2 %v8861_v12, %s7434_s29 }
0x11e4   :  { %v4689_v8 = vpop.xlane.xlu2 %4688 }
0x11e7   :  { %5247 = vrot.lane.b32.xlu1 %v8901_v27, %s7427_s7 }
0x11ec   :  { %v10271_v53 = vpop.xlane.xlu2 %4700 }
0x11ef   :  { %5634 = vrot.lane.b32.xlu0 %v8847_v52, %s7432_s2  ;;  %5614 = vrot.lane.b32.xlu1 %v8808_v3, %s7433_s16 }
0x11f3   :  { %v5046_v15 = vpop.xlane.xlu0 %5045 }
0x11f4   :  { %7316 = vrcp.f32 %v5046_v15  ;;  %v5274_v9 = vpop.permute.xlu2 %5273 }
0x11f5   :  { %6467 = vmatpush.xpose.msk.msra.mxu0 %vm187_vm1, %v5274_v9 }
0x11f7   :  { %5632 = vrot.lane.b32.xlu0 %v8920_v37, %s7432_s2  ;;  %5253 = vrot.lane.b32.xlu1 %v8920_v37, %s7427_s7 }
0x11f9   :  { %v4686_v26 = vpop.xlane.xlu1 %4685 }
0x11fa   :  { %v7317_v51 = vpop.eup %7316  ;;  %7318 = vrcp.f32 %v4686_v26 }
0x11fb   :  { %v5049_v11 = vpop.xlane.xlu0 %5048  ;;  %v5074_v46 = vmul.f32 %v7317_v51, %v10172_v43 }
0x11fc   :  { %7320 = vrcp.f32 %v5049_v11  ;;  %v5270_v50 = vpop.permute.xlu2 %5269 }
0x11fd   :  { %6451 = vmatmul.msk.f32.gmra.mxu1 %vm269_vm2, %v5074_v46  ;;  %7322 = vrcp.f32 %v4689_v8 }
0x11ff   :  { %5267 = vrot.lane.b32.xlu0 %v8808_v3, %s7426_s1  ;;  %5620 = vrot.lane.b32.xlu1 %v8802_v32, %s7433_s16 }
0x1200   :  { %v7319_v16 = vpop.eup %7318 }
0x1201   :  { %v4712_v63 = vmul.f32 %v7319_v16, %v10177_v5  ;;  %v5058_v2 = vpop.xlane.xlu1 %5057 }
0x1202   :  { %v7321_v37 = vpop.eup %7320 }
0x1203   :  { %6419 = vmatmul.msk.f32.gmra.mxu3 %vm269_vm2, %v4712_v63  ;;  %v5052_v58 = vpop.xlane.xlu0 %5051  ;;  %v5075_v1 = vmul.f32 %v7321_v37, %v10179_v54  ;;  %v7323_v43 = vpop.eup %7322 }
0x1204   :  { %7324 = vrcp.f32 %v5052_v58  ;;  %v4713_v62 = vmul.f32 %v7323_v43, %v10161_v44 }
0x1205   :  { %6452 = vmatmul.msk.f32.gmra.mxu1 %vm269_vm2, %v5075_v1  ;;  %7326 = vrcp.f32 %v4692_v39 }
0x1207   :  { %5626 = vrot.lane.b32.xlu0 %v8901_v27, %s7432_s2 }
0x1209   :  { %v5061_v27 = vpop.xlane.xlu1 %5060 }
0x120a   :  { %v7325_v20 = vpop.eup %7324 }
0x120b   :  { %6420 = vmatmul.msk.f32.gmra.mxu3 %vm269_vm2, %v4713_v62  ;;  %v5076_v5 = vmul.f32 %v7325_v20, %v10188_v61  ;;  %v7327_v36 = vpop.eup %7326 }
0x120c   :  { %v4714_v54 = vmul.f32 %v7327_v36, %v10139_v14  ;;  %v5629_v14 = vpop.permute.xlu2 %5628 }
0x120d   :  { %6453 = vmatmul.msk.f32.gmra.mxu1 %vm269_vm2, %v5076_v5 }
0x120f   :  { %5261 = vrot.lane.b32.xlu0 %v8816_v49, %s7426_s1 }
0x1213   :  { %6421 = vmatmul.msk.f32.gmra.mxu3 %vm269_vm2, %v4714_v54 }
0x1217   :  { %5259 = vrot.lane.b32.xlu0 %v8867_v47, %s7426_s1 }
0x121f   :  { %5245 = vrot.lane.b32.xlu0 %v8816_v49, %s7427_s7 }
0x1221   :  { %v5637_v44 = vpop.permute.xlu1 %5636 }
0x1222   :  { %6500 = vmatpush.xpose.msk.msra.mxu3 %vm187_vm1, %v5637_v44 }
0x1227   :  { %5612 = vrot.lane.b32.xlu0 %v8855_v23, %s7433_s16 }
0x1229   :  { %v5272_v61 = vpop.permute.xlu1 %5271 }
0x122a   :  { %6468 = vmatpush.xpose.msk.msra.mxu0 %vm187_vm1, %v5272_v61 }
0x122e   :  { %6469 = vmatpush.xpose.msk.msra.mxu0 %vm187_vm1, %v5270_v50 }
0x122f   :  { %5251 = vrot.lane.b32.xlu0 %v8808_v3, %s7427_s7  ;;  %v5264_v3 = vpop.permute.xlu2 %5263 }
0x1234   :  { %v4783_v47 = vpop.f32.mrf.mxu3 }
0x1235   :  { %6426 = vmatmul.msk.f32.vlgmr.msrb.gmra.mxu0 %vm187_vm1, %v4783_v47 }
0x1236   :  { %v5055_v49 = vpop.xlane.xlu0 %5054 }
0x1237   :  { %7328 = vrcp.f32 %v5055_v49  ;;  %5618 = vrot.lane.b32.xlu0 %v8847_v52, %s7433_s16 }
0x1238   :  { %7330 = vrcp.f32 %v5058_v2 }
0x123c   :  { %v4786_v23 = vpop.f32.mrf.mxu3 }
0x123d   :  { %v7329_v6 = vpop.eup %7328  ;;  %6427 = vmatmul.msk.f32.gmra.mxu0 %vm187_vm1, %v4786_v23 }
0x123e   :  { %v4695_v42 = vpop.xlane.xlu0 %4694  ;;  %v5077_v8 = vmul.f32 %v7329_v6, %v10228_v24  ;;  %v7331_v39 = vpop.eup %7330 }
0x123f   :  { %7332 = vrcp.f32 %v4695_v42  ;;  %5257 = vrot.lane.b32.xlu0 %v8802_v32, %s7427_s7  ;;  %v5078_v26 = vmul.f32 %v7331_v39, %v10186_v28  ;;  %v5623_v32 = vpop.permute.xlu2 %5622 }
0x1240   :  { %6454 = vmatmul.msk.f32.gmra.mxu1 %vm269_vm2, %v5077_v8  ;;  %7334 = vrcp.f32 %v5061_v27 }
0x1245   :  { %v7333_v15 = vpop.eup %7332 }
0x1246   :  { %v4698_v9 = vpop.xlane.xlu0 %4697  ;;  %v4715_v52 = vmul.f32 %v7333_v15, %v10234_v17  ;;  %v7335_v24 = vpop.eup %7334 }
0x1247   :  { %7336 = vrcp.f32 %v4698_v9  ;;  %6853 = vrot.lane.b32.xlu0 %v8861_v12, %s7430_s12  ;;  %v5079_v17 = vmul.f32 %v7335_v24, %v10194_v22  ;;  %v10334_v28 = vpop.permute.xlu2 %5243 }
0x1248   :  { %6422 = vmatmul.msk.f32.gmra.mxu3 %vm269_vm2, %v4715_v52  ;;  %6455 = vmatmul.msk.f32.gmra.mxu1 %vm269_vm2, %v5078_v26  ;;  %7338 = vrcp.f32 %v10271_v53 }
0x124d   :  { %v7337_v51 = vpop.eup %7336 }
0x124e   :  { %v5064_v11 = vpop.xlane.xlu0 %5063  ;;  %v4716_v46 = vmul.f32 %v7337_v51, %v10243_v10  ;;  %v7339_v12 = vpop.eup %7338 }
0x124f   :  { %7340 = vrcp.f32 %v5064_v11  ;;  %6863 = vrot.lane.b32.xlu0 %v8963_v21, %s7430_s12  ;;  %v4717_v63 = vmul.f32 %v7339_v12, %v10166_v48  ;;  %v10342_v22 = vpop.permute.xlu2 %5610  ;;  %v5631_v48 = vpop.permute.xlu1 %5630 }
0x1250   :  { %6423 = vmatmul.msk.f32.gmra.mxu3 %vm269_vm2, %v4716_v46  ;;  %6456 = vmatmul.msk.f32.gmra.mxu1 %vm269_vm2, %v5079_v17 }
0x1251   :  { %v5146_v10 = vpop.f32.mrf.mxu1 }
0x1255   :  { %v7341_v16 = vpop.eup %7340 }
0x1256   :  { %v5080_v53 = vmul.f32 %v7341_v16, %v10257_v29 }
0x1257   :  { %6868 = vrot.lane.b32.xlu0 %v8963_v21, %s7434_s29  ;;  %v10346_v58 = vpop.permute.xlu2 %5249  ;;  %v5266_v43 = vpop.permute.xlu1 %5265 }
0x1258   :  { %6424 = vmatmul.msk.f32.gmra.mxu3 %vm269_vm2, %v4717_v63  ;;  %6457 = vmatmul.msk.f32.gmra.mxu1 %vm269_vm2, %v5080_v53 }
0x125f   :  { %v10350_v29 = vpop.permute.xlu2 %5616  ;;  %v5625_v36 = vpop.permute.xlu1 %5624 }
0x1260   :  { %6459 = vmatmul.msk.f32.vlgmr.msrb.gmra.mxu3 %vm187_vm1, %v5146_v10 }
0x1261   :  { %v5635_v37 = vpop.permute.xlu0 %5634 }
0x1262   :  { %6501 = vmatpush.xpose.msk.msra.mxu3 %vm187_vm1, %v5635_v37  ;;  %v3768_v37 = vadd.f32 %v9484_v0, %v10010_v55 }
0x1267   :  { %v10358_v5 = vpop.permute.xlu2 %5255 }
0x1269   :  { %v5633_v1 = vpop.permute.xlu0 %5632 }
0x126a   :  { %6502 = vmatpush.xpose.msk.msra.mxu3 %vm187_vm1, %v5633_v1 }
0x126e   :  { %6503 = vmatpush.xpose.msk.msra.mxu3 %vm187_vm1, %v5631_v48  ;;  %v5607_v48 = vpop.permute.xlu1 %5606 }
0x126f   :  { %v6859_v27 = vpop.permute.xlu2 %6858 }
0x1270   :  { %v6860_v61 = vunpack.i.l.bf16 %v6859_v27 }
0x1271   :  { %v5268_v21 = vpop.permute.xlu0 %5267 }
0x1272   :  { %6470 = vmatpush.xpose.msk.msra.mxu0 %vm187_vm1, %v5268_v21  ;;  %6504 = vmatpush.xpose.msk.msra.mxu3 %vm187_vm1, %v5629_v14  ;;  %v6861_v14 = vunpack.i.h.bf16 %v6859_v27  ;;  %v4146_v21 = vadd.f32 %v10054_v7, %v3768_v37 }
0x1276   :  { %6471 = vmatpush.xpose.msk.msra.mxu0 %vm187_vm1, %v5266_v43 }
0x1279   :  { %v5627_v62 = vpop.permute.xlu0 %5626 }
0x127a   :  { %v5149_v20 = vpop.f32.mrf.mxu1  ;;  %6472 = vmatpush.xpose.msk.msra.mxu0 %vm187_vm1, %v5264_v3  ;;  %6505 = vmatpush.xpose.msk.msra.mxu3 %vm187_vm1, %v5627_v62  ;;  %v4509_v62 = vadd.f32 %v10036_v38, %v4146_v21  ;;  %v3774_v38 = vadd.f32 %v9505_v18, %v10020_v33 }
0x127b   :  { %6460 = vmatmul.msk.f32.gmra.mxu3 %vm187_vm1, %v5149_v20 }
0x127e   :  { %6506 = vmatpush.xpose.msk.msra.mxu3 %vm187_vm1, %v5625_v36 }
0x1281   :  { %v5262_v2 = vpop.permute.xlu0 %5261 }
0x1282   :  { %v5152_v54 = vpop.f32.mrf.mxu1  ;;  %6473 = vmatpush.xpose.msk.msra.mxu0 %vm187_vm1, %v5262_v2  ;;  %6507 = vmatpush.xpose.msk.msra.mxu3 %vm187_vm1, %v5623_v32 }
0x1283   :  { %6461 = vmatmul.msk.f32.gmra.mxu3 %vm187_vm1, %v5152_v54  ;;  %v5609_v54 = vpop.permute.xlu1 %5608 }
0x1286   :  { %v4789_v44 = vpop.f32.mrf.mxu3 }
0x1287   :  { %6428 = vmatmul.msk.f32.gmra.mxu0 %vm187_vm1, %v4789_v44 }
0x1289   :  { %v5260_v50 = vpop.permute.xlu0 %5259 }
0x128a   :  { %v5155_v47 = vpop.f32.mrf.mxu1  ;;  %6474 = vmatpush.xpose.msk.msra.mxu0 %vm187_vm1, %v5260_v50 }
0x128b   :  { %6462 = vmatmul.msk.f32.gmra.mxu3 %vm187_vm1, %v5155_v47  ;;  %v5248_v0 = vpop.permute.xlu1 %5247 }
0x128e   :  { %5863 = vmatpush.msrb.mxu0 %v6860_v61  ;;  %v4792_v49 = vpop.f32.mrf.mxu3  ;;  %v3777_v61 = vadd.f32 %v9520_v60, %v10026_v41 }
0x128f   :  { %6429 = vmatmul.msk.f32.gmra.mxu0 %vm187_vm1, %v4792_v49 }
0x1290   :  { %5864 = vmatpush.msrb.mxu0 %v6861_v14  ;;  %v4149_v18 = vadd.f32 %v10066_v56, %v3777_v61 }
0x1291   :  { %v5246_v6 = vpop.permute.xlu0 %5245 }
0x1293   :  { %v5615_v7 = vpop.permute.xlu1 %5614 }
0x1296   :  { %v4795_v23 = vpop.f32.mrf.mxu3 }
0x1297   :  { %6430 = vmatmul.msk.f32.gmra.mxu0 %vm187_vm1, %v4795_v23 }
0x1299   :  { %v5613_v42 = vpop.permute.xlu0 %5612 }
0x129b   :  { %v5254_v47 = vpop.permute.xlu1 %5253 }
0x12a1   :  { %v5252_v8 = vpop.permute.xlu0 %5251 }
0x12a3   :  { %v5621_v41 = vpop.permute.xlu1 %5620 }
0x12a9   :  { %v10369_v3 = vpop.permute.xlu0 %5618 }
0x12b1   :  { %v10371_v39 = vpop.permute.xlu0 %5257 }
0x12b2   :  { %v4848_v43 = vpop.f32.mrf.mxu0 }
0x12b3   :  { %v4872_v20 = vadd.f32 %v4848_v43, %v4509_v62 }
0x12b9   :  { %v6854_v15 = vpop.permute.xlu0 %6853 }
0x12ba   :  { %v6855_v9 = vunpack.i.l.bf16 %v6854_v15  ;;  %v6856_v52 = vunpack.i.h.bf16 %v6854_v15  ;;  %v10395_v55 = vpop.f32.mrf.mxu0 }
0x12bc   :  { %5500 = vmatpush.msrb.mxu2 %v6855_v9 }
0x12bd   :  { %v5158_v26 = vpop.f32.mrf.mxu1 }
0x12be   :  { %6463 = vmatmul.msk.f32.gmra.mxu3 %vm187_vm1, %v5158_v26  ;;  %5501 = vmatpush.msrb.mxu2 %v6856_v52  ;;  %v10809_v52 = vld [vmem:[#allocation28_spill] sm:$0xff] }
0x12c1   :  { %v6864_v32 = vpop.permute.xlu0 %6863 }
0x12c2   :  { %v6865_v24 = vunpack.i.l.bf16 %v6864_v32  ;;  %v6866_v51 = vunpack.i.h.bf16 %v6864_v32  ;;  %v10810_v32 = vld [vmem:[#allocation15_spill] sm:$0xff] }
0x12c4   :  { %5502 = vmatpush.msrb.mxu2 %v6865_v24 }
0x12c5   :  { %v5161_v11 = vpop.f32.mrf.mxu1 }
0x12c6   :  { %6464 = vmatmul.msk.f32.gmra.mxu3 %vm187_vm1, %v5161_v11  ;;  %5503 = vmatpush.msrb.mxu2 %v6866_v51  ;;  %v10812_v11 = vld [vmem:[#allocation14_spill] sm:$0xff] }
0x12c9   :  { %v6869_v46 = vpop.permute.xlu0 %6868 }
0x12ca   :  { %v6870_v17 = vunpack.i.l.bf16 %v6869_v46  ;;  %v6871_v16 = vunpack.i.h.bf16 %v6869_v46 }
0x12cb   :  { %v4798_v12 = vpop.f32.mrf.mxu3 }
0x12cc   :  { %6431 = vmatmul.msk.f32.gmra.mxu0 %vm187_vm1, %v4798_v12 }
0x12cd   :  { %5865 = vmatpush.msrb.mxu0 %v6870_v17  ;;  %v5164_v63 = vpop.f32.mrf.mxu1  ;;  %v10813_v17 = vld [vmem:[#allocation36_spill] sm:$0xff] }
0x12ce   :  { %6465 = vmatmul.msk.f32.gmra.mxu3 %vm187_vm1, %v5164_v63 }
0x12cf   :  { %5866 = vmatpush.msrb.mxu0 %v6871_v16  ;;  %v10814_v16 = vld [vmem:[#allocation39_spill] sm:$0xff] }
0x12d3   :  { %v4801_v53 = vpop.f32.mrf.mxu3 }
0x12d4   :  { %6432 = vmatmul.msk.f32.gmra.mxu0 %vm187_vm1, %v4801_v53 }
0x12d5   :  { %v5167_v10 = vpop.f32.mrf.mxu1 }
0x12d6   :  { %6466 = vmatmul.msk.f32.gmra.mxu3 %vm187_vm1, %v5167_v10 }
0x12db   :  { %v4804_v1 = vpop.f32.mrf.mxu3 }
0x12dc   :  { %6433 = vmatmul.msk.f32.gmra.mxu0 %vm187_vm1, %v4804_v1 }
0x12de   :  { %6508 = vmatmul.msk.f32.vlgmr.msra.gmra.mxu3 %vm187_vm1, %v5607_v48 }
0x12e3   :  { %v5211_v36 = vpop.f32.mrf.mxu3 }
0x12e4   :  { %v10385_v2 = vadd.f32 %v5211_v36, %v4872_v20  ;;  %6475 = vmatmul.msk.f32.vlgmr.msra.gmra.mxu0 %vm187_vm1, %v10334_v28 }
0x12e6   :  { %6509 = vmatmul.msk.f32.gmra.mxu3 %vm187_vm1, %v5609_v54 }
0x12ec   :  { %6476 = vmatmul.msk.f32.gmra.mxu0 %vm187_vm1, %v5246_v6 }
0x12ee   :  { %6510 = vmatmul.msk.f32.gmra.mxu3 %vm187_vm1, %v10342_v22  ;;  %v4148_v22 = vadd.f32 %v10062_v25, %v3774_v38  ;;  %v4512_v25 = vadd.f32 %v10056_v35, %v4149_v18  ;;  %v3780_v35 = vadd.f32 %v9542_v59, %v10032_v19  ;;  %v10808_v59 = vld [vmem:[#allocation3_spill] sm:$0xff] }
0x12ef   :  { %v3786_v19 = vadd.f32 %v10808_v59, %v10043_v30  ;;  %v10815_v59 = vld [vmem:[#allocation34_spill] sm:$0xff] }
0x12f0   :  { %v4511_v27 = vadd.f32 %v10047_v45, %v4148_v22  ;;  %v4150_v56 = vadd.f32 %v10070_v4, %v3780_v35 }
0x12f1   :  { %v4152_v26 = vadd.f32 %v10809_v52, %v3786_v19  ;;  %v10816_v19 = vld [vmem:[#allocation35_spill] sm:$0xff] }
0x12f2   :  { %v4513_v6 = vadd.f32 %v10060_v31, %v4150_v56 }
0x12f3   :  { %v4515_v24 = vadd.f32 %v10810_v32, %v4152_v26 }
0x12f4   :  { %6477 = vmatmul.msk.f32.gmra.mxu0 %vm187_vm1, %v5248_v0 }
0x12f6   :  { %6511 = vmatmul.msk.f32.gmra.mxu3 %vm187_vm1, %v5613_v42 }
0x12fc   :  { %6478 = vmatmul.msk.f32.gmra.mxu0 %vm187_vm1, %v10346_v58 }
0x12fe   :  { %v10401_v28 = vpop.f32.mrf.mxu3  ;;  %6512 = vmatmul.msk.f32.gmra.mxu3 %vm187_vm1, %v5615_v7 }
0x1304   :  { %v4854_v44 = vpop.f32.mrf.mxu0  ;;  %6479 = vmatmul.msk.f32.gmra.mxu0 %vm187_vm1, %v5252_v8  ;;  %v3783_v8 = vadd.f32 %v9562_v40, %v10038_v57  ;;  %v10811_v57 = vld [vmem:[#allocation4_spill] sm:$0xff] }
0x1305   :  { %v4874_v50 = vadd.f32 %v4854_v44, %v4511_v27  ;;  %v3789_v46 = vadd.f32 %v10812_v11, %v10811_v57 }
0x1306   :  { %v5217_v58 = vpop.f32.mrf.mxu3  ;;  %6513 = vmatmul.msk.f32.gmra.mxu3 %vm187_vm1, %v10350_v29 }
0x1307   :  { %v10412_v33 = vadd.f32 %v5217_v58, %v4874_v50 }
0x130c   :  { %v4857_v14 = vpop.f32.mrf.mxu0  ;;  %6480 = vmatmul.msk.f32.gmra.mxu0 %vm187_vm1, %v5254_v47 }
0x130d   :  { %v4875_v45 = vadd.f32 %v4857_v14, %v4512_v25 }
0x130e   :  { %v5220_v49 = vpop.f32.mrf.mxu3  ;;  %6514 = vmatmul.msk.f32.gmra.mxu3 %vm187_vm1, %v10369_v3  ;;  %v4151_v3 = vadd.f32 %v10074_v13, %v3783_v8 }
0x130f   :  { %v10418_v60 = vadd.f32 %v5220_v49, %v4875_v45 }
0x1310   :  { %v4514_v15 = vadd.f32 %v10064_v34, %v4151_v3  ;;  %v4153_v34 = vadd.f32 %v10813_v17, %v3789_v46 }
0x1312   :  { %v4516_v63 = vadd.f32 %v10814_v16, %v4153_v34 }
0x1314   :  { %6481 = vmatmul.msk.f32.gmra.mxu0 %vm187_vm1, %v10358_v5  ;;  %v4860_v29 = vpop.f32.mrf.mxu0 }
0x1315   :  { %v4876_v23 = vadd.f32 %v4860_v29, %v4513_v6 }
0x1316   :  { %6515 = vmatmul.msk.f32.gmra.mxu3 %vm187_vm1, %v5621_v41 }
0x131c   :  { %6482 = vmatmul.msk.f32.gmra.mxu0 %vm187_vm1, %v10371_v39 }
0x1341   :  { %v5223_v42 = vpop.f32.mrf.mxu3 }
0x1342   :  { %v10431_v5 = vadd.f32 %v5223_v42, %v4876_v23 }
0x1349   :  { %v4863_v39 = vpop.f32.mrf.mxu0  ;;  %v5226_v9 = vpop.f32.mrf.mxu3 }
0x134a   :  { %v4877_v4 = vadd.f32 %v4863_v39, %v4514_v15 }
0x134c   :  { %v10438_v31 = vadd.f32 %v5226_v9, %v4877_v4 }
0x1351   :  { %v4866_v51 = vpop.f32.mrf.mxu0  ;;  %v5229_v40 = vpop.f32.mrf.mxu3 }
0x1352   :  { %v4878_v13 = vadd.f32 %v4866_v51, %v4515_v24 }
0x1354   :  { %v10444_v12 = vadd.f32 %v5229_v40, %v4878_v13 }
0x1359   :  { %v4869_v30 = vpop.f32.mrf.mxu0  ;;  %v5232_v10 = vpop.f32.mrf.mxu3 }
0x135a   :  { %v4879_v53 = vadd.f32 %v4869_v30, %v4516_v63 }
0x135c   :  { %v10447_v37 = vadd.f32 %v5232_v10, %v4879_v53 }
0x1361   :  { %v5324_v48 = vpop.f32.mrf.mxu0  ;;  %v5687_v38 = vpop.f32.mrf.mxu3 }
0x1362   :  { %v5348_v1 = vmul.f32 0.5, %v5324_v48  ;;  %v5711_v34 = vmul.f32 0.5, %v5687_v38 }
0x1364   :  { %v5356_v21 = vsel %vm269_vm2, %v5348_v1, -inf  ;;  %v5719_v10 = vsel %vm269_vm2, %v5711_v34, -inf }
0x1365   :  { %5357 = vmax.xlane.f32.xlu2 %v5356_v21 }
0x1369   :  { %v5327_v43 = vpop.f32.mrf.mxu0  ;;  %v5690_v44 = vpop.f32.mrf.mxu3 }
0x136a   :  { %v10450_v62 = vmul.f32 0.5, %v5327_v43  ;;  %v10460_v18 = vmul.f32 0.5, %v5690_v44 }
0x136c   :  { %v5359_v20 = vsel %vm269_vm2, %v10450_v62, -inf  ;;  %v5722_v45 = vsel %vm269_vm2, %v10460_v18, -inf }
0x136d   :  { %5360 = vmax.xlane.f32.xlu0 %v5359_v20 }
0x1371   :  { %v5330_v36 = vpop.f32.mrf.mxu0  ;;  %v5693_v47 = vpop.f32.mrf.mxu3 }
0x1372   :  { %v5350_v54 = vmul.f32 0.5, %v5330_v36  ;;  %v5713_v41 = vmul.f32 0.5, %v5693_v47 }
0x1374   :  { %v5362_v0 = vsel %vm269_vm2, %v5350_v54, -inf  ;;  %v5725_v6 = vsel %vm269_vm2, %v5713_v41, -inf }
0x1375   :  { %5363 = vmax.xlane.f32.xlu1 %v5362_v0 }
0x1379   :  { %v5333_v7 = vpop.f32.mrf.mxu0  ;;  %v10470_v29 = vpop.f32.mrf.mxu3 }
0x137a   :  { %v5351_v22 = vmul.f32 0.5, %v5333_v7 }
0x137c   :  { %v5365_v27 = vsel %vm269_vm2, %v5351_v22, -inf }
0x137d   :  { %5366 = vmax.xlane.f32.xlu0 %v5365_v27 }
0x1381   :  { %v5336_v61 = vpop.f32.mrf.mxu0  ;;  %v5699_v15 = vpop.f32.mrf.mxu3 }
0x1382   :  { %v10456_v50 = vmul.f32 0.5, %v5336_v61  ;;  %v10479_v39 = vmul.f32 0.5, %v5699_v15 }
0x1384   :  { %v5368_v58 = vsel %vm269_vm2, %v10456_v50, -inf  ;;  %v5731_v9 = vsel %vm269_vm2, %v10479_v39, -inf }
0x1385   :  { %5369 = vmax.xlane.f32.xlu2 %v5368_v58 }
0x1389   :  { %v5339_v25 = vpop.f32.mrf.mxu0  ;;  %v5702_v4 = vpop.f32.mrf.mxu3 }
0x138a   :  { %v10462_v14 = vmul.f32 0.5, %v5339_v25  ;;  %v10489_v26 = vmul.f32 0.5, %v5702_v4 }
0x138c   :  { %v5371_v49 = vsel %vm269_vm2, %v10462_v14, -inf  ;;  %v5734_v32 = vsel %vm269_vm2, %v10489_v26, -inf }
0x138d   :  { %5723 = vmax.xlane.f32.xlu2 %v5722_v45  ;;  %5372 = vmax.xlane.f32.xlu1 %v5371_v49 }
0x1391   :  { %v5342_v35 = vpop.f32.mrf.mxu0  ;;  %v10487_v52 = vpop.f32.mrf.mxu3 }
0x1392   :  { %v10468_v56 = vmul.f32 0.5, %v5342_v35 }
0x1394   :  { %v5374_v23 = vsel %vm269_vm2, %v10468_v56, -inf }
0x1395   :  { %5726 = vmax.xlane.f32.xlu2 %v5725_v6  ;;  %5375 = vmax.xlane.f32.xlu1 %v5374_v23 }
0x1399   :  { %v5345_v42 = vpop.f32.mrf.mxu0  ;;  %v5708_v24 = vpop.f32.mrf.mxu3 }
0x139a   :  { %v10475_v8 = vmul.f32 0.5, %v5345_v42  ;;  %v10493_v40 = vmul.f32 0.5, %v5708_v24 }
0x139c   :  { %v5377_v3 = vsel %vm269_vm2, %v10475_v8, -inf  ;;  %v5740_v46 = vsel %vm269_vm2, %v10493_v40, -inf }
0x139d   :  { %5378 = vmax.xlane.f32.xlu0 %v5377_v3 }
0x13a5   :  { %5732 = vmax.xlane.f32.xlu0 %v5731_v9 }
0x13ad   :  { %6873 = vrot.lane.b32.xlu2 %v10815_v59, %s7430_s12 }
0x13b9   :  { %6888 = vrot.lane.b32.xlu0 %v10816_v19, %s7434_s29 }
0x13d6   :  { %5735 = vmax.xlane.f32.xlu2 %v5734_v32  ;;  %v10530_v32 = vmul.f32 0.5, %v10487_v52 }
0x13d8   :  { %v5358_v51 = vpop.xlane.xlu2 %5357 }
0x13d9   :  { %v5380_v57 = vsub.f32 %v5348_v1, %v5358_v51  ;;  %v5737_v51 = vsel %vm269_vm2, %v10530_v32, -inf }
0x13db   :  { %v5388_v11 = vmul.f32 1.442695, %v5380_v57 }
0x13dd   :  { %7342 = vpow2.f32 %v5388_v11 }
0x13de   :  { %5741 = vmax.xlane.f32.xlu2 %v5740_v46 }
0x13e0   :  { %v5361_v16 = vpop.xlane.xlu0 %5360 }
0x13e1   :  { %v5381_v24 = vsub.f32 %v10450_v62, %v5361_v16 }
0x13e3   :  { %v10497_v13 = vpop.eup %7342 }
0x13e4   :  { %v5404_v17 = vsel %vm269_vm2, %v10497_v13, 0.0 }
0x13e5   :  { %5405 = vadd.xlane.f32.xlu1 %v5404_v17 }
0x13e8   :  { %v5364_v63 = vpop.xlane.xlu1 %5363 }
0x13e9   :  { %v5382_v30 = vsub.f32 %v5350_v54, %v5364_v63 }
0x13eb   :  { %v5392_v53 = vmul.f32 1.442695, %v5382_v30 }
0x13ed   :  { %7344 = vpow2.f32 %v5392_v53  ;;  %5720 = vmax.xlane.f32.xlu1 %v5719_v10 }
0x13f0   :  { %v5367_v48 = vpop.xlane.xlu0 %5366 }
0x13f1   :  { %v5383_v1 = vsub.f32 %v5351_v22, %v5367_v48 }
0x13f3   :  { %v10502_v21 = vpop.eup %7344  ;;  %v5394_v43 = vmul.f32 1.442695, %v5383_v1 }
0x13f4   :  { %v5410_v20 = vsel %vm269_vm2, %v10502_v21, 0.0 }
0x13f5   :  { %7346 = vpow2.f32 %v5394_v43  ;;  %5411 = vadd.xlane.f32.xlu2 %v5410_v20 }
0x13f8   :  { %v10506_v36 = vpop.xlane.xlu2 %5369 }
0x13fb   :  { %v10508_v0 = vpop.eup %7346 }
0x13fc   :  { %v5413_v54 = vsel %vm269_vm2, %v10508_v0, 0.0 }
0x13fd   :  { %5414 = vadd.xlane.f32.xlu0 %v5413_v54 }
0x1400   :  { %v5724_v38 = vpop.xlane.xlu2 %5723  ;;  %v5373_v23 = vpop.xlane.xlu1 %5372 }
0x1401   :  { %v5744_v7 = vsub.f32 %v10460_v18, %v5724_v38 }
0x1403   :  { %v5753_v22 = vmul.f32 1.442695, %v5744_v7 }
0x1405   :  { %7348 = vpow2.f32 %v5753_v22  ;;  %v5384_v22 = vsub.f32 %v10456_v50, %v10506_v36 }
0x1406   :  { %6878 = vrot.lane.b32.xlu1 %v10815_v59, %s7434_s29 }
0x1408   :  { %v5727_v27 = vpop.xlane.xlu2 %5726  ;;  %v5376_v42 = vpop.xlane.xlu1 %5375 }
0x1409   :  { %v5745_v44 = vsub.f32 %v5713_v41, %v5727_v27  ;;  %v5714_v41 = vmul.f32 0.5, %v10470_v29 }
0x140b   :  { %v10515_v61 = vpop.eup %7348  ;;  %v5755_v58 = vmul.f32 1.442695, %v5745_v44  ;;  %v5728_v6 = vsel %vm269_vm2, %v5714_v41, -inf  ;;  %v5396_v44 = vmul.f32 1.442695, %v5384_v22 }
0x140c   :  { %v5770_v47 = vsel %vm269_vm2, %v10515_v61, 0.0 }
0x140d   :  { %7350 = vpow2.f32 %v5755_v58  ;;  %5771 = vadd.xlane.f32.xlu2 %v5770_v47  ;;  %v5385_v58 = vsub.f32 %v10462_v14, %v5373_v23 }
0x1410   :  { %v6874_v25 = vpop.permute.xlu2 %6873  ;;  %v10527_v9 = vpop.xlane.xlu0 %5378 }
0x1411   :  { %v6875_v45 = vunpack.i.l.bf16 %v6874_v25  ;;  %v6876_v18 = vunpack.i.h.bf16 %v6874_v25 }
0x1413   :  { %v10519_v49 = vpop.eup %7350  ;;  %5504 = vmatpush.msrb.mxu2 %v6875_v45  ;;  %v5398_v45 = vmul.f32 1.442695, %v5385_v58 }
0x1414   :  { %v5773_v35 = vsel %vm269_vm2, %v10519_v49, 0.0 }
0x1415   :  { %5774 = vadd.xlane.f32.xlu2 %v5773_v35  ;;  %5505 = vmatpush.msrb.mxu2 %v6876_v18  ;;  %v5386_v35 = vsub.f32 %v10468_v56, %v5376_v42 }
0x1417   :  { %v5400_v36 = vmul.f32 1.442695, %v5386_v35 }
0x1418   :  { %v5733_v29 = vpop.xlane.xlu0 %5732 }
0x1419   :  { %v5747_v46 = vsub.f32 %v10479_v39, %v5733_v29 }
0x141b   :  { %v5759_v62 = vmul.f32 1.442695, %v5747_v46 }
0x1430   :  { %5729 = vmax.xlane.f32.xlu1 %v5728_v6 }
0x1449   :  { %6883 = vrot.lane.b32.xlu1 %v10816_v19, %s7430_s12  ;;  %v5390_v19 = vmul.f32 1.442695, %v5381_v24  ;;  %v5736_v30 = vpop.xlane.xlu2 %5735 }
0x144a   :  { %v5748_v48 = vsub.f32 %v10489_v26, %v5736_v30 }
0x144c   :  { %v5761_v1 = vmul.f32 1.442695, %v5748_v48 }
0x1458   :  { %v5406_v3 = vpop.xlane.xlu1 %5405 }
0x1460   :  { %v5721_v15 = vpop.xlane.xlu1 %5720 }
0x1461   :  { %v5743_v59 = vsub.f32 %v5711_v34, %v5721_v15  ;;  %v6889_v34 = vpop.permute.xlu0 %6888  ;;  %v5387_v15 = vsub.f32 %v10475_v8, %v10527_v9 }
0x1462   :  { %v6890_v16 = vunpack.i.l.bf16 %v6889_v34  ;;  %v6891_v10 = vunpack.i.h.bf16 %v6889_v34 }
0x1463   :  { %v5751_v4 = vmul.f32 1.442695, %v5743_v59  ;;  %v5402_v42 = vmul.f32 1.442695, %v5387_v15 }
0x1465   :  { %7352 = vpow2.f32 %v5751_v4 }
0x1466   :  { %7354 = vpow2.f32 %v5390_v19 }
0x1467   :  { %7356 = vpow2.f32 %v5759_v62 }
0x1468   :  { %7358 = vpow2.f32 %v5761_v1 }
0x146b   :  { %v10535_v57 = vpop.eup %7352 }
0x146c   :  { %v5767_v52 = vsel %vm269_vm2, %v10535_v57, 0.0  ;;  %v10540_v53 = vpop.eup %7354 }
0x146d   :  { %v5407_v39 = vsel %vm269_vm2, %v10540_v53, 0.0  ;;  %v10545_v43 = vpop.eup %7356 }
0x146e   :  { %v5779_v20 = vsel %vm269_vm2, %v10545_v43, 0.0  ;;  %v10549_v54 = vpop.eup %7358 }
0x146f   :  { %v5782_v38 = vsel %vm269_vm2, %v10549_v54, 0.0 }
0x1470   :  { %v5415_v22 = vpop.xlane.xlu0 %5414 }
0x1473   :  { %5738 = vmax.xlane.f32.xlu1 %v5737_v51  ;;  %v5742_v51 = vpop.xlane.xlu2 %5741 }
0x1478   :  { %v6879_v11 = vpop.permute.xlu1 %6878 }
0x1479   :  { %v6880_v17 = vunpack.i.l.bf16 %v6879_v11  ;;  %v6881_v63 = vunpack.i.h.bf16 %v6879_v11 }
0x147b   :  { %5768 = vadd.xlane.f32.xlu1 %v5767_v52  ;;  %5867 = vmatpush.msrb.mxu0 %v6880_v17  ;;  %v5412_v46 = vpop.xlane.xlu2 %5411  ;;  %v5750_v17 = vsub.f32 %v10493_v40, %v5742_v51 }
0x147d   :  { %5868 = vmatpush.msrb.mxu0 %v6881_v63  ;;  %v5765_v52 = vmul.f32 1.442695, %v5750_v17 }
0x147f   :  { %5869 = vmatpush.msrb.mxu0 %v6890_v16 }
0x1481   :  { %5870 = vmatpush.msrb.mxu0 %v6891_v10 }
0x1483   :  { %5408 = vadd.xlane.f32.xlu1 %v5407_v39  ;;  %v5772_v62 = vpop.xlane.xlu2 %5771 }
0x148b   :  { %5780 = vadd.xlane.f32.xlu1 %v5779_v20  ;;  %v5775_v40 = vpop.xlane.xlu2 %5774 }
0x1493   :  { %5783 = vadd.xlane.f32.xlu1 %v5782_v38 }
0x14a3   :  { %v5730_v26 = vpop.xlane.xlu1 %5729 }
0x14a4   :  { %v5746_v7 = vsub.f32 %v5714_v41, %v5730_v26 }
0x14a6   :  { %v5757_v27 = vmul.f32 1.442695, %v5746_v7 }
0x14a8   :  { %7360 = vpow2.f32 %v5757_v27 }
0x14a9   :  { %7362 = vpow2.f32 %v5396_v44 }
0x14aa   :  { %7364 = vpow2.f32 %v5398_v45 }
0x14ab   :  { %7366 = vrcp.f32 %v5406_v3  ;;  %v10817_v3 = vld [vmem:[#allocation33_spill] sm:$0xff] }
0x14ac   :  { %7368 = vpow2.f32 %v5400_v36  ;;  %v10818_v24 = vrot.slane %v10817_v3, 4 }
0x14ad   :  { %7370 = vpow2.f32 %v5402_v42 }
0x14ae   :  { %v10556_v47 = vpop.eup %7360 }
0x14af   :  { %v5776_v25 = vsel %vm269_vm2, %v10556_v47, 0.0  ;;  %v10560_v18 = vpop.eup %7362 }
0x14b0   :  { %5777 = vadd.xlane.f32.xlu2 %v5776_v25  ;;  %v5416_v50 = vsel %vm269_vm2, %v10560_v18, 0.0  ;;  %v10565_v14 = vpop.eup %7364 }
0x14b1   :  { %v7367_v6 = vpop.eup %7366  ;;  %v5419_v56 = vsel %vm269_vm2, %v10565_v14, 0.0 }
0x14b2   :  { %v5436_v4 = vmul.f32 %v7367_v6, %v10497_v13  ;;  %v10576_v29 = vpop.eup %7368 }
0x14b3   :  { %v5422_v8 = vsel %vm269_vm2, %v10576_v29, 0.0  ;;  %v10580_v13 = vpop.eup %7370 }
0x14b4   :  { %v5425_v9 = vsel %vm269_vm2, %v10580_v13, 0.0 }
0x14b8   :  { %5417 = vadd.xlane.f32.xlu2 %v5416_v50 }
0x14bb   :  { %v6884_v41 = vpop.permute.xlu1 %6883 }
0x14bc   :  { %v6885_v23 = vunpack.i.l.bf16 %v6884_v41  ;;  %v6886_v59 = vunpack.i.h.bf16 %v6884_v41 }
0x14be   :  { %5506 = vmatpush.msrb.mxu2 %v6885_v23 }
0x14c0   :  { %5420 = vadd.xlane.f32.xlu2 %v5419_v56  ;;  %5507 = vmatpush.msrb.mxu2 %v6886_v59 }
0x14c1   :  { %6483 = vmatmul.msk.f32.vlgmr.msrb.gmra.mxu2 %vm269_vm2, %v5436_v4 }
0x14c2   :  { %6524 = vmatpush.msk.msra.mxu2 %vm763_vm3, %v10818_v24 }
0x14c8   :  { %5423 = vadd.xlane.f32.xlu2 %v5422_v8 }
0x14d0   :  { %5426 = vadd.xlane.f32.xlu2 %v5425_v9 }
0x14e6   :  { %v5739_v19 = vpop.xlane.xlu1 %5738 }
0x14e7   :  { %v5749_v11 = vsub.f32 %v10530_v32, %v5739_v19 }
0x14e9   :  { %v5763_v34 = vmul.f32 1.442695, %v5749_v11 }
0x14eb   :  { %7372 = vpow2.f32 %v5763_v34 }
0x14ee   :  { %v5769_v63 = vpop.xlane.xlu1 %5768 }
0x14ef   :  { %7374 = vrcp.f32 %v5769_v63 }
0x14f0   :  { %7376 = vpow2.f32 %v5765_v52 }
0x14f1   :  { %v10586_v16 = vpop.eup %7372  ;;  %7378 = vrcp.f32 %v5772_v62 }
0x14f2   :  { %v5785_v30 = vsel %vm269_vm2, %v10586_v16, 0.0 }
0x14f3   :  { %5786 = vadd.xlane.f32.xlu1 %v5785_v30 }
0x14f5   :  { %v7375_v10 = vpop.eup %7374 }
0x14f6   :  { %v5799_v32 = vmul.f32 %v7375_v10, %v10535_v57  ;;  %v5409_v48 = vpop.xlane.xlu1 %5408  ;;  %v10591_v39 = vpop.eup %7376 }
0x14f7   :  { %7380 = vrcp.f32 %v5409_v48  ;;  %v5788_v1 = vsel %vm269_vm2, %v10591_v39, 0.0  ;;  %v7379_v20 = vpop.eup %7378 }
0x14f8   :  { %6516 = vmatmul.msk.f32.vlgmr.msrb.gmra.mxu0 %vm269_vm2, %v5799_v32  ;;  %7382 = vrcp.f32 %v5412_v46  ;;  %v5800_v7 = vmul.f32 %v7379_v20, %v10515_v61  ;;  %v10819_v20 = vld [vmem:[#allocation27_spill] sm:$0xff] }
0x14f9   :  { %7384 = vrcp.f32 %v5775_v40 }
0x14fa   :  { %7386 = vrcp.f32 %v5415_v22 }
0x14fb   :  { %5789 = vadd.xlane.f32.xlu1 %v5788_v1 }
0x14fd   :  { %v7381_v38 = vpop.eup %7380 }
0x14fe   :  { %v5437_v26 = vmul.f32 %v7381_v38, %v10540_v53  ;;  %v7383_v57 = vpop.eup %7382  ;;  %v5781_v45 = vpop.xlane.xlu1 %5780  ;;  %v10820_v38 = vld [vmem:[#allocation48_spill] sm:$0xff] }
0x14ff   :  { %v7385_v27 = vpop.eup %7384  ;;  %v5438_v44 = vmul.f32 %v7383_v57, %v10502_v21 }
0x1500   :  { %6484 = vmatmul.msk.f32.gmra.mxu2 %vm269_vm2, %v5437_v26  ;;  %6517 = vmatmul.msk.f32.gmra.mxu0 %vm269_vm2, %v5800_v7  ;;  %v5801_v58 = vmul.f32 %v7385_v27, %v10519_v49  ;;  %v7387_v25 = vpop.eup %7386  ;;  %v3771_v26 = vadd.f32 %v10820_v38, %v10819_v20  ;;  %v10821_v7 = vld [vmem:[#allocation21_spill] sm:$0xff] }
0x1501   :  { %v5439_v53 = vmul.f32 %v7387_v25, %v10508_v0 }
0x1502   :  { %v4147_v57 = vadd.f32 %v10821_v7, %v3771_v26 }
0x1506   :  { %v5784_v21 = vpop.xlane.xlu1 %5783 }
0x1508   :  { %6485 = vmatmul.msk.f32.gmra.mxu2 %vm269_vm2, %v5438_v44  ;;  %6518 = vmatmul.msk.f32.gmra.mxu0 %vm269_vm2, %v5801_v58  ;;  %v10822_v58 = vld [vmem:[#allocation9_spill] sm:$0xff] }
0x1509   :  { %v4510_v25 = vadd.f32 %v10822_v58, %v4147_v57 }
0x1510   :  { %6486 = vmatmul.msk.f32.gmra.mxu2 %vm269_vm2, %v5439_v53  ;;  %v7411_v53 = vld [vmem:[%s10692_s4] ss:$0 sm:$0xff] }
0x1523   :  { %v5778_v61 = vpop.xlane.xlu2 %5777 }
0x1524   :  { %7388 = vrcp.f32 %v5778_v61 }
0x1525   :  { %7390 = vrcp.f32 %v5781_v45  ;;  %v4873_v45 = vadd.f32 %v10395_v55, %v4510_v25 }
0x152a   :  { %v7389_v35 = vpop.eup %7388 }
0x152b   :  { %v5418_v50 = vpop.xlane.xlu2 %5417  ;;  %v5802_v36 = vmul.f32 %v7389_v35, %v10556_v47  ;;  %v7391_v49 = vpop.eup %7390  ;;  %v5236_v35 = vadd.f32 %v10401_v28, %v4873_v45 }
0x152c   :  { %7392 = vrcp.f32 %v5418_v50  ;;  %v5803_v23 = vmul.f32 %v7391_v49, %v10545_v43 }
0x152d   :  { %6519 = vmatmul.msk.f32.gmra.mxu0 %vm269_vm2, %v5802_v36  ;;  %7394 = vrcp.f32 %v5784_v21 }
0x1532   :  { %v7393_v41 = vpop.eup %7392 }
0x1533   :  { %v5421_v6 = vpop.xlane.xlu2 %5420  ;;  %v5440_v0 = vmul.f32 %v7393_v41, %v10560_v18  ;;  %v7395_v15 = vpop.eup %7394 }
0x1534   :  { %7396 = vrcp.f32 %v5421_v6  ;;  %v5804_v56 = vmul.f32 %v7395_v15, %v10549_v54 }
0x1535   :  { %6487 = vmatmul.msk.f32.gmra.mxu2 %vm269_vm2, %v5440_v0  ;;  %6520 = vmatmul.msk.f32.gmra.mxu0 %vm269_vm2, %v5803_v23 }
0x153a   :  { %v7397_v59 = vpop.eup %7396 }
0x153b   :  { %v5424_v47 = vpop.xlane.xlu2 %5423  ;;  %v5441_v4 = vmul.f32 %v7397_v59, %v10565_v14 }
0x153c   :  { %7398 = vrcp.f32 %v5424_v47 }
0x153d   :  { %6488 = vmatmul.msk.f32.gmra.mxu2 %vm269_vm2, %v5441_v4  ;;  %6521 = vmatmul.msk.f32.gmra.mxu0 %vm269_vm2, %v5804_v56 }
0x1542   :  { %v7399_v18 = vpop.eup %7398 }
0x1543   :  { %v5427_v42 = vpop.xlane.xlu2 %5426  ;;  %v5442_v43 = vmul.f32 %v7399_v18, %v10576_v29 }
0x1544   :  { %7400 = vrcp.f32 %v5427_v42  ;;  %v5509_v3 = vpop.f32.mrf.mxu2 }
0x1545   :  { %6489 = vmatmul.msk.f32.gmra.mxu2 %vm269_vm2, %v5442_v43  ;;  %6492 = vmatmul.msk.f32.vlgmr.msra.gmra.mxu1 %vm187_vm1, %v5509_v3 }
0x154a   :  { %v7401_v24 = vpop.eup %7400 }
0x154b   :  { %v5443_v14 = vmul.f32 %v7401_v24, %v10580_v13 }
0x154d   :  { %6490 = vmatmul.msk.f32.gmra.mxu2 %vm269_vm2, %v5443_v14 }
0x1566   :  { %v5787_v54 = vpop.xlane.xlu1 %5786 }
0x1567   :  { %7402 = vrcp.f32 %v5787_v54 }
0x156d   :  { %v7403_v8 = vpop.eup %7402 }
0x156e   :  { %v5790_v9 = vpop.xlane.xlu1 %5789  ;;  %v5805_v51 = vmul.f32 %v7403_v8, %v10586_v16 }
0x156f   :  { %7404 = vrcp.f32 %v5790_v9 }
0x1570   :  { %6522 = vmatmul.msk.f32.gmra.mxu0 %vm269_vm2, %v5805_v51 }
0x1575   :  { %v7405_v29 = vpop.eup %7404  ;;  %v5872_v19 = vpop.f32.mrf.mxu0 }
0x1576   :  { %v5806_v11 = vmul.f32 %v7405_v29, %v10591_v39  ;;  %6525 = vmatmul.msk.f32.vlgmr.msra.gmra.mxu2 %vm187_vm1, %v5872_v19 }
0x1578   :  { %6523 = vmatmul.msk.f32.gmra.mxu0 %vm269_vm2, %v5806_v11 }
0x157d   :  { %v5875_v13 = vpop.f32.mrf.mxu0 }
0x157e   :  { %6526 = vmatmul.msk.f32.gmra.mxu2 %vm187_vm1, %v5875_v13 }
0x1583   :  { %v5512_v46 = vpop.f32.mrf.mxu2 }
0x1584   :  { %6493 = vmatmul.msk.f32.gmra.mxu1 %vm187_vm1, %v5512_v46 }
0x1585   :  { %v5878_v17 = vpop.f32.mrf.mxu0 }
0x1586   :  { %6527 = vmatmul.msk.f32.gmra.mxu2 %vm187_vm1, %v5878_v17 }
0x158b   :  { %v5515_v34 = vpop.f32.mrf.mxu2 }
0x158c   :  { %6494 = vmatmul.msk.f32.gmra.mxu1 %vm187_vm1, %v5515_v34 }
0x1593   :  { %v5518_v52 = vpop.f32.mrf.mxu2 }
0x1594   :  { %6495 = vmatmul.msk.f32.gmra.mxu1 %vm187_vm1, %v5518_v52 }
0x15aa   :  { %v5881_v63 = vpop.f32.mrf.mxu0 }
0x15ab   :  { %6528 = vmatmul.msk.f32.gmra.mxu2 %vm187_vm1, %v5881_v63 }
0x15b2   :  { %v5884_v62 = vpop.f32.mrf.mxu0 }
0x15b3   :  { %6529 = vmatmul.msk.f32.gmra.mxu2 %vm187_vm1, %v5884_v62 }
0x15b8   :  { %v5521_v16 = vpop.f32.mrf.mxu2 }
0x15b9   :  { %6496 = vmatmul.msk.f32.gmra.mxu1 %vm187_vm1, %v5521_v16 }
0x15ba   :  { %v5887_v30 = vpop.f32.mrf.mxu0 }
0x15bb   :  { %6530 = vmatmul.msk.f32.gmra.mxu2 %vm187_vm1, %v5887_v30 }
0x15c0   :  { %v5524_v10 = vpop.f32.mrf.mxu2 }
0x15c1   :  { %6497 = vmatmul.msk.f32.gmra.mxu1 %vm187_vm1, %v5524_v10 }
0x15c2   :  { %v5574_v40 = vpop.f32.mrf.mxu1 }
0x15c3   :  { %v5598_v22 = vadd.f32 %v5574_v40, %v10385_v2 }
0x15c8   :  { %v5527_v32 = vpop.f32.mrf.mxu2 }
0x15c9   :  { %6498 = vmatmul.msk.f32.gmra.mxu1 %vm187_vm1, %v5527_v32 }
0x15d0   :  { %v5530_v48 = vpop.f32.mrf.mxu2 }
0x15d1   :  { %6499 = vmatmul.msk.f32.gmra.mxu1 %vm187_vm1, %v5530_v48 }
0x15ed   :  { %v5890_v39 = vpop.f32.mrf.mxu0 }
0x15ee   :  { %6531 = vmatmul.msk.f32.gmra.mxu2 %vm187_vm1, %v5890_v39 }
0x15f5   :  { %v5893_v1 = vpop.f32.mrf.mxu0 }
0x15f6   :  { %6532 = vmatmul.msk.f32.gmra.mxu2 %vm187_vm1, %v5893_v1 }
0x15f9   :  { %v5937_v27 = vpop.f32.mrf.mxu2 }
0x15fa   :  { %v5961_v44 = vadd.f32 %v5937_v27, %v5598_v22 }
0x15fc   :  { %v5969_v61 = vadd.f32 %v7411_v53, %v5961_v44 }
0x15fe   :  { %5977 = vst.msk [vmem:[%s10693_s5 + $0x40] sm:$0xff] %vm44_vm0, %v5969_v61 }
0x1601   :  { %v5577_v50 = vpop.f32.mrf.mxu1  ;;  %v5940_v2 = vpop.f32.mrf.mxu2 }
0x1602   :  { %v5599_v36 = vadd.f32 %v5577_v50, %v5236_v35 }
0x1604   :  { %v5962_v21 = vadd.f32 %v5940_v2, %v5599_v36 }
0x1606   :  { %v5970_v49 = vadd.f32 %v7411_v53, %v5962_v21 }
0x1608   :  { %5978 = vst.msk [vmem:[%s10693_s5 + $0x48] sm:$0xff] %vm44_vm0, %v5970_v49 }
0x1609   :  { %v5580_v41 = vpop.f32.mrf.mxu1  ;;  %v5943_v6 = vpop.f32.mrf.mxu2 }
0x160a   :  { %v5600_v55 = vadd.f32 %v5580_v41, %v10412_v33 }
0x160c   :  { %v5963_v0 = vadd.f32 %v5943_v6, %v5600_v55 }
0x160e   :  { %v5971_v23 = vadd.f32 %v7411_v53, %v5963_v0 }
0x1610   :  { %5979 = vst.msk [vmem:[%s10693_s5 + $0x50] sm:$0xff] %vm44_vm0, %v5971_v23 }
0x1611   :  { %v5583_v28 = vpop.f32.mrf.mxu1 }
0x1612   :  { %v5601_v15 = vadd.f32 %v5583_v28, %v10418_v60 }
0x162e   :  { %v5946_v59 = vpop.f32.mrf.mxu2 }
0x162f   :  { %v5964_v47 = vadd.f32 %v5946_v59, %v5601_v15 }
0x1631   :  { %v5972_v4 = vadd.f32 %v7411_v53, %v5964_v47 }
0x1633   :  { %5980 = vst.msk [vmem:[%s10693_s5 + $0x58] sm:$0xff] %vm44_vm0, %v5972_v4 }
0x1636   :  { %v5586_v33 = vpop.f32.mrf.mxu1  ;;  %v5949_v56 = vpop.f32.mrf.mxu2 }
0x1637   :  { %v5602_v18 = vadd.f32 %v5586_v33, %v10431_v5 }
0x1639   :  { %v5965_v42 = vadd.f32 %v5949_v56, %v5602_v18 }
0x163b   :  { %v5973_v43 = vadd.f32 %v7411_v53, %v5965_v42 }
0x163d   :  { %5981 = vst.msk [vmem:[%s10693_s5 + $0x60] sm:$0xff] %vm44_vm0, %v5973_v43 }
0x163e   :  { %v5589_v60 = vpop.f32.mrf.mxu1  ;;  %v5952_v24 = vpop.f32.mrf.mxu2 }
0x163f   :  { %v5603_v3 = vadd.f32 %v5589_v60, %v10438_v31 }
0x1641   :  { %v5966_v14 = vadd.f32 %v5952_v24, %v5603_v3 }
0x1643   :  { %v5974_v54 = vadd.f32 %v7411_v53, %v5966_v14 }
0x1645   :  { %5982 = vst.msk [vmem:[%s10693_s5 + $0x68] sm:$0xff] %vm44_vm0, %v5974_v54 }
0x1646   :  { %v5592_v8 = vpop.f32.mrf.mxu1 }
0x1647   :  { %v5604_v5 = vadd.f32 %v5592_v8, %v10444_v12 }
0x164e   :  { %v5595_v19 = vpop.f32.mrf.mxu1 }
0x164f   :  { %v5605_v31 = vadd.f32 %v5595_v19, %v10447_v37 }
0x1671   :  { %v5955_v9 = vpop.f32.mrf.mxu2 }
0x1672   :  { %v5967_v51 = vadd.f32 %v5955_v9, %v5604_v5 }
0x1674   :  { %v5975_v29 = vadd.f32 %v7411_v53, %v5967_v51 }
0x1676   :  { %5983 = vst.msk [vmem:[%s10693_s5 + $0x70] sm:$0xff] %vm44_vm0, %v5975_v29 }
0x1679   :  { %v5958_v11 = vpop.f32.mrf.mxu2 }
0x167a   :  { %v5968_v13 = vadd.f32 %v5958_v11, %v5605_v31 }
0x167c   :  { %v5976_v46 = vadd.f32 %v7411_v53, %v5968_v13 }
0x167e   :  { %5984 = vst.msk [vmem:[%s10693_s5 + $0x78] sm:$0xff] %vm44_vm0, %v5976_v46 }

</bundles_post_ra>
